<compile_context>
chip_gen: v7x
topology: tpu7x:2x2x1
jax: 0.10.0
libtpu: 0.0.40
codegen_flags: <defaults>
</compile_context>

<pallas_src>
import jax
import jax.numpy as jnp
from jax.experimental import pallas as pl
from jax.experimental.pallas import tpu as pltpu

BN_EPS = 1e-5
MATMUL_DTYPE = jnp.bfloat16   # set to jnp.float32 for bit-closer f32-reference numerics

_VMEM = pl.BlockSpec(memory_space=pltpu.MemorySpace.VMEM)


# ------------------------------- fused kernel -------------------------------- #

def event_encoder_kernel(x_ref, wdw_ref, g1_ref, b1_ref,
                         w2_ref, g2_ref, b2_ref,
                         wmlp_ref, gmlp_ref, bmlp_ref,
                         whd_ref, bhd_ref, eps_ref,
                         z_ref, mu_ref, lv_ref,
                         pad_ref):
    """Entire EventEncoder forward.

    x_ref    : (N, H, W, C)     un-padded input, NHWC, f32
    wdw_ref  : (9, C)           depthwise taps, tap index t = dh*3 + dw
    g1/b1    : (1, C)           conv1 BN gamma/beta
    w2_ref   : (9, hidden, C)   conv2 weights per tap (out, in), bf16
    g2/b2    : (hidden, 1)      conv2 BN gamma/beta
    wmlp_ref : (L, hidden, hidden) MLP weights (out, in), bf16
    gmlp/bmlp: (L, hidden, 1)   MLP BN gamma/beta
    whd_ref  : (2C, hidden)     fused [mu; logvar] head weights, bf16
    bhd_ref  : (2C, 1)          fused head biases
    eps_ref  : (C, M)           N(0,1) noise, transposed layout
    z/mu/lv  : (C, M)           outputs, transposed layout (M = N*H*W lanes)
    pad_ref  : (N, H+2, W+2, C) VMEM scratch, reused: padded x, then padded h1
    """
    N, H, W, C = x_ref.shape
    M = N * H * W
    hidden = w2_ref.shape[1]
    n_layers = wmlp_ref.shape[0]
    inv_m = jnp.float32(1.0 / M)

    # Zero-pad the input into the shared scratch.  The 1-pixel zero border is
    # written once and remains valid when the interior is later overwritten
    # with h1 for conv2's shifted-tap reads.
    pad_ref[...] = jnp.zeros_like(pad_ref)
    pad_ref[:, 1:1 + H, 1:1 + W, :] = x_ref[...]

    # ---- Stage 1: depthwise 3x3 conv + BN(batch stats, one pass) + ReLU ------
    acc1 = jnp.zeros((N, H, W, C), jnp.float32)
    for dh in range(3):
        for dw in range(3):
            t = dh * 3 + dw
            tap = pad_ref[:, dh:dh + H, dw:dw + W, :]
            acc1 = acc1 + tap * wdw_ref[t:t + 1, :]        # (N,H,W,C)*(1,C)
    a1 = acc1.reshape(M, C)                                # free leading-dim collapse
    s1 = jnp.sum(a1, axis=0, keepdims=True)                # (1, C)
    ss1 = jnp.sum(a1 * a1, axis=0, keepdims=True)          # (1, C)
    mean1 = s1 * inv_m
    var1 = ss1 * inv_m - mean1 * mean1                     # biased variance
    scale1 = g1_ref[...] * jax.lax.rsqrt(var1 + BN_EPS)
    shift1 = b1_ref[...] - mean1 * scale1
    h1 = jnp.maximum(acc1 * scale1 + shift1, 0.0)          # (N, H, W, C)

    # Reuse the same padded scratch for conv2: overwrite interior with h1,
    # border is still zero from the initial fill.
    pad_ref[:, 1:1 + H, 1:1 + W, :] = h1

    # ---- Stage 2: conv2 (3x3, C -> hidden) as 9 MXU matmuls, transposed out --
    # Accumulator is (hidden, M): 512 dense lanes, only ~16 live f32 vregs.
    acc2 = jnp.zeros((hidden, M), jnp.float32)
    for dh in range(3):
        for dw in range(3):
            t = dh * 3 + dw
            patch = pad_ref[:, dh:dh + H, dw:dw + W, :].reshape(M, C)
            acc2 = acc2 + jax.lax.dot_general(
                w2_ref[t], patch.astype(w2_ref.dtype),     # (hidden,C) @ (M,C)^T
                dimension_numbers=(((1,), (1,)), ((), ())),
                preferred_element_type=jnp.float32)

    def bn_relu_t(y, gamma, beta):
        # y: (F, M); gamma/beta: (F, 1). Train-mode BN over the M axis, one pass.
        s = jnp.sum(y, axis=1, keepdims=True)
        ss = jnp.sum(y * y, axis=1, keepdims=True)
        mean = s * inv_m
        var = ss * inv_m - mean * mean
        scale = gamma * jax.lax.rsqrt(var + BN_EPS)
        shift = beta - mean * scale
        return jnp.maximum(y * scale + shift, 0.0)

    h = bn_relu_t(acc2, g2_ref[...], b2_ref[...])          # (hidden, M) f32

    # ---- Stage 3: n_layers x (1x1 conv + BN + ReLU), transposed layout -------
    for i in range(n_layers):
        y = jnp.dot(wmlp_ref[i], h.astype(wmlp_ref.dtype),
                    preferred_element_type=jnp.float32)    # (hidden, M)
        h = bn_relu_t(y, gmlp_ref[i], bmlp_ref[i])

    # ---- Stage 4: fused mu/logvar heads + reparameterize ---------------------
    heads = jnp.dot(whd_ref[...], h.astype(whd_ref.dtype),
                    preferred_element_type=jnp.float32) + bhd_ref[...]   # (2C, M)
    mu = heads[0:C, :]
    lv = heads[C:2 * C, :]
    z_ref[...] = mu + jnp.exp(0.5 * lv) * eps_ref[...]
    mu_ref[...] = mu
    lv_ref[...] = lv


# --------------------------------- wrapper ------------------------------------ #

@jax.jit
def event_encoder_forward(x_nchw, params, eps_nchw):
    """EventEncoder forward (stochastic=True). x/eps: (N, C, H, W). Returns z, mu, logvar (NCHW)."""
    x = jnp.transpose(x_nchw, (0, 2, 3, 1)).astype(jnp.float32)   # NHWC (tiny, one-time)
    N, H, W, C = x.shape
    M = N * H * W
    eps_t = jnp.transpose(eps_nchw, (1, 0, 2, 3)).reshape(C, M).astype(jnp.float32)

    out_sds = jax.ShapeDtypeStruct((C, M), jnp.float32)
    z_t, mu_t, lv_t = pl.pallas_call(
        event_encoder_kernel,
        out_shape=(out_sds, out_sds, out_sds),
        in_specs=[_VMEM] * 13,
        out_specs=(_VMEM, _VMEM, _VMEM),
        scratch_shapes=[
            pltpu.VMEM((N, H + 2, W + 2, C), jnp.float32),   # shared padded scratch
        ],
    )(x, params["w_dw"], params["g1"], params["b1"],
      params["w2"], params["g2"], params["b2"],
      params["w_mlp"], params["g_mlp"], params["b_mlp"],
      params["w_heads"], params["b_heads"], eps_t)

    def to_nchw(a):
        return jnp.transpose(a.reshape(C, N, H, W), (1, 0, 2, 3))

    return to_nchw(z_t), to_nchw(mu_t), to_nchw(lv_t)


# -------------------------- deterministic parameters -------------------------- #

def init_params(key, in_channels, hidden_channels, n_layers):
    """Deterministic params, pre-laid-out for the fused kernel.

    PyTorch mapping:
      conv1 depthwise weight (C,1,3,3) -> w_dw (9, C), tap t = dh*3+dw
      conv2 weight (F,C,3,3)           -> w2   (9, F, C)       (bf16)
      MLP_i weight (F,F,1,1)           -> w_mlp[i] (F_out,F_in) (bf16)
      mu/logvar weight (C,F,1,1)+bias  -> w_heads (2C,F) bf16, b_heads (2C,1)
      BatchNorm affine gamma/beta default-initialized to 1/0.
    """
    C, F = in_channels, hidden_channels
    keys = jax.random.split(key, 6 + n_layers)
    p = {}

    w_dw = 0.1 * jax.random.normal(keys[0], (C, 3, 3), jnp.float32)
    p["w_dw"] = jnp.transpose(w_dw, (1, 2, 0)).reshape(9, C)
    p["g1"] = jnp.ones((1, C), jnp.float32)
    p["b1"] = jnp.zeros((1, C), jnp.float32)

    w2 = 0.1 * jax.random.normal(keys[1], (F, C, 3, 3), jnp.float32)
    p["w2"] = jnp.transpose(w2, (2, 3, 0, 1)).reshape(9, F, C).astype(MATMUL_DTYPE)
    p["g2"] = jnp.ones((F, 1), jnp.float32)
    p["b2"] = jnp.zeros((F, 1), jnp.float32)

    if n_layers > 0:
        w_mlp = jnp.stack([0.1 * jax.random.normal(keys[2 + i], (F, F), jnp.float32)
                           for i in range(n_layers)])
    else:
        w_mlp = jnp.zeros((0, F, F), jnp.float32)
    p["w_mlp"] = w_mlp.astype(MATMUL_DTYPE)
    p["g_mlp"] = jnp.ones((n_layers, F, 1), jnp.float32)
    p["b_mlp"] = jnp.zeros((n_layers, F, 1), jnp.float32)

    w_mu = 0.1 * jax.random.normal(keys[2 + n_layers], (C, F), jnp.float32)
    b_mu = 0.01 * jax.random.normal(keys[3 + n_layers], (C,), jnp.float32)
    w_lv = 0.1 * jax.random.normal(keys[4 + n_layers], (C, F), jnp.float32)
    b_lv = 0.01 * jax.random.normal(keys[5 + n_layers], (C,), jnp.float32)
    p["w_heads"] = jnp.concatenate([w_mu, w_lv], axis=0).astype(MATMUL_DTYPE)
    p["b_heads"] = jnp.concatenate([b_mu, b_lv], axis=0).reshape(2 * C, 1)
    return p


# ----------------------------------- main ------------------------------------- #

if __name__ == "__main__":
    N, C, H, W = 2, 4, 16, 16        # batch, in_channels, spatial
    hidden_channels = 32
    n_layers = 2                     # stochastic=True path: returns (z, mu, logvar)

    key = jax.random.PRNGKey(0)
    k_x, k_eps, k_p = jax.random.split(key, 3)

    x = jax.random.normal(k_x, (N, C, H, W), jnp.float32)
    # eps ~ N(0,1), drawn outside the kernel (equivalent to torch.randn in
    # reparameterize; exact bitwise match to torch RNG is not possible).
    eps = jax.random.normal(k_eps, (N, C, H, W), jnp.float32)

    params = init_params(k_p, C, hidden_channels, n_layers)

    z, mu, logvar = event_encoder_forward(x, params, eps)
    jax.block_until_ready((z, mu, logvar))

    assert z.shape == (N, C, H, W)
    assert mu.shape == (N, C, H, W)
    assert logvar.shape == (N, C, H, W)
    assert bool(jnp.all(jnp.isfinite(z)))
    assert bool(jnp.all(jnp.isfinite(mu)))
    assert bool(jnp.all(jnp.isfinite(logvar)))
    print("KERNEL_OK")
</pallas_src>

<mosaic_0001>
module attributes {stable_mosaic.version = 11 : i64} {
  func.func @event_encoder_kernel(%arg0: memref<2x16x16x4xf32, #tpu.memory_space<vmem>>, %arg1: memref<9x4xf32, #tpu.memory_space<vmem>>, %arg2: memref<1x4xf32, #tpu.memory_space<vmem>>, %arg3: memref<1x4xf32, #tpu.memory_space<vmem>>, %arg4: memref<9x32x4xbf16, #tpu.memory_space<vmem>>, %arg5: memref<32x1xf32, #tpu.memory_space<vmem>>, %arg6: memref<32x1xf32, #tpu.memory_space<vmem>>, %arg7: memref<2x32x32xbf16, #tpu.memory_space<vmem>>, %arg8: memref<2x32x1xf32, #tpu.memory_space<vmem>>, %arg9: memref<2x32x1xf32, #tpu.memory_space<vmem>>, %arg10: memref<8x32xbf16, #tpu.memory_space<vmem>>, %arg11: memref<8x1xf32, #tpu.memory_space<vmem>>, %arg12: memref<4x512xf32, #tpu.memory_space<vmem>>, %arg13: memref<4x512xf32, #tpu.memory_space<vmem>>, %arg14: memref<4x512xf32, #tpu.memory_space<vmem>>, %arg15: memref<4x512xf32, #tpu.memory_space<vmem>>, %arg16: memref<2x18x18x4xf32, #tpu.memory_space<vmem>>) attributes {dimension_semantics = [], scalar_prefetch = 0 : i64, scratch_operands = 1 : i64, tpu.core_type = #tpu.core_type<tc>} {
    %cst = arith.constant 0.000000e+00 : f32
    %0 = vector.broadcast %cst : f32 to vector<2x18x18x4xf32>
    %c0 = arith.constant 0 : index
    %c0_0 = arith.constant 0 : index
    %c0_1 = arith.constant 0 : index
    %c0_2 = arith.constant 0 : index
    %1 = vector.load %arg16[%c0, %c0_0, %c0_1, %c0_2] : memref<2x18x18x4xf32, #tpu.memory_space<vmem>>, vector<2x18x18x4xf32>
    tpu.vector_store %arg16[%c0, %c0_0, %c0_1, %c0_2], %0 {strides = array<i32>} : memref<2x18x18x4xf32, #tpu.memory_space<vmem>>, vector<2x18x18x4xf32>,
    %c0_3 = arith.constant 0 : index
    %c0_4 = arith.constant 0 : index
    %c0_5 = arith.constant 0 : index
    %c0_6 = arith.constant 0 : index
    %2 = vector.load %arg0[%c0_3, %c0_4, %c0_5, %c0_6] : memref<2x16x16x4xf32, #tpu.memory_space<vmem>>, vector<2x16x16x4xf32>
    %c0_7 = arith.constant 0 : index
    %c1 = arith.constant 1 : index
    %c1_8 = arith.constant 1 : index
    %c0_9 = arith.constant 0 : index
    %3 = vector.load %arg16[%c0_7, %c1, %c1_8, %c0_9] : memref<2x18x18x4xf32, #tpu.memory_space<vmem>>, vector<2x16x16x4xf32>
    tpu.vector_store %arg16[%c0_7, %c1, %c1_8, %c0_9], %2 {strides = array<i32>} : memref<2x18x18x4xf32, #tpu.memory_space<vmem>>, vector<2x16x16x4xf32>,
    %cst_10 = arith.constant 0.000000e+00 : f32
    %4 = vector.broadcast %cst_10 : f32 to vector<2x16x16x4xf32>
    %c0_11 = arith.constant 0 : index
    %c0_12 = arith.constant 0 : index
    %c0_13 = arith.constant 0 : index
    %c0_14 = arith.constant 0 : index
    %5 = vector.load %arg16[%c0_11, %c0_12, %c0_13, %c0_14] : memref<2x18x18x4xf32, #tpu.memory_space<vmem>>, vector<2x16x16x4xf32>
    %c0_15 = arith.constant 0 : index
    %c0_16 = arith.constant 0 : index
    %6 = vector.load %arg1[%c0_15, %c0_16] : memref<9x4xf32, #tpu.memory_space<vmem>>, vector<1x4xf32>
    %7 = vector.shape_cast %6 : vector<1x4xf32> to vector<1x1x1x4xf32>
    %8 = vector.broadcast %7 : vector<1x1x1x4xf32> to vector<2x16x16x4xf32>
    %9 = arith.mulf %5, %8 : vector<2x16x16x4xf32>
    %10 = arith.addf %4, %9 : vector<2x16x16x4xf32>
    %c0_17 = arith.constant 0 : index
    %c0_18 = arith.constant 0 : index
    %c1_19 = arith.constant 1 : index
    %c0_20 = arith.constant 0 : index
    %11 = vector.load %arg16[%c0_17, %c0_18, %c1_19, %c0_20] : memref<2x18x18x4xf32, #tpu.memory_space<vmem>>, vector<2x16x16x4xf32>
    %c1_21 = arith.constant 1 : index
    %c0_22 = arith.constant 0 : index
    %12 = vector.load %arg1[%c1_21, %c0_22] : memref<9x4xf32, #tpu.memory_space<vmem>>, vector<1x4xf32>
    %13 = vector.shape_cast %12 : vector<1x4xf32> to vector<1x1x1x4xf32>
    %14 = vector.broadcast %13 : vector<1x1x1x4xf32> to vector<2x16x16x4xf32>
    %15 = arith.mulf %11, %14 : vector<2x16x16x4xf32>
    %16 = arith.addf %10, %15 : vector<2x16x16x4xf32>
    %c0_23 = arith.constant 0 : index
    %c0_24 = arith.constant 0 : index
    %c2 = arith.constant 2 : index
    %c0_25 = arith.constant 0 : index
    %17 = vector.load %arg16[%c0_23, %c0_24, %c2, %c0_25] : memref<2x18x18x4xf32, #tpu.memory_space<vmem>>, vector<2x16x16x4xf32>
    %c2_26 = arith.constant 2 : index
    %c0_27 = arith.constant 0 : index
    %18 = vector.load %arg1[%c2_26, %c0_27] : memref<9x4xf32, #tpu.memory_space<vmem>>, vector<1x4xf32>
    %19 = vector.shape_cast %18 : vector<1x4xf32> to vector<1x1x1x4xf32>
    %20 = vector.broadcast %19 : vector<1x1x1x4xf32> to vector<2x16x16x4xf32>
    %21 = arith.mulf %17, %20 : vector<2x16x16x4xf32>
    %22 = arith.addf %16, %21 : vector<2x16x16x4xf32>
    %c0_28 = arith.constant 0 : index
    %c1_29 = arith.constant 1 : index
    %c0_30 = arith.constant 0 : index
    %c0_31 = arith.constant 0 : index
    %23 = vector.load %arg16[%c0_28, %c1_29, %c0_30, %c0_31] : memref<2x18x18x4xf32, #tpu.memory_space<vmem>>, vector<2x16x16x4xf32>
    %c3 = arith.constant 3 : index
    %c0_32 = arith.constant 0 : index
    %24 = vector.load %arg1[%c3, %c0_32] : memref<9x4xf32, #tpu.memory_space<vmem>>, vector<1x4xf32>
    %25 = vector.shape_cast %24 : vector<1x4xf32> to vector<1x1x1x4xf32>
    %26 = vector.broadcast %25 : vector<1x1x1x4xf32> to vector<2x16x16x4xf32>
    %27 = arith.mulf %23, %26 : vector<2x16x16x4xf32>
    %28 = arith.addf %22, %27 : vector<2x16x16x4xf32>
    %c0_33 = arith.constant 0 : index
    %c1_34 = arith.constant 1 : index
    %c1_35 = arith.constant 1 : index
    %c0_36 = arith.constant 0 : index
    %29 = vector.load %arg16[%c0_33, %c1_34, %c1_35, %c0_36] : memref<2x18x18x4xf32, #tpu.memory_space<vmem>>, vector<2x16x16x4xf32>
    %c4 = arith.constant 4 : index
    %c0_37 = arith.constant 0 : index
    %30 = vector.load %arg1[%c4, %c0_37] : memref<9x4xf32, #tpu.memory_space<vmem>>, vector<1x4xf32>
    %31 = vector.shape_cast %30 : vector<1x4xf32> to vector<1x1x1x4xf32>
    %32 = vector.broadcast %31 : vector<1x1x1x4xf32> to vector<2x16x16x4xf32>
    %33 = arith.mulf %29, %32 : vector<2x16x16x4xf32>
    %34 = arith.addf %28, %33 : vector<2x16x16x4xf32>
    %c0_38 = arith.constant 0 : index
    %c1_39 = arith.constant 1 : index
    %c2_40 = arith.constant 2 : index
    %c0_41 = arith.constant 0 : index
    %35 = vector.load %arg16[%c0_38, %c1_39, %c2_40, %c0_41] : memref<2x18x18x4xf32, #tpu.memory_space<vmem>>, vector<2x16x16x4xf32>
    %c5 = arith.constant 5 : index
    %c0_42 = arith.constant 0 : index
    %36 = vector.load %arg1[%c5, %c0_42] : memref<9x4xf32, #tpu.memory_space<vmem>>, vector<1x4xf32>
    %37 = vector.shape_cast %36 : vector<1x4xf32> to vector<1x1x1x4xf32>
    %38 = vector.broadcast %37 : vector<1x1x1x4xf32> to vector<2x16x16x4xf32>
    %39 = arith.mulf %35, %38 : vector<2x16x16x4xf32>
    %40 = arith.addf %34, %39 : vector<2x16x16x4xf32>
    %c0_43 = arith.constant 0 : index
    %c2_44 = arith.constant 2 : index
    %c0_45 = arith.constant 0 : index
    %c0_46 = arith.constant 0 : index
    %41 = vector.load %arg16[%c0_43, %c2_44, %c0_45, %c0_46] : memref<2x18x18x4xf32, #tpu.memory_space<vmem>>, vector<2x16x16x4xf32>
    %c6 = arith.constant 6 : index
    %c0_47 = arith.constant 0 : index
    %42 = vector.load %arg1[%c6, %c0_47] : memref<9x4xf32, #tpu.memory_space<vmem>>, vector<1x4xf32>
    %43 = vector.shape_cast %42 : vector<1x4xf32> to vector<1x1x1x4xf32>
    %44 = vector.broadcast %43 : vector<1x1x1x4xf32> to vector<2x16x16x4xf32>
    %45 = arith.mulf %41, %44 : vector<2x16x16x4xf32>
    %46 = arith.addf %40, %45 : vector<2x16x16x4xf32>
    %c0_48 = arith.constant 0 : index
    %c2_49 = arith.constant 2 : index
    %c1_50 = arith.constant 1 : index
    %c0_51 = arith.constant 0 : index
    %47 = vector.load %arg16[%c0_48, %c2_49, %c1_50, %c0_51] : memref<2x18x18x4xf32, #tpu.memory_space<vmem>>, vector<2x16x16x4xf32>
    %c7 = arith.constant 7 : index
    %c0_52 = arith.constant 0 : index
    %48 = vector.load %arg1[%c7, %c0_52] : memref<9x4xf32, #tpu.memory_space<vmem>>, vector<1x4xf32>
    %49 = vector.shape_cast %48 : vector<1x4xf32> to vector<1x1x1x4xf32>
    %50 = vector.broadcast %49 : vector<1x1x1x4xf32> to vector<2x16x16x4xf32>
    %51 = arith.mulf %47, %50 : vector<2x16x16x4xf32>
    %52 = arith.addf %46, %51 : vector<2x16x16x4xf32>
    %c0_53 = arith.constant 0 : index
    %c2_54 = arith.constant 2 : index
    %c2_55 = arith.constant 2 : index
    %c0_56 = arith.constant 0 : index
    %53 = vector.load %arg16[%c0_53, %c2_54, %c2_55, %c0_56] : memref<2x18x18x4xf32, #tpu.memory_space<vmem>>, vector<2x16x16x4xf32>
    %c8 = arith.constant 8 : index
    %c0_57 = arith.constant 0 : index
    %54 = vector.load %arg1[%c8, %c0_57] : memref<9x4xf32, #tpu.memory_space<vmem>>, vector<1x4xf32>
    %55 = vector.shape_cast %54 : vector<1x4xf32> to vector<1x1x1x4xf32>
    %56 = vector.broadcast %55 : vector<1x1x1x4xf32> to vector<2x16x16x4xf32>
    %57 = arith.mulf %53, %56 : vector<2x16x16x4xf32>
    %58 = arith.addf %52, %57 : vector<2x16x16x4xf32>
    %59 = vector.shape_cast %58 : vector<2x16x16x4xf32> to vector<512x4xf32>
    %cst_58 = arith.constant dense<0.000000e+00> : vector<4xf32>
    %60 = vector.multi_reduction <add>, %59, %cst_58 [0] : vector<512x4xf32> to vector<4xf32>
    %61 = vector.shape_cast %60 : vector<4xf32> to vector<1x4xf32>
    %62 = arith.mulf %59, %59 : vector<512x4xf32>
    %cst_59 = arith.constant dense<0.000000e+00> : vector<4xf32>
    %63 = vector.multi_reduction <add>, %62, %cst_59 [0] : vector<512x4xf32> to vector<4xf32>
    %64 = vector.shape_cast %63 : vector<4xf32> to vector<1x4xf32>
    %cst_60 = arith.constant 0.001953125 : f32
    %65 = vector.broadcast %cst_60 : f32 to vector<1x4xf32>
    %66 = arith.mulf %61, %65 : vector<1x4xf32>
    %cst_61 = arith.constant 0.001953125 : f32
    %67 = vector.broadcast %cst_61 : f32 to vector<1x4xf32>
    %68 = arith.mulf %64, %67 : vector<1x4xf32>
    %69 = arith.mulf %66, %66 : vector<1x4xf32>
    %70 = arith.subf %68, %69 : vector<1x4xf32>
    %c0_62 = arith.constant 0 : index
    %c0_63 = arith.constant 0 : index
    %71 = vector.load %arg2[%c0_62, %c0_63] : memref<1x4xf32, #tpu.memory_space<vmem>>, vector<1x4xf32>
    %cst_64 = arith.constant 9.99999974E-6 : f32
    %72 = vector.broadcast %cst_64 : f32 to vector<1x4xf32>
    %73 = arith.addf %70, %72 : vector<1x4xf32>
    %74 = math.rsqrt %73 : vector<1x4xf32>
    %75 = arith.mulf %71, %74 : vector<1x4xf32>
    %c0_65 = arith.constant 0 : index
    %c0_66 = arith.constant 0 : index
    %76 = vector.load %arg3[%c0_65, %c0_66] : memref<1x4xf32, #tpu.memory_space<vmem>>, vector<1x4xf32>
    %77 = arith.mulf %66, %75 : vector<1x4xf32>
    %78 = arith.subf %76, %77 : vector<1x4xf32>
    %79 = vector.shape_cast %75 : vector<1x4xf32> to vector<1x1x1x4xf32>
    %80 = vector.broadcast %79 : vector<1x1x1x4xf32> to vector<2x16x16x4xf32>
    %81 = arith.mulf %58, %80 : vector<2x16x16x4xf32>
    %82 = vector.shape_cast %78 : vector<1x4xf32> to vector<1x1x1x4xf32>
    %83 = vector.broadcast %82 : vector<1x1x1x4xf32> to vector<2x16x16x4xf32>
    %84 = arith.addf %81, %83 : vector<2x16x16x4xf32>
    %cst_67 = arith.constant 0.000000e+00 : f32
    %85 = vector.broadcast %cst_67 : f32 to vector<2x16x16x4xf32>
    %86 = arith.maximumf %84, %85 : vector<2x16x16x4xf32>
    %c0_68 = arith.constant 0 : index
    %c1_69 = arith.constant 1 : index
    %c1_70 = arith.constant 1 : index
    %c0_71 = arith.constant 0 : index
    %87 = vector.load %arg16[%c0_68, %c1_69, %c1_70, %c0_71] : memref<2x18x18x4xf32, #tpu.memory_space<vmem>>, vector<2x16x16x4xf32>
    tpu.vector_store %arg16[%c0_68, %c1_69, %c1_70, %c0_71], %86 {strides = array<i32>} : memref<2x18x18x4xf32, #tpu.memory_space<vmem>>, vector<2x16x16x4xf32>,
    %cst_72 = arith.constant 0.000000e+00 : f32
    %88 = vector.broadcast %cst_72 : f32 to vector<32x512xf32>
    %c0_73 = arith.constant 0 : index
    %c0_74 = arith.constant 0 : index
    %c0_75 = arith.constant 0 : index
    %c0_76 = arith.constant 0 : index
    %89 = vector.load %arg16[%c0_73, %c0_74, %c0_75, %c0_76] : memref<2x18x18x4xf32, #tpu.memory_space<vmem>>, vector<2x16x16x4xf32>
    %90 = vector.shape_cast %89 : vector<2x16x16x4xf32> to vector<512x4xf32>
    %c0_77 = arith.constant 0 : index
    %c0_78 = arith.constant 0 : index
    %c0_79 = arith.constant 0 : index
    %91 = vector.load %arg4[%c0_77, %c0_78, %c0_79] : memref<9x32x4xbf16, #tpu.memory_space<vmem>>, vector<1x32x4xbf16>
    %92 = vector.shape_cast %91 : vector<1x32x4xbf16> to vector<32x4xbf16>
    %93 = arith.truncf %90 : vector<512x4xf32> to vector<512x4xbf16>
    %cst_80 = arith.constant dense<0.000000e+00> : vector<32x512xf32>
    %94 = tpu.matmul %92, %93, %cst_80 {dimension_numbers = #tpu.dot_dimension_numbers<[1], [1], [0], [0], [0, 0, 1, 0], [], []>} : vector<32x4xbf16>, vector<512x4xbf16>, vector<32x512xf32> -> vector<32x512xf32>
    %95 = arith.addf %88, %94 : vector<32x512xf32>
    %c0_81 = arith.constant 0 : index
    %c0_82 = arith.constant 0 : index
    %c1_83 = arith.constant 1 : index
    %c0_84 = arith.constant 0 : index
    %96 = vector.load %arg16[%c0_81, %c0_82, %c1_83, %c0_84] : memref<2x18x18x4xf32, #tpu.memory_space<vmem>>, vector<2x16x16x4xf32>
    %97 = vector.shape_cast %96 : vector<2x16x16x4xf32> to vector<512x4xf32>
    %c1_85 = arith.constant 1 : index
    %c0_86 = arith.constant 0 : index
    %c0_87 = arith.constant 0 : index
    %98 = vector.load %arg4[%c1_85, %c0_86, %c0_87] : memref<9x32x4xbf16, #tpu.memory_space<vmem>>, vector<1x32x4xbf16>
    %99 = vector.shape_cast %98 : vector<1x32x4xbf16> to vector<32x4xbf16>
    %100 = arith.truncf %97 : vector<512x4xf32> to vector<512x4xbf16>
    %cst_88 = arith.constant dense<0.000000e+00> : vector<32x512xf32>
    %101 = tpu.matmul %99, %100, %cst_88 {dimension_numbers = #tpu.dot_dimension_numbers<[1], [1], [0], [0], [0, 0, 1, 0], [], []>} : vector<32x4xbf16>, vector<512x4xbf16>, vector<32x512xf32> -> vector<32x512xf32>
    %102 = arith.addf %95, %101 : vector<32x512xf32>
    %c0_89 = arith.constant 0 : index
    %c0_90 = arith.constant 0 : index
    %c2_91 = arith.constant 2 : index
    %c0_92 = arith.constant 0 : index
    %103 = vector.load %arg16[%c0_89, %c0_90, %c2_91, %c0_92] : memref<2x18x18x4xf32, #tpu.memory_space<vmem>>, vector<2x16x16x4xf32>
    %104 = vector.shape_cast %103 : vector<2x16x16x4xf32> to vector<512x4xf32>
    %c2_93 = arith.constant 2 : index
    %c0_94 = arith.constant 0 : index
    %c0_95 = arith.constant 0 : index
    %105 = vector.load %arg4[%c2_93, %c0_94, %c0_95] : memref<9x32x4xbf16, #tpu.memory_space<vmem>>, vector<1x32x4xbf16>
    %106 = vector.shape_cast %105 : vector<1x32x4xbf16> to vector<32x4xbf16>
    %107 = arith.truncf %104 : vector<512x4xf32> to vector<512x4xbf16>
    %cst_96 = arith.constant dense<0.000000e+00> : vector<32x512xf32>
    %108 = tpu.matmul %106, %107, %cst_96 {dimension_numbers = #tpu.dot_dimension_numbers<[1], [1], [0], [0], [0, 0, 1, 0], [], []>} : vector<32x4xbf16>, vector<512x4xbf16>, vector<32x512xf32> -> vector<32x512xf32>
    %109 = arith.addf %102, %108 : vector<32x512xf32>
    %c0_97 = arith.constant 0 : index
    %c1_98 = arith.constant 1 : index
    %c0_99 = arith.constant 0 : index
    %c0_100 = arith.constant 0 : index
    %110 = vector.load %arg16[%c0_97, %c1_98, %c0_99, %c0_100] : memref<2x18x18x4xf32, #tpu.memory_space<vmem>>, vector<2x16x16x4xf32>
    %111 = vector.shape_cast %110 : vector<2x16x16x4xf32> to vector<512x4xf32>
    %c3_101 = arith.constant 3 : index
    %c0_102 = arith.constant 0 : index
    %c0_103 = arith.constant 0 : index
    %112 = vector.load %arg4[%c3_101, %c0_102, %c0_103] : memref<9x32x4xbf16, #tpu.memory_space<vmem>>, vector<1x32x4xbf16>
    %113 = vector.shape_cast %112 : vector<1x32x4xbf16> to vector<32x4xbf16>
    %114 = arith.truncf %111 : vector<512x4xf32> to vector<512x4xbf16>
    %cst_104 = arith.constant dense<0.000000e+00> : vector<32x512xf32>
    %115 = tpu.matmul %113, %114, %cst_104 {dimension_numbers = #tpu.dot_dimension_numbers<[1], [1], [0], [0], [0, 0, 1, 0], [], []>} : vector<32x4xbf16>, vector<512x4xbf16>, vector<32x512xf32> -> vector<32x512xf32>
    %116 = arith.addf %109, %115 : vector<32x512xf32>
    %c0_105 = arith.constant 0 : index
    %c1_106 = arith.constant 1 : index
    %c1_107 = arith.constant 1 : index
    %c0_108 = arith.constant 0 : index
    %117 = vector.load %arg16[%c0_105, %c1_106, %c1_107, %c0_108] : memref<2x18x18x4xf32, #tpu.memory_space<vmem>>, vector<2x16x16x4xf32>
    %118 = vector.shape_cast %117 : vector<2x16x16x4xf32> to vector<512x4xf32>
    %c4_109 = arith.constant 4 : index
    %c0_110 = arith.constant 0 : index
    %c0_111 = arith.constant 0 : index
    %119 = vector.load %arg4[%c4_109, %c0_110, %c0_111] : memref<9x32x4xbf16, #tpu.memory_space<vmem>>, vector<1x32x4xbf16>
    %120 = vector.shape_cast %119 : vector<1x32x4xbf16> to vector<32x4xbf16>
    %121 = arith.truncf %118 : vector<512x4xf32> to vector<512x4xbf16>
    %cst_112 = arith.constant dense<0.000000e+00> : vector<32x512xf32>
    %122 = tpu.matmul %120, %121, %cst_112 {dimension_numbers = #tpu.dot_dimension_numbers<[1], [1], [0], [0], [0, 0, 1, 0], [], []>} : vector<32x4xbf16>, vector<512x4xbf16>, vector<32x512xf32> -> vector<32x512xf32>
    %123 = arith.addf %116, %122 : vector<32x512xf32>
    %c0_113 = arith.constant 0 : index
    %c1_114 = arith.constant 1 : index
    %c2_115 = arith.constant 2 : index
    %c0_116 = arith.constant 0 : index
    %124 = vector.load %arg16[%c0_113, %c1_114, %c2_115, %c0_116] : memref<2x18x18x4xf32, #tpu.memory_space<vmem>>, vector<2x16x16x4xf32>
    %125 = vector.shape_cast %124 : vector<2x16x16x4xf32> to vector<512x4xf32>
    %c5_117 = arith.constant 5 : index
    %c0_118 = arith.constant 0 : index
    %c0_119 = arith.constant 0 : index
    %126 = vector.load %arg4[%c5_117, %c0_118, %c0_119] : memref<9x32x4xbf16, #tpu.memory_space<vmem>>, vector<1x32x4xbf16>
    %127 = vector.shape_cast %126 : vector<1x32x4xbf16> to vector<32x4xbf16>
    %128 = arith.truncf %125 : vector<512x4xf32> to vector<512x4xbf16>
    %cst_120 = arith.constant dense<0.000000e+00> : vector<32x512xf32>
    %129 = tpu.matmul %127, %128, %cst_120 {dimension_numbers = #tpu.dot_dimension_numbers<[1], [1], [0], [0], [0, 0, 1, 0], [], []>} : vector<32x4xbf16>, vector<512x4xbf16>, vector<32x512xf32> -> vector<32x512xf32>
    %130 = arith.addf %123, %129 : vector<32x512xf32>
    %c0_121 = arith.constant 0 : index
    %c2_122 = arith.constant 2 : index
    %c0_123 = arith.constant 0 : index
    %c0_124 = arith.constant 0 : index
    %131 = vector.load %arg16[%c0_121, %c2_122, %c0_123, %c0_124] : memref<2x18x18x4xf32, #tpu.memory_space<vmem>>, vector<2x16x16x4xf32>
    %132 = vector.shape_cast %131 : vector<2x16x16x4xf32> to vector<512x4xf32>
    %c6_125 = arith.constant 6 : index
    %c0_126 = arith.constant 0 : index
    %c0_127 = arith.constant 0 : index
    %133 = vector.load %arg4[%c6_125, %c0_126, %c0_127] : memref<9x32x4xbf16, #tpu.memory_space<vmem>>, vector<1x32x4xbf16>
    %134 = vector.shape_cast %133 : vector<1x32x4xbf16> to vector<32x4xbf16>
    %135 = arith.truncf %132 : vector<512x4xf32> to vector<512x4xbf16>
    %cst_128 = arith.constant dense<0.000000e+00> : vector<32x512xf32>
    %136 = tpu.matmul %134, %135, %cst_128 {dimension_numbers = #tpu.dot_dimension_numbers<[1], [1], [0], [0], [0, 0, 1, 0], [], []>} : vector<32x4xbf16>, vector<512x4xbf16>, vector<32x512xf32> -> vector<32x512xf32>
    %137 = arith.addf %130, %136 : vector<32x512xf32>
    %c0_129 = arith.constant 0 : index
    %c2_130 = arith.constant 2 : index
    %c1_131 = arith.constant 1 : index
    %c0_132 = arith.constant 0 : index
    %138 = vector.load %arg16[%c0_129, %c2_130, %c1_131, %c0_132] : memref<2x18x18x4xf32, #tpu.memory_space<vmem>>, vector<2x16x16x4xf32>
    %139 = vector.shape_cast %138 : vector<2x16x16x4xf32> to vector<512x4xf32>
    %c7_133 = arith.constant 7 : index
    %c0_134 = arith.constant 0 : index
    %c0_135 = arith.constant 0 : index
    %140 = vector.load %arg4[%c7_133, %c0_134, %c0_135] : memref<9x32x4xbf16, #tpu.memory_space<vmem>>, vector<1x32x4xbf16>
    %141 = vector.shape_cast %140 : vector<1x32x4xbf16> to vector<32x4xbf16>
    %142 = arith.truncf %139 : vector<512x4xf32> to vector<512x4xbf16>
    %cst_136 = arith.constant dense<0.000000e+00> : vector<32x512xf32>
    %143 = tpu.matmul %141, %142, %cst_136 {dimension_numbers = #tpu.dot_dimension_numbers<[1], [1], [0], [0], [0, 0, 1, 0], [], []>} : vector<32x4xbf16>, vector<512x4xbf16>, vector<32x512xf32> -> vector<32x512xf32>
    %144 = arith.addf %137, %143 : vector<32x512xf32>
    %c0_137 = arith.constant 0 : index
    %c2_138 = arith.constant 2 : index
    %c2_139 = arith.constant 2 : index
    %c0_140 = arith.constant 0 : index
    %145 = vector.load %arg16[%c0_137, %c2_138, %c2_139, %c0_140] : memref<2x18x18x4xf32, #tpu.memory_space<vmem>>, vector<2x16x16x4xf32>
    %146 = vector.shape_cast %145 : vector<2x16x16x4xf32> to vector<512x4xf32>
    %c8_141 = arith.constant 8 : index
    %c0_142 = arith.constant 0 : index
    %c0_143 = arith.constant 0 : index
    %147 = vector.load %arg4[%c8_141, %c0_142, %c0_143] : memref<9x32x4xbf16, #tpu.memory_space<vmem>>, vector<1x32x4xbf16>
    %148 = vector.shape_cast %147 : vector<1x32x4xbf16> to vector<32x4xbf16>
    %149 = arith.truncf %146 : vector<512x4xf32> to vector<512x4xbf16>
    %cst_144 = arith.constant dense<0.000000e+00> : vector<32x512xf32>
    %150 = tpu.matmul %148, %149, %cst_144 {dimension_numbers = #tpu.dot_dimension_numbers<[1], [1], [0], [0], [0, 0, 1, 0], [], []>} : vector<32x4xbf16>, vector<512x4xbf16>, vector<32x512xf32> -> vector<32x512xf32>
    %151 = arith.addf %144, %150 : vector<32x512xf32>
    %c0_145 = arith.constant 0 : index
    %c0_146 = arith.constant 0 : index
    %152 = vector.load %arg5[%c0_145, %c0_146] : memref<32x1xf32, #tpu.memory_space<vmem>>, vector<32x1xf32>
    %c0_147 = arith.constant 0 : index
    %c0_148 = arith.constant 0 : index
    %153 = vector.load %arg6[%c0_147, %c0_148] : memref<32x1xf32, #tpu.memory_space<vmem>>, vector<32x1xf32>
    %cst_149 = arith.constant dense<0.000000e+00> : vector<32xf32>
    %154 = vector.multi_reduction <add>, %151, %cst_149 [1] : vector<32x512xf32> to vector<32xf32>
    %155 = vector.shape_cast %154 : vector<32xf32> to vector<32x1xf32>
    %156 = arith.mulf %151, %151 : vector<32x512xf32>
    %cst_150 = arith.constant dense<0.000000e+00> : vector<32xf32>
    %157 = vector.multi_reduction <add>, %156, %cst_150 [1] : vector<32x512xf32> to vector<32xf32>
    %158 = vector.shape_cast %157 : vector<32xf32> to vector<32x1xf32>
    %cst_151 = arith.constant 0.001953125 : f32
    %159 = vector.broadcast %cst_151 : f32 to vector<32x1xf32>
    %160 = arith.mulf %155, %159 : vector<32x1xf32>
    %cst_152 = arith.constant 0.001953125 : f32
    %161 = vector.broadcast %cst_152 : f32 to vector<32x1xf32>
    %162 = arith.mulf %158, %161 : vector<32x1xf32>
    %163 = arith.mulf %160, %160 : vector<32x1xf32>
    %164 = arith.subf %162, %163 : vector<32x1xf32>
    %cst_153 = arith.constant 9.99999974E-6 : f32
    %165 = vector.broadcast %cst_153 : f32 to vector<32x1xf32>
    %166 = arith.addf %164, %165 : vector<32x1xf32>
    %167 = math.rsqrt %166 : vector<32x1xf32>
    %168 = arith.mulf %152, %167 : vector<32x1xf32>
    %169 = arith.mulf %160, %168 : vector<32x1xf32>
    %170 = arith.subf %153, %169 : vector<32x1xf32>
    %171 = vector.broadcast %168 : vector<32x1xf32> to vector<32x512xf32>
    %172 = arith.mulf %151, %171 : vector<32x512xf32>
    %173 = vector.broadcast %170 : vector<32x1xf32> to vector<32x512xf32>
    %174 = arith.addf %172, %173 : vector<32x512xf32>
    %cst_154 = arith.constant 0.000000e+00 : f32
    %175 = vector.broadcast %cst_154 : f32 to vector<32x512xf32>
    %176 = arith.maximumf %174, %175 : vector<32x512xf32>
    %c0_155 = arith.constant 0 : index
    %c0_156 = arith.constant 0 : index
    %c0_157 = arith.constant 0 : index
    %177 = vector.load %arg7[%c0_155, %c0_156, %c0_157] : memref<2x32x32xbf16, #tpu.memory_space<vmem>>, vector<1x32x32xbf16>
    %178 = vector.shape_cast %177 : vector<1x32x32xbf16> to vector<32x32xbf16>
    %179 = arith.truncf %176 : vector<32x512xf32> to vector<32x512xbf16>
    %cst_158 = arith.constant dense<0.000000e+00> : vector<32x512xf32>
    %180 = tpu.matmul %178, %179, %cst_158 {dimension_numbers = #tpu.dot_dimension_numbers<[1], [0], [0], [1], [0, 0, 1, 1], [], []>} : vector<32x32xbf16>, vector<32x512xbf16>, vector<32x512xf32> -> vector<32x512xf32>
    %c0_159 = arith.constant 0 : index
    %c0_160 = arith.constant 0 : index
    %c0_161 = arith.constant 0 : index
    %181 = vector.load %arg8[%c0_159, %c0_160, %c0_161] : memref<2x32x1xf32, #tpu.memory_space<vmem>>, vector<1x32x1xf32>
    %182 = vector.shape_cast %181 : vector<1x32x1xf32> to vector<32x1xf32>
    %c0_162 = arith.constant 0 : index
    %c0_163 = arith.constant 0 : index
    %c0_164 = arith.constant 0 : index
    %183 = vector.load %arg9[%c0_162, %c0_163, %c0_164] : memref<2x32x1xf32, #tpu.memory_space<vmem>>, vector<1x32x1xf32>
    %184 = vector.shape_cast %183 : vector<1x32x1xf32> to vector<32x1xf32>
    %cst_165 = arith.constant dense<0.000000e+00> : vector<32xf32>
    %185 = vector.multi_reduction <add>, %180, %cst_165 [1] : vector<32x512xf32> to vector<32xf32>
    %186 = vector.shape_cast %185 : vector<32xf32> to vector<32x1xf32>
    %187 = arith.mulf %180, %180 : vector<32x512xf32>
    %cst_166 = arith.constant dense<0.000000e+00> : vector<32xf32>
    %188 = vector.multi_reduction <add>, %187, %cst_166 [1] : vector<32x512xf32> to vector<32xf32>
    %189 = vector.shape_cast %188 : vector<32xf32> to vector<32x1xf32>
    %cst_167 = arith.constant 0.001953125 : f32
    %190 = vector.broadcast %cst_167 : f32 to vector<32x1xf32>
    %191 = arith.mulf %186, %190 : vector<32x1xf32>
    %cst_168 = arith.constant 0.001953125 : f32
    %192 = vector.broadcast %cst_168 : f32 to vector<32x1xf32>
    %193 = arith.mulf %189, %192 : vector<32x1xf32>
    %194 = arith.mulf %191, %191 : vector<32x1xf32>
    %195 = arith.subf %193, %194 : vector<32x1xf32>
    %cst_169 = arith.constant 9.99999974E-6 : f32
    %196 = vector.broadcast %cst_169 : f32 to vector<32x1xf32>
    %197 = arith.addf %195, %196 : vector<32x1xf32>
    %198 = math.rsqrt %197 : vector<32x1xf32>
    %199 = arith.mulf %182, %198 : vector<32x1xf32>
    %200 = arith.mulf %191, %199 : vector<32x1xf32>
    %201 = arith.subf %184, %200 : vector<32x1xf32>
    %202 = vector.broadcast %199 : vector<32x1xf32> to vector<32x512xf32>
    %203 = arith.mulf %180, %202 : vector<32x512xf32>
    %204 = vector.broadcast %201 : vector<32x1xf32> to vector<32x512xf32>
    %205 = arith.addf %203, %204 : vector<32x512xf32>
    %cst_170 = arith.constant 0.000000e+00 : f32
    %206 = vector.broadcast %cst_170 : f32 to vector<32x512xf32>
    %207 = arith.maximumf %205, %206 : vector<32x512xf32>
    %c1_171 = arith.constant 1 : index
    %c0_172 = arith.constant 0 : index
    %c0_173 = arith.constant 0 : index
    %208 = vector.load %arg7[%c1_171, %c0_172, %c0_173] : memref<2x32x32xbf16, #tpu.memory_space<vmem>>, vector<1x32x32xbf16>
    %209 = vector.shape_cast %208 : vector<1x32x32xbf16> to vector<32x32xbf16>
    %210 = arith.truncf %207 : vector<32x512xf32> to vector<32x512xbf16>
    %cst_174 = arith.constant dense<0.000000e+00> : vector<32x512xf32>
    %211 = tpu.matmul %209, %210, %cst_174 {dimension_numbers = #tpu.dot_dimension_numbers<[1], [0], [0], [1], [0, 0, 1, 1], [], []>} : vector<32x32xbf16>, vector<32x512xbf16>, vector<32x512xf32> -> vector<32x512xf32>
    %c1_175 = arith.constant 1 : index
    %c0_176 = arith.constant 0 : index
    %c0_177 = arith.constant 0 : index
    %212 = vector.load %arg8[%c1_175, %c0_176, %c0_177] : memref<2x32x1xf32, #tpu.memory_space<vmem>>, vector<1x32x1xf32>
    %213 = vector.shape_cast %212 : vector<1x32x1xf32> to vector<32x1xf32>
    %c1_178 = arith.constant 1 : index
    %c0_179 = arith.constant 0 : index
    %c0_180 = arith.constant 0 : index
    %214 = vector.load %arg9[%c1_178, %c0_179, %c0_180] : memref<2x32x1xf32, #tpu.memory_space<vmem>>, vector<1x32x1xf32>
    %215 = vector.shape_cast %214 : vector<1x32x1xf32> to vector<32x1xf32>
    %cst_181 = arith.constant dense<0.000000e+00> : vector<32xf32>
    %216 = vector.multi_reduction <add>, %211, %cst_181 [1] : vector<32x512xf32> to vector<32xf32>
    %217 = vector.shape_cast %216 : vector<32xf32> to vector<32x1xf32>
    %218 = arith.mulf %211, %211 : vector<32x512xf32>
    %cst_182 = arith.constant dense<0.000000e+00> : vector<32xf32>
    %219 = vector.multi_reduction <add>, %218, %cst_182 [1] : vector<32x512xf32> to vector<32xf32>
    %220 = vector.shape_cast %219 : vector<32xf32> to vector<32x1xf32>
    %cst_183 = arith.constant 0.001953125 : f32
    %221 = vector.broadcast %cst_183 : f32 to vector<32x1xf32>
    %222 = arith.mulf %217, %221 : vector<32x1xf32>
    %cst_184 = arith.constant 0.001953125 : f32
    %223 = vector.broadcast %cst_184 : f32 to vector<32x1xf32>
    %224 = arith.mulf %220, %223 : vector<32x1xf32>
    %225 = arith.mulf %222, %222 : vector<32x1xf32>
    %226 = arith.subf %224, %225 : vector<32x1xf32>
    %cst_185 = arith.constant 9.99999974E-6 : f32
    %227 = vector.broadcast %cst_185 : f32 to vector<32x1xf32>
    %228 = arith.addf %226, %227 : vector<32x1xf32>
    %229 = math.rsqrt %228 : vector<32x1xf32>
    %230 = arith.mulf %213, %229 : vector<32x1xf32>
    %231 = arith.mulf %222, %230 : vector<32x1xf32>
    %232 = arith.subf %215, %231 : vector<32x1xf32>
    %233 = vector.broadcast %230 : vector<32x1xf32> to vector<32x512xf32>
    %234 = arith.mulf %211, %233 : vector<32x512xf32>
    %235 = vector.broadcast %232 : vector<32x1xf32> to vector<32x512xf32>
    %236 = arith.addf %234, %235 : vector<32x512xf32>
    %cst_186 = arith.constant 0.000000e+00 : f32
    %237 = vector.broadcast %cst_186 : f32 to vector<32x512xf32>
    %238 = arith.maximumf %236, %237 : vector<32x512xf32>
    %c0_187 = arith.constant 0 : index
    %c0_188 = arith.constant 0 : index
    %239 = vector.load %arg10[%c0_187, %c0_188] : memref<8x32xbf16, #tpu.memory_space<vmem>>, vector<8x32xbf16>
    %240 = arith.truncf %238 : vector<32x512xf32> to vector<32x512xbf16>
    %cst_189 = arith.constant dense<0.000000e+00> : vector<8x512xf32>
    %241 = tpu.matmul %239, %240, %cst_189 {dimension_numbers = #tpu.dot_dimension_numbers<[1], [0], [0], [1], [0, 0, 1, 1], [], []>} : vector<8x32xbf16>, vector<32x512xbf16>, vector<8x512xf32> -> vector<8x512xf32>
    %c0_190 = arith.constant 0 : index
    %c0_191 = arith.constant 0 : index
    %242 = vector.load %arg11[%c0_190, %c0_191] : memref<8x1xf32, #tpu.memory_space<vmem>>, vector<8x1xf32>
    %243 = vector.broadcast %242 : vector<8x1xf32> to vector<8x512xf32>
    %244 = arith.addf %241, %243 : vector<8x512xf32>
    %245 = vector.extract_strided_slice %244 {offsets = [0, 0], sizes = [4, 512], strides = [1, 1]} : vector<8x512xf32> to vector<4x512xf32>
    %246 = vector.extract_strided_slice %244 {offsets = [4, 0], sizes = [4, 512], strides = [1, 1]} : vector<8x512xf32> to vector<4x512xf32>
    %cst_192 = arith.constant 5.000000e-01 : f32
    %247 = vector.broadcast %cst_192 : f32 to vector<4x512xf32>
    %248 = arith.mulf %247, %246 : vector<4x512xf32>
    %249 = math.exp %248 : vector<4x512xf32>
    %c0_193 = arith.constant 0 : index
    %c0_194 = arith.constant 0 : index
    %250 = vector.load %arg12[%c0_193, %c0_194] : memref<4x512xf32, #tpu.memory_space<vmem>>, vector<4x512xf32>
    %251 = arith.mulf %249, %250 : vector<4x512xf32>
    %252 = arith.addf %245, %251 : vector<4x512xf32>
    %c0_195 = arith.constant 0 : index
    %c0_196 = arith.constant 0 : index
    %253 = vector.load %arg13[%c0_195, %c0_196] : memref<4x512xf32, #tpu.memory_space<vmem>>, vector<4x512xf32>
    tpu.vector_store %arg13[%c0_195, %c0_196], %252 {strides = array<i32>} : memref<4x512xf32, #tpu.memory_space<vmem>>, vector<4x512xf32>,
    %c0_197 = arith.constant 0 : index
    %c0_198 = arith.constant 0 : index
    %254 = vector.load %arg14[%c0_197, %c0_198] : memref<4x512xf32, #tpu.memory_space<vmem>>, vector<4x512xf32>
    tpu.vector_store %arg14[%c0_197, %c0_198], %245 {strides = array<i32>} : memref<4x512xf32, #tpu.memory_space<vmem>>, vector<4x512xf32>,
    %c0_199 = arith.constant 0 : index
    %c0_200 = arith.constant 0 : index
    %255 = vector.load %arg15[%c0_199, %c0_200] : memref<4x512xf32, #tpu.memory_space<vmem>>, vector<4x512xf32>
    tpu.vector_store %arg15[%c0_199, %c0_200], %246 {strides = array<i32>} : memref<4x512xf32, #tpu.memory_space<vmem>>, vector<4x512xf32>,
    return
  }
}

</mosaic_0001>

<bundles_post_ra>
// kernel: event_encoder_forward.1
= control target key start
LH: loop header
LB: loop body
LE: loop exit
PB: predicated region body
PF: predicated region fallthrough
CT: control target
= control target key end

     0   :  { %vm48_vm0 = vcmask 31744   ;;  %vm51_vm1 = vcmask 25600   ;;  %v7481_v0 = vmov 0.0   ;;  %vm5862_vm2 = vcmask 261120   ;;  %s12242_s0 = inlined_call_operand.vmem [shape: f32[2,16,16,4], index: 0, kind: input, shape index: {}]   ;;  %s12243_s1 = inlined_call_operand.vmem [shape: f32[9,4], index: 1, kind: input, shape index: {}]   ;;  %s12244_s4 = inlined_call_operand.vmem [shape: bf16[9,32,4], index: 4, kind: input, shape index: {}]   ;;  %s12245_s2 = inlined_call_operand.vmem [shape: f32[1,4], index: 2, kind: input, shape index: {}]   ;;  %s12246_s3 = inlined_call_operand.vmem [shape: f32[1,4], index: 3, kind: input, shape index: {}]   ;;  %s12247_s5 = inlined_call_operand.vmem [shape: f32[32,1], index: 5, kind: input, shape index: {}]   ;;  %s12248_s6 = inlined_call_operand.vmem [shape: f32[32,1], index: 6, kind: input, shape index: {}]   ;;  %s12249_s7 = inlined_call_operand.vmem [shape: bf16[2,32,32], index: 7, kind: input, shape index: {}]   ;;  %s12250_s8 = inlined_call_operand.vmem [shape: f32[2,32,1], index: 8, kind: input, shape index: {}]   ;;  %s12251_s9 = inlined_call_operand.vmem [shape: f32[2,32,1], index: 9, kind: input, shape index: {}]   ;;  %s12252_s11 = inlined_call_operand.vmem [shape: f32[8,1], index: 11, kind: input, shape index: {}]   ;;  %s12253_s10 = inlined_call_operand.vmem [shape: bf16[8,32], index: 10, kind: input, shape index: {}]   ;;  %s12254_s14 = inlined_call_operand.vmem [shape: f32[4,512], index: 14, kind: output, shape index: {1}]   ;;  %s12255_s15 = inlined_call_operand.vmem [shape: f32[4,512], index: 15, kind: output, shape index: {2}]   ;;  %s12256_s12 = inlined_call_operand.vmem [shape: f32[4,512], index: 12, kind: input, shape index: {}]   ;;  %s12257_s13 = inlined_call_operand.vmem [shape: f32[4,512], index: 13, kind: output, shape index: {0}]  }
   0x1   :  { %49 = vst.msk [vmem:[#allocation2] sm:$0xff] %vm48_vm0, %v7481_v0  ;;  %50 = vst.msk [vmem:[#allocation2 + $0x8] sm:$0xff] %vm48_vm0, %v7481_v0  ;;  %v158_v1 = vld [vmem:[%s12242_s0] sm:$0xff]  ;;  %v159_v2 = vld [vmem:[%s12242_s0 + $0x8] sm:$0xff] }
   0x2   :  { %52 = vst.msk [vmem:[#allocation2 + $0x10] sm:$0x3] %vm51_vm1, %v7481_v0  ;;  %55 = vst.msk [vmem:[#allocation2 + $0x28] sm:$0x3] %vm51_vm1, %v7481_v0  ;;  %v160_v3 = vld [vmem:[%s12242_s0 + $0x10] sm:$0xff]  ;;  %v161_v4 = vld [vmem:[%s12242_s0 + $0x18] sm:$0xff] }
   0x3   :  { %53 = vst.msk [vmem:[#allocation2 + $0x18] sm:$0xff] %vm48_vm0, %v7481_v0  ;;  %54 = vst.msk [vmem:[#allocation2 + $0x20] sm:$0xff] %vm48_vm0, %v7481_v0  ;;  %v162_v5 = vld [vmem:[%s12242_s0 + $0x20] sm:$0xff]  ;;  %v163_v6 = vld [vmem:[%s12242_s0 + $0x28] sm:$0xff] }
   0x4   :  { %56 = vst.msk [vmem:[#allocation2 + $0x30] sm:$0xff] %vm48_vm0, %v7481_v0  ;;  %57 = vst.msk [vmem:[#allocation2 + $0x38] sm:$0xff] %vm48_vm0, %v7481_v0  ;;  %v164_v7 = vld [vmem:[%s12242_s0 + $0x30] sm:$0xff]  ;;  %v165_v8 = vld [vmem:[%s12242_s0 + $0x38] sm:$0xff] }
   0x5   :  { %58 = vst.msk [vmem:[#allocation2 + $0x40] sm:$0x3] %vm51_vm1, %v7481_v0  ;;  %61 = vst.msk [vmem:[#allocation2 + $0x58] sm:$0x3] %vm51_vm1, %v7481_v0  ;;  %v166_v9 = vld [vmem:[%s12242_s0 + $0x40] sm:$0xff]  ;;  %v167_v10 = vld [vmem:[%s12242_s0 + $0x48] sm:$0xff] }
   0x6   :  { %59 = vst.msk [vmem:[#allocation2 + $0x48] sm:$0xff] %vm48_vm0, %v7481_v0  ;;  %60 = vst.msk [vmem:[#allocation2 + $0x50] sm:$0xff] %vm48_vm0, %v7481_v0  ;;  %v168_v11 = vld [vmem:[%s12242_s0 + $0x50] sm:$0xff]  ;;  %v169_v12 = vld [vmem:[%s12242_s0 + $0x58] sm:$0xff] }
   0x7   :  { %62 = vst.msk [vmem:[#allocation2 + $0x60] sm:$0xff] %vm48_vm0, %v7481_v0  ;;  %63 = vst.msk [vmem:[#allocation2 + $0x68] sm:$0xff] %vm48_vm0, %v7481_v0  ;;  %v170_v13 = vld [vmem:[%s12242_s0 + $0x60] sm:$0xff]  ;;  %v171_v14 = vld [vmem:[%s12242_s0 + $0x68] sm:$0xff] }
   0x8   :  { %64 = vst.msk [vmem:[#allocation2 + $0x70] sm:$0x3] %vm51_vm1, %v7481_v0  ;;  %67 = vst.msk [vmem:[#allocation2 + $0x88] sm:$0x3] %vm51_vm1, %v7481_v0  ;;  %v172_v15 = vld [vmem:[%s12242_s0 + $0x70] sm:$0xff]  ;;  %v173_v16 = vld [vmem:[%s12242_s0 + $0x78] sm:$0xff] }
   0x9   :  { %65 = vst.msk [vmem:[#allocation2 + $0x78] sm:$0xff] %vm48_vm0, %v7481_v0  ;;  %66 = vst.msk [vmem:[#allocation2 + $0x80] sm:$0xff] %vm48_vm0, %v7481_v0  ;;  %v174_v17 = vld [vmem:[%s12242_s0 + $0x80] sm:$0xff]  ;;  %v175_v18 = vld [vmem:[%s12242_s0 + $0x88] sm:$0xff] }
   0xa   :  { %68 = vst.msk [vmem:[#allocation2 + $0x90] sm:$0xff] %vm48_vm0, %v7481_v0  ;;  %69 = vst.msk [vmem:[#allocation2 + $0x98] sm:$0xff] %vm48_vm0, %v7481_v0  ;;  %v176_v19 = vld [vmem:[%s12242_s0 + $0x90] sm:$0xff]  ;;  %v177_v20 = vld [vmem:[%s12242_s0 + $0x98] sm:$0xff] }
   0xb   :  { %70 = vst.msk [vmem:[#allocation2 + $0xa0] sm:$0x3] %vm51_vm1, %v7481_v0  ;;  %73 = vst.msk [vmem:[#allocation2 + $0xb8] sm:$0x3] %vm51_vm1, %v7481_v0  ;;  %v178_v21 = vld [vmem:[%s12242_s0 + $0xa0] sm:$0xff]  ;;  %v179_v22 = vld [vmem:[%s12242_s0 + $0xa8] sm:$0xff] }
   0xc   :  { %71 = vst.msk [vmem:[#allocation2 + $0xa8] sm:$0xff] %vm48_vm0, %v7481_v0  ;;  %72 = vst.msk [vmem:[#allocation2 + $0xb0] sm:$0xff] %vm48_vm0, %v7481_v0  ;;  %v180_v23 = vld [vmem:[%s12242_s0 + $0xb0] sm:$0xff]  ;;  %v181_v24 = vld [vmem:[%s12242_s0 + $0xb8] sm:$0xff] }
   0xd   :  { %74 = vst.msk [vmem:[#allocation2 + $0xc0] sm:$0xff] %vm48_vm0, %v7481_v0  ;;  %75 = vst.msk [vmem:[#allocation2 + $0xc8] sm:$0xff] %vm48_vm0, %v7481_v0  ;;  %v182_v25 = vld [vmem:[%s12242_s0 + $0xc0] sm:$0xff]  ;;  %v183_v26 = vld [vmem:[%s12242_s0 + $0xc8] sm:$0xff] }
   0xe   :  { %76 = vst.msk [vmem:[#allocation2 + $0xd0] sm:$0x3] %vm51_vm1, %v7481_v0  ;;  %79 = vst.msk [vmem:[#allocation2 + $0xe8] sm:$0x3] %vm51_vm1, %v7481_v0  ;;  %v184_v27 = vld [vmem:[%s12242_s0 + $0xd0] sm:$0xff]  ;;  %v185_v28 = vld [vmem:[%s12242_s0 + $0xd8] sm:$0xff] }
   0xf   :  { %77 = vst.msk [vmem:[#allocation2 + $0xd8] sm:$0xff] %vm48_vm0, %v7481_v0  ;;  %78 = vst.msk [vmem:[#allocation2 + $0xe0] sm:$0xff] %vm48_vm0, %v7481_v0  ;;  %v186_v29 = vld [vmem:[%s12242_s0 + $0xe0] sm:$0xff]  ;;  %v187_v30 = vld [vmem:[%s12242_s0 + $0xe8] sm:$0xff] }
  0x10   :  { %80 = vst.msk [vmem:[#allocation2 + $0xf0] sm:$0xff] %vm48_vm0, %v7481_v0  ;;  %81 = vst.msk [vmem:[#allocation2 + $0xf8] sm:$0xff] %vm48_vm0, %v7481_v0  ;;  %v188_v31 = vld [vmem:[%s12242_s0 + $0xf0] sm:$0xff]  ;;  %v189_v32 = vld [vmem:[%s12242_s0 + $0xf8] sm:$0xff] }
  0x11   :  { %82 = vst.msk [vmem:[#allocation2 + $0x100] sm:$0x3] %vm51_vm1, %v7481_v0  ;;  %85 = vst.msk [vmem:[#allocation2 + $0x118] sm:$0x3] %vm51_vm1, %v7481_v0  ;;  %v190_v33 = vld [vmem:[%s12242_s0 + $0x100] sm:$0xff]  ;;  %v191_v34 = vld [vmem:[%s12242_s0 + $0x108] sm:$0xff] }
  0x12   :  { %83 = vst.msk [vmem:[#allocation2 + $0x108] sm:$0xff] %vm48_vm0, %v7481_v0  ;;  %84 = vst.msk [vmem:[#allocation2 + $0x110] sm:$0xff] %vm48_vm0, %v7481_v0  ;;  %v192_v35 = vld [vmem:[%s12242_s0 + $0x110] sm:$0xff]  ;;  %v193_v36 = vld [vmem:[%s12242_s0 + $0x118] sm:$0xff] }
  0x13   :  { %86 = vst.msk [vmem:[#allocation2 + $0x120] sm:$0xff] %vm48_vm0, %v7481_v0  ;;  %87 = vst.msk [vmem:[#allocation2 + $0x128] sm:$0xff] %vm48_vm0, %v7481_v0  ;;  %v194_v37 = vld [vmem:[%s12242_s0 + $0x120] sm:$0xff]  ;;  %v195_v38 = vld [vmem:[%s12242_s0 + $0x128] sm:$0xff] }
  0x14   :  { %88 = vst.msk [vmem:[#allocation2 + $0x130] sm:$0x3] %vm51_vm1, %v7481_v0  ;;  %91 = vst.msk [vmem:[#allocation2 + $0x148] sm:$0x3] %vm51_vm1, %v7481_v0  ;;  %v196_v39 = vld [vmem:[%s12242_s0 + $0x130] sm:$0xff]  ;;  %v197_v40 = vld [vmem:[%s12242_s0 + $0x138] sm:$0xff] }
  0x15   :  { %89 = vst.msk [vmem:[#allocation2 + $0x138] sm:$0xff] %vm48_vm0, %v7481_v0  ;;  %90 = vst.msk [vmem:[#allocation2 + $0x140] sm:$0xff] %vm48_vm0, %v7481_v0  ;;  %v198_v41 = vld [vmem:[%s12242_s0 + $0x140] sm:$0xff]  ;;  %v199_v42 = vld [vmem:[%s12242_s0 + $0x148] sm:$0xff] }
  0x16   :  { %92 = vst.msk [vmem:[#allocation2 + $0x150] sm:$0xff] %vm48_vm0, %v7481_v0  ;;  %93 = vst.msk [vmem:[#allocation2 + $0x158] sm:$0xff] %vm48_vm0, %v7481_v0  ;;  %v200_v43 = vld [vmem:[%s12242_s0 + $0x150] sm:$0xff]  ;;  %v201_v44 = vld [vmem:[%s12242_s0 + $0x158] sm:$0xff] }
  0x17   :  { %94 = vst.msk [vmem:[#allocation2 + $0x160] sm:$0x3] %vm51_vm1, %v7481_v0  ;;  %97 = vst.msk [vmem:[#allocation2 + $0x178] sm:$0x3] %vm51_vm1, %v7481_v0  ;;  %v202_v45 = vld [vmem:[%s12242_s0 + $0x160] sm:$0xff]  ;;  %v203_v46 = vld [vmem:[%s12242_s0 + $0x168] sm:$0xff] }
  0x18   :  { %95 = vst.msk [vmem:[#allocation2 + $0x168] sm:$0xff] %vm48_vm0, %v7481_v0  ;;  %96 = vst.msk [vmem:[#allocation2 + $0x170] sm:$0xff] %vm48_vm0, %v7481_v0  ;;  %v204_v47 = vld [vmem:[%s12242_s0 + $0x170] sm:$0xff]  ;;  %v205_v48 = vld [vmem:[%s12242_s0 + $0x178] sm:$0xff] }
  0x19   :  { %98 = vst.msk [vmem:[#allocation2 + $0x180] sm:$0xff] %vm48_vm0, %v7481_v0  ;;  %99 = vst.msk [vmem:[#allocation2 + $0x188] sm:$0xff] %vm48_vm0, %v7481_v0  ;;  %v206_v49 = vld [vmem:[%s12242_s0 + $0x180] sm:$0xff]  ;;  %v207_v50 = vld [vmem:[%s12242_s0 + $0x188] sm:$0xff] }
  0x1a   :  { %100 = vst.msk [vmem:[#allocation2 + $0x190] sm:$0x3] %vm51_vm1, %v7481_v0  ;;  %103 = vst.msk [vmem:[#allocation2 + $0x1a8] sm:$0x3] %vm51_vm1, %v7481_v0  ;;  %v208_v51 = vld [vmem:[%s12242_s0 + $0x190] sm:$0xff]  ;;  %v209_v52 = vld [vmem:[%s12242_s0 + $0x198] sm:$0xff] }
  0x1b   :  { %101 = vst.msk [vmem:[#allocation2 + $0x198] sm:$0xff] %vm48_vm0, %v7481_v0  ;;  %102 = vst.msk [vmem:[#allocation2 + $0x1a0] sm:$0xff] %vm48_vm0, %v7481_v0  ;;  %v210_v53 = vld [vmem:[%s12242_s0 + $0x1a0] sm:$0xff]  ;;  %v211_v54 = vld [vmem:[%s12242_s0 + $0x1a8] sm:$0xff] }
  0x1c   :  { %104 = vst.msk [vmem:[#allocation2 + $0x1b0] sm:$0xff] %vm48_vm0, %v7481_v0  ;;  %105 = vst.msk [vmem:[#allocation2 + $0x1b8] sm:$0xff] %vm48_vm0, %v7481_v0  ;;  %v212_v55 = vld [vmem:[%s12242_s0 + $0x1b0] sm:$0xff]  ;;  %v213_v56 = vld [vmem:[%s12242_s0 + $0x1b8] sm:$0xff] }
  0x1d   :  { %106 = vst.msk [vmem:[#allocation2 + $0x1c0] sm:$0x3] %vm51_vm1, %v7481_v0  ;;  %109 = vst.msk [vmem:[#allocation2 + $0x1d8] sm:$0x3] %vm51_vm1, %v7481_v0  ;;  %v214_v57 = vld [vmem:[%s12242_s0 + $0x1c0] sm:$0xff]  ;;  %v215_v58 = vld [vmem:[%s12242_s0 + $0x1c8] sm:$0xff] }
  0x1e   :  { %107 = vst.msk [vmem:[#allocation2 + $0x1c8] sm:$0xff] %vm48_vm0, %v7481_v0  ;;  %108 = vst.msk [vmem:[#allocation2 + $0x1d0] sm:$0xff] %vm48_vm0, %v7481_v0  ;;  %v216_v59 = vld [vmem:[%s12242_s0 + $0x1d0] sm:$0xff]  ;;  %v217_v60 = vld [vmem:[%s12242_s0 + $0x1d8] sm:$0xff] }
  0x1f   :  { %110 = vst.msk [vmem:[#allocation2 + $0x1e0] sm:$0xff] %vm48_vm0, %v7481_v0  ;;  %111 = vst.msk [vmem:[#allocation2 + $0x1e8] sm:$0xff] %vm48_vm0, %v7481_v0  ;;  %v218_v61 = vld [vmem:[%s12242_s0 + $0x1e0] sm:$0xff]  ;;  %v219_v62 = vld [vmem:[%s12242_s0 + $0x1e8] sm:$0xff] }
  0x20   :  { %112 = vst.msk [vmem:[#allocation2 + $0x1f0] sm:$0x3] %vm51_vm1, %v7481_v0  ;;  %115 = vst.msk [vmem:[#allocation2 + $0x208] sm:$0x3] %vm51_vm1, %v7481_v0  ;;  %v220_v63 = vld [vmem:[%s12242_s0 + $0x1f0] sm:$0xff] }
  0x21   :  { %113 = vst.msk [vmem:[#allocation2 + $0x1f8] sm:$0xff] %vm48_vm0, %v7481_v0  ;;  %114 = vst.msk [vmem:[#allocation2 + $0x200] sm:$0xff] %vm48_vm0, %v7481_v0 }
  0x22   :  { %116 = vst.msk [vmem:[#allocation2 + $0x210] sm:$0xff] %vm48_vm0, %v7481_v0  ;;  %117 = vst.msk [vmem:[#allocation2 + $0x218] sm:$0xff] %vm48_vm0, %v7481_v0 }
  0x23   :  { %118 = vst.msk [vmem:[#allocation2 + $0x220] sm:$0x3] %vm51_vm1, %v7481_v0  ;;  %121 = vst.msk [vmem:[#allocation2 + $0x238] sm:$0x3] %vm51_vm1, %v7481_v0 }
  0x24   :  { %119 = vst.msk [vmem:[#allocation2 + $0x228] sm:$0xff] %vm48_vm0, %v7481_v0  ;;  %120 = vst.msk [vmem:[#allocation2 + $0x230] sm:$0xff] %vm48_vm0, %v7481_v0 }
  0x25   :  { %122 = vst.msk [vmem:[#allocation2 + $0x240] sm:$0xff] %vm48_vm0, %v7481_v0  ;;  %123 = vst.msk [vmem:[#allocation2 + $0x248] sm:$0xff] %vm48_vm0, %v7481_v0 }
  0x26   :  { %124 = vst.msk [vmem:[#allocation2 + $0x250] sm:$0x3] %vm51_vm1, %v7481_v0  ;;  %127 = vst.msk [vmem:[#allocation2 + $0x268] sm:$0x3] %vm51_vm1, %v7481_v0 }
  0x27   :  { %125 = vst.msk [vmem:[#allocation2 + $0x258] sm:$0xff] %vm48_vm0, %v7481_v0  ;;  %126 = vst.msk [vmem:[#allocation2 + $0x260] sm:$0xff] %vm48_vm0, %v7481_v0 }
  0x28   :  { %128 = vst.msk [vmem:[#allocation2 + $0x270] sm:$0xff] %vm48_vm0, %v7481_v0  ;;  %129 = vst.msk [vmem:[#allocation2 + $0x278] sm:$0xff] %vm48_vm0, %v7481_v0 }
  0x29   :  { %130 = vst.msk [vmem:[#allocation2 + $0x280] sm:$0x3] %vm51_vm1, %v7481_v0  ;;  %133 = vst.msk [vmem:[#allocation2 + $0x298] sm:$0x3] %vm51_vm1, %v7481_v0 }
  0x2a   :  { %131 = vst.msk [vmem:[#allocation2 + $0x288] sm:$0xff] %vm48_vm0, %v7481_v0  ;;  %132 = vst.msk [vmem:[#allocation2 + $0x290] sm:$0xff] %vm48_vm0, %v7481_v0 }
  0x2b   :  { %134 = vst.msk [vmem:[#allocation2 + $0x2a0] sm:$0xff] %vm48_vm0, %v7481_v0  ;;  %135 = vst.msk [vmem:[#allocation2 + $0x2a8] sm:$0xff] %vm48_vm0, %v7481_v0 }
  0x2c   :  { %136 = vst.msk [vmem:[#allocation2 + $0x2b0] sm:$0x3] %vm51_vm1, %v7481_v0  ;;  %139 = vst.msk [vmem:[#allocation2 + $0x2c8] sm:$0x3] %vm51_vm1, %v7481_v0 }
  0x2d   :  { %137 = vst.msk [vmem:[#allocation2 + $0x2b8] sm:$0xff] %vm48_vm0, %v7481_v0  ;;  %138 = vst.msk [vmem:[#allocation2 + $0x2c0] sm:$0xff] %vm48_vm0, %v7481_v0 }
  0x2e   :  { %140 = vst.msk [vmem:[#allocation2 + $0x2d0] sm:$0xff] %vm48_vm0, %v7481_v0  ;;  %141 = vst.msk [vmem:[#allocation2 + $0x2d8] sm:$0xff] %vm48_vm0, %v7481_v0 }
  0x2f   :  { %142 = vst.msk [vmem:[#allocation2 + $0x2e0] sm:$0x3] %vm51_vm1, %v7481_v0  ;;  %145 = vst.msk [vmem:[#allocation2 + $0x2f8] sm:$0x3] %vm51_vm1, %v7481_v0 }
  0x30   :  { %143 = vst.msk [vmem:[#allocation2 + $0x2e8] sm:$0xff] %vm48_vm0, %v7481_v0  ;;  %144 = vst.msk [vmem:[#allocation2 + $0x2f0] sm:$0xff] %vm48_vm0, %v7481_v0 }
  0x31   :  { %146 = vst.msk [vmem:[#allocation2 + $0x300] sm:$0xff] %vm48_vm0, %v7481_v0  ;;  %147 = vst.msk [vmem:[#allocation2 + $0x308] sm:$0xff] %vm48_vm0, %v7481_v0 }
  0x32   :  { %148 = vst.msk [vmem:[#allocation2 + $0x310] sm:$0x3] %vm51_vm1, %v7481_v0  ;;  %151 = vst.msk [vmem:[#allocation2 + $0x328] sm:$0x3] %vm51_vm1, %v7481_v0 }
  0x33   :  { %149 = vst.msk [vmem:[#allocation2 + $0x318] sm:$0xff] %vm48_vm0, %v7481_v0  ;;  %150 = vst.msk [vmem:[#allocation2 + $0x320] sm:$0xff] %vm48_vm0, %v7481_v0 }
  0x34   :  { %152 = vst.msk [vmem:[#allocation2 + $0x330] sm:$0xff] %vm48_vm0, %v7481_v0  ;;  %153 = vst.msk [vmem:[#allocation2 + $0x338] sm:$0xff] %vm48_vm0, %v7481_v0 }
  0x35   :  { %154 = vst.msk [vmem:[#allocation2 + $0x340] sm:$0x3] %vm51_vm1, %v7481_v0  ;;  %157 = vst.msk [vmem:[#allocation2 + $0x358] sm:$0x3] %vm51_vm1, %v7481_v0 }
  0x36   :  { %155 = vst.msk [vmem:[#allocation2 + $0x348] sm:$0xff] %vm48_vm0, %v7481_v0  ;;  %156 = vst.msk [vmem:[#allocation2 + $0x350] sm:$0xff] %vm48_vm0, %v7481_v0  ;;  %v221_v0 = vld [vmem:[%s12242_s0 + $0x1f8] sm:$0xff] }
  0x37   :  { %223 = vst.msk [vmem:[#allocation2 + $0x19] sm:$0xff] %vm48_vm0, %v158_v1  ;;  %224 = vst.msk [vmem:[#allocation2 + $0x21] sm:$0xff] %vm48_vm0, %v159_v2  ;;  %v320_v1 = vld [vmem:[#allocation2 + $0x1b8] sm:$0xff] }
  0x38   :  { %225 = vst.msk [vmem:[#allocation2 + $0x31] sm:$0xff] %vm48_vm0, %v160_v3  ;;  %226 = vst.msk [vmem:[#allocation2 + $0x39] sm:$0xff] %vm48_vm0, %v161_v4 }
  0x39   :  { %227 = vst.msk [vmem:[#allocation2 + $0x49] sm:$0xff] %vm48_vm0, %v162_v5  ;;  %228 = vst.msk [vmem:[#allocation2 + $0x51] sm:$0xff] %vm48_vm0, %v163_v6 }
  0x3a   :  { %229 = vst.msk [vmem:[#allocation2 + $0x61] sm:$0xff] %vm48_vm0, %v164_v7  ;;  %230 = vst.msk [vmem:[#allocation2 + $0x69] sm:$0xff] %vm48_vm0, %v165_v8 }
  0x3b   :  { %231 = vst.msk [vmem:[#allocation2 + $0x79] sm:$0xff] %vm48_vm0, %v166_v9  ;;  %232 = vst.msk [vmem:[#allocation2 + $0x81] sm:$0xff] %vm48_vm0, %v167_v10 }
  0x3c   :  { %233 = vst.msk [vmem:[#allocation2 + $0x91] sm:$0xff] %vm48_vm0, %v168_v11  ;;  %234 = vst.msk [vmem:[#allocation2 + $0x99] sm:$0xff] %vm48_vm0, %v169_v12 }
  0x3d   :  { %235 = vst.msk [vmem:[#allocation2 + $0xa9] sm:$0xff] %vm48_vm0, %v170_v13  ;;  %236 = vst.msk [vmem:[#allocation2 + $0xb1] sm:$0xff] %vm48_vm0, %v171_v14 }
  0x3e   :  { %237 = vst.msk [vmem:[#allocation2 + $0xc1] sm:$0xff] %vm48_vm0, %v172_v15  ;;  %238 = vst.msk [vmem:[#allocation2 + $0xc9] sm:$0xff] %vm48_vm0, %v173_v16 }
  0x3f   :  { %239 = vst.msk [vmem:[#allocation2 + $0xd9] sm:$0xff] %vm48_vm0, %v174_v17  ;;  %240 = vst.msk [vmem:[#allocation2 + $0xe1] sm:$0xff] %vm48_vm0, %v175_v18  ;;  %v8038_v18 = vld [vmem:[%s12243_s1] ss:$0 sm:$0xff] }
  0x40   :  { %241 = vst.msk [vmem:[#allocation2 + $0xf1] sm:$0xff] %vm48_vm0, %v176_v19  ;;  %242 = vst.msk [vmem:[#allocation2 + $0xf9] sm:$0xff] %vm48_vm0, %v177_v20 }
  0x41   :  { %243 = vst.msk [vmem:[#allocation2 + $0x109] sm:$0xff] %vm48_vm0, %v178_v21  ;;  %244 = vst.msk [vmem:[#allocation2 + $0x111] sm:$0xff] %vm48_vm0, %v179_v22 }
  0x42   :  { %245 = vst.msk [vmem:[#allocation2 + $0x121] sm:$0xff] %vm48_vm0, %v180_v23  ;;  %246 = vst.msk [vmem:[#allocation2 + $0x129] sm:$0xff] %vm48_vm0, %v181_v24  ;;  %v8041_v23 = vmul.f32 %v8038_v18, %v320_v1 }
  0x43   :  { %247 = vst.msk [vmem:[#allocation2 + $0x139] sm:$0xff] %vm48_vm0, %v182_v25  ;;  %248 = vst.msk [vmem:[#allocation2 + $0x141] sm:$0xff] %vm48_vm0, %v183_v26 }
  0x44   :  { %249 = vst.msk [vmem:[#allocation2 + $0x151] sm:$0xff] %vm48_vm0, %v184_v27  ;;  %250 = vst.msk [vmem:[#allocation2 + $0x159] sm:$0xff] %vm48_vm0, %v185_v28 }
  0x45   :  { %251 = vst.msk [vmem:[#allocation2 + $0x169] sm:$0xff] %vm48_vm0, %v186_v29  ;;  %252 = vst.msk [vmem:[#allocation2 + $0x171] sm:$0xff] %vm48_vm0, %v187_v30 }
  0x46   :  { %253 = vst.msk [vmem:[#allocation2 + $0x181] sm:$0xff] %vm48_vm0, %v188_v31  ;;  %254 = vst.msk [vmem:[#allocation2 + $0x189] sm:$0xff] %vm48_vm0, %v189_v32 }
  0x47   :  { %255 = vst.msk [vmem:[#allocation2 + $0x1c9] sm:$0xff] %vm48_vm0, %v190_v33  ;;  %256 = vst.msk [vmem:[#allocation2 + $0x1d1] sm:$0xff] %vm48_vm0, %v191_v34 }
  0x48   :  { %257 = vst.msk [vmem:[#allocation2 + $0x1e1] sm:$0xff] %vm48_vm0, %v192_v35  ;;  %258 = vst.msk [vmem:[#allocation2 + $0x1e9] sm:$0xff] %vm48_vm0, %v193_v36 }
  0x49   :  { %259 = vst.msk [vmem:[#allocation2 + $0x1f9] sm:$0xff] %vm48_vm0, %v194_v37  ;;  %260 = vst.msk [vmem:[#allocation2 + $0x201] sm:$0xff] %vm48_vm0, %v195_v38 }
  0x4a   :  { %261 = vst.msk [vmem:[#allocation2 + $0x211] sm:$0xff] %vm48_vm0, %v196_v39  ;;  %262 = vst.msk [vmem:[#allocation2 + $0x219] sm:$0xff] %vm48_vm0, %v197_v40 }
  0x4b   :  { %263 = vst.msk [vmem:[#allocation2 + $0x229] sm:$0xff] %vm48_vm0, %v198_v41  ;;  %264 = vst.msk [vmem:[#allocation2 + $0x231] sm:$0xff] %vm48_vm0, %v199_v42 }
  0x4c   :  { %265 = vst.msk [vmem:[#allocation2 + $0x241] sm:$0xff] %vm48_vm0, %v200_v43  ;;  %266 = vst.msk [vmem:[#allocation2 + $0x249] sm:$0xff] %vm48_vm0, %v201_v44 }
  0x4d   :  { %267 = vst.msk [vmem:[#allocation2 + $0x259] sm:$0xff] %vm48_vm0, %v202_v45  ;;  %268 = vst.msk [vmem:[#allocation2 + $0x261] sm:$0xff] %vm48_vm0, %v203_v46  ;;  %v517_v46 = vld [vmem:[#allocation2 + $0x1b9] sm:$0xff] }
  0x4e   :  { %269 = vst.msk [vmem:[#allocation2 + $0x271] sm:$0xff] %vm48_vm0, %v204_v47  ;;  %270 = vst.msk [vmem:[#allocation2 + $0x279] sm:$0xff] %vm48_vm0, %v205_v48  ;;  %v321_v2 = vld [vmem:[#allocation2 + $0x1c8] sm:$0xff]  ;;  %v322_v3 = vld [vmem:[#allocation2 + $0x1d0] sm:$0xff] }
  0x4f   :  { %271 = vst.msk [vmem:[#allocation2 + $0x289] sm:$0xff] %vm48_vm0, %v206_v49  ;;  %272 = vst.msk [vmem:[#allocation2 + $0x291] sm:$0xff] %vm48_vm0, %v207_v50  ;;  %v323_v4 = vld [vmem:[#allocation2 + $0x1e0] sm:$0xff]  ;;  %v324_v5 = vld [vmem:[#allocation2 + $0x1e8] sm:$0xff]  ;;  %v8044_v28 = vmul.f32 %v8038_v18, %v321_v2  ;;  %v8047_v29 = vmul.f32 %v8038_v18, %v322_v3 }
  0x50   :  { %273 = vst.msk [vmem:[#allocation2 + $0x2a1] sm:$0xff] %vm48_vm0, %v208_v51  ;;  %274 = vst.msk [vmem:[#allocation2 + $0x2a9] sm:$0xff] %vm48_vm0, %v209_v52  ;;  %v325_v6 = vld [vmem:[#allocation2 + $0x1f8] sm:$0xff]  ;;  %v326_v7 = vld [vmem:[#allocation2 + $0x200] sm:$0xff]  ;;  %v8050_v30 = vmul.f32 %v8038_v18, %v323_v4  ;;  %v8053_v31 = vmul.f32 %v8038_v18, %v324_v5 }
  0x51   :  { %275 = vst.msk [vmem:[#allocation2 + $0x2b9] sm:$0xff] %vm48_vm0, %v210_v53  ;;  %276 = vst.msk [vmem:[#allocation2 + $0x2c1] sm:$0xff] %vm48_vm0, %v211_v54  ;;  %v327_v8 = vld [vmem:[#allocation2 + $0x210] sm:$0xff]  ;;  %v328_v9 = vld [vmem:[#allocation2 + $0x218] sm:$0xff]  ;;  %v8056_v36 = vmul.f32 %v8038_v18, %v325_v6  ;;  %v8059_v37 = vmul.f32 %v8038_v18, %v326_v7 }
  0x52   :  { %277 = vst.msk [vmem:[#allocation2 + $0x2d1] sm:$0xff] %vm48_vm0, %v212_v55  ;;  %278 = vst.msk [vmem:[#allocation2 + $0x2d9] sm:$0xff] %vm48_vm0, %v213_v56  ;;  %v329_v10 = vld [vmem:[#allocation2 + $0x228] sm:$0xff]  ;;  %v330_v11 = vld [vmem:[#allocation2 + $0x230] sm:$0xff]  ;;  %v8062_v38 = vmul.f32 %v8038_v18, %v327_v8  ;;  %v8065_v39 = vmul.f32 %v8038_v18, %v328_v9 }
  0x53   :  { %279 = vst.msk [vmem:[#allocation2 + $0x2e9] sm:$0xff] %vm48_vm0, %v214_v57  ;;  %280 = vst.msk [vmem:[#allocation2 + $0x2f1] sm:$0xff] %vm48_vm0, %v215_v58  ;;  %v331_v12 = vld [vmem:[#allocation2 + $0x240] sm:$0xff]  ;;  %v332_v13 = vld [vmem:[#allocation2 + $0x248] sm:$0xff]  ;;  %v8068_v42 = vmul.f32 %v8038_v18, %v329_v10  ;;  %v8071_v43 = vmul.f32 %v8038_v18, %v330_v11 }
  0x54   :  { %281 = vst.msk [vmem:[#allocation2 + $0x301] sm:$0xff] %vm48_vm0, %v216_v59  ;;  %282 = vst.msk [vmem:[#allocation2 + $0x309] sm:$0xff] %vm48_vm0, %v217_v60  ;;  %v333_v14 = vld [vmem:[#allocation2 + $0x258] sm:$0xff]  ;;  %v334_v15 = vld [vmem:[#allocation2 + $0x260] sm:$0xff]  ;;  %v8074_v44 = vmul.f32 %v8038_v18, %v331_v12  ;;  %v8077_v45 = vmul.f32 %v8038_v18, %v332_v13 }
  0x55   :  { %283 = vst.msk [vmem:[#allocation2 + $0x319] sm:$0xff] %vm48_vm0, %v218_v61  ;;  %284 = vst.msk [vmem:[#allocation2 + $0x321] sm:$0xff] %vm48_vm0, %v219_v62  ;;  %v335_v16 = vld [vmem:[#allocation2 + $0x270] sm:$0xff]  ;;  %v336_v17 = vld [vmem:[#allocation2 + $0x278] sm:$0xff]  ;;  %v8080_v48 = vmul.f32 %v8038_v18, %v333_v14  ;;  %v8083_v49 = vmul.f32 %v8038_v18, %v334_v15 }
  0x56   :  { %285 = vst.msk [vmem:[#allocation2 + $0x331] sm:$0xff] %vm48_vm0, %v220_v63  ;;  %286 = vst.msk [vmem:[#allocation2 + $0x339] sm:$0xff] %vm48_vm0, %v221_v0  ;;  %v337_v19 = vld [vmem:[#allocation2 + $0x288] sm:$0xff]  ;;  %v338_v20 = vld [vmem:[#allocation2 + $0x290] sm:$0xff]  ;;  %v8086_v50 = vmul.f32 %v8038_v18, %v335_v16  ;;  %v8089_v51 = vmul.f32 %v8038_v18, %v336_v17 }
  0x57   :  { %12325 = vst [vmem:[#allocation3_spill] sm:$0xff] %v8038_v18  ;;  %v339_v21 = vld [vmem:[#allocation2 + $0x2a0] sm:$0xff]  ;;  %v340_v22 = vld [vmem:[#allocation2 + $0x2a8] sm:$0xff]  ;;  %v519_v52 = vld [vmem:[#allocation2 + $0x1d1] sm:$0xff]  ;;  %v8092_v56 = vmul.f32 %v8038_v18, %v337_v19  ;;  %v8095_v57 = vmul.f32 %v8038_v18, %v338_v20 }
  0x58   :  { %v341_v24 = vld [vmem:[#allocation2 + $0x2b8] sm:$0xff]  ;;  %v342_v25 = vld [vmem:[#allocation2 + $0x2c0] sm:$0xff]  ;;  %v518_v47 = vld [vmem:[#allocation2 + $0x1c9] sm:$0xff]  ;;  %v8098_v58 = vmul.f32 %v8038_v18, %v339_v21  ;;  %v8101_v59 = vmul.f32 %v8038_v18, %v340_v22 }
  0x59   :  { %v343_v26 = vld [vmem:[#allocation2 + $0x2d0] sm:$0xff]  ;;  %v344_v27 = vld [vmem:[#allocation2 + $0x2d8] sm:$0xff]  ;;  %v520_v53 = vld [vmem:[#allocation2 + $0x1e1] sm:$0xff]  ;;  %v8104_v0 = vmul.f32 %v8038_v18, %v341_v24  ;;  %v8107_v1 = vmul.f32 %v8038_v18, %v342_v25 }
  0x5a   :  { %v345_v32 = vld [vmem:[#allocation2 + $0x2e8] sm:$0xff]  ;;  %v346_v33 = vld [vmem:[#allocation2 + $0x2f0] sm:$0xff]  ;;  %v522_v55 = vld [vmem:[#allocation2 + $0x1f9] sm:$0xff]  ;;  %v8110_v2 = vmul.f32 %v8038_v18, %v343_v26  ;;  %v8113_v3 = vmul.f32 %v8038_v18, %v344_v27 }
  0x5b   :  { %v347_v34 = vld [vmem:[#allocation2 + $0x300] sm:$0xff]  ;;  %v348_v35 = vld [vmem:[#allocation2 + $0x308] sm:$0xff]  ;;  %v524_v61 = vld [vmem:[#allocation2 + $0x211] sm:$0xff]  ;;  %12326 = vst [vmem:[#allocation4_spill] sm:$0xff] %v8107_v1  ;;  %v8116_v7 = vmul.f32 %v8038_v18, %v345_v32  ;;  %v8119_v8 = vmul.f32 %v8038_v18, %v346_v33 }
  0x5c   :  { %v349_v40 = vld [vmem:[#allocation2 + $0x318] sm:$0xff]  ;;  %v350_v41 = vld [vmem:[#allocation2 + $0x320] sm:$0xff]  ;;  %v521_v54 = vld [vmem:[#allocation2 + $0x1e9] sm:$0xff]  ;;  %12327 = vst [vmem:[#allocation5_spill] sm:$0xff] %v8110_v2  ;;  %v8122_v9 = vmul.f32 %v8038_v18, %v347_v34  ;;  %v8125_v10 = vmul.f32 %v8038_v18, %v348_v35 }
  0x5d   :  { %v523_v60 = vld [vmem:[#allocation2 + $0x201] sm:$0xff]  ;;  %v525_v62 = vld [vmem:[#allocation2 + $0x219] sm:$0xff]  ;;  %v526_v63 = vld [vmem:[#allocation2 + $0x229] sm:$0xff]  ;;  %12328 = vst [vmem:[#allocation6_spill] sm:$0xff] %v8113_v3  ;;  %v8133_v14 = vmul.f32 %v8038_v18, %v349_v40  ;;  %v8136_v15 = vmul.f32 %v8038_v18, %v350_v41 }
  0x5e   :  { %v527_v4 = vld [vmem:[#allocation2 + $0x231] sm:$0xff]  ;;  %v528_v5 = vld [vmem:[#allocation2 + $0x241] sm:$0xff]  ;;  %v529_v6 = vld [vmem:[#allocation2 + $0x249] sm:$0xff]  ;;  %12329 = vst [vmem:[#allocation7_spill] sm:$0xff] %v8116_v7 }
  0x5f   :  { %12330 = vst [vmem:[#allocation8_spill] sm:$0xff] %v8119_v8  ;;  %12331 = vst [vmem:[#allocation9_spill] sm:$0xff] %v8122_v9  ;;  %v530_v11 = vld [vmem:[#allocation2 + $0x259] sm:$0xff]  ;;  %v531_v12 = vld [vmem:[#allocation2 + $0x261] sm:$0xff] }
  0x60   :  { %12332 = vst [vmem:[#allocation10_spill] sm:$0xff] %v8125_v10  ;;  %v8130_v13 = vld [vmem:[%s12243_s1 + $0x1] ss:$0 sm:$0xff]  ;;  %12334 = vst [vmem:[#allocation12_spill] sm:$0xff] %v8133_v14  ;;  %v532_v16 = vld [vmem:[#allocation2 + $0x271] sm:$0xff] }
  0x61   :  { %12333 = vst [vmem:[#allocation11_spill] sm:$0xff] %v8130_v13  ;;  %12335 = vst [vmem:[#allocation13_spill] sm:$0xff] %v8136_v15  ;;  %v533_v17 = vld [vmem:[#allocation2 + $0x279] sm:$0xff]  ;;  %v534_v19 = vld [vmem:[#allocation2 + $0x289] sm:$0xff]  ;;  %v586_v20 = vmul.f32 %v8130_v13, %v517_v46  ;;  %v587_v21 = vmul.f32 %v8130_v13, %v518_v47  ;;  %v588_v26 = vmul.f32 %v8130_v13, %v519_v52 }
  0x62   :  { %v535_v22 = vld [vmem:[#allocation2 + $0x291] sm:$0xff]  ;;  %v536_v24 = vld [vmem:[#allocation2 + $0x2a1] sm:$0xff]  ;;  %v537_v25 = vld [vmem:[#allocation2 + $0x2a9] sm:$0xff]  ;;  %v589_v27 = vmul.f32 %v8130_v13, %v520_v53  ;;  %v590_v32 = vmul.f32 %v8130_v13, %v521_v54  ;;  %v591_v33 = vmul.f32 %v8130_v13, %v522_v55  ;;  %v592_v41 = vmul.f32 %v8130_v13, %v523_v60 }
  0x63   :  { %v538_v34 = vld [vmem:[#allocation2 + $0x2b9] sm:$0xff]  ;;  %v539_v35 = vld [vmem:[#allocation2 + $0x2c1] sm:$0xff]  ;;  %v540_v40 = vld [vmem:[#allocation2 + $0x2d1] sm:$0xff]  ;;  %v593_v46 = vmul.f32 %v8130_v13, %v524_v61  ;;  %v594_v47 = vmul.f32 %v8130_v13, %v525_v62  ;;  %v595_v18 = vmul.f32 %v8130_v13, %v526_v63  ;;  %v596_v53 = vmul.f32 %v8130_v13, %v527_v4 }
  0x64   :  { %v541_v15 = vld [vmem:[#allocation2 + $0x2d9] sm:$0xff]  ;;  %v542_v14 = vld [vmem:[#allocation2 + $0x2e9] sm:$0xff]  ;;  %v543_v52 = vld [vmem:[#allocation2 + $0x2f1] sm:$0xff]  ;;  %v597_v54 = vmul.f32 %v8130_v13, %v528_v5  ;;  %v598_v55 = vmul.f32 %v8130_v13, %v529_v6  ;;  %v599_v10 = vmul.f32 %v8130_v13, %v530_v11  ;;  %v600_v61 = vmul.f32 %v8130_v13, %v531_v12 }
  0x65   :  { %v544_v9 = vld [vmem:[#allocation2 + $0x301] sm:$0xff]  ;;  %v545_v8 = vld [vmem:[#allocation2 + $0x309] sm:$0xff]  ;;  %v546_v60 = vld [vmem:[#allocation2 + $0x319] sm:$0xff]  ;;  %v601_v62 = vmul.f32 %v8130_v13, %v532_v16  ;;  %v602_v63 = vmul.f32 %v8130_v13, %v533_v17  ;;  %v603_v7 = vmul.f32 %v8130_v13, %v534_v19  ;;  %v604_v4 = vmul.f32 %v8130_v13, %v535_v22 }
  0x66   :  { %v547_v3 = vld [vmem:[#allocation2 + $0x321] sm:$0xff]  ;;  %v605_v5 = vmul.f32 %v8130_v13, %v536_v24  ;;  %v606_v6 = vmul.f32 %v8130_v13, %v537_v25  ;;  %v607_v11 = vmul.f32 %v8130_v13, %v538_v34  ;;  %v608_v2 = vmul.f32 %v8130_v13, %v539_v35 }
  0x67   :  { %v609_v1 = vmul.f32 %v8130_v13, %v540_v40  ;;  %v610_v12 = vmul.f32 %v8130_v13, %v541_v15  ;;  %v611_v16 = vmul.f32 %v8130_v13, %v542_v14  ;;  %v612_v17 = vmul.f32 %v8130_v13, %v543_v52  ;;  %v287_v40 = vld [vmem:[#allocation2] sm:$0xff]  ;;  %v291_v52 = vld [vmem:[#allocation2 + $0x30] sm:$0xff] }
  0x68   :  { %v613_v19 = vmul.f32 %v8130_v13, %v544_v9  ;;  %v614_v22 = vmul.f32 %v8130_v13, %v545_v8  ;;  %v615_v24 = vmul.f32 %v8130_v13, %v546_v60  ;;  %v616_v25 = vmul.f32 %v8130_v13, %v547_v3  ;;  %v295_v60 = vld [vmem:[#allocation2 + $0x60] sm:$0xff] }
  0x69   :  { %v8170_v34 = vadd.f32 %v586_v20, %v8041_v23  ;;  %v8173_v35 = vadd.f32 %v587_v21, %v8044_v28  ;;  %v8176_v15 = vadd.f32 %v588_v26, %v8047_v29  ;;  %v8179_v14 = vadd.f32 %v589_v27, %v8050_v30 }
  0x6a   :  { %v8182_v9 = vadd.f32 %v590_v32, %v8053_v31  ;;  %v8185_v8 = vadd.f32 %v591_v33, %v8056_v36  ;;  %v8188_v3 = vadd.f32 %v592_v41, %v8059_v37  ;;  %v8191_v23 = vadd.f32 %v593_v46, %v8062_v38  ;;  %v288_v41 = vld [vmem:[#allocation2 + $0x8] sm:$0xff]  ;;  %v289_v46 = vld [vmem:[#allocation2 + $0x18] sm:$0xff] }
  0x6b   :  { %v8194_v28 = vadd.f32 %v594_v47, %v8065_v39  ;;  %v8197_v29 = vadd.f32 %v595_v18, %v8068_v42  ;;  %v8200_v30 = vadd.f32 %v596_v53, %v8071_v43  ;;  %v8203_v31 = vadd.f32 %v597_v54, %v8074_v44  ;;  %v290_v47 = vld [vmem:[#allocation2 + $0x20] sm:$0xff]  ;;  %v292_v53 = vld [vmem:[#allocation2 + $0x38] sm:$0xff]  ;;  %v293_v54 = vld [vmem:[#allocation2 + $0x48] sm:$0xff] }
  0x6c   :  { %v8206_v36 = vadd.f32 %v598_v55, %v8077_v45  ;;  %v8209_v37 = vadd.f32 %v599_v10, %v8080_v48  ;;  %v8212_v38 = vadd.f32 %v600_v61, %v8083_v49  ;;  %v8215_v39 = vadd.f32 %v601_v62, %v8086_v50  ;;  %v12336_v49 = vld [vmem:[#allocation4_spill] sm:$0xff]  ;;  %v294_v55 = vld [vmem:[#allocation2 + $0x50] sm:$0xff]  ;;  %v297_v62 = vld [vmem:[#allocation2 + $0x78] sm:$0xff] }
  0x6d   :  { %v8218_v18 = vadd.f32 %v602_v63, %v8089_v51  ;;  %v8221_v42 = vadd.f32 %v603_v7, %v8092_v56  ;;  %v8224_v43 = vadd.f32 %v604_v4, %v8095_v57  ;;  %v8227_v44 = vadd.f32 %v605_v5, %v8098_v58  ;;  %v12338_v51 = vld [vmem:[#allocation5_spill] sm:$0xff]  ;;  %v12340_v56 = vld [vmem:[#allocation6_spill] sm:$0xff]  ;;  %v12342_v57 = vld [vmem:[#allocation7_spill] sm:$0xff] }
  0x6e   :  { %v8230_v45 = vadd.f32 %v606_v6, %v8101_v59  ;;  %v8233_v48 = vadd.f32 %v607_v11, %v8104_v0  ;;  %v8236_v50 = vadd.f32 %v608_v2, %v12336_v49  ;;  %v8239_v10 = vadd.f32 %v609_v1, %v12338_v51  ;;  %v12344_v58 = vld [vmem:[#allocation8_spill] sm:$0xff]  ;;  %v12346_v59 = vld [vmem:[#allocation9_spill] sm:$0xff]  ;;  %v12348_v0 = vld [vmem:[#allocation10_spill] sm:$0xff] }
  0x6f   :  { %v8242_v7 = vadd.f32 %v610_v12, %v12340_v56  ;;  %v8245_v20 = vadd.f32 %v611_v16, %v12342_v57  ;;  %v8248_v21 = vadd.f32 %v612_v17, %v12344_v58  ;;  %v8251_v26 = vadd.f32 %v613_v19, %v12346_v59  ;;  %v12350_v2 = vld [vmem:[#allocation12_spill] sm:$0xff]  ;;  %v12352_v1 = vld [vmem:[#allocation13_spill] sm:$0xff]  ;;  %v298_v63 = vld [vmem:[#allocation2 + $0x80] sm:$0xff] }
  0x70   :  { %12337 = vst [vmem:[#allocation4_spill] sm:$0xff] %v8236_v50  ;;  %12339 = vst [vmem:[#allocation5_spill] sm:$0xff] %v8239_v10  ;;  %v8254_v27 = vadd.f32 %v614_v22, %v12348_v0  ;;  %v8257_v32 = vadd.f32 %v615_v24, %v12350_v2  ;;  %v8260_v33 = vadd.f32 %v616_v25, %v12352_v1  ;;  %v296_v61 = vld [vmem:[#allocation2 + $0x68] sm:$0xff]  ;;  %v299_v4 = vld [vmem:[#allocation2 + $0x90] sm:$0xff] }
  0x71   :  { %12341 = vst [vmem:[#allocation6_spill] sm:$0xff] %v8242_v7  ;;  %12343 = vst [vmem:[#allocation7_spill] sm:$0xff] %v8245_v20  ;;  %v300_v5 = vld [vmem:[#allocation2 + $0x98] sm:$0xff]  ;;  %v301_v6 = vld [vmem:[#allocation2 + $0xa8] sm:$0xff] }
  0x72   :  { %12345 = vst [vmem:[#allocation8_spill] sm:$0xff] %v8248_v21  ;;  %12347 = vst [vmem:[#allocation9_spill] sm:$0xff] %v8251_v26  ;;  %v302_v11 = vld [vmem:[#allocation2 + $0xb0] sm:$0xff]  ;;  %v303_v12 = vld [vmem:[#allocation2 + $0xc0] sm:$0xff] }
  0x73   :  { %12349 = vst [vmem:[#allocation10_spill] sm:$0xff] %v8254_v27  ;;  %12351 = vst [vmem:[#allocation12_spill] sm:$0xff] %v8257_v32  ;;  %v304_v16 = vld [vmem:[#allocation2 + $0xc8] sm:$0xff]  ;;  %v305_v17 = vld [vmem:[#allocation2 + $0xd8] sm:$0xff] }
  0x74   :  { %12353 = vst [vmem:[#allocation13_spill] sm:$0xff] %v8260_v33  ;;  %v306_v19 = vld [vmem:[#allocation2 + $0xe0] sm:$0xff]  ;;  %v307_v22 = vld [vmem:[#allocation2 + $0xf0] sm:$0xff]  ;;  %v308_v24 = vld [vmem:[#allocation2 + $0xf8] sm:$0xff] }
  0x75   :  { %v309_v25 = vld [vmem:[#allocation2 + $0x108] sm:$0xff]  ;;  %v310_v49 = vld [vmem:[#allocation2 + $0x110] sm:$0xff]  ;;  %v12354_v51 = vld [vmem:[#allocation3_spill] sm:$0xff] }
  0x76   :  { %v8263_v56 = vmul.f32 %v12354_v51, %v287_v40  ;;  %v8266_v57 = vmul.f32 %v12354_v51, %v288_v41  ;;  %v8269_v58 = vmul.f32 %v12354_v51, %v289_v46  ;;  %v8272_v59 = vmul.f32 %v12354_v51, %v290_v47  ;;  %v311_v0 = vld [vmem:[#allocation2 + $0x120] sm:$0xff]  ;;  %v312_v2 = vld [vmem:[#allocation2 + $0x128] sm:$0xff]  ;;  %v313_v1 = vld [vmem:[#allocation2 + $0x138] sm:$0xff] }
  0x77   :  { %v314_v33 = vld [vmem:[#allocation2 + $0x140] sm:$0xff]  ;;  %v8275_v32 = vmul.f32 %v12354_v51, %v291_v52  ;;  %v8278_v27 = vmul.f32 %v12354_v51, %v292_v53  ;;  %v8281_v40 = vmul.f32 %v12354_v51, %v293_v54  ;;  %v8284_v41 = vmul.f32 %v12354_v51, %v294_v55  ;;  %v315_v46 = vld [vmem:[#allocation2 + $0x150] sm:$0xff]  ;;  %v317_v47 = vld [vmem:[#allocation2 + $0x168] sm:$0xff] }
  0x78   :  { %12355 = vst [vmem:[#allocation3_spill] sm:$0xff] %v8263_v56  ;;  %12356 = vst [vmem:[#allocation14_spill] sm:$0xff] %v8266_v57  ;;  %v8287_v57 = vmul.f32 %v12354_v51, %v295_v60  ;;  %v8290_v56 = vmul.f32 %v12354_v51, %v296_v61  ;;  %v8293_v52 = vmul.f32 %v12354_v51, %v297_v62  ;;  %v319_v54 = vld [vmem:[#allocation2 + $0x1b0] sm:$0xff]  ;;  %v484_v61 = vld [vmem:[#allocation2 + $0x1] sm:$0xff] }
  0x79   :  { %12357 = vst [vmem:[#allocation15_spill] sm:$0xff] %v8269_v58  ;;  %12358 = vst [vmem:[#allocation16_spill] sm:$0xff] %v8272_v59  ;;  %v316_v58 = vld [vmem:[#allocation2 + $0x158] sm:$0xff]  ;;  %v318_v59 = vld [vmem:[#allocation2 + $0x170] sm:$0xff]  ;;  %v8296_v53 = vmul.f32 %v12354_v51, %v298_v63  ;;  %v8299_v55 = vmul.f32 %v12354_v51, %v299_v4  ;;  %v8308_v60 = vmul.f32 %v12354_v51, %v302_v11 }
  0x7a   :  { %12359 = vst [vmem:[#allocation17_spill] sm:$0xff] %v8275_v32  ;;  %12360 = vst [vmem:[#allocation18_spill] sm:$0xff] %v8278_v27  ;;  %v486_v62 = vld [vmem:[#allocation2 + $0x19] sm:$0xff]  ;;  %v8314_v63 = vmul.f32 %v12354_v51, %v304_v16  ;;  %v8317_v4 = vmul.f32 %v12354_v51, %v305_v17  ;;  %v715_v11 = vld [vmem:[#allocation2 + $0x1ca] sm:$0xff]  ;;  %v8332_v16 = vmul.f32 %v12354_v51, %v310_v49 }
  0x7b   :  { %12361 = vst [vmem:[#allocation19_spill] sm:$0xff] %v8281_v40  ;;  %12362 = vst [vmem:[#allocation20_spill] sm:$0xff] %v8284_v41  ;;  %v8302_v41 = vmul.f32 %v12354_v51, %v300_v5  ;;  %v8305_v40 = vmul.f32 %v12354_v51, %v301_v6  ;;  %v8320_v5 = vmul.f32 %v12354_v51, %v306_v19  ;;  %v487_v6 = vld [vmem:[#allocation2 + $0x21] sm:$0xff]  ;;  %v716_v17 = vld [vmem:[#allocation2 + $0x1d2] sm:$0xff] }
  0x7c   :  { %12363 = vst [vmem:[#allocation21_spill] sm:$0xff] %v8287_v57  ;;  %12364 = vst [vmem:[#allocation22_spill] sm:$0xff] %v8290_v56  ;;  %v485_v56 = vld [vmem:[#allocation2 + $0x9] sm:$0xff]  ;;  %v722_v49 = vld [vmem:[#allocation2 + $0x21a] sm:$0xff] }
  0x7d   :  { %12365 = vst [vmem:[#allocation23_spill] sm:$0xff] %v8293_v52  ;;  %12366 = vst [vmem:[#allocation24_spill] sm:$0xff] %v8296_v53  ;;  %v8311_v52 = vmul.f32 %v12354_v51, %v303_v12  ;;  %v8329_v12 = vmul.f32 %v12354_v51, %v309_v25  ;;  %v718_v19 = vld [vmem:[#allocation2 + $0x1ea] sm:$0xff]  ;;  %v720_v25 = vld [vmem:[#allocation2 + $0x202] sm:$0xff] }
  0x7e   :  { %12367 = vst [vmem:[#allocation25_spill] sm:$0xff] %v8299_v55  ;;  %12368 = vst [vmem:[#allocation26_spill] sm:$0xff] %v8302_v41  ;;  %v714_v41 = vld [vmem:[#allocation2 + $0x1ba] sm:$0xff]  ;;  %v8326_v55 = vmul.f32 %v12354_v51, %v308_v24  ;;  %v8344_v24 = vmul.f32 %v12354_v51, %v314_v33  ;;  %v726_v33 = vld [vmem:[#allocation2 + $0x24a] sm:$0xff] }
  0x7f   :  { %12369 = vst [vmem:[#allocation27_spill] sm:$0xff] %v8305_v40  ;;  %12370 = vst [vmem:[#allocation28_spill] sm:$0xff] %v8308_v60  ;;  %v488_v40 = vld [vmem:[#allocation2 + $0x31] sm:$0xff]  ;;  %v8323_v60 = vmul.f32 %v12354_v51, %v307_v22  ;;  %v8341_v22 = vmul.f32 %v12354_v51, %v313_v1  ;;  %v741_v26 = vld [vmem:[#allocation2 + $0x302] sm:$0xff] }
  0x80   :  { %12371 = vst [vmem:[#allocation29_spill] sm:$0xff] %v8311_v52  ;;  %12372 = vst [vmem:[#allocation30_spill] sm:$0xff] %v8314_v63  ;;  %v8335_v63 = vmul.f32 %v12354_v51, %v311_v0  ;;  %v8338_v52 = vmul.f32 %v12354_v51, %v312_v2  ;;  %v8353_v0 = vmul.f32 %v12354_v51, %v317_v47  ;;  %v724_v1 = vld [vmem:[#allocation2 + $0x232] sm:$0xff]  ;;  %v727_v47 = vld [vmem:[#allocation2 + $0x25a] sm:$0xff] }
  0x81   :  { %12373 = vst [vmem:[#allocation31_spill] sm:$0xff] %v8317_v4  ;;  %12374 = vst [vmem:[#allocation32_spill] sm:$0xff] %v8320_v5  ;;  %v717_v4 = vld [vmem:[#allocation2 + $0x1e2] sm:$0xff]  ;;  %v719_v5 = vld [vmem:[#allocation2 + $0x1fa] sm:$0xff]  ;;  %v8356_v2 = vmul.f32 %v12354_v51, %v318_v59 }
  0x82   :  { %12375 = vst [vmem:[#allocation33_spill] sm:$0xff] %v8323_v60  ;;  %12376 = vst [vmem:[#allocation34_spill] sm:$0xff] %v8326_v55  ;;  %v8347_v55 = vmul.f32 %v12354_v51, %v315_v46  ;;  %v8350_v60 = vmul.f32 %v12354_v51, %v316_v58  ;;  %v8365_v46 = vmul.f32 %v8130_v13, %v485_v56  ;;  %v8373_v59 = vld [vmem:[%s12243_s1 + $0x2] ss:$0 sm:$0xff]  ;;  %v731_v56 = vld [vmem:[#allocation2 + $0x28a] sm:$0xff] }
  0x83   :  { %12377 = vst [vmem:[#allocation35_spill] sm:$0xff] %v8329_v12  ;;  %12378 = vst [vmem:[#allocation36_spill] sm:$0xff] %v8332_v16  ;;  %v721_v12 = vld [vmem:[#allocation2 + $0x212] sm:$0xff]  ;;  %v723_v16 = vld [vmem:[#allocation2 + $0x22a] sm:$0xff]  ;;  %v8368_v58 = vmul.f32 %v8130_v13, %v486_v62  ;;  %v784_v62 = vmul.f32 %v8373_v59, %v715_v11  ;;  %v785_v53 = vmul.f32 %v8373_v59, %v716_v17 }
  0x84   :  { %12379 = vst [vmem:[#allocation37_spill] sm:$0xff] %v8335_v63  ;;  %12380 = vst [vmem:[#allocation38_spill] sm:$0xff] %v8338_v52  ;;  %v8362_v52 = vmul.f32 %v8130_v13, %v484_v61  ;;  %v730_v61 = vld [vmem:[#allocation2 + $0x27a] sm:$0xff]  ;;  %v734_v63 = vld [vmem:[#allocation2 + $0x2aa] sm:$0xff]  ;;  %v786_v57 = vmul.f32 %v8373_v59, %v717_v4  ;;  %v788_v27 = vmul.f32 %v8373_v59, %v719_v5 }
  0x85   :  { %12381 = vst [vmem:[#allocation39_spill] sm:$0xff] %v8341_v22  ;;  %12382 = vst [vmem:[#allocation40_spill] sm:$0xff] %v8344_v24  ;;  %v725_v22 = vld [vmem:[#allocation2 + $0x242] sm:$0xff]  ;;  %v8359_v24 = vmul.f32 %v12354_v51, %v319_v54  ;;  %v8379_v51 = vmul.f32 %v8130_v13, %v488_v40  ;;  %v729_v54 = vld [vmem:[#allocation2 + $0x272] sm:$0xff]  ;;  %v791_v11 = vmul.f32 %v8373_v59, %v722_v49 }
  0x86   :  { %12383 = vst [vmem:[#allocation41_spill] sm:$0xff] %v8347_v55  ;;  %12384 = vst [vmem:[#allocation42_spill] sm:$0xff] %v8350_v60  ;;  %v732_v60 = vld [vmem:[#allocation2 + $0x292] sm:$0xff]  ;;  %v733_v55 = vld [vmem:[#allocation2 + $0x2a2] sm:$0xff]  ;;  %v793_v4 = vmul.f32 %v8373_v59, %v724_v1  ;;  %v795_v5 = vmul.f32 %v8373_v59, %v726_v33  ;;  %v798_v49 = vmul.f32 %v8373_v59, %v729_v54 }
  0x87   :  { %12385 = vst [vmem:[#allocation43_spill] sm:$0xff] %v8353_v0  ;;  %12386 = vst [vmem:[#allocation44_spill] sm:$0xff] %v8356_v2  ;;  %v728_v0 = vld [vmem:[#allocation2 + $0x262] sm:$0xff]  ;;  %v8376_v2 = vmul.f32 %v8130_v13, %v487_v6  ;;  %v787_v6 = vmul.f32 %v8373_v59, %v718_v19  ;;  %v735_v40 = vld [vmem:[#allocation2 + $0x2ba] sm:$0xff]  ;;  %v794_v19 = vmul.f32 %v8373_v59, %v725_v22 }
  0x88   :  { %12387 = vst [vmem:[#allocation45_spill] sm:$0xff] %v8359_v24  ;;  %12388 = vst [vmem:[#allocation46_spill] sm:$0xff] %v8362_v52  ;;  %v783_v24 = vmul.f32 %v8373_v59, %v714_v41  ;;  %v737_v32 = vld [vmem:[#allocation2 + $0x2d2] sm:$0xff]  ;;  %v790_v41 = vmul.f32 %v8373_v59, %v721_v12  ;;  %v739_v52 = vld [vmem:[#allocation2 + $0x2ea] sm:$0xff]  ;;  %v796_v13 = vmul.f32 %v8373_v59, %v727_v47 }
  0x89   :  { %12389 = vst [vmem:[#allocation47_spill] sm:$0xff] %v8365_v46  ;;  %12390 = vst [vmem:[#allocation48_spill] sm:$0xff] %v8368_v58  ;;  %v792_v58 = vmul.f32 %v8373_v59, %v723_v16  ;;  %v738_v46 = vld [vmem:[#allocation2 + $0x2da] sm:$0xff]  ;;  %v740_v17 = vld [vmem:[#allocation2 + $0x2f2] sm:$0xff]  ;;  %v797_v12 = vmul.f32 %v8373_v59, %v728_v0  ;;  %v799_v16 = vmul.f32 %v8373_v59, %v730_v61 }
  0x8a   :  { %12391 = vst [vmem:[#allocation49_spill] sm:$0xff] %v8376_v2  ;;  %12392 = vst [vmem:[#allocation50_spill] sm:$0xff] %v8379_v51  ;;  %v736_v51 = vld [vmem:[#allocation2 + $0x2c2] sm:$0xff]  ;;  %v789_v2 = vmul.f32 %v8373_v59, %v720_v25  ;;  %v742_v21 = vld [vmem:[#allocation2 + $0x30a] sm:$0xff]  ;;  %v800_v20 = vmul.f32 %v8373_v59, %v731_v56  ;;  %v801_v1 = vmul.f32 %v8373_v59, %v732_v60 }
  0x8b   :  { %v743_v25 = vld [vmem:[#allocation2 + $0x31a] sm:$0xff]  ;;  %v744_v7 = vld [vmem:[#allocation2 + $0x322] sm:$0xff]  ;;  %v802_v22 = vmul.f32 %v8373_v59, %v733_v55  ;;  %v803_v33 = vmul.f32 %v8373_v59, %v734_v63  ;;  %v804_v47 = vmul.f32 %v8373_v59, %v735_v40  ;;  %v805_v10 = vmul.f32 %v8373_v59, %v736_v51 }
  0x8c   :  { %v806_v50 = vmul.f32 %v8373_v59, %v737_v32  ;;  %v807_v0 = vmul.f32 %v8373_v59, %v738_v46  ;;  %v808_v54 = vmul.f32 %v8373_v59, %v739_v52  ;;  %v809_v61 = vmul.f32 %v8373_v59, %v740_v17  ;;  %v12401_v17 = vld [vmem:[#allocation6_spill] sm:$0xff] }
  0x8d   :  { %v810_v56 = vmul.f32 %v8373_v59, %v741_v26  ;;  %v811_v60 = vmul.f32 %v8373_v59, %v742_v21  ;;  %v812_v55 = vmul.f32 %v8373_v59, %v743_v25  ;;  %v813_v63 = vmul.f32 %v8373_v59, %v744_v7  ;;  %v503_v25 = vld [vmem:[#allocation2 + $0xe1] sm:$0xff] }
  0x8e   :  { %v8413_v40 = vadd.f32 %v783_v24, %v8170_v34  ;;  %v8416_v51 = vadd.f32 %v784_v62, %v8173_v35  ;;  %v8419_v32 = vadd.f32 %v785_v53, %v8176_v15  ;;  %v8422_v52 = vadd.f32 %v786_v57, %v8179_v14  ;;  %v490_v57 = vld [vmem:[#allocation2 + $0x49] sm:$0xff]  ;;  %v491_v53 = vld [vmem:[#allocation2 + $0x51] sm:$0xff]  ;;  %v494_v24 = vld [vmem:[#allocation2 + $0x79] sm:$0xff] }
  0x8f   :  { %v8425_v26 = vadd.f32 %v787_v6, %v8182_v9  ;;  %v8428_v21 = vadd.f32 %v788_v27, %v8185_v8  ;;  %v8431_v7 = vadd.f32 %v789_v2, %v8188_v3  ;;  %v8434_v34 = vadd.f32 %v790_v41, %v8191_v23  ;;  %v489_v9 = vld [vmem:[#allocation2 + $0x39] sm:$0xff]  ;;  %v492_v8 = vld [vmem:[#allocation2 + $0x61] sm:$0xff]  ;;  %v501_v41 = vld [vmem:[#allocation2 + $0xc9] sm:$0xff] }
  0x90   :  { %v8437_v35 = vadd.f32 %v791_v11, %v8194_v28  ;;  %v8440_v15 = vadd.f32 %v792_v58, %v8197_v29  ;;  %v8443_v14 = vadd.f32 %v793_v4, %v8200_v30  ;;  %v8446_v27 = vadd.f32 %v794_v19, %v8203_v31  ;;  %v493_v29 = vld [vmem:[#allocation2 + $0x69] sm:$0xff]  ;;  %v495_v30 = vld [vmem:[#allocation2 + $0x81] sm:$0xff] }
  0x91   :  { %v8449_v3 = vadd.f32 %v795_v5, %v8206_v36  ;;  %v8452_v23 = vadd.f32 %v796_v13, %v8209_v37  ;;  %v8455_v28 = vadd.f32 %v797_v12, %v8212_v38  ;;  %v8458_v2 = vadd.f32 %v798_v49, %v8215_v39  ;;  %v496_v13 = vld [vmem:[#allocation2 + $0x91] sm:$0xff]  ;;  %v497_v37 = vld [vmem:[#allocation2 + $0x99] sm:$0xff]  ;;  %v498_v58 = vld [vmem:[#allocation2 + $0xa9] sm:$0xff] }
  0x92   :  { %v8461_v46 = vadd.f32 %v799_v16, %v8218_v18  ;;  %v8464_v31 = vadd.f32 %v800_v20, %v8221_v42  ;;  %v8467_v36 = vadd.f32 %v801_v1, %v8224_v43  ;;  %v8470_v38 = vadd.f32 %v802_v22, %v8227_v44  ;;  %v12397_v18 = vld [vmem:[#allocation4_spill] sm:$0xff]  ;;  %v499_v42 = vld [vmem:[#allocation2 + $0xb1] sm:$0xff]  ;;  %v12403_v44 = vld [vmem:[#allocation7_spill] sm:$0xff] }
  0x93   :  { %v8473_v62 = vadd.f32 %v803_v33, %v8230_v45  ;;  %v8476_v39 = vadd.f32 %v804_v47, %v8233_v48  ;;  %v8479_v6 = vadd.f32 %v805_v10, %v12397_v18  ;;  %v500_v20 = vld [vmem:[#allocation2 + $0xc1] sm:$0xff]  ;;  %v12399_v43 = vld [vmem:[#allocation5_spill] sm:$0xff]  ;;  %v8485_v4 = vadd.f32 %v807_v0, %v12401_v17  ;;  %v502_v48 = vld [vmem:[#allocation2 + $0xd9] sm:$0xff] }
  0x94   :  { %12393 = vst [vmem:[#allocation51_spill] sm:$0xff] %v8467_v36  ;;  %12394 = vst [vmem:[#allocation52_spill] sm:$0xff] %v8470_v38  ;;  %v8482_v11 = vadd.f32 %v806_v50, %v12399_v43  ;;  %v8488_v19 = vadd.f32 %v808_v54, %v12403_v44  ;;  %v12405_v45 = vld [vmem:[#allocation8_spill] sm:$0xff]  ;;  %v504_v12 = vld [vmem:[#allocation2 + $0xf1] sm:$0xff] }
  0x95   :  { %12395 = vst [vmem:[#allocation53_spill] sm:$0xff] %v8473_v62  ;;  %12396 = vst [vmem:[#allocation54_spill] sm:$0xff] %v8476_v39  ;;  %v8491_v5 = vadd.f32 %v809_v61, %v12405_v45  ;;  %v12407_v10 = vld [vmem:[#allocation9_spill] sm:$0xff]  ;;  %v12409_v16 = vld [vmem:[#allocation10_spill] sm:$0xff] }
  0x96   :  { %12398 = vst [vmem:[#allocation4_spill] sm:$0xff] %v8479_v6  ;;  %12400 = vst [vmem:[#allocation5_spill] sm:$0xff] %v8482_v11  ;;  %v8494_v49 = vadd.f32 %v810_v56, %v12407_v10  ;;  %v8497_v1 = vadd.f32 %v811_v60, %v12409_v16  ;;  %v12411_v50 = vld [vmem:[#allocation12_spill] sm:$0xff]  ;;  %v12413_v33 = vld [vmem:[#allocation13_spill] sm:$0xff] }
  0x97   :  { %12402 = vst [vmem:[#allocation6_spill] sm:$0xff] %v8485_v4  ;;  %12404 = vst [vmem:[#allocation7_spill] sm:$0xff] %v8488_v19  ;;  %v8500_v22 = vadd.f32 %v812_v55, %v12411_v50  ;;  %v8503_v47 = vadd.f32 %v813_v63, %v12413_v33  ;;  %v505_v0 = vld [vmem:[#allocation2 + $0xf9] sm:$0xff]  ;;  %v506_v54 = vld [vmem:[#allocation2 + $0x109] sm:$0xff] }
  0x98   :  { %12406 = vst [vmem:[#allocation8_spill] sm:$0xff] %v8491_v5  ;;  %12408 = vst [vmem:[#allocation9_spill] sm:$0xff] %v8494_v49  ;;  %v507_v18 = vld [vmem:[#allocation2 + $0x111] sm:$0xff]  ;;  %v12415_v61 = vld [vmem:[#allocation11_spill] sm:$0xff] }
  0x99   :  { %12410 = vst [vmem:[#allocation10_spill] sm:$0xff] %v8497_v1  ;;  %12412 = vst [vmem:[#allocation12_spill] sm:$0xff] %v8500_v22  ;;  %v558_v43 = vmul.f32 %v12415_v61, %v489_v9  ;;  %v559_v17 = vmul.f32 %v12415_v61, %v490_v57  ;;  %v560_v44 = vmul.f32 %v12415_v61, %v491_v53  ;;  %v508_v45 = vld [vmem:[#allocation2 + $0x121] sm:$0xff]  ;;  %v509_v60 = vld [vmem:[#allocation2 + $0x129] sm:$0xff] }
  0x9a   :  { %12414 = vst [vmem:[#allocation13_spill] sm:$0xff] %v8503_v47  ;;  %v561_v56 = vmul.f32 %v12415_v61, %v492_v8  ;;  %v510_v10 = vld [vmem:[#allocation2 + $0x139] sm:$0xff]  ;;  %v562_v55 = vmul.f32 %v12415_v61, %v493_v29  ;;  %v563_v16 = vmul.f32 %v12415_v61, %v494_v24  ;;  %v564_v63 = vmul.f32 %v12415_v61, %v495_v30  ;;  %v511_v33 = vld [vmem:[#allocation2 + $0x141] sm:$0xff]  ;;  %v512_v47 = vld [vmem:[#allocation2 + $0x151] sm:$0xff] }
  0x9b   :  { %v565_v50 = vmul.f32 %v12415_v61, %v496_v13  ;;  %v513_v9 = vld [vmem:[#allocation2 + $0x159] sm:$0xff]  ;;  %v566_v57 = vmul.f32 %v12415_v61, %v497_v37  ;;  %v567_v53 = vmul.f32 %v12415_v61, %v498_v58  ;;  %v568_v8 = vmul.f32 %v12415_v61, %v499_v42  ;;  %v514_v1 = vld [vmem:[#allocation2 + $0x169] sm:$0xff]  ;;  %v515_v49 = vld [vmem:[#allocation2 + $0x171] sm:$0xff] }
  0x9c   :  { %v569_v22 = vmul.f32 %v12415_v61, %v500_v20  ;;  %v516_v29 = vld [vmem:[#allocation2 + $0x1b1] sm:$0xff]  ;;  %v570_v24 = vmul.f32 %v12415_v61, %v501_v41  ;;  %v571_v30 = vmul.f32 %v12415_v61, %v502_v48  ;;  %v572_v13 = vmul.f32 %v12415_v61, %v503_v25  ;;  %v12416_v11 = vld [vmem:[#allocation3_spill] sm:$0xff] }
  0x9d   :  { %v573_v5 = vmul.f32 %v12415_v61, %v504_v12  ;;  %v574_v19 = vmul.f32 %v12415_v61, %v505_v0  ;;  %v575_v37 = vmul.f32 %v12415_v61, %v506_v54  ;;  %v576_v58 = vmul.f32 %v12415_v61, %v507_v18  ;;  %v12417_v18 = vld [vmem:[#allocation46_spill] sm:$0xff] }
  0x9e   :  { %v577_v42 = vmul.f32 %v12415_v61, %v508_v45  ;;  %v578_v20 = vmul.f32 %v12415_v61, %v509_v60  ;;  %v579_v4 = vmul.f32 %v12415_v61, %v510_v10  ;;  %v580_v41 = vmul.f32 %v12415_v61, %v511_v33  ;;  %v12418_v45 = vld [vmem:[#allocation14_spill] sm:$0xff]  ;;  %v12419_v60 = vld [vmem:[#allocation47_spill] sm:$0xff]  ;;  %v12422_v33 = vld [vmem:[#allocation48_spill] sm:$0xff] }
  0x9f   :  { %v581_v48 = vmul.f32 %v12415_v61, %v512_v47  ;;  %v582_v25 = vmul.f32 %v12415_v61, %v513_v9  ;;  %v583_v12 = vmul.f32 %v12415_v61, %v514_v1  ;;  %v584_v0 = vmul.f32 %v12415_v61, %v515_v49  ;;  %v12421_v10 = vld [vmem:[#allocation15_spill] sm:$0xff]  ;;  %v12424_v47 = vld [vmem:[#allocation16_spill] sm:$0xff]  ;;  %v12425_v9 = vld [vmem:[#allocation49_spill] sm:$0xff] }
  0xa0   :  { %v585_v54 = vmul.f32 %v12415_v61, %v516_v29  ;;  %v8535_v6 = vadd.f32 %v12417_v18, %v12416_v11  ;;  %v8539_v39 = vadd.f32 %v12419_v60, %v12418_v45  ;;  %v8543_v62 = vadd.f32 %v12422_v33, %v12421_v10  ;;  %v12427_v1 = vld [vmem:[#allocation17_spill] sm:$0xff]  ;;  %v12428_v49 = vld [vmem:[#allocation50_spill] sm:$0xff]  ;;  %v12432_v11 = vld [vmem:[#allocation19_spill] sm:$0xff] }
  0xa1   :  { %v8547_v38 = vadd.f32 %v12425_v9, %v12424_v47  ;;  %v8551_v36 = vadd.f32 %v12428_v49, %v12427_v1  ;;  %v12430_v61 = vld [vmem:[#allocation18_spill] sm:$0xff]  ;;  %v8557_v18 = vadd.f32 %v559_v17, %v12432_v11  ;;  %v12434_v45 = vld [vmem:[#allocation20_spill] sm:$0xff]  ;;  %v12440_v47 = vld [vmem:[#allocation23_spill] sm:$0xff] }
  0xa2   :  { %12420 = vst [vmem:[#allocation11_spill] sm:$0xff] %v8539_v39  ;;  %12423 = vst [vmem:[#allocation3_spill] sm:$0xff] %v8543_v62  ;;  %v8554_v29 = vadd.f32 %v558_v43, %v12430_v61  ;;  %v8560_v60 = vadd.f32 %v560_v44, %v12434_v45  ;;  %v12436_v39 = vld [vmem:[#allocation21_spill] sm:$0xff]  ;;  %v12438_v33 = vld [vmem:[#allocation22_spill] sm:$0xff]  ;;  %v8569_v9 = vadd.f32 %v563_v16, %v12440_v47 }
  0xa3   :  { %12426 = vst [vmem:[#allocation46_spill] sm:$0xff] %v8547_v38  ;;  %12429 = vst [vmem:[#allocation14_spill] sm:$0xff] %v8551_v36  ;;  %v8563_v10 = vadd.f32 %v561_v56, %v12436_v39  ;;  %v8566_v62 = vadd.f32 %v562_v55, %v12438_v33  ;;  %v12442_v1 = vld [vmem:[#allocation24_spill] sm:$0xff]  ;;  %v12444_v43 = vld [vmem:[#allocation25_spill] sm:$0xff] }
  0xa4   :  { %12431 = vst [vmem:[#allocation47_spill] sm:$0xff] %v8554_v29  ;;  %12433 = vst [vmem:[#allocation15_spill] sm:$0xff] %v8557_v18  ;;  %v8572_v49 = vadd.f32 %v564_v63, %v12442_v1  ;;  %v8575_v61 = vadd.f32 %v565_v50, %v12444_v43  ;;  %v12446_v17 = vld [vmem:[#allocation26_spill] sm:$0xff]  ;;  %v12448_v44 = vld [vmem:[#allocation27_spill] sm:$0xff] }
  0xa5   :  { %12435 = vst [vmem:[#allocation48_spill] sm:$0xff] %v8560_v60  ;;  %12437 = vst [vmem:[#allocation16_spill] sm:$0xff] %v8563_v10  ;;  %v8578_v11 = vadd.f32 %v566_v57, %v12446_v17  ;;  %v8581_v45 = vadd.f32 %v567_v53, %v12448_v44  ;;  %v12450_v39 = vld [vmem:[#allocation28_spill] sm:$0xff]  ;;  %v12452_v16 = vld [vmem:[#allocation29_spill] sm:$0xff] }
  0xa6   :  { %12439 = vst [vmem:[#allocation49_spill] sm:$0xff] %v8566_v62  ;;  %12441 = vst [vmem:[#allocation17_spill] sm:$0xff] %v8569_v9  ;;  %v8584_v56 = vadd.f32 %v568_v8, %v12450_v39  ;;  %v681_v55 = vld [vmem:[#allocation2 + $0x2] sm:$0xff]  ;;  %v682_v33 = vld [vmem:[#allocation2 + $0xa] sm:$0xff]  ;;  %v8587_v47 = vadd.f32 %v569_v22, %v12452_v16 }
  0xa7   :  { %12443 = vst [vmem:[#allocation50_spill] sm:$0xff] %v8572_v49  ;;  %12445 = vst [vmem:[#allocation18_spill] sm:$0xff] %v8575_v61  ;;  %v683_v62 = vld [vmem:[#allocation2 + $0x1a] sm:$0xff]  ;;  %v12458_v57 = vld [vmem:[#allocation32_spill] sm:$0xff] }
  0xa8   :  { %12447 = vst [vmem:[#allocation19_spill] sm:$0xff] %v8578_v11  ;;  %12449 = vst [vmem:[#allocation20_spill] sm:$0xff] %v8581_v45  ;;  %v12454_v63 = vld [vmem:[#allocation30_spill] sm:$0xff]  ;;  %v12456_v50 = vld [vmem:[#allocation31_spill] sm:$0xff]  ;;  %v8596_v17 = vadd.f32 %v572_v13, %v12458_v57 }
  0xa9   :  { %12451 = vst [vmem:[#allocation21_spill] sm:$0xff] %v8584_v56  ;;  %12453 = vst [vmem:[#allocation22_spill] sm:$0xff] %v8587_v47  ;;  %v8590_v1 = vadd.f32 %v570_v24, %v12454_v63  ;;  %v8593_v43 = vadd.f32 %v571_v30, %v12456_v50  ;;  %v684_v53 = vld [vmem:[#allocation2 + $0x22] sm:$0xff]  ;;  %v685_v44 = vld [vmem:[#allocation2 + $0x32] sm:$0xff] }
  0xaa   :  { %12459 = vst [vmem:[#allocation25_spill] sm:$0xff] %v8596_v17  ;;  %v911_v45 = vld [vmem:[#allocation2 + $0x1d0] sm:$0xff]  ;;  %v912_v8 = vld [vmem:[#allocation2 + $0x1e0] sm:$0xff]  ;;  %v12462_v11 = vld [vmem:[#allocation34_spill] sm:$0xff] }
  0xab   :  { %12455 = vst [vmem:[#allocation23_spill] sm:$0xff] %v8590_v1  ;;  %12457 = vst [vmem:[#allocation24_spill] sm:$0xff] %v8593_v43  ;;  %v12460_v39 = vld [vmem:[#allocation33_spill] sm:$0xff]  ;;  %v8602_v61 = vadd.f32 %v574_v19, %v12462_v11  ;;  %v12464_v22 = vld [vmem:[#allocation35_spill] sm:$0xff] }
  0xac   :  { %v8599_v56 = vadd.f32 %v573_v5, %v12460_v39  ;;  %v8605_v16 = vadd.f32 %v575_v37, %v12464_v22  ;;  %v12466_v24 = vld [vmem:[#allocation36_spill] sm:$0xff]  ;;  %v914_v50 = vld [vmem:[#allocation2 + $0x1f8] sm:$0xff]  ;;  %v915_v13 = vld [vmem:[#allocation2 + $0x200] sm:$0xff] }
  0xad   :  { %12463 = vst [vmem:[#allocation27_spill] sm:$0xff] %v8602_v61  ;;  %v8608_v63 = vadd.f32 %v576_v58, %v12466_v24  ;;  %v913_v30 = vld [vmem:[#allocation2 + $0x1e8] sm:$0xff]  ;;  %v916_v57 = vld [vmem:[#allocation2 + $0x210] sm:$0xff]  ;;  %v12470_v1 = vld [vmem:[#allocation38_spill] sm:$0xff] }
  0xae   :  { %12461 = vst [vmem:[#allocation26_spill] sm:$0xff] %v8599_v56  ;;  %12465 = vst [vmem:[#allocation28_spill] sm:$0xff] %v8605_v16  ;;  %v12468_v17 = vld [vmem:[#allocation37_spill] sm:$0xff]  ;;  %v8614_v47 = vadd.f32 %v578_v20, %v12470_v1  ;;  %v12472_v5 = vld [vmem:[#allocation39_spill] sm:$0xff] }
  0xaf   :  { %12467 = vst [vmem:[#allocation29_spill] sm:$0xff] %v8608_v63  ;;  %v8611_v43 = vadd.f32 %v577_v42, %v12468_v17  ;;  %v8617_v39 = vadd.f32 %v579_v4, %v12472_v5  ;;  %v12474_v19 = vld [vmem:[#allocation40_spill] sm:$0xff]  ;;  %v917_v37 = vld [vmem:[#allocation2 + $0x218] sm:$0xff]  ;;  %v919_v58 = vld [vmem:[#allocation2 + $0x230] sm:$0xff] }
  0xb0   :  { %12471 = vst [vmem:[#allocation31_spill] sm:$0xff] %v8614_v47  ;;  %v8620_v11 = vadd.f32 %v580_v41, %v12474_v19  ;;  %v918_v22 = vld [vmem:[#allocation2 + $0x228] sm:$0xff]  ;;  %v920_v24 = vld [vmem:[#allocation2 + $0x240] sm:$0xff]  ;;  %v12476_v63 = vld [vmem:[#allocation41_spill] sm:$0xff] }
  0xb1   :  { %12469 = vst [vmem:[#allocation30_spill] sm:$0xff] %v8611_v43  ;;  %12473 = vst [vmem:[#allocation32_spill] sm:$0xff] %v8617_v39  ;;  %v8623_v16 = vadd.f32 %v581_v48, %v12476_v63  ;;  %v12478_v61 = vld [vmem:[#allocation42_spill] sm:$0xff]  ;;  %v12480_v42 = vld [vmem:[#allocation43_spill] sm:$0xff]  ;;  %v8638_v39 = vmul.f32 %v8373_v59, %v681_v55  ;;  %v8641_v48 = vmul.f32 %v8373_v59, %v682_v33 }
  0xb2   :  { %12475 = vst [vmem:[#allocation33_spill] sm:$0xff] %v8620_v11  ;;  %v8626_v56 = vadd.f32 %v582_v25, %v12478_v61  ;;  %v8629_v17 = vadd.f32 %v583_v12, %v12480_v42  ;;  %v12482_v20 = vld [vmem:[#allocation44_spill] sm:$0xff]  ;;  %v922_v5 = vld [vmem:[#allocation2 + $0x258] sm:$0xff]  ;;  %v923_v41 = vld [vmem:[#allocation2 + $0x260] sm:$0xff]  ;;  %v8644_v25 = vmul.f32 %v8373_v59, %v683_v62  ;;  %v8652_v63 = vmul.f32 %v8373_v59, %v684_v53 }
  0xb3   :  { %12477 = vst [vmem:[#allocation34_spill] sm:$0xff] %v8623_v16  ;;  %v8632_v1 = vadd.f32 %v584_v0, %v12482_v20  ;;  %v921_v4 = vld [vmem:[#allocation2 + $0x248] sm:$0xff]  ;;  %v12484_v19 = vld [vmem:[#allocation45_spill] sm:$0xff]  ;;  %v925_v61 = vld [vmem:[#allocation2 + $0x278] sm:$0xff] }
  0xb4   :  { %12479 = vst [vmem:[#allocation35_spill] sm:$0xff] %v8626_v56  ;;  %12481 = vst [vmem:[#allocation36_spill] sm:$0xff] %v8629_v17  ;;  %v8635_v11 = vadd.f32 %v585_v54, %v12484_v19  ;;  %v924_v12 = vld [vmem:[#allocation2 + $0x270] sm:$0xff]  ;;  %v8649_v0 = vld [vmem:[%s12243_s1 + $0x3] ss:$0 sm:$0xff]  ;;  %v8655_v54 = vmul.f32 %v8373_v59, %v685_v44 }
  0xb5   :  { %12483 = vst [vmem:[#allocation37_spill] sm:$0xff] %v8632_v1  ;;  %12486 = vst [vmem:[#allocation39_spill] sm:$0xff] %v8644_v25  ;;  %v926_v55 = vld [vmem:[#allocation2 + $0x288] sm:$0xff]  ;;  %v927_v42 = vld [vmem:[#allocation2 + $0x290] sm:$0xff]  ;;  %v980_v20 = vmul.f32 %v8649_v0, %v911_v45  ;;  %v981_v62 = vmul.f32 %v8649_v0, %v912_v8  ;;  %v982_v17 = vmul.f32 %v8649_v0, %v913_v30 }
  0xb6   :  { %12485 = vst [vmem:[#allocation38_spill] sm:$0xff] %v8635_v11  ;;  %12487 = vst [vmem:[#allocation40_spill] sm:$0xff] %v8652_v63  ;;  %v928_v33 = vld [vmem:[#allocation2 + $0x2a0] sm:$0xff]  ;;  %v929_v19 = vld [vmem:[#allocation2 + $0x2a8] sm:$0xff]  ;;  %v983_v56 = vmul.f32 %v8649_v0, %v914_v50  ;;  %v984_v53 = vmul.f32 %v8649_v0, %v915_v13  ;;  %v985_v16 = vmul.f32 %v8649_v0, %v916_v57 }
  0xb7   :  { %12488 = vst [vmem:[#allocation41_spill] sm:$0xff] %v8655_v54  ;;  %v930_v11 = vld [vmem:[#allocation2 + $0x2b8] sm:$0xff]  ;;  %v931_v1 = vld [vmem:[#allocation2 + $0x2c0] sm:$0xff]  ;;  %v932_v44 = vld [vmem:[#allocation2 + $0x2d0] sm:$0xff]  ;;  %v986_v49 = vmul.f32 %v8649_v0, %v917_v37  ;;  %v987_v45 = vmul.f32 %v8649_v0, %v918_v22  ;;  %v988_v8 = vmul.f32 %v8649_v0, %v919_v58  ;;  %v989_v9 = vmul.f32 %v8649_v0, %v920_v24 }
  0xb8   :  { %v933_v47 = vld [vmem:[#allocation2 + $0x2d8] sm:$0xff]  ;;  %v934_v43 = vld [vmem:[#allocation2 + $0x2e8] sm:$0xff]  ;;  %v935_v10 = vld [vmem:[#allocation2 + $0x2f0] sm:$0xff]  ;;  %v990_v50 = vmul.f32 %v8649_v0, %v921_v4  ;;  %v991_v13 = vmul.f32 %v8649_v0, %v922_v5  ;;  %v992_v57 = vmul.f32 %v8649_v0, %v923_v41  ;;  %v993_v18 = vmul.f32 %v8649_v0, %v924_v12 }
  0xb9   :  { %v936_v60 = vld [vmem:[#allocation2 + $0x300] sm:$0xff]  ;;  %v937_v30 = vld [vmem:[#allocation2 + $0x308] sm:$0xff]  ;;  %v938_v29 = vld [vmem:[#allocation2 + $0x318] sm:$0xff]  ;;  %v994_v22 = vmul.f32 %v8649_v0, %v925_v61  ;;  %v995_v58 = vmul.f32 %v8649_v0, %v926_v55  ;;  %v996_v24 = vmul.f32 %v8649_v0, %v927_v42  ;;  %v997_v36 = vmul.f32 %v8649_v0, %v928_v33 }
  0xba   :  { %v939_v54 = vld [vmem:[#allocation2 + $0x320] sm:$0xff]  ;;  %v940_v37 = vld [vmem:[#allocation2 + $0x330] sm:$0xff]  ;;  %v941_v63 = vld [vmem:[#allocation2 + $0x338] sm:$0xff]  ;;  %v998_v4 = vmul.f32 %v8649_v0, %v929_v19  ;;  %v999_v5 = vmul.f32 %v8649_v0, %v930_v11  ;;  %v1000_v41 = vmul.f32 %v8649_v0, %v931_v1  ;;  %v1001_v12 = vmul.f32 %v8649_v0, %v932_v44 }
  0xbb   :  { %v1002_v38 = vmul.f32 %v8649_v0, %v933_v47  ;;  %v1003_v25 = vmul.f32 %v8649_v0, %v934_v43  ;;  %v1004_v61 = vmul.f32 %v8649_v0, %v935_v10  ;;  %v1005_v55 = vmul.f32 %v8649_v0, %v936_v60 }
  0xbc   :  { %v1006_v42 = vmul.f32 %v8649_v0, %v937_v30  ;;  %v1007_v33 = vmul.f32 %v8649_v0, %v938_v29  ;;  %v1008_v19 = vmul.f32 %v8649_v0, %v939_v54  ;;  %v1009_v11 = vmul.f32 %v8649_v0, %v940_v37 }
  0xbd   :  { %v1010_v1 = vmul.f32 %v8649_v0, %v941_v63  ;;  %v8689_v44 = vadd.f32 %v980_v20, %v8413_v40  ;;  %v8692_v47 = vadd.f32 %v981_v62, %v8416_v51  ;;  %v8695_v10 = vadd.f32 %v982_v17, %v8419_v32  ;;  %v688_v17 = vld [vmem:[#allocation2 + $0x52] sm:$0xff]  ;;  %v695_v62 = vld [vmem:[#allocation2 + $0xaa] sm:$0xff] }
  0xbe   :  { %v8698_v60 = vadd.f32 %v983_v56, %v8422_v52  ;;  %v8701_v29 = vadd.f32 %v984_v53, %v8425_v26  ;;  %v8704_v43 = vadd.f32 %v985_v16, %v8428_v21  ;;  %v8707_v63 = vadd.f32 %v986_v49, %v8431_v7  ;;  %v686_v26 = vld [vmem:[#allocation2 + $0x3a] sm:$0xff]  ;;  %v687_v56 = vld [vmem:[#allocation2 + $0x4a] sm:$0xff]  ;;  %v689_v21 = vld [vmem:[#allocation2 + $0x62] sm:$0xff] }
  0xbf   :  { %v8710_v40 = vadd.f32 %v987_v45, %v8434_v34  ;;  %v8713_v51 = vadd.f32 %v988_v8, %v8437_v35  ;;  %v8716_v32 = vadd.f32 %v989_v9, %v8440_v15  ;;  %v8719_v52 = vadd.f32 %v990_v50, %v8443_v14  ;;  %v690_v15 = vld [vmem:[#allocation2 + $0x6a] sm:$0xff]  ;;  %v691_v9 = vld [vmem:[#allocation2 + $0x7a] sm:$0xff]  ;;  %v692_v14 = vld [vmem:[#allocation2 + $0x82] sm:$0xff] }
  0xc0   :  { %v8722_v16 = vadd.f32 %v991_v13, %v8446_v27  ;;  %v8725_v7 = vadd.f32 %v992_v57, %v8449_v3  ;;  %v8728_v34 = vadd.f32 %v993_v18, %v8452_v23  ;;  %v8731_v35 = vadd.f32 %v994_v22, %v8455_v28  ;;  %v12489_v3 = vld [vmem:[#allocation51_spill] sm:$0xff]  ;;  %v693_v23 = vld [vmem:[#allocation2 + $0x92] sm:$0xff]  ;;  %v12491_v28 = vld [vmem:[#allocation52_spill] sm:$0xff] }
  0xc1   :  { %v8734_v49 = vadd.f32 %v995_v58, %v8458_v2  ;;  %v8737_v54 = vadd.f32 %v996_v24, %v8461_v46  ;;  %v8740_v27 = vadd.f32 %v997_v36, %v8464_v31  ;;  %v8743_v20 = vadd.f32 %v998_v4, %v12489_v3  ;;  %v694_v18 = vld [vmem:[#allocation2 + $0x9a] sm:$0xff]  ;;  %v12493_v45 = vld [vmem:[#allocation53_spill] sm:$0xff]  ;;  %v12497_v46 = vld [vmem:[#allocation4_spill] sm:$0xff] }
  0xc2   :  { %v8746_v53 = vadd.f32 %v999_v5, %v12491_v28  ;;  %v8749_v8 = vadd.f32 %v1000_v41, %v12493_v45  ;;  %v12495_v2 = vld [vmem:[#allocation54_spill] sm:$0xff]  ;;  %v8755_v50 = vadd.f32 %v1002_v38, %v12497_v46  ;;  %v697_v36 = vld [vmem:[#allocation2 + $0xc2] sm:$0xff]  ;;  %v698_v13 = vld [vmem:[#allocation2 + $0xca] sm:$0xff] }
  0xc3   :  { %12490 = vst [vmem:[#allocation42_spill] sm:$0xff] %v8743_v20  ;;  %v8752_v30 = vadd.f32 %v1001_v12, %v12495_v2  ;;  %v696_v31 = vld [vmem:[#allocation2 + $0xb2] sm:$0xff]  ;;  %v12503_v24 = vld [vmem:[#allocation7_spill] sm:$0xff]  ;;  %v12505_v5 = vld [vmem:[#allocation8_spill] sm:$0xff] }
  0xc4   :  { %12492 = vst [vmem:[#allocation43_spill] sm:$0xff] %v8746_v53  ;;  %12494 = vst [vmem:[#allocation44_spill] sm:$0xff] %v8749_v8  ;;  %v12499_v57 = vld [vmem:[#allocation5_spill] sm:$0xff]  ;;  %v12501_v22 = vld [vmem:[#allocation6_spill] sm:$0xff]  ;;  %v8764_v4 = vadd.f32 %v1005_v55, %v12503_v24  ;;  %v8767_v41 = vadd.f32 %v1006_v42, %v12505_v5  ;;  %v755_v42 = vmul.f32 %v8373_v59, %v686_v26 }
  0xc5   :  { %12496 = vst [vmem:[#allocation45_spill] sm:$0xff] %v8752_v30  ;;  %12498 = vst [vmem:[#allocation51_spill] sm:$0xff] %v8755_v50  ;;  %v8758_v37 = vadd.f32 %v1003_v25, %v12499_v57  ;;  %v8761_v58 = vadd.f32 %v1004_v61, %v12501_v22  ;;  %v699_v12 = vld [vmem:[#allocation2 + $0xda] sm:$0xff]  ;;  %v700_v3 = vld [vmem:[#allocation2 + $0xe2] sm:$0xff]  ;;  %v756_v5 = vmul.f32 %v8373_v59, %v687_v56 }
  0xc6   :  { %12504 = vst [vmem:[#allocation54_spill] sm:$0xff] %v8764_v4  ;;  %12506 = vst [vmem:[#allocation4_spill] sm:$0xff] %v8767_v41  ;;  %v701_v28 = vld [vmem:[#allocation2 + $0xf2] sm:$0xff]  ;;  %v12511_v25 = vld [vmem:[#allocation12_spill] sm:$0xff]  ;;  %v757_v41 = vmul.f32 %v8373_v59, %v688_v17  ;;  %v763_v56 = vmul.f32 %v8373_v59, %v694_v18  ;;  %v764_v17 = vmul.f32 %v8373_v59, %v695_v62 }
  0xc7   :  { %12500 = vst [vmem:[#allocation52_spill] sm:$0xff] %v8758_v37  ;;  %12502 = vst [vmem:[#allocation53_spill] sm:$0xff] %v8761_v58  ;;  %v12507_v38 = vld [vmem:[#allocation9_spill] sm:$0xff]  ;;  %v12509_v2 = vld [vmem:[#allocation10_spill] sm:$0xff]  ;;  %v8776_v57 = vadd.f32 %v1009_v11, %v12511_v25  ;;  %v759_v11 = vmul.f32 %v8373_v59, %v690_v15  ;;  %v760_v25 = vmul.f32 %v8373_v59, %v691_v9 }
  0xc8   :  { %v8770_v45 = vadd.f32 %v1007_v33, %v12507_v38  ;;  %v8773_v46 = vadd.f32 %v1008_v19, %v12509_v2  ;;  %v12513_v61 = vld [vmem:[#allocation13_spill] sm:$0xff]  ;;  %v702_v55 = vld [vmem:[#allocation2 + $0xfa] sm:$0xff]  ;;  %v758_v33 = vmul.f32 %v8373_v59, %v689_v21  ;;  %v705_v38 = vld [vmem:[#allocation2 + $0x122] sm:$0xff]  ;;  %v765_v21 = vmul.f32 %v8373_v59, %v696_v31 }
  0xc9   :  { %12512 = vst [vmem:[#allocation7_spill] sm:$0xff] %v8776_v57  ;;  %v8779_v22 = vadd.f32 %v1010_v1, %v12513_v61  ;;  %v703_v24 = vld [vmem:[#allocation2 + $0x10a] sm:$0xff]  ;;  %v704_v4 = vld [vmem:[#allocation2 + $0x112] sm:$0xff]  ;;  %v707_v2 = vld [vmem:[#allocation2 + $0x13a] sm:$0xff]  ;;  %v761_v1 = vmul.f32 %v8373_v59, %v692_v14  ;;  %v762_v61 = vmul.f32 %v8373_v59, %v693_v23  ;;  %v767_v9 = vmul.f32 %v8373_v59, %v698_v13 }
  0xca   :  { %12508 = vst [vmem:[#allocation5_spill] sm:$0xff] %v8770_v45  ;;  %12510 = vst [vmem:[#allocation6_spill] sm:$0xff] %v8773_v46  ;;  %v706_v19 = vld [vmem:[#allocation2 + $0x12a] sm:$0xff]  ;;  %v709_v57 = vld [vmem:[#allocation2 + $0x152] sm:$0xff]  ;;  %v766_v46 = vmul.f32 %v8373_v59, %v697_v36  ;;  %v768_v14 = vmul.f32 %v8373_v59, %v699_v12  ;;  %v769_v23 = vmul.f32 %v8373_v59, %v700_v3 }
  0xcb   :  { %12514 = vst [vmem:[#allocation8_spill] sm:$0xff] %v8779_v22  ;;  %v708_v22 = vld [vmem:[#allocation2 + $0x142] sm:$0xff]  ;;  %v710_v26 = vld [vmem:[#allocation2 + $0x15a] sm:$0xff]  ;;  %v711_v45 = vld [vmem:[#allocation2 + $0x16a] sm:$0xff]  ;;  %v770_v37 = vmul.f32 %v8373_v59, %v701_v28  ;;  %v771_v50 = vmul.f32 %v8373_v59, %v702_v55  ;;  %v772_v18 = vmul.f32 %v8373_v59, %v703_v24  ;;  %v773_v62 = vmul.f32 %v8373_v59, %v704_v4 }
  0xcc   :  { %v712_v58 = vld [vmem:[#allocation2 + $0x172] sm:$0xff]  ;;  %v774_v31 = vmul.f32 %v8373_v59, %v705_v38  ;;  %v775_v36 = vmul.f32 %v8373_v59, %v706_v19  ;;  %v776_v30 = vmul.f32 %v8373_v59, %v707_v2  ;;  %v777_v13 = vmul.f32 %v8373_v59, %v708_v22  ;;  %v12515_v38 = vld [vmem:[#allocation11_spill] sm:$0xff] }
  0xcd   :  { %v713_v15 = vld [vmem:[#allocation2 + $0x1b2] sm:$0xff]  ;;  %v778_v12 = vmul.f32 %v8373_v59, %v709_v57  ;;  %v779_v3 = vmul.f32 %v8373_v59, %v710_v26  ;;  %v780_v28 = vmul.f32 %v8373_v59, %v711_v45  ;;  %v781_v55 = vmul.f32 %v8373_v59, %v712_v58  ;;  %v12517_v2 = vld [vmem:[#allocation3_spill] sm:$0xff]  ;;  %v12521_v26 = vld [vmem:[#allocation40_spill] sm:$0xff] }
  0xce   :  { %v782_v24 = vmul.f32 %v8373_v59, %v713_v15  ;;  %v8811_v4 = vadd.f32 %v8638_v39, %v8535_v6  ;;  %v8815_v19 = vadd.f32 %v8641_v48, %v12515_v38  ;;  %v12518_v22 = vld [vmem:[#allocation39_spill] sm:$0xff]  ;;  %v12520_v57 = vld [vmem:[#allocation46_spill] sm:$0xff]  ;;  %v12524_v58 = vld [vmem:[#allocation41_spill] sm:$0xff] }
  0xcf   :  { %v8819_v8 = vadd.f32 %v12518_v22, %v12517_v2  ;;  %v8823_v53 = vadd.f32 %v12521_v26, %v12520_v57  ;;  %v12523_v45 = vld [vmem:[#allocation14_spill] sm:$0xff]  ;;  %v12526_v59 = vld [vmem:[#allocation47_spill] sm:$0xff]  ;;  %v12530_v48 = vld [vmem:[#allocation48_spill] sm:$0xff] }
  0xd0   :  { %12516 = vst [vmem:[#allocation9_spill] sm:$0xff] %v8815_v19  ;;  %v8827_v20 = vadd.f32 %v12524_v58, %v12523_v45  ;;  %v8830_v15 = vadd.f32 %v755_v42, %v12526_v59  ;;  %v12528_v6 = vld [vmem:[#allocation15_spill] sm:$0xff]  ;;  %v8836_v38 = vadd.f32 %v757_v41, %v12530_v48  ;;  %v12532_v19 = vld [vmem:[#allocation16_spill] sm:$0xff]  ;;  %v12534_v22 = vld [vmem:[#allocation49_spill] sm:$0xff] }
  0xd1   :  { %12519 = vst [vmem:[#allocation10_spill] sm:$0xff] %v8819_v8  ;;  %12522 = vst [vmem:[#allocation12_spill] sm:$0xff] %v8823_v53  ;;  %v8833_v39 = vadd.f32 %v756_v5, %v12528_v6  ;;  %v8839_v2 = vadd.f32 %v758_v33, %v12532_v19  ;;  %v8842_v8 = vadd.f32 %v759_v11, %v12534_v22  ;;  %v12536_v57 = vld [vmem:[#allocation17_spill] sm:$0xff]  ;;  %v12538_v45 = vld [vmem:[#allocation50_spill] sm:$0xff] }
  0xd2   :  { %12525 = vst [vmem:[#allocation13_spill] sm:$0xff] %v8827_v20  ;;  %12527 = vst [vmem:[#allocation11_spill] sm:$0xff] %v8830_v15  ;;  %v8845_v26 = vadd.f32 %v760_v25, %v12536_v57  ;;  %v8848_v58 = vadd.f32 %v761_v1, %v12538_v45  ;;  %v12540_v42 = vld [vmem:[#allocation18_spill] sm:$0xff]  ;;  %v12542_v5 = vld [vmem:[#allocation19_spill] sm:$0xff] }
  0xd3   :  { %12529 = vst [vmem:[#allocation3_spill] sm:$0xff] %v8833_v39  ;;  %12531 = vst [vmem:[#allocation39_spill] sm:$0xff] %v8836_v38  ;;  %v8851_v59 = vadd.f32 %v762_v61, %v12540_v42  ;;  %v8854_v6 = vadd.f32 %v763_v56, %v12542_v5  ;;  %v12544_v41 = vld [vmem:[#allocation20_spill] sm:$0xff]  ;;  %v12546_v33 = vld [vmem:[#allocation21_spill] sm:$0xff] }
  0xd4   :  { %12533 = vst [vmem:[#allocation46_spill] sm:$0xff] %v8839_v2  ;;  %12535 = vst [vmem:[#allocation40_spill] sm:$0xff] %v8842_v8  ;;  %v8857_v48 = vadd.f32 %v764_v17, %v12544_v41  ;;  %v8860_v19 = vadd.f32 %v765_v21, %v12546_v33  ;;  %v878_v11 = vld [vmem:[#allocation2 + $0x18] sm:$0xff]  ;;  %v879_v22 = vld [vmem:[#allocation2 + $0x20] sm:$0xff] }
  0xd5   :  { %12537 = vst [vmem:[#allocation14_spill] sm:$0xff] %v8845_v26  ;;  %12539 = vst [vmem:[#allocation41_spill] sm:$0xff] %v8848_v58  ;;  %v880_v8 = vld [vmem:[#allocation2 + $0x30] sm:$0xff]  ;;  %v12548_v25 = vld [vmem:[#allocation22_spill] sm:$0xff] }
  0xd6   :  { %12541 = vst [vmem:[#allocation47_spill] sm:$0xff] %v8851_v59  ;;  %12543 = vst [vmem:[#allocation15_spill] sm:$0xff] %v8854_v6  ;;  %v8863_v57 = vadd.f32 %v766_v46, %v12548_v25  ;;  %v12550_v1 = vld [vmem:[#allocation23_spill] sm:$0xff]  ;;  %v12552_v61 = vld [vmem:[#allocation24_spill] sm:$0xff] }
  0xd7   :  { %12545 = vst [vmem:[#allocation48_spill] sm:$0xff] %v8857_v48  ;;  %12547 = vst [vmem:[#allocation16_spill] sm:$0xff] %v8860_v19  ;;  %v8866_v45 = vadd.f32 %v767_v9, %v12550_v1  ;;  %v8869_v42 = vadd.f32 %v768_v14, %v12552_v61  ;;  %v12554_v56 = vld [vmem:[#allocation25_spill] sm:$0xff]  ;;  %v881_v17 = vld [vmem:[#allocation2 + $0x38] sm:$0xff] }
  0xd8   :  { %12549 = vst [vmem:[#allocation49_spill] sm:$0xff] %v8863_v57  ;;  %v8872_v5 = vadd.f32 %v769_v23, %v12554_v56  ;;  %v882_v41 = vld [vmem:[#allocation2 + $0x48] sm:$0xff]  ;;  %v1108_v48 = vld [vmem:[#allocation2 + $0x1d1] sm:$0xff]  ;;  %v12558_v6 = vld [vmem:[#allocation27_spill] sm:$0xff] }
  0xd9   :  { %12551 = vst [vmem:[#allocation17_spill] sm:$0xff] %v8866_v45  ;;  %12553 = vst [vmem:[#allocation50_spill] sm:$0xff] %v8869_v42  ;;  %v1109_v21 = vld [vmem:[#allocation2 + $0x1e1] sm:$0xff]  ;;  %v12556_v33 = vld [vmem:[#allocation26_spill] sm:$0xff]  ;;  %v8878_v59 = vadd.f32 %v771_v50, %v12558_v6 }
  0xda   :  { %12555 = vst [vmem:[#allocation18_spill] sm:$0xff] %v8872_v5  ;;  %v8875_v19 = vadd.f32 %v770_v37, %v12556_v33  ;;  %v12560_v46 = vld [vmem:[#allocation28_spill] sm:$0xff]  ;;  %v12562_v9 = vld [vmem:[#allocation29_spill] sm:$0xff]  ;;  %v1111_v61 = vld [vmem:[#allocation2 + $0x1f9] sm:$0xff] }
  0xdb   :  { %12559 = vst [vmem:[#allocation20_spill] sm:$0xff] %v8878_v59  ;;  %v8881_v25 = vadd.f32 %v772_v18, %v12560_v46  ;;  %v8884_v1 = vadd.f32 %v773_v62, %v12562_v9  ;;  %v1110_v14 = vld [vmem:[#allocation2 + $0x1e9] sm:$0xff]  ;;  %v1112_v23 = vld [vmem:[#allocation2 + $0x201] sm:$0xff]  ;;  %v1113_v56 = vld [vmem:[#allocation2 + $0x211] sm:$0xff] }
  0xdc   :  { %12557 = vst [vmem:[#allocation19_spill] sm:$0xff] %v8875_v19  ;;  %v12564_v5 = vld [vmem:[#allocation30_spill] sm:$0xff]  ;;  %v12566_v45 = vld [vmem:[#allocation31_spill] sm:$0xff]  ;;  %v12568_v37 = vld [vmem:[#allocation32_spill] sm:$0xff] }
  0xdd   :  { %12561 = vst [vmem:[#allocation21_spill] sm:$0xff] %v8881_v25  ;;  %12563 = vst [vmem:[#allocation22_spill] sm:$0xff] %v8884_v1  ;;  %v8887_v42 = vadd.f32 %v774_v31, %v12564_v5  ;;  %v8890_v57 = vadd.f32 %v775_v36, %v12566_v45  ;;  %v8893_v33 = vadd.f32 %v776_v30, %v12568_v37  ;;  %v12570_v50 = vld [vmem:[#allocation33_spill] sm:$0xff]  ;;  %v1114_v18 = vld [vmem:[#allocation2 + $0x219] sm:$0xff] }
  0xde   :  { %v8896_v6 = vadd.f32 %v777_v13, %v12570_v50  ;;  %v1115_v46 = vld [vmem:[#allocation2 + $0x229] sm:$0xff]  ;;  %v1116_v62 = vld [vmem:[#allocation2 + $0x231] sm:$0xff]  ;;  %v1117_v9 = vld [vmem:[#allocation2 + $0x241] sm:$0xff] }
  0xdf   :  { %12565 = vst [vmem:[#allocation23_spill] sm:$0xff] %v8887_v42  ;;  %12567 = vst [vmem:[#allocation24_spill] sm:$0xff] %v8890_v57  ;;  %v12572_v1 = vld [vmem:[#allocation34_spill] sm:$0xff]  ;;  %v12574_v59 = vld [vmem:[#allocation35_spill] sm:$0xff] }
  0xe0   :  { %12569 = vst [vmem:[#allocation25_spill] sm:$0xff] %v8893_v33  ;;  %12571 = vst [vmem:[#allocation26_spill] sm:$0xff] %v8896_v6  ;;  %v8899_v25 = vadd.f32 %v778_v12, %v12572_v1  ;;  %v8902_v19 = vadd.f32 %v779_v3, %v12574_v59  ;;  %v12576_v31 = vld [vmem:[#allocation36_spill] sm:$0xff]  ;;  %v12578_v36 = vld [vmem:[#allocation37_spill] sm:$0xff]  ;;  %v8914_v33 = vmul.f32 %v8649_v0, %v878_v11 }
  0xe1   :  { %v8905_v5 = vadd.f32 %v780_v28, %v12576_v31  ;;  %v8908_v45 = vadd.f32 %v781_v55, %v12578_v36  ;;  %v1118_v30 = vld [vmem:[#allocation2 + $0x249] sm:$0xff]  ;;  %v1119_v37 = vld [vmem:[#allocation2 + $0x259] sm:$0xff]  ;;  %v1120_v13 = vld [vmem:[#allocation2 + $0x261] sm:$0xff]  ;;  %v8917_v12 = vmul.f32 %v8649_v0, %v879_v22  ;;  %v8920_v3 = vmul.f32 %v8649_v0, %v880_v8 }
  0xe2   :  { %12573 = vst [vmem:[#allocation27_spill] sm:$0xff] %v8899_v25  ;;  %12575 = vst [vmem:[#allocation28_spill] sm:$0xff] %v8902_v19  ;;  %v12580_v50 = vld [vmem:[#allocation38_spill] sm:$0xff]  ;;  %v8925_v55 = vld [vmem:[%s12243_s1 + $0x4] ss:$0 sm:$0xff]  ;;  %v8928_v1 = vmul.f32 %v8649_v0, %v881_v17 }
  0xe3   :  { %12577 = vst [vmem:[#allocation29_spill] sm:$0xff] %v8905_v5  ;;  %12579 = vst [vmem:[#allocation30_spill] sm:$0xff] %v8908_v45  ;;  %v8911_v6 = vadd.f32 %v782_v24, %v12580_v50  ;;  %v1121_v28 = vld [vmem:[#allocation2 + $0x271] sm:$0xff]  ;;  %v1122_v59 = vld [vmem:[#allocation2 + $0x279] sm:$0xff]  ;;  %v8931_v24 = vmul.f32 %v8649_v0, %v882_v41  ;;  %v1177_v36 = vmul.f32 %v8925_v55, %v1108_v48 }
  0xe4   :  { %12582 = vst [vmem:[#allocation32_spill] sm:$0xff] %v8920_v3  ;;  %12583 = vst [vmem:[#allocation33_spill] sm:$0xff] %v8928_v1  ;;  %v1123_v11 = vld [vmem:[#allocation2 + $0x289] sm:$0xff]  ;;  %v1124_v31 = vld [vmem:[#allocation2 + $0x291] sm:$0xff]  ;;  %v1178_v8 = vmul.f32 %v8925_v55, %v1109_v21  ;;  %v1179_v5 = vmul.f32 %v8925_v55, %v1110_v14  ;;  %v1180_v19 = vmul.f32 %v8925_v55, %v1111_v61 }
  0xe5   :  { %12581 = vst [vmem:[#allocation31_spill] sm:$0xff] %v8911_v6  ;;  %12584 = vst [vmem:[#allocation34_spill] sm:$0xff] %v8931_v24  ;;  %v1125_v22 = vld [vmem:[#allocation2 + $0x2a1] sm:$0xff]  ;;  %v1126_v50 = vld [vmem:[#allocation2 + $0x2a9] sm:$0xff]  ;;  %v1181_v17 = vmul.f32 %v8925_v55, %v1112_v23  ;;  %v1182_v25 = vmul.f32 %v8925_v55, %v1113_v56  ;;  %v1183_v58 = vmul.f32 %v8925_v55, %v1114_v18 }
  0xe6   :  { %v1127_v6 = vld [vmem:[#allocation2 + $0x2b9] sm:$0xff]  ;;  %v1128_v45 = vld [vmem:[#allocation2 + $0x2c1] sm:$0xff]  ;;  %v1129_v41 = vld [vmem:[#allocation2 + $0x2d1] sm:$0xff]  ;;  %v1184_v48 = vmul.f32 %v8925_v55, %v1115_v46  ;;  %v1185_v21 = vmul.f32 %v8925_v55, %v1116_v62  ;;  %v1186_v26 = vmul.f32 %v8925_v55, %v1117_v9  ;;  %v1187_v61 = vmul.f32 %v8925_v55, %v1118_v30 }
  0xe7   :  { %v1130_v57 = vld [vmem:[#allocation2 + $0x2d9] sm:$0xff]  ;;  %v1131_v42 = vld [vmem:[#allocation2 + $0x2e9] sm:$0xff]  ;;  %v1132_v2 = vld [vmem:[#allocation2 + $0x2f1] sm:$0xff]  ;;  %v1188_v23 = vmul.f32 %v8925_v55, %v1119_v37  ;;  %v1189_v56 = vmul.f32 %v8925_v55, %v1120_v13  ;;  %v1190_v39 = vmul.f32 %v8925_v55, %v1121_v28  ;;  %v1191_v46 = vmul.f32 %v8925_v55, %v1122_v59 }
  0xe8   :  { %v1133_v38 = vld [vmem:[#allocation2 + $0x301] sm:$0xff]  ;;  %v1134_v14 = vld [vmem:[#allocation2 + $0x309] sm:$0xff]  ;;  %v1135_v15 = vld [vmem:[#allocation2 + $0x319] sm:$0xff]  ;;  %v1192_v62 = vmul.f32 %v8925_v55, %v1123_v11  ;;  %v1193_v9 = vmul.f32 %v8925_v55, %v1124_v31  ;;  %v1194_v20 = vmul.f32 %v8925_v55, %v1125_v22  ;;  %v1195_v30 = vmul.f32 %v8925_v55, %v1126_v50 }
  0xe9   :  { %v1136_v24 = vld [vmem:[#allocation2 + $0x321] sm:$0xff]  ;;  %v1137_v18 = vld [vmem:[#allocation2 + $0x331] sm:$0xff]  ;;  %v1138_v1 = vld [vmem:[#allocation2 + $0x339] sm:$0xff]  ;;  %v1196_v37 = vmul.f32 %v8925_v55, %v1127_v6  ;;  %v1197_v13 = vmul.f32 %v8925_v55, %v1128_v45  ;;  %v1198_v28 = vmul.f32 %v8925_v55, %v1129_v41  ;;  %v1199_v53 = vmul.f32 %v8925_v55, %v1130_v57 }
  0xea   :  { %v1200_v3 = vmul.f32 %v8925_v55, %v1131_v42  ;;  %v1201_v59 = vmul.f32 %v8925_v55, %v1132_v2  ;;  %v1202_v11 = vmul.f32 %v8925_v55, %v1133_v38  ;;  %v1203_v31 = vmul.f32 %v8925_v55, %v1134_v14 }
  0xeb   :  { %v1204_v22 = vmul.f32 %v8925_v55, %v1135_v15  ;;  %v1205_v50 = vmul.f32 %v8925_v55, %v1136_v24  ;;  %v1206_v6 = vmul.f32 %v8925_v55, %v1137_v18  ;;  %v1207_v45 = vmul.f32 %v8925_v55, %v1138_v1 }
  0xec   :  { %v8965_v41 = vadd.f32 %v1177_v36, %v8689_v44  ;;  %v8968_v57 = vadd.f32 %v1178_v8, %v8692_v47  ;;  %v8971_v2 = vadd.f32 %v1179_v5, %v8695_v10  ;;  %v8974_v38 = vadd.f32 %v1180_v19, %v8698_v60  ;;  %v884_v19 = vld [vmem:[#allocation2 + $0x60] sm:$0xff]  ;;  %v885_v5 = vld [vmem:[#allocation2 + $0x68] sm:$0xff] }
  0xed   :  { %v8977_v15 = vadd.f32 %v1181_v17, %v8701_v29  ;;  %v8980_v42 = vadd.f32 %v1182_v25, %v8704_v43  ;;  %v8983_v1 = vadd.f32 %v1183_v58, %v8707_v63  ;;  %v8986_v44 = vadd.f32 %v1184_v48, %v8710_v40  ;;  %v883_v29 = vld [vmem:[#allocation2 + $0x50] sm:$0xff]  ;;  %v886_v43 = vld [vmem:[#allocation2 + $0x78] sm:$0xff]  ;;  %v892_v8 = vld [vmem:[#allocation2 + $0xc0] sm:$0xff] }
  0xee   :  { %v8989_v47 = vadd.f32 %v1185_v21, %v8713_v51  ;;  %v8992_v10 = vadd.f32 %v1186_v26, %v8716_v32  ;;  %v8995_v60 = vadd.f32 %v1187_v61, %v8719_v52  ;;  %v8998_v25 = vadd.f32 %v1188_v23, %v8722_v16  ;;  %v887_v32 = vld [vmem:[#allocation2 + $0x80] sm:$0xff]  ;;  %v888_v26 = vld [vmem:[#allocation2 + $0x90] sm:$0xff]  ;;  %v889_v52 = vld [vmem:[#allocation2 + $0x98] sm:$0xff] }
  0xef   :  { %v9001_v63 = vadd.f32 %v1189_v56, %v8725_v7  ;;  %v9004_v40 = vadd.f32 %v1190_v39, %v8728_v34  ;;  %v9007_v51 = vadd.f32 %v1191_v46, %v8731_v35  ;;  %v9010_v58 = vadd.f32 %v1192_v62, %v8734_v49  ;;  %v12585_v7 = vld [vmem:[#allocation42_spill] sm:$0xff]  ;;  %v890_v34 = vld [vmem:[#allocation2 + $0xa8] sm:$0xff]  ;;  %v891_v39 = vld [vmem:[#allocation2 + $0xb0] sm:$0xff] }
  0xf0   :  { %v9013_v24 = vadd.f32 %v1193_v9, %v8737_v54  ;;  %v9016_v16 = vadd.f32 %v1194_v20, %v8740_v27  ;;  %v9019_v36 = vadd.f32 %v1195_v30, %v12585_v7  ;;  %v12587_v35 = vld [vmem:[#allocation43_spill] sm:$0xff]  ;;  %v12589_v48 = vld [vmem:[#allocation44_spill] sm:$0xff]  ;;  %v12591_v49 = vld [vmem:[#allocation45_spill] sm:$0xff] }
  0xf1   :  { %v9022_v17 = vadd.f32 %v1196_v37, %v12587_v35  ;;  %v9025_v21 = vadd.f32 %v1197_v13, %v12589_v48  ;;  %v9028_v14 = vadd.f32 %v1198_v28, %v12591_v49  ;;  %v12593_v54 = vld [vmem:[#allocation51_spill] sm:$0xff]  ;;  %v893_v27 = vld [vmem:[#allocation2 + $0xc8] sm:$0xff]  ;;  %v894_v20 = vld [vmem:[#allocation2 + $0xd8] sm:$0xff] }
  0xf2   :  { %12586 = vst [vmem:[#allocation35_spill] sm:$0xff] %v9019_v36  ;;  %v9031_v61 = vadd.f32 %v1199_v53, %v12593_v54  ;;  %v895_v23 = vld [vmem:[#allocation2 + $0xe0] sm:$0xff]  ;;  %v12595_v56 = vld [vmem:[#allocation52_spill] sm:$0xff]  ;;  %v12597_v46 = vld [vmem:[#allocation53_spill] sm:$0xff] }
  0xf3   :  { %12588 = vst [vmem:[#allocation36_spill] sm:$0xff] %v9022_v17  ;;  %12590 = vst [vmem:[#allocation37_spill] sm:$0xff] %v9025_v21  ;;  %v9034_v18 = vadd.f32 %v1200_v3, %v12595_v56  ;;  %v9037_v62 = vadd.f32 %v1201_v59, %v12597_v46  ;;  %v12599_v9 = vld [vmem:[#allocation54_spill] sm:$0xff]  ;;  %v12601_v37 = vld [vmem:[#allocation4_spill] sm:$0xff] }
  0xf4   :  { %12592 = vst [vmem:[#allocation38_spill] sm:$0xff] %v9028_v14  ;;  %12594 = vst [vmem:[#allocation42_spill] sm:$0xff] %v9031_v61  ;;  %v9040_v30 = vadd.f32 %v1202_v11, %v12599_v9  ;;  %v9043_v13 = vadd.f32 %v1203_v31, %v12601_v37  ;;  %v896_v28 = vld [vmem:[#allocation2 + $0xf0] sm:$0xff]  ;;  %v897_v7 = vld [vmem:[#allocation2 + $0xf8] sm:$0xff]  ;;  %v952_v31 = vmul.f32 %v8649_v0, %v883_v29 }
  0xf5   :  { %12596 = vst [vmem:[#allocation43_spill] sm:$0xff] %v9034_v18  ;;  %12598 = vst [vmem:[#allocation44_spill] sm:$0xff] %v9037_v62  ;;  %v898_v35 = vld [vmem:[#allocation2 + $0x108] sm:$0xff]  ;;  %v12603_v53 = vld [vmem:[#allocation5_spill] sm:$0xff]  ;;  %v953_v37 = vmul.f32 %v8649_v0, %v884_v19  ;;  %v960_v19 = vmul.f32 %v8649_v0, %v891_v39 }
  0xf6   :  { %12600 = vst [vmem:[#allocation45_spill] sm:$0xff] %v9040_v30  ;;  %12602 = vst [vmem:[#allocation51_spill] sm:$0xff] %v9043_v13  ;;  %v9046_v48 = vadd.f32 %v1204_v22, %v12603_v53  ;;  %v12605_v49 = vld [vmem:[#allocation6_spill] sm:$0xff]  ;;  %v12607_v3 = vld [vmem:[#allocation7_spill] sm:$0xff]  ;;  %v954_v13 = vmul.f32 %v8649_v0, %v885_v5  ;;  %v955_v22 = vmul.f32 %v8649_v0, %v886_v43 }
  0xf7   :  { %v9049_v54 = vadd.f32 %v1205_v50, %v12605_v49  ;;  %v9052_v56 = vadd.f32 %v1206_v6, %v12607_v3  ;;  %v12609_v59 = vld [vmem:[#allocation8_spill] sm:$0xff]  ;;  %v899_v11 = vld [vmem:[#allocation2 + $0x110] sm:$0xff]  ;;  %v900_v9 = vld [vmem:[#allocation2 + $0x120] sm:$0xff]  ;;  %v956_v6 = vmul.f32 %v8649_v0, %v887_v32  ;;  %v957_v3 = vmul.f32 %v8649_v0, %v888_v26 }
  0xf8   :  { %12604 = vst [vmem:[#allocation52_spill] sm:$0xff] %v9046_v48  ;;  %v9055_v46 = vadd.f32 %v1207_v45, %v12609_v59  ;;  %v901_v30 = vld [vmem:[#allocation2 + $0x128] sm:$0xff]  ;;  %v902_v53 = vld [vmem:[#allocation2 + $0x138] sm:$0xff]  ;;  %v903_v50 = vld [vmem:[#allocation2 + $0x140] sm:$0xff]  ;;  %v958_v45 = vmul.f32 %v8649_v0, %v889_v52  ;;  %v959_v59 = vmul.f32 %v8649_v0, %v890_v34  ;;  %v961_v5 = vmul.f32 %v8649_v0, %v892_v8 }
  0xf9   :  { %12606 = vst [vmem:[#allocation53_spill] sm:$0xff] %v9049_v54  ;;  %12608 = vst [vmem:[#allocation54_spill] sm:$0xff] %v9052_v56  ;;  %v904_v49 = vld [vmem:[#allocation2 + $0x150] sm:$0xff]  ;;  %v906_v56 = vld [vmem:[#allocation2 + $0x168] sm:$0xff]  ;;  %v962_v43 = vmul.f32 %v8649_v0, %v893_v27  ;;  %v963_v54 = vmul.f32 %v8649_v0, %v894_v20  ;;  %v964_v26 = vmul.f32 %v8649_v0, %v895_v23 }
  0xfa   :  { %12610 = vst [vmem:[#allocation4_spill] sm:$0xff] %v9055_v46  ;;  %v905_v46 = vld [vmem:[#allocation2 + $0x158] sm:$0xff]  ;;  %v907_v29 = vld [vmem:[#allocation2 + $0x170] sm:$0xff]  ;;  %v908_v48 = vld [vmem:[#allocation2 + $0x180] sm:$0xff]  ;;  %v965_v52 = vmul.f32 %v8649_v0, %v896_v28  ;;  %v966_v34 = vmul.f32 %v8649_v0, %v897_v7  ;;  %v967_v18 = vmul.f32 %v8649_v0, %v898_v35  ;;  %v968_v61 = vmul.f32 %v8649_v0, %v899_v11 }
  0xfb   :  { %v909_v62 = vld [vmem:[#allocation2 + $0x188] sm:$0xff]  ;;  %v969_v39 = vmul.f32 %v8649_v0, %v900_v9  ;;  %v970_v8 = vmul.f32 %v8649_v0, %v901_v30  ;;  %v971_v27 = vmul.f32 %v8649_v0, %v902_v53  ;;  %v972_v20 = vmul.f32 %v8649_v0, %v903_v50  ;;  %v12611_v53 = vld [vmem:[#allocation9_spill] sm:$0xff] }
  0xfc   :  { %v910_v32 = vld [vmem:[#allocation2 + $0x1c8] sm:$0xff]  ;;  %v973_v14 = vmul.f32 %v8649_v0, %v904_v49  ;;  %v974_v23 = vmul.f32 %v8649_v0, %v905_v46  ;;  %v975_v28 = vmul.f32 %v8649_v0, %v906_v56  ;;  %v976_v7 = vmul.f32 %v8649_v0, %v907_v29  ;;  %v12613_v49 = vld [vmem:[#allocation10_spill] sm:$0xff]  ;;  %v12617_v29 = vld [vmem:[#allocation33_spill] sm:$0xff] }
  0xfd   :  { %v977_v35 = vmul.f32 %v8649_v0, %v908_v48  ;;  %v978_v11 = vmul.f32 %v8649_v0, %v909_v62  ;;  %v979_v9 = vmul.f32 %v8649_v0, %v910_v32  ;;  %v9087_v30 = vadd.f32 %v8914_v33, %v8811_v4  ;;  %v12614_v46 = vld [vmem:[#allocation32_spill] sm:$0xff]  ;;  %v12619_v48 = vld [vmem:[#allocation13_spill] sm:$0xff]  ;;  %v12620_v62 = vld [vmem:[#allocation34_spill] sm:$0xff] }
  0xfe   :  { %v9091_v50 = vadd.f32 %v8917_v12, %v12611_v53  ;;  %v9095_v21 = vadd.f32 %v12614_v46, %v12613_v49  ;;  %v12616_v56 = vld [vmem:[#allocation12_spill] sm:$0xff]  ;;  %v9103_v36 = vadd.f32 %v12620_v62, %v12619_v48  ;;  %v12622_v0 = vld [vmem:[#allocation11_spill] sm:$0xff]  ;;  %v12634_v48 = vld [vmem:[#allocation41_spill] sm:$0xff] }
  0xff   :  { %v9099_v17 = vadd.f32 %v12617_v29, %v12616_v56  ;;  %v9106_v32 = vadd.f32 %v952_v31, %v12622_v0  ;;  %v12624_v4 = vld [vmem:[#allocation3_spill] sm:$0xff]  ;;  %v12630_v46 = vld [vmem:[#allocation40_spill] sm:$0xff]  ;;  %v12632_v56 = vld [vmem:[#allocation14_spill] sm:$0xff]  ;;  %v9124_v62 = vadd.f32 %v958_v45, %v12634_v48 }
 0x100   :  { %12612 = vst [vmem:[#allocation5_spill] sm:$0xff] %v9091_v50  ;;  %12615 = vst [vmem:[#allocation6_spill] sm:$0xff] %v9095_v21  ;;  %v9109_v33 = vadd.f32 %v953_v37, %v12624_v4  ;;  %v12626_v12 = vld [vmem:[#allocation39_spill] sm:$0xff]  ;;  %v12628_v50 = vld [vmem:[#allocation46_spill] sm:$0xff]  ;;  %v9118_v21 = vadd.f32 %v956_v6, %v12630_v46  ;;  %v9121_v29 = vadd.f32 %v957_v3, %v12632_v56 }
 0x101   :  { %12618 = vst [vmem:[#allocation7_spill] sm:$0xff] %v9099_v17  ;;  %12621 = vst [vmem:[#allocation8_spill] sm:$0xff] %v9103_v36  ;;  %v9112_v53 = vadd.f32 %v954_v13, %v12626_v12  ;;  %v9115_v49 = vadd.f32 %v955_v22, %v12628_v50  ;;  %v12636_v31 = vld [vmem:[#allocation47_spill] sm:$0xff]  ;;  %v12640_v13 = vld [vmem:[#allocation48_spill] sm:$0xff] }
 0x102   :  { %12623 = vst [vmem:[#allocation9_spill] sm:$0xff] %v9106_v32  ;;  %12625 = vst [vmem:[#allocation10_spill] sm:$0xff] %v9109_v33  ;;  %v9127_v0 = vadd.f32 %v959_v59, %v12636_v31  ;;  %v12638_v37 = vld [vmem:[#allocation15_spill] sm:$0xff]  ;;  %v9133_v12 = vadd.f32 %v961_v5, %v12640_v13  ;;  %v12642_v22 = vld [vmem:[#allocation16_spill] sm:$0xff] }
 0x103   :  { %12627 = vst [vmem:[#allocation32_spill] sm:$0xff] %v9112_v53  ;;  %12629 = vst [vmem:[#allocation12_spill] sm:$0xff] %v9115_v49  ;;  %v9130_v4 = vadd.f32 %v960_v19, %v12638_v37  ;;  %v9136_v50 = vadd.f32 %v962_v43, %v12642_v22  ;;  %v1075_v6 = vld [vmem:[#allocation2 + $0x19] sm:$0xff]  ;;  %v1076_v46 = vld [vmem:[#allocation2 + $0x21] sm:$0xff] }
 0x104   :  { %12631 = vst [vmem:[#allocation33_spill] sm:$0xff] %v9118_v21  ;;  %12633 = vst [vmem:[#allocation13_spill] sm:$0xff] %v9121_v29  ;;  %v1077_v21 = vld [vmem:[#allocation2 + $0x31] sm:$0xff]  ;;  %v1078_v5 = vld [vmem:[#allocation2 + $0x39] sm:$0xff] }
 0x105   :  { %12635 = vst [vmem:[#allocation34_spill] sm:$0xff] %v9124_v62  ;;  %12637 = vst [vmem:[#allocation11_spill] sm:$0xff] %v9127_v0  ;;  %v12644_v3 = vld [vmem:[#allocation49_spill] sm:$0xff]  ;;  %v12648_v59 = vld [vmem:[#allocation50_spill] sm:$0xff] }
 0x106   :  { %12639 = vst [vmem:[#allocation3_spill] sm:$0xff] %v9130_v4  ;;  %12641 = vst [vmem:[#allocation39_spill] sm:$0xff] %v9133_v12  ;;  %v9139_v56 = vadd.f32 %v963_v54, %v12644_v3  ;;  %v12646_v45 = vld [vmem:[#allocation17_spill] sm:$0xff]  ;;  %v9145_v31 = vadd.f32 %v965_v52, %v12648_v59  ;;  %v12650_v19 = vld [vmem:[#allocation18_spill] sm:$0xff] }
 0x107   :  { %12643 = vst [vmem:[#allocation46_spill] sm:$0xff] %v9136_v50  ;;  %v9142_v48 = vadd.f32 %v964_v26, %v12646_v45  ;;  %v9148_v37 = vadd.f32 %v966_v34, %v12650_v19  ;;  %v1079_v13 = vld [vmem:[#allocation2 + $0x49] sm:$0xff]  ;;  %v1305_v12 = vld [vmem:[#allocation2 + $0x1d2] sm:$0xff]  ;;  %v12652_v22 = vld [vmem:[#allocation19_spill] sm:$0xff] }
 0x108   :  { %12645 = vst [vmem:[#allocation40_spill] sm:$0xff] %v9139_v56  ;;  %12649 = vst [vmem:[#allocation41_spill] sm:$0xff] %v9145_v31  ;;  %v1306_v43 = vld [vmem:[#allocation2 + $0x1e2] sm:$0xff]  ;;  %v9151_v50 = vadd.f32 %v967_v18, %v12652_v22  ;;  %v12656_v54 = vld [vmem:[#allocation21_spill] sm:$0xff] }
 0x109   :  { %12647 = vst [vmem:[#allocation14_spill] sm:$0xff] %v9142_v48  ;;  %12651 = vst [vmem:[#allocation47_spill] sm:$0xff] %v9148_v37  ;;  %v12654_v4 = vld [vmem:[#allocation20_spill] sm:$0xff]  ;;  %v9157_v3 = vadd.f32 %v969_v39, %v12656_v54  ;;  %v12658_v26 = vld [vmem:[#allocation22_spill] sm:$0xff] }
 0x10a   :  { %12653 = vst [vmem:[#allocation15_spill] sm:$0xff] %v9151_v50  ;;  %v9154_v0 = vadd.f32 %v968_v61, %v12654_v4  ;;  %v9160_v45 = vadd.f32 %v970_v8, %v12658_v26  ;;  %v1307_v52 = vld [vmem:[#allocation2 + $0x1ea] sm:$0xff]  ;;  %v1308_v59 = vld [vmem:[#allocation2 + $0x1fa] sm:$0xff]  ;;  %v1309_v34 = vld [vmem:[#allocation2 + $0x202] sm:$0xff] }
 0x10b   :  { %12657 = vst [vmem:[#allocation16_spill] sm:$0xff] %v9157_v3  ;;  %v1310_v19 = vld [vmem:[#allocation2 + $0x212] sm:$0xff]  ;;  %v12660_v37 = vld [vmem:[#allocation23_spill] sm:$0xff]  ;;  %v12662_v48 = vld [vmem:[#allocation24_spill] sm:$0xff] }
 0x10c   :  { %12655 = vst [vmem:[#allocation48_spill] sm:$0xff] %v9154_v0  ;;  %12659 = vst [vmem:[#allocation49_spill] sm:$0xff] %v9160_v45  ;;  %v9163_v31 = vadd.f32 %v971_v27, %v12660_v37  ;;  %v9166_v56 = vadd.f32 %v972_v20, %v12662_v48  ;;  %v12664_v18 = vld [vmem:[#allocation25_spill] sm:$0xff]  ;;  %v12666_v61 = vld [vmem:[#allocation26_spill] sm:$0xff] }
 0x10d   :  { %v9169_v22 = vadd.f32 %v973_v14, %v12664_v18  ;;  %v9172_v4 = vadd.f32 %v974_v23, %v12666_v61  ;;  %v1311_v39 = vld [vmem:[#allocation2 + $0x21a] sm:$0xff]  ;;  %v1312_v54 = vld [vmem:[#allocation2 + $0x22a] sm:$0xff]  ;;  %v1313_v8 = vld [vmem:[#allocation2 + $0x232] sm:$0xff] }
 0x10e   :  { %12661 = vst [vmem:[#allocation17_spill] sm:$0xff] %v9163_v31  ;;  %12663 = vst [vmem:[#allocation50_spill] sm:$0xff] %v9166_v56  ;;  %v1314_v26 = vld [vmem:[#allocation2 + $0x242] sm:$0xff]  ;;  %v12672_v27 = vld [vmem:[#allocation29_spill] sm:$0xff] }
 0x10f   :  { %12665 = vst [vmem:[#allocation18_spill] sm:$0xff] %v9169_v22  ;;  %12667 = vst [vmem:[#allocation19_spill] sm:$0xff] %v9172_v4  ;;  %v12668_v45 = vld [vmem:[#allocation27_spill] sm:$0xff]  ;;  %v12670_v0 = vld [vmem:[#allocation28_spill] sm:$0xff]  ;;  %v9181_v37 = vadd.f32 %v977_v35, %v12672_v27  ;;  %v9190_v22 = vmul.f32 %v8925_v55, %v1075_v6 }
 0x110   :  { %v9175_v3 = vadd.f32 %v975_v28, %v12668_v45  ;;  %v9178_v50 = vadd.f32 %v976_v7, %v12670_v0  ;;  %v12674_v20 = vld [vmem:[#allocation30_spill] sm:$0xff]  ;;  %v1315_v14 = vld [vmem:[#allocation2 + $0x24a] sm:$0xff]  ;;  %v1317_v23 = vld [vmem:[#allocation2 + $0x262] sm:$0xff]  ;;  %v9193_v28 = vmul.f32 %v8925_v55, %v1076_v46  ;;  %v9196_v7 = vmul.f32 %v8925_v55, %v1077_v21 }
 0x111   :  { %12673 = vst [vmem:[#allocation22_spill] sm:$0xff] %v9181_v37  ;;  %v9184_v48 = vadd.f32 %v978_v11, %v12674_v20  ;;  %v1316_v18 = vld [vmem:[#allocation2 + $0x25a] sm:$0xff]  ;;  %v1318_v35 = vld [vmem:[#allocation2 + $0x272] sm:$0xff]  ;;  %v9201_v11 = vld [vmem:[%s12243_s1 + $0x5] ss:$0 sm:$0xff]  ;;  %v9204_v45 = vmul.f32 %v8925_v55, %v1078_v5 }
 0x112   :  { %12669 = vst [vmem:[#allocation20_spill] sm:$0xff] %v9175_v3  ;;  %12671 = vst [vmem:[#allocation21_spill] sm:$0xff] %v9178_v50  ;;  %v12676_v61 = vld [vmem:[#allocation31_spill] sm:$0xff]  ;;  %v1320_v6 = vld [vmem:[#allocation2 + $0x28a] sm:$0xff]  ;;  %v1374_v20 = vmul.f32 %v9201_v11, %v1305_v12  ;;  %v1375_v21 = vmul.f32 %v9201_v11, %v1306_v43  ;;  %v1376_v37 = vmul.f32 %v9201_v11, %v1307_v52 }
 0x113   :  { %12675 = vst [vmem:[#allocation23_spill] sm:$0xff] %v9184_v48  ;;  %v9187_v4 = vadd.f32 %v979_v9, %v12676_v61  ;;  %12678 = vst [vmem:[#allocation25_spill] sm:$0xff] %v9196_v7  ;;  %v1319_v0 = vld [vmem:[#allocation2 + $0x27a] sm:$0xff]  ;;  %v9207_v9 = vmul.f32 %v8925_v55, %v1079_v13  ;;  %v1321_v27 = vld [vmem:[#allocation2 + $0x292] sm:$0xff]  ;;  %v1377_v50 = vmul.f32 %v9201_v11, %v1308_v59 }
 0x114   :  { %12679 = vst [vmem:[#allocation26_spill] sm:$0xff] %v9204_v45  ;;  %v1322_v46 = vld [vmem:[#allocation2 + $0x2a2] sm:$0xff]  ;;  %v1323_v61 = vld [vmem:[#allocation2 + $0x2aa] sm:$0xff]  ;;  %v1378_v5 = vmul.f32 %v9201_v11, %v1309_v34  ;;  %v1379_v3 = vmul.f32 %v9201_v11, %v1310_v19  ;;  %v1326_v13 = vld [vmem:[#allocation2 + $0x2d2] sm:$0xff]  ;;  %v1380_v62 = vmul.f32 %v9201_v11, %v1311_v39  ;;  %v1381_v12 = vmul.f32 %v9201_v11, %v1312_v54 }
 0x115   :  { %12677 = vst [vmem:[#allocation24_spill] sm:$0xff] %v9187_v4  ;;  %12680 = vst [vmem:[#allocation27_spill] sm:$0xff] %v9207_v9  ;;  %v1324_v4 = vld [vmem:[#allocation2 + $0x2ba] sm:$0xff]  ;;  %v1325_v48 = vld [vmem:[#allocation2 + $0x2c2] sm:$0xff]  ;;  %v1382_v43 = vmul.f32 %v9201_v11, %v1313_v8  ;;  %v1383_v29 = vmul.f32 %v9201_v11, %v1314_v26  ;;  %v1384_v59 = vmul.f32 %v9201_v11, %v1315_v14 }
 0x116   :  { %v1327_v56 = vld [vmem:[#allocation2 + $0x2da] sm:$0xff]  ;;  %v1328_v31 = vld [vmem:[#allocation2 + $0x2ea] sm:$0xff]  ;;  %v1329_v49 = vld [vmem:[#allocation2 + $0x2f2] sm:$0xff]  ;;  %v1385_v34 = vmul.f32 %v9201_v11, %v1316_v18  ;;  %v1386_v19 = vmul.f32 %v9201_v11, %v1317_v23  ;;  %v1387_v33 = vmul.f32 %v9201_v11, %v1318_v35  ;;  %v1388_v54 = vmul.f32 %v9201_v11, %v1319_v0 }
 0x117   :  { %v1330_v53 = vld [vmem:[#allocation2 + $0x302] sm:$0xff]  ;;  %v1331_v52 = vld [vmem:[#allocation2 + $0x30a] sm:$0xff]  ;;  %v1332_v32 = vld [vmem:[#allocation2 + $0x31a] sm:$0xff]  ;;  %v1389_v8 = vmul.f32 %v9201_v11, %v1320_v6  ;;  %v1390_v26 = vmul.f32 %v9201_v11, %v1321_v27  ;;  %v1391_v36 = vmul.f32 %v9201_v11, %v1322_v46  ;;  %v1392_v14 = vmul.f32 %v9201_v11, %v1323_v61 }
 0x118   :  { %v1333_v9 = vld [vmem:[#allocation2 + $0x322] sm:$0xff]  ;;  %v1334_v39 = vld [vmem:[#allocation2 + $0x332] sm:$0xff]  ;;  %v1335_v45 = vld [vmem:[#allocation2 + $0x33a] sm:$0xff]  ;;  %v1393_v18 = vmul.f32 %v9201_v11, %v1324_v4  ;;  %v1394_v23 = vmul.f32 %v9201_v11, %v1325_v48  ;;  %v1395_v35 = vmul.f32 %v9201_v11, %v1326_v13  ;;  %v1396_v17 = vmul.f32 %v9201_v11, %v1327_v56 }
 0x119   :  { %v1397_v7 = vmul.f32 %v9201_v11, %v1328_v31  ;;  %v1398_v0 = vmul.f32 %v9201_v11, %v1329_v49  ;;  %v1399_v6 = vmul.f32 %v9201_v11, %v1330_v53  ;;  %v1400_v27 = vmul.f32 %v9201_v11, %v1331_v52 }
 0x11a   :  { %v1401_v46 = vmul.f32 %v9201_v11, %v1332_v32  ;;  %v1402_v61 = vmul.f32 %v9201_v11, %v1333_v9  ;;  %v1403_v4 = vmul.f32 %v9201_v11, %v1334_v39  ;;  %v1404_v48 = vmul.f32 %v9201_v11, %v1335_v45 }
 0x11b   :  { %v9241_v13 = vadd.f32 %v1374_v20, %v8965_v41  ;;  %v9244_v56 = vadd.f32 %v1375_v21, %v8968_v57  ;;  %v9247_v49 = vadd.f32 %v1376_v37, %v8971_v2  ;;  %v9250_v53 = vadd.f32 %v1377_v50, %v8974_v38  ;;  %v1081_v50 = vld [vmem:[#allocation2 + $0x61] sm:$0xff]  ;;  %v1082_v37 = vld [vmem:[#allocation2 + $0x69] sm:$0xff] }
 0x11c   :  { %v9253_v32 = vadd.f32 %v1378_v5, %v8977_v15  ;;  %v9256_v31 = vadd.f32 %v1379_v3, %v8980_v42  ;;  %v9259_v45 = vadd.f32 %v1380_v62, %v8983_v1  ;;  %v9262_v41 = vadd.f32 %v1381_v12, %v8986_v44  ;;  %v1080_v15 = vld [vmem:[#allocation2 + $0x51] sm:$0xff]  ;;  %v1083_v42 = vld [vmem:[#allocation2 + $0x79] sm:$0xff]  ;;  %v1089_v21 = vld [vmem:[#allocation2 + $0xc1] sm:$0xff] }
 0x11d   :  { %v9265_v57 = vadd.f32 %v1382_v43, %v8989_v47  ;;  %v9268_v2 = vadd.f32 %v1383_v29, %v8992_v10  ;;  %v9271_v38 = vadd.f32 %v1384_v59, %v8995_v60  ;;  %v9274_v3 = vadd.f32 %v1385_v34, %v8998_v25  ;;  %v1084_v10 = vld [vmem:[#allocation2 + $0x81] sm:$0xff]  ;;  %v1085_v29 = vld [vmem:[#allocation2 + $0x91] sm:$0xff]  ;;  %v1086_v60 = vld [vmem:[#allocation2 + $0x99] sm:$0xff] }
 0x11e   :  { %v9277_v1 = vadd.f32 %v1386_v19, %v9001_v63  ;;  %v9280_v44 = vadd.f32 %v1387_v33, %v9004_v40  ;;  %v9283_v47 = vadd.f32 %v1388_v54, %v9007_v51  ;;  %v9286_v62 = vadd.f32 %v1389_v8, %v9010_v58  ;;  %v12681_v63 = vld [vmem:[#allocation35_spill] sm:$0xff]  ;;  %v1087_v40 = vld [vmem:[#allocation2 + $0xa9] sm:$0xff]  ;;  %v1088_v33 = vld [vmem:[#allocation2 + $0xb1] sm:$0xff] }
 0x11f   :  { %v9289_v9 = vadd.f32 %v1390_v26, %v9013_v24  ;;  %v9292_v25 = vadd.f32 %v1391_v36, %v9016_v16  ;;  %v9295_v20 = vadd.f32 %v1392_v14, %v12681_v63  ;;  %v12683_v51 = vld [vmem:[#allocation36_spill] sm:$0xff]  ;;  %v12685_v12 = vld [vmem:[#allocation37_spill] sm:$0xff]  ;;  %v12687_v58 = vld [vmem:[#allocation38_spill] sm:$0xff] }
 0x120   :  { %v9298_v5 = vadd.f32 %v1393_v18, %v12683_v51  ;;  %v9301_v43 = vadd.f32 %v1394_v23, %v12685_v12  ;;  %v9304_v52 = vadd.f32 %v1395_v35, %v12687_v58  ;;  %v12689_v24 = vld [vmem:[#allocation42_spill] sm:$0xff]  ;;  %v1090_v16 = vld [vmem:[#allocation2 + $0xc9] sm:$0xff]  ;;  %v1092_v34 = vld [vmem:[#allocation2 + $0xe1] sm:$0xff] }
 0x121   :  { %12682 = vst [vmem:[#allocation28_spill] sm:$0xff] %v9295_v20  ;;  %v9307_v59 = vadd.f32 %v1396_v17, %v12689_v24  ;;  %v1091_v36 = vld [vmem:[#allocation2 + $0xd9] sm:$0xff]  ;;  %v12693_v54 = vld [vmem:[#allocation44_spill] sm:$0xff]  ;;  %v12695_v26 = vld [vmem:[#allocation45_spill] sm:$0xff] }
 0x122   :  { %12684 = vst [vmem:[#allocation29_spill] sm:$0xff] %v9298_v5  ;;  %12686 = vst [vmem:[#allocation30_spill] sm:$0xff] %v9301_v43  ;;  %v12691_v19 = vld [vmem:[#allocation43_spill] sm:$0xff]  ;;  %v9313_v8 = vadd.f32 %v1398_v0, %v12693_v54  ;;  %v9316_v14 = vadd.f32 %v1399_v6, %v12695_v26  ;;  %v1093_v35 = vld [vmem:[#allocation2 + $0xf1] sm:$0xff] }
 0x123   :  { %12688 = vst [vmem:[#allocation31_spill] sm:$0xff] %v9304_v52  ;;  %12690 = vst [vmem:[#allocation35_spill] sm:$0xff] %v9307_v59  ;;  %v9310_v39 = vadd.f32 %v1397_v7, %v12691_v19  ;;  %v12697_v18 = vld [vmem:[#allocation51_spill] sm:$0xff]  ;;  %v1095_v51 = vld [vmem:[#allocation2 + $0x109] sm:$0xff] }
 0x124   :  { %12694 = vst [vmem:[#allocation37_spill] sm:$0xff] %v9313_v8  ;;  %12696 = vst [vmem:[#allocation38_spill] sm:$0xff] %v9316_v14  ;;  %v9319_v23 = vadd.f32 %v1400_v27, %v12697_v18  ;;  %v1094_v63 = vld [vmem:[#allocation2 + $0xf9] sm:$0xff]  ;;  %v12699_v17 = vld [vmem:[#allocation52_spill] sm:$0xff]  ;;  %v1149_v27 = vmul.f32 %v8925_v55, %v1080_v15  ;;  %v1150_v18 = vmul.f32 %v8925_v55, %v1081_v50 }
 0x125   :  { %12692 = vst [vmem:[#allocation36_spill] sm:$0xff] %v9310_v39  ;;  %v9322_v12 = vadd.f32 %v1401_v46, %v12699_v17  ;;  %v12701_v58 = vld [vmem:[#allocation53_spill] sm:$0xff]  ;;  %v12703_v7 = vld [vmem:[#allocation54_spill] sm:$0xff]  ;;  %v12705_v0 = vld [vmem:[#allocation4_spill] sm:$0xff]  ;;  %v1152_v46 = vmul.f32 %v8925_v55, %v1083_v42  ;;  %v1157_v50 = vmul.f32 %v8925_v55, %v1088_v33  ;;  %v1159_v42 = vmul.f32 %v8925_v55, %v1090_v16 }
 0x126   :  { %12698 = vst [vmem:[#allocation42_spill] sm:$0xff] %v9319_v23  ;;  %v9325_v24 = vadd.f32 %v1402_v61, %v12701_v58  ;;  %v9328_v19 = vadd.f32 %v1403_v4, %v12703_v7  ;;  %v9331_v54 = vadd.f32 %v1404_v48, %v12705_v0  ;;  %v1096_v6 = vld [vmem:[#allocation2 + $0x111] sm:$0xff]  ;;  %v1097_v26 = vld [vmem:[#allocation2 + $0x121] sm:$0xff]  ;;  %v1098_v14 = vld [vmem:[#allocation2 + $0x129] sm:$0xff]  ;;  %v1151_v23 = vmul.f32 %v8925_v55, %v1082_v37 }
 0x127   :  { %12700 = vst [vmem:[#allocation43_spill] sm:$0xff] %v9322_v12  ;;  %v1099_v17 = vld [vmem:[#allocation2 + $0x139] sm:$0xff]  ;;  %v1100_v61 = vld [vmem:[#allocation2 + $0x141] sm:$0xff]  ;;  %v1101_v58 = vld [vmem:[#allocation2 + $0x151] sm:$0xff]  ;;  %v1153_v4 = vmul.f32 %v8925_v55, %v1084_v10  ;;  %v1154_v7 = vmul.f32 %v8925_v55, %v1085_v29  ;;  %v1155_v48 = vmul.f32 %v8925_v55, %v1086_v60  ;;  %v1156_v0 = vmul.f32 %v8925_v55, %v1087_v40 }
 0x128   :  { %12702 = vst [vmem:[#allocation44_spill] sm:$0xff] %v9325_v24  ;;  %12704 = vst [vmem:[#allocation45_spill] sm:$0xff] %v9328_v19  ;;  %v1103_v19 = vld [vmem:[#allocation2 + $0x169] sm:$0xff]  ;;  %v1104_v15 = vld [vmem:[#allocation2 + $0x171] sm:$0xff]  ;;  %v1158_v37 = vmul.f32 %v8925_v55, %v1089_v21  ;;  %v1160_v24 = vmul.f32 %v8925_v55, %v1091_v36  ;;  %v1161_v29 = vmul.f32 %v8925_v55, %v1092_v34 }
 0x129   :  { %12706 = vst [vmem:[#allocation51_spill] sm:$0xff] %v9331_v54  ;;  %v1102_v54 = vld [vmem:[#allocation2 + $0x159] sm:$0xff]  ;;  %v1105_v12 = vld [vmem:[#allocation2 + $0x181] sm:$0xff]  ;;  %v1106_v8 = vld [vmem:[#allocation2 + $0x189] sm:$0xff]  ;;  %v1162_v60 = vmul.f32 %v8925_v55, %v1093_v35  ;;  %v1163_v40 = vmul.f32 %v8925_v55, %v1094_v63  ;;  %v1164_v39 = vmul.f32 %v8925_v55, %v1095_v51  ;;  %v1165_v59 = vmul.f32 %v8925_v55, %v1096_v6 }
 0x12a   :  { %v1107_v10 = vld [vmem:[#allocation2 + $0x1c9] sm:$0xff]  ;;  %v1166_v33 = vmul.f32 %v8925_v55, %v1097_v26  ;;  %v1167_v21 = vmul.f32 %v8925_v55, %v1098_v14  ;;  %v1168_v16 = vmul.f32 %v8925_v55, %v1099_v17  ;;  %v1169_v36 = vmul.f32 %v8925_v55, %v1100_v61 }
 0x12b   :  { %v1170_v52 = vmul.f32 %v8925_v55, %v1101_v58  ;;  %v1171_v34 = vmul.f32 %v8925_v55, %v1102_v54  ;;  %v1172_v35 = vmul.f32 %v8925_v55, %v1103_v19  ;;  %v1173_v63 = vmul.f32 %v8925_v55, %v1104_v15  ;;  %v12707_v17 = vld [vmem:[#allocation5_spill] sm:$0xff]  ;;  %v12709_v58 = vld [vmem:[#allocation6_spill] sm:$0xff]  ;;  %v12712_v19 = vld [vmem:[#allocation7_spill] sm:$0xff] }
 0x12c   :  { %v1174_v51 = vmul.f32 %v8925_v55, %v1105_v12  ;;  %v1175_v6 = vmul.f32 %v8925_v55, %v1106_v8  ;;  %v1176_v26 = vmul.f32 %v8925_v55, %v1107_v10  ;;  %v9363_v14 = vadd.f32 %v9190_v22, %v9087_v30  ;;  %v12710_v54 = vld [vmem:[#allocation25_spill] sm:$0xff]  ;;  %v12713_v15 = vld [vmem:[#allocation26_spill] sm:$0xff]  ;;  %v12715_v12 = vld [vmem:[#allocation8_spill] sm:$0xff] }
 0x12d   :  { %v9367_v61 = vadd.f32 %v9193_v28, %v12707_v17  ;;  %v9371_v43 = vadd.f32 %v12710_v54, %v12709_v58  ;;  %v9375_v5 = vadd.f32 %v12713_v15, %v12712_v19  ;;  %v12716_v8 = vld [vmem:[#allocation27_spill] sm:$0xff]  ;;  %v12718_v55 = vld [vmem:[#allocation9_spill] sm:$0xff]  ;;  %v12720_v30 = vld [vmem:[#allocation10_spill] sm:$0xff] }
 0x12e   :  { %v9379_v20 = vadd.f32 %v12716_v8, %v12715_v12  ;;  %v9382_v10 = vadd.f32 %v1149_v27, %v12718_v55  ;;  %v9385_v22 = vadd.f32 %v1150_v18, %v12720_v30  ;;  %v12722_v28 = vld [vmem:[#allocation32_spill] sm:$0xff]  ;;  %v12726_v54 = vld [vmem:[#allocation33_spill] sm:$0xff]  ;;  %v12730_v12 = vld [vmem:[#allocation34_spill] sm:$0xff] }
 0x12f   :  { %12708 = vst [vmem:[#allocation52_spill] sm:$0xff] %v9367_v61  ;;  %12711 = vst [vmem:[#allocation53_spill] sm:$0xff] %v9371_v43  ;;  %v9388_v17 = vadd.f32 %v1151_v23, %v12722_v28  ;;  %v12724_v61 = vld [vmem:[#allocation12_spill] sm:$0xff]  ;;  %v9394_v43 = vadd.f32 %v1153_v4, %v12726_v54  ;;  %v12728_v19 = vld [vmem:[#allocation13_spill] sm:$0xff]  ;;  %v9400_v8 = vadd.f32 %v1155_v48, %v12730_v12 }
 0x130   :  { %12714 = vst [vmem:[#allocation54_spill] sm:$0xff] %v9375_v5  ;;  %12717 = vst [vmem:[#allocation4_spill] sm:$0xff] %v9379_v20  ;;  %v9391_v58 = vadd.f32 %v1152_v46, %v12724_v61  ;;  %v9397_v15 = vadd.f32 %v1154_v7, %v12728_v19  ;;  %v12732_v27 = vld [vmem:[#allocation11_spill] sm:$0xff]  ;;  %v12738_v46 = vld [vmem:[#allocation46_spill] sm:$0xff] }
 0x131   :  { %12719 = vst [vmem:[#allocation5_spill] sm:$0xff] %v9382_v10  ;;  %12721 = vst [vmem:[#allocation6_spill] sm:$0xff] %v9385_v22  ;;  %v9403_v55 = vadd.f32 %v1156_v0, %v12732_v27  ;;  %v12734_v18 = vld [vmem:[#allocation3_spill] sm:$0xff]  ;;  %v9412_v61 = vadd.f32 %v1159_v42, %v12738_v46  ;;  %v12740_v7 = vld [vmem:[#allocation40_spill] sm:$0xff] }
 0x132   :  { %12723 = vst [vmem:[#allocation25_spill] sm:$0xff] %v9388_v17  ;;  %12725 = vst [vmem:[#allocation7_spill] sm:$0xff] %v9391_v58  ;;  %v9406_v30 = vadd.f32 %v1157_v50, %v12734_v18  ;;  %v12736_v23 = vld [vmem:[#allocation39_spill] sm:$0xff]  ;;  %v9415_v19 = vadd.f32 %v1160_v24, %v12740_v7  ;;  %v12742_v48 = vld [vmem:[#allocation14_spill] sm:$0xff] }
 0x133   :  { %12727 = vst [vmem:[#allocation26_spill] sm:$0xff] %v9394_v43  ;;  %12729 = vst [vmem:[#allocation8_spill] sm:$0xff] %v9397_v15  ;;  %v9409_v28 = vadd.f32 %v1158_v37, %v12736_v23  ;;  %v1272_v4 = vld [vmem:[#allocation2 + $0x1a] sm:$0xff]  ;;  %v1273_v54 = vld [vmem:[#allocation2 + $0x22] sm:$0xff]  ;;  %v9418_v12 = vadd.f32 %v1161_v29, %v12742_v48 }
 0x134   :  { %12731 = vst [vmem:[#allocation27_spill] sm:$0xff] %v9400_v8  ;;  %12733 = vst [vmem:[#allocation9_spill] sm:$0xff] %v9403_v55  ;;  %v1274_v43 = vld [vmem:[#allocation2 + $0x32] sm:$0xff]  ;;  %v12746_v50 = vld [vmem:[#allocation47_spill] sm:$0xff] }
 0x135   :  { %12735 = vst [vmem:[#allocation10_spill] sm:$0xff] %v9406_v30  ;;  %12737 = vst [vmem:[#allocation32_spill] sm:$0xff] %v9409_v28  ;;  %v12744_v0 = vld [vmem:[#allocation41_spill] sm:$0xff]  ;;  %v9424_v18 = vadd.f32 %v1163_v40, %v12746_v50  ;;  %v1275_v37 = vld [vmem:[#allocation2 + $0x3a] sm:$0xff] }
 0x136   :  { %12739 = vst [vmem:[#allocation12_spill] sm:$0xff] %v9412_v61  ;;  %12741 = vst [vmem:[#allocation33_spill] sm:$0xff] %v9415_v19  ;;  %v9421_v27 = vadd.f32 %v1162_v60, %v12744_v0  ;;  %v1276_v23 = vld [vmem:[#allocation2 + $0x4a] sm:$0xff]  ;;  %v1504_v42 = vld [vmem:[#allocation2 + $0x1f8] sm:$0xff] }
 0x137   :  { %12743 = vst [vmem:[#allocation13_spill] sm:$0xff] %v9418_v12  ;;  %12747 = vst [vmem:[#allocation11_spill] sm:$0xff] %v9424_v18  ;;  %v1503_v28 = vld [vmem:[#allocation2 + $0x1e8] sm:$0xff]  ;;  %v12748_v46 = vld [vmem:[#allocation15_spill] sm:$0xff] }
 0x138   :  { %12745 = vst [vmem:[#allocation34_spill] sm:$0xff] %v9421_v27  ;;  %v9427_v61 = vadd.f32 %v1164_v39, %v12748_v46  ;;  %v12750_v30 = vld [vmem:[#allocation48_spill] sm:$0xff]  ;;  %v12754_v29 = vld [vmem:[#allocation49_spill] sm:$0xff]  ;;  %v1505_v60 = vld [vmem:[#allocation2 + $0x200] sm:$0xff] }
 0x139   :  { %v9430_v55 = vadd.f32 %v1165_v59, %v12750_v30  ;;  %v12752_v24 = vld [vmem:[#allocation16_spill] sm:$0xff]  ;;  %v9436_v48 = vadd.f32 %v1167_v21, %v12754_v29  ;;  %v1506_v0 = vld [vmem:[#allocation2 + $0x210] sm:$0xff]  ;;  %v1507_v40 = vld [vmem:[#allocation2 + $0x218] sm:$0xff] }
 0x13a   :  { %12749 = vst [vmem:[#allocation3_spill] sm:$0xff] %v9427_v61  ;;  %v9433_v7 = vadd.f32 %v1166_v33, %v12752_v24  ;;  %v1508_v50 = vld [vmem:[#allocation2 + $0x228] sm:$0xff]  ;;  %v12756_v18 = vld [vmem:[#allocation17_spill] sm:$0xff]  ;;  %v12758_v12 = vld [vmem:[#allocation50_spill] sm:$0xff] }
 0x13b   :  { %12751 = vst [vmem:[#allocation39_spill] sm:$0xff] %v9430_v55  ;;  %12755 = vst [vmem:[#allocation40_spill] sm:$0xff] %v9436_v48  ;;  %v9439_v27 = vadd.f32 %v1168_v16, %v12756_v18  ;;  %v9442_v19 = vadd.f32 %v1169_v36, %v12758_v12  ;;  %v12760_v39 = vld [vmem:[#allocation18_spill] sm:$0xff]  ;;  %v12762_v59 = vld [vmem:[#allocation19_spill] sm:$0xff] }
 0x13c   :  { %12753 = vst [vmem:[#allocation46_spill] sm:$0xff] %v9433_v7  ;;  %v9445_v46 = vadd.f32 %v1170_v52, %v12760_v39  ;;  %v9448_v30 = vadd.f32 %v1171_v34, %v12762_v59  ;;  %v1509_v33 = vld [vmem:[#allocation2 + $0x230] sm:$0xff]  ;;  %v1510_v24 = vld [vmem:[#allocation2 + $0x240] sm:$0xff]  ;;  %v1511_v21 = vld [vmem:[#allocation2 + $0x248] sm:$0xff] }
 0x13d   :  { %12757 = vst [vmem:[#allocation14_spill] sm:$0xff] %v9439_v27  ;;  %12759 = vst [vmem:[#allocation41_spill] sm:$0xff] %v9442_v19  ;;  %v1512_v29 = vld [vmem:[#allocation2 + $0x258] sm:$0xff]  ;;  %v12764_v48 = vld [vmem:[#allocation20_spill] sm:$0xff] }
 0x13e   :  { %12761 = vst [vmem:[#allocation47_spill] sm:$0xff] %v9445_v46  ;;  %12763 = vst [vmem:[#allocation15_spill] sm:$0xff] %v9448_v30  ;;  %v9451_v7 = vadd.f32 %v1172_v35, %v12764_v48  ;;  %v12766_v55 = vld [vmem:[#allocation21_spill] sm:$0xff]  ;;  %v12768_v16 = vld [vmem:[#allocation22_spill] sm:$0xff]  ;;  %v9466_v46 = vmul.f32 %v9201_v11, %v1272_v4  ;;  %v9469_v35 = vmul.f32 %v9201_v11, %v1273_v54 }
 0x13f   :  { %v9454_v61 = vadd.f32 %v1173_v63, %v12766_v55  ;;  %v9457_v18 = vadd.f32 %v1174_v51, %v12768_v16  ;;  %v12770_v36 = vld [vmem:[#allocation23_spill] sm:$0xff]  ;;  %v1514_v39 = vld [vmem:[#allocation2 + $0x270] sm:$0xff]  ;;  %v1515_v34 = vld [vmem:[#allocation2 + $0x278] sm:$0xff]  ;;  %v9472_v63 = vmul.f32 %v9201_v11, %v1274_v43  ;;  %v9480_v48 = vmul.f32 %v9201_v11, %v1275_v37 }
 0x140   :  { %12765 = vst [vmem:[#allocation48_spill] sm:$0xff] %v9451_v7  ;;  %v9460_v12 = vadd.f32 %v1175_v6, %v12770_v36  ;;  %v1513_v52 = vld [vmem:[#allocation2 + $0x260] sm:$0xff]  ;;  %v12772_v59 = vld [vmem:[#allocation24_spill] sm:$0xff]  ;;  %v1517_v55 = vld [vmem:[#allocation2 + $0x290] sm:$0xff] }
 0x141   :  { %12767 = vst [vmem:[#allocation16_spill] sm:$0xff] %v9454_v61  ;;  %12769 = vst [vmem:[#allocation49_spill] sm:$0xff] %v9457_v18  ;;  %v9463_v30 = vadd.f32 %v1176_v26, %v12772_v59  ;;  %v1516_v51 = vld [vmem:[#allocation2 + $0x288] sm:$0xff]  ;;  %v9477_v6 = vld [vmem:[%s12243_s1 + $0x6] ss:$0 sm:$0xff]  ;;  %v9483_v26 = vmul.f32 %v9201_v11, %v1276_v23 }
 0x142   :  { %12771 = vst [vmem:[#allocation17_spill] sm:$0xff] %v9460_v12  ;;  %12774 = vst [vmem:[#allocation18_spill] sm:$0xff] %v9472_v63  ;;  %v1518_v4 = vld [vmem:[#allocation2 + $0x2a0] sm:$0xff]  ;;  %v1519_v16 = vld [vmem:[#allocation2 + $0x2a8] sm:$0xff]  ;;  %v1572_v36 = vmul.f32 %v9477_v6, %v1503_v28  ;;  %v1573_v43 = vmul.f32 %v9477_v6, %v1504_v42  ;;  %v1574_v18 = vmul.f32 %v9477_v6, %v1505_v60 }
 0x143   :  { %12773 = vst [vmem:[#allocation50_spill] sm:$0xff] %v9463_v30  ;;  %12775 = vst [vmem:[#allocation19_spill] sm:$0xff] %v9480_v48  ;;  %v1520_v54 = vld [vmem:[#allocation2 + $0x2b8] sm:$0xff]  ;;  %v1521_v59 = vld [vmem:[#allocation2 + $0x2c0] sm:$0xff]  ;;  %v1575_v61 = vmul.f32 %v9477_v6, %v1506_v0  ;;  %v1576_v37 = vmul.f32 %v9477_v6, %v1507_v40  ;;  %v1577_v7 = vmul.f32 %v9477_v6, %v1508_v50 }
 0x144   :  { %12776 = vst [vmem:[#allocation20_spill] sm:$0xff] %v9483_v26  ;;  %v1522_v30 = vld [vmem:[#allocation2 + $0x2d0] sm:$0xff]  ;;  %v1523_v12 = vld [vmem:[#allocation2 + $0x2d8] sm:$0xff]  ;;  %v1524_v23 = vld [vmem:[#allocation2 + $0x2e8] sm:$0xff]  ;;  %v1578_v8 = vmul.f32 %v9477_v6, %v1509_v33  ;;  %v1579_v28 = vmul.f32 %v9477_v6, %v1510_v24  ;;  %v1580_v42 = vmul.f32 %v9477_v6, %v1511_v21  ;;  %v1581_v15 = vmul.f32 %v9477_v6, %v1512_v29 }
 0x145   :  { %v1525_v19 = vld [vmem:[#allocation2 + $0x2f0] sm:$0xff]  ;;  %v1526_v27 = vld [vmem:[#allocation2 + $0x300] sm:$0xff]  ;;  %v1527_v58 = vld [vmem:[#allocation2 + $0x308] sm:$0xff]  ;;  %v1582_v0 = vmul.f32 %v9477_v6, %v1513_v52  ;;  %v1583_v40 = vmul.f32 %v9477_v6, %v1514_v39  ;;  %v1584_v50 = vmul.f32 %v9477_v6, %v1515_v34  ;;  %v1585_v22 = vmul.f32 %v9477_v6, %v1516_v51 }
 0x146   :  { %v1528_v17 = vld [vmem:[#allocation2 + $0x318] sm:$0xff]  ;;  %v1529_v60 = vld [vmem:[#allocation2 + $0x320] sm:$0xff]  ;;  %v1530_v10 = vld [vmem:[#allocation2 + $0x330] sm:$0xff]  ;;  %v1586_v24 = vmul.f32 %v9477_v6, %v1517_v55  ;;  %v1587_v21 = vmul.f32 %v9477_v6, %v1518_v4  ;;  %v1588_v29 = vmul.f32 %v9477_v6, %v1519_v16  ;;  %v1589_v20 = vmul.f32 %v9477_v6, %v1520_v54 }
 0x147   :  { %v1531_v26 = vld [vmem:[#allocation2 + $0x338] sm:$0xff]  ;;  %v1532_v33 = vld [vmem:[#allocation2 + $0x348] sm:$0xff]  ;;  %v1533_v48 = vld [vmem:[#allocation2 + $0x350] sm:$0xff]  ;;  %v1590_v52 = vmul.f32 %v9477_v6, %v1521_v59  ;;  %v1591_v39 = vmul.f32 %v9477_v6, %v1522_v30  ;;  %v1592_v34 = vmul.f32 %v9477_v6, %v1523_v12  ;;  %v1593_v51 = vmul.f32 %v9477_v6, %v1524_v23 }
 0x148   :  { %v1594_v5 = vmul.f32 %v9477_v6, %v1525_v19  ;;  %v1595_v63 = vmul.f32 %v9477_v6, %v1526_v27  ;;  %v1596_v55 = vmul.f32 %v9477_v6, %v1527_v58  ;;  %v1597_v4 = vmul.f32 %v9477_v6, %v1528_v17 }
 0x149   :  { %v1598_v16 = vmul.f32 %v9477_v6, %v1529_v60  ;;  %v1599_v54 = vmul.f32 %v9477_v6, %v1530_v10  ;;  %v1600_v59 = vmul.f32 %v9477_v6, %v1531_v26  ;;  %v1601_v30 = vmul.f32 %v9477_v6, %v1532_v33 }
 0x14a   :  { %v1602_v12 = vmul.f32 %v9477_v6, %v1533_v48  ;;  %v9517_v23 = vadd.f32 %v1572_v36, %v9241_v13  ;;  %v9520_v19 = vadd.f32 %v1573_v43, %v9244_v56  ;;  %v9523_v58 = vadd.f32 %v1574_v18, %v9247_v49  ;;  %v1279_v18 = vld [vmem:[#allocation2 + $0x6a] sm:$0xff]  ;;  %v1286_v43 = vld [vmem:[#allocation2 + $0xc2] sm:$0xff] }
 0x14b   :  { %v9526_v17 = vadd.f32 %v1575_v61, %v9250_v53  ;;  %v9529_v10 = vadd.f32 %v1576_v37, %v9253_v32  ;;  %v9532_v27 = vadd.f32 %v1577_v7, %v9256_v31  ;;  %v9535_v48 = vadd.f32 %v1578_v8, %v9259_v45  ;;  %v1277_v32 = vld [vmem:[#allocation2 + $0x52] sm:$0xff]  ;;  %v1278_v61 = vld [vmem:[#allocation2 + $0x62] sm:$0xff]  ;;  %v1280_v31 = vld [vmem:[#allocation2 + $0x7a] sm:$0xff] }
 0x14c   :  { %v9538_v13 = vadd.f32 %v1579_v28, %v9262_v41  ;;  %v9541_v56 = vadd.f32 %v1580_v42, %v9265_v57  ;;  %v9544_v49 = vadd.f32 %v1581_v15, %v9268_v2  ;;  %v9547_v53 = vadd.f32 %v1582_v0, %v9271_v38  ;;  %v1281_v2 = vld [vmem:[#allocation2 + $0x82] sm:$0xff]  ;;  %v1282_v15 = vld [vmem:[#allocation2 + $0x92] sm:$0xff]  ;;  %v1283_v38 = vld [vmem:[#allocation2 + $0x9a] sm:$0xff] }
 0x14d   :  { %v9550_v7 = vadd.f32 %v1583_v40, %v9274_v3  ;;  %v9553_v45 = vadd.f32 %v1584_v50, %v9277_v1  ;;  %v9556_v41 = vadd.f32 %v1585_v22, %v9280_v44  ;;  %v9559_v57 = vadd.f32 %v1586_v24, %v9283_v47  ;;  %v12777_v1 = vld [vmem:[#allocation28_spill] sm:$0xff]  ;;  %v1285_v22 = vld [vmem:[#allocation2 + $0xb2] sm:$0xff] }
 0x14e   :  { %v9562_v8 = vadd.f32 %v1587_v21, %v9286_v62  ;;  %v9565_v26 = vadd.f32 %v1588_v29, %v9289_v9  ;;  %v9568_v3 = vadd.f32 %v1589_v20, %v9292_v25  ;;  %v9571_v36 = vadd.f32 %v1590_v52, %v12777_v1  ;;  %v1284_v44 = vld [vmem:[#allocation2 + $0xaa] sm:$0xff]  ;;  %v12781_v28 = vld [vmem:[#allocation30_spill] sm:$0xff]  ;;  %v12783_v62 = vld [vmem:[#allocation31_spill] sm:$0xff] }
 0x14f   :  { %v12779_v47 = vld [vmem:[#allocation29_spill] sm:$0xff]  ;;  %v9577_v42 = vadd.f32 %v1592_v34, %v12781_v28  ;;  %v9580_v60 = vadd.f32 %v1593_v51, %v12783_v62  ;;  %v12785_v9 = vld [vmem:[#allocation35_spill] sm:$0xff]  ;;  %v12787_v50 = vld [vmem:[#allocation36_spill] sm:$0xff] }
 0x150   :  { %12778 = vst [vmem:[#allocation21_spill] sm:$0xff] %v9571_v36  ;;  %v9574_v37 = vadd.f32 %v1591_v39, %v12779_v47  ;;  %v9583_v0 = vadd.f32 %v1594_v5, %v12785_v9  ;;  %v1287_v25 = vld [vmem:[#allocation2 + $0xca] sm:$0xff]  ;;  %v1288_v20 = vld [vmem:[#allocation2 + $0xda] sm:$0xff]  ;;  %v1289_v40 = vld [vmem:[#allocation2 + $0xe2] sm:$0xff]  ;;  %v9586_v33 = vadd.f32 %v1595_v63, %v12787_v50 }
 0x151   :  { %12782 = vst [vmem:[#allocation23_spill] sm:$0xff] %v9577_v42  ;;  %12784 = vst [vmem:[#allocation24_spill] sm:$0xff] %v9580_v60  ;;  %v12789_v24 = vld [vmem:[#allocation37_spill] sm:$0xff]  ;;  %v12791_v29 = vld [vmem:[#allocation38_spill] sm:$0xff] }
 0x152   :  { %12780 = vst [vmem:[#allocation22_spill] sm:$0xff] %v9574_v37  ;;  %12786 = vst [vmem:[#allocation28_spill] sm:$0xff] %v9583_v0  ;;  %v9589_v21 = vadd.f32 %v1596_v55, %v12789_v24  ;;  %v9592_v52 = vadd.f32 %v1597_v4, %v12791_v29  ;;  %v12793_v39 = vld [vmem:[#allocation42_spill] sm:$0xff]  ;;  %v1292_v47 = vld [vmem:[#allocation2 + $0x10a] sm:$0xff] }
 0x153   :  { %12788 = vst [vmem:[#allocation29_spill] sm:$0xff] %v9586_v33  ;;  %v9595_v34 = vadd.f32 %v1598_v16, %v12793_v39  ;;  %v1290_v51 = vld [vmem:[#allocation2 + $0xf2] sm:$0xff]  ;;  %v1291_v1 = vld [vmem:[#allocation2 + $0xfa] sm:$0xff]  ;;  %v12797_v62 = vld [vmem:[#allocation44_spill] sm:$0xff]  ;;  %v1346_v16 = vmul.f32 %v9201_v11, %v1277_v32  ;;  %v1347_v39 = vmul.f32 %v9201_v11, %v1278_v61  ;;  %v1354_v61 = vmul.f32 %v9201_v11, %v1285_v22 }
 0x154   :  { %12790 = vst [vmem:[#allocation30_spill] sm:$0xff] %v9589_v21  ;;  %12792 = vst [vmem:[#allocation31_spill] sm:$0xff] %v9592_v52  ;;  %v12795_v5 = vld [vmem:[#allocation43_spill] sm:$0xff]  ;;  %v9601_v9 = vadd.f32 %v1600_v59, %v12797_v62  ;;  %v12799_v63 = vld [vmem:[#allocation45_spill] sm:$0xff]  ;;  %v1361_v33 = vmul.f32 %v9201_v11, %v1292_v47 }
 0x155   :  { %12794 = vst [vmem:[#allocation35_spill] sm:$0xff] %v9595_v34  ;;  %v9598_v28 = vadd.f32 %v1599_v54, %v12795_v5  ;;  %v9604_v50 = vadd.f32 %v1601_v30, %v12799_v63  ;;  %v12801_v55 = vld [vmem:[#allocation51_spill] sm:$0xff]  ;;  %v1293_v4 = vld [vmem:[#allocation2 + $0x112] sm:$0xff]  ;;  %v1295_v52 = vld [vmem:[#allocation2 + $0x12a] sm:$0xff]  ;;  %v1348_v34 = vmul.f32 %v9201_v11, %v1279_v18  ;;  %v1349_v54 = vmul.f32 %v9201_v11, %v1280_v31 }
 0x156   :  { %12798 = vst [vmem:[#allocation37_spill] sm:$0xff] %v9601_v9  ;;  %v9607_v24 = vadd.f32 %v1602_v12, %v12801_v55  ;;  %v1294_v29 = vld [vmem:[#allocation2 + $0x122] sm:$0xff]  ;;  %v1296_v5 = vld [vmem:[#allocation2 + $0x13a] sm:$0xff]  ;;  %v1298_v62 = vld [vmem:[#allocation2 + $0x152] sm:$0xff]  ;;  %v1350_v30 = vmul.f32 %v9201_v11, %v1281_v2  ;;  %v1351_v63 = vmul.f32 %v9201_v11, %v1282_v15  ;;  %v1352_v12 = vmul.f32 %v9201_v11, %v1283_v38 }
 0x157   :  { %12796 = vst [vmem:[#allocation36_spill] sm:$0xff] %v9598_v28  ;;  %12800 = vst [vmem:[#allocation38_spill] sm:$0xff] %v9604_v50  ;;  %v1297_v59 = vld [vmem:[#allocation2 + $0x142] sm:$0xff]  ;;  %v1353_v55 = vmul.f32 %v9201_v11, %v1284_v44  ;;  %v1300_v50 = vld [vmem:[#allocation2 + $0x16a] sm:$0xff]  ;;  %v1355_v18 = vmul.f32 %v9201_v11, %v1286_v43  ;;  %v1356_v31 = vmul.f32 %v9201_v11, %v1287_v25 }
 0x158   :  { %12802 = vst [vmem:[#allocation42_spill] sm:$0xff] %v9607_v24  ;;  %v1299_v24 = vld [vmem:[#allocation2 + $0x15a] sm:$0xff]  ;;  %v1301_v32 = vld [vmem:[#allocation2 + $0x172] sm:$0xff]  ;;  %v1357_v9 = vmul.f32 %v9201_v11, %v1288_v20  ;;  %v1302_v28 = vld [vmem:[#allocation2 + $0x182] sm:$0xff]  ;;  %v1358_v15 = vmul.f32 %v9201_v11, %v1289_v40  ;;  %v1359_v38 = vmul.f32 %v9201_v11, %v1290_v51  ;;  %v1360_v44 = vmul.f32 %v9201_v11, %v1291_v1 }
 0x159   :  { %v1303_v21 = vld [vmem:[#allocation2 + $0x18a] sm:$0xff]  ;;  %v1362_v0 = vmul.f32 %v9201_v11, %v1293_v4  ;;  %v1363_v22 = vmul.f32 %v9201_v11, %v1294_v29  ;;  %v1364_v43 = vmul.f32 %v9201_v11, %v1295_v52  ;;  %v1365_v25 = vmul.f32 %v9201_v11, %v1296_v5 }
 0x15a   :  { %v1304_v2 = vld [vmem:[#allocation2 + $0x1ca] sm:$0xff]  ;;  %v1366_v20 = vmul.f32 %v9201_v11, %v1297_v59  ;;  %v1367_v60 = vmul.f32 %v9201_v11, %v1298_v62  ;;  %v1368_v40 = vmul.f32 %v9201_v11, %v1299_v24  ;;  %v1369_v51 = vmul.f32 %v9201_v11, %v1300_v50  ;;  %v12806_v24 = vld [vmem:[#allocation18_spill] sm:$0xff] }
 0x15b   :  { %v1370_v1 = vmul.f32 %v9201_v11, %v1301_v32  ;;  %v1371_v47 = vmul.f32 %v9201_v11, %v1302_v28  ;;  %v1372_v4 = vmul.f32 %v9201_v11, %v1303_v21  ;;  %v1373_v29 = vmul.f32 %v9201_v11, %v1304_v2  ;;  %v12803_v5 = vld [vmem:[#allocation52_spill] sm:$0xff]  ;;  %v12805_v62 = vld [vmem:[#allocation53_spill] sm:$0xff]  ;;  %v12808_v50 = vld [vmem:[#allocation54_spill] sm:$0xff] }
 0x15c   :  { %v9639_v52 = vadd.f32 %v9466_v46, %v9363_v14  ;;  %v9643_v59 = vadd.f32 %v9469_v35, %v12803_v5  ;;  %v9647_v42 = vadd.f32 %v12806_v24, %v12805_v62  ;;  %v12809_v32 = vld [vmem:[#allocation19_spill] sm:$0xff]  ;;  %v12811_v28 = vld [vmem:[#allocation4_spill] sm:$0xff]  ;;  %v12814_v11 = vld [vmem:[#allocation5_spill] sm:$0xff] }
 0x15d   :  { %v9651_v37 = vadd.f32 %v12809_v32, %v12808_v50  ;;  %v12812_v21 = vld [vmem:[#allocation20_spill] sm:$0xff]  ;;  %v9658_v2 = vadd.f32 %v1346_v16, %v12814_v11  ;;  %v12816_v14 = vld [vmem:[#allocation6_spill] sm:$0xff]  ;;  %v12818_v35 = vld [vmem:[#allocation25_spill] sm:$0xff] }
 0x15e   :  { %12804 = vst [vmem:[#allocation43_spill] sm:$0xff] %v9643_v59  ;;  %12807 = vst [vmem:[#allocation44_spill] sm:$0xff] %v9647_v42  ;;  %v9655_v36 = vadd.f32 %v12812_v21, %v12811_v28  ;;  %v9661_v46 = vadd.f32 %v1347_v39, %v12816_v14  ;;  %v9664_v5 = vadd.f32 %v1348_v34, %v12818_v35  ;;  %v12820_v59 = vld [vmem:[#allocation7_spill] sm:$0xff]  ;;  %v12822_v24 = vld [vmem:[#allocation26_spill] sm:$0xff] }
 0x15f   :  { %12810 = vst [vmem:[#allocation45_spill] sm:$0xff] %v9651_v37  ;;  %12815 = vst [vmem:[#allocation52_spill] sm:$0xff] %v9658_v2  ;;  %v9667_v62 = vadd.f32 %v1349_v54, %v12820_v59  ;;  %v9670_v42 = vadd.f32 %v1350_v30, %v12822_v24  ;;  %v12824_v50 = vld [vmem:[#allocation8_spill] sm:$0xff]  ;;  %v12826_v28 = vld [vmem:[#allocation27_spill] sm:$0xff] }
 0x160   :  { %12813 = vst [vmem:[#allocation51_spill] sm:$0xff] %v9655_v36  ;;  %12817 = vst [vmem:[#allocation53_spill] sm:$0xff] %v9661_v46  ;;  %v9673_v32 = vadd.f32 %v1351_v63, %v12824_v50  ;;  %v9676_v21 = vadd.f32 %v1352_v12, %v12826_v28  ;;  %v12828_v16 = vld [vmem:[#allocation9_spill] sm:$0xff]  ;;  %v12830_v39 = vld [vmem:[#allocation10_spill] sm:$0xff] }
 0x161   :  { %12819 = vst [vmem:[#allocation18_spill] sm:$0xff] %v9664_v5  ;;  %12821 = vst [vmem:[#allocation54_spill] sm:$0xff] %v9667_v62  ;;  %v9679_v11 = vadd.f32 %v1353_v55, %v12828_v16  ;;  %v9682_v14 = vadd.f32 %v1354_v61, %v12830_v39  ;;  %v12832_v34 = vld [vmem:[#allocation32_spill] sm:$0xff]  ;;  %v1470_v30 = vld [vmem:[#allocation2 + $0x30] sm:$0xff] }
 0x162   :  { %12823 = vst [vmem:[#allocation19_spill] sm:$0xff] %v9670_v42  ;;  %12825 = vst [vmem:[#allocation4_spill] sm:$0xff] %v9673_v32  ;;  %v9685_v35 = vadd.f32 %v1355_v18, %v12832_v34  ;;  %v12834_v54 = vld [vmem:[#allocation12_spill] sm:$0xff]  ;;  %v1471_v24 = vld [vmem:[#allocation2 + $0x38] sm:$0xff] }
 0x163   :  { %12827 = vst [vmem:[#allocation20_spill] sm:$0xff] %v9676_v21  ;;  %12829 = vst [vmem:[#allocation5_spill] sm:$0xff] %v9679_v11  ;;  %v9688_v59 = vadd.f32 %v1356_v31, %v12834_v54  ;;  %v1472_v42 = vld [vmem:[#allocation2 + $0x48] sm:$0xff]  ;;  %v12836_v63 = vld [vmem:[#allocation33_spill] sm:$0xff] }
 0x164   :  { %12831 = vst [vmem:[#allocation6_spill] sm:$0xff] %v9682_v14  ;;  %12833 = vst [vmem:[#allocation25_spill] sm:$0xff] %v9685_v35  ;;  %v9691_v50 = vadd.f32 %v1357_v9, %v12836_v63  ;;  %v12838_v12 = vld [vmem:[#allocation13_spill] sm:$0xff]  ;;  %v12840_v55 = vld [vmem:[#allocation34_spill] sm:$0xff] }
 0x165   :  { %12835 = vst [vmem:[#allocation7_spill] sm:$0xff] %v9688_v59  ;;  %v9694_v28 = vadd.f32 %v1358_v15, %v12838_v12  ;;  %v9697_v16 = vadd.f32 %v1359_v38, %v12840_v55  ;;  %v12842_v61 = vld [vmem:[#allocation11_spill] sm:$0xff]  ;;  %v1473_v18 = vld [vmem:[#allocation2 + $0x50] sm:$0xff]  ;;  %v12848_v9 = vld [vmem:[#allocation46_spill] sm:$0xff] }
 0x166   :  { %12837 = vst [vmem:[#allocation26_spill] sm:$0xff] %v9691_v50  ;;  %v9700_v39 = vadd.f32 %v1360_v44, %v12842_v61  ;;  %v1474_v34 = vld [vmem:[#allocation2 + $0x60] sm:$0xff]  ;;  %v1700_v35 = vld [vmem:[#allocation2 + $0x1e9] sm:$0xff]  ;;  %v9709_v63 = vadd.f32 %v1363_v22, %v12848_v9  ;;  %v1703_v55 = vld [vmem:[#allocation2 + $0x211] sm:$0xff] }
 0x167   :  { %12839 = vst [vmem:[#allocation8_spill] sm:$0xff] %v9694_v28  ;;  %12841 = vst [vmem:[#allocation27_spill] sm:$0xff] %v9697_v16  ;;  %v1701_v31 = vld [vmem:[#allocation2 + $0x1f9] sm:$0xff]  ;;  %v12850_v15 = vld [vmem:[#allocation40_spill] sm:$0xff] }
 0x168   :  { %12843 = vst [vmem:[#allocation9_spill] sm:$0xff] %v9700_v39  ;;  %v12844_v54 = vld [vmem:[#allocation3_spill] sm:$0xff]  ;;  %12849 = vst [vmem:[#allocation12_spill] sm:$0xff] %v9709_v63  ;;  %v9712_v12 = vadd.f32 %v1364_v43, %v12850_v15  ;;  %v1705_v61 = vld [vmem:[#allocation2 + $0x229] sm:$0xff] }
 0x169   :  { %v9703_v59 = vadd.f32 %v1361_v33, %v12844_v54  ;;  %v12846_v14 = vld [vmem:[#allocation39_spill] sm:$0xff]  ;;  %v12852_v39 = vld [vmem:[#allocation14_spill] sm:$0xff]  ;;  %v12854_v28 = vld [vmem:[#allocation41_spill] sm:$0xff] }
 0x16a   :  { %v9706_v11 = vadd.f32 %v1362_v0, %v12846_v14  ;;  %12851 = vst [vmem:[#allocation33_spill] sm:$0xff] %v9712_v12  ;;  %v1702_v38 = vld [vmem:[#allocation2 + $0x201] sm:$0xff]  ;;  %v1704_v44 = vld [vmem:[#allocation2 + $0x219] sm:$0xff]  ;;  %v9715_v16 = vadd.f32 %v1365_v25, %v12852_v39  ;;  %v9718_v50 = vadd.f32 %v1366_v20, %v12854_v28  ;;  %v1706_v22 = vld [vmem:[#allocation2 + $0x231] sm:$0xff] }
 0x16b   :  { %12845 = vst [vmem:[#allocation10_spill] sm:$0xff] %v9703_v59  ;;  %v12856_v33 = vld [vmem:[#allocation47_spill] sm:$0xff]  ;;  %v1708_v43 = vld [vmem:[#allocation2 + $0x249] sm:$0xff]  ;;  %v1727_v2 = vld [vmem:[#allocation2 + $0x331] sm:$0xff] }
 0x16c   :  { %12847 = vst [vmem:[#allocation32_spill] sm:$0xff] %v9706_v11  ;;  %12853 = vst [vmem:[#allocation13_spill] sm:$0xff] %v9715_v16  ;;  %v9721_v54 = vadd.f32 %v1367_v60, %v12856_v33  ;;  %v12858_v0 = vld [vmem:[#allocation15_spill] sm:$0xff]  ;;  %v12860_v12 = vld [vmem:[#allocation48_spill] sm:$0xff] }
 0x16d   :  { %12855 = vst [vmem:[#allocation34_spill] sm:$0xff] %v9718_v50  ;;  %v9724_v14 = vadd.f32 %v1368_v40, %v12858_v0  ;;  %v1707_v9 = vld [vmem:[#allocation2 + $0x241] sm:$0xff]  ;;  %v1709_v15 = vld [vmem:[#allocation2 + $0x259] sm:$0xff]  ;;  %v9727_v63 = vadd.f32 %v1369_v51, %v12860_v12  ;;  %v12864_v25 = vld [vmem:[#allocation49_spill] sm:$0xff]  ;;  %v9745_v51 = vmul.f32 %v9477_v6, %v1471_v24  ;;  %v9756_v12 = vmul.f32 %v9477_v6, %v1473_v18 }
 0x16e   :  { %12857 = vst [vmem:[#allocation11_spill] sm:$0xff] %v9721_v54  ;;  %v12862_v11 = vld [vmem:[#allocation16_spill] sm:$0xff]  ;;  %v9733_v39 = vadd.f32 %v1371_v47, %v12864_v25  ;;  %v12866_v20 = vld [vmem:[#allocation17_spill] sm:$0xff]  ;;  %v1712_v40 = vld [vmem:[#allocation2 + $0x279] sm:$0xff]  ;;  %v9742_v54 = vmul.f32 %v9477_v6, %v1470_v30 }
 0x16f   :  { %12859 = vst [vmem:[#allocation3_spill] sm:$0xff] %v9724_v14  ;;  %12861 = vst [vmem:[#allocation39_spill] sm:$0xff] %v9727_v63  ;;  %v9730_v59 = vadd.f32 %v1370_v1, %v12862_v11  ;;  %v9736_v28 = vadd.f32 %v1372_v4, %v12866_v20  ;;  %v1710_v60 = vld [vmem:[#allocation2 + $0x261] sm:$0xff]  ;;  %v1711_v33 = vld [vmem:[#allocation2 + $0x271] sm:$0xff]  ;;  %v9748_v1 = vmul.f32 %v9477_v6, %v1472_v42 }
 0x170   :  { %12865 = vst [vmem:[#allocation40_spill] sm:$0xff] %v9733_v39  ;;  %v12868_v0 = vld [vmem:[#allocation50_spill] sm:$0xff]  ;;  %v1713_v47 = vld [vmem:[#allocation2 + $0x289] sm:$0xff]  ;;  %v9753_v4 = vld [vmem:[%s12243_s1 + $0x7] ss:$0 sm:$0xff] }
 0x171   :  { %12863 = vst [vmem:[#allocation46_spill] sm:$0xff] %v9730_v59  ;;  %12867 = vst [vmem:[#allocation14_spill] sm:$0xff] %v9736_v28  ;;  %v9739_v14 = vadd.f32 %v1373_v29, %v12868_v0  ;;  %v1714_v11 = vld [vmem:[#allocation2 + $0x291] sm:$0xff]  ;;  %v9759_v29 = vmul.f32 %v9477_v6, %v1474_v34  ;;  %v1715_v30 = vld [vmem:[#allocation2 + $0x2a1] sm:$0xff]  ;;  %v1769_v20 = vmul.f32 %v9753_v4, %v1700_v35 }
 0x172   :  { %12870 = vst [vmem:[#allocation47_spill] sm:$0xff] %v9748_v1  ;;  %12871 = vst [vmem:[#allocation15_spill] sm:$0xff] %v9753_v4  ;;  %v1716_v25 = vld [vmem:[#allocation2 + $0x2a9] sm:$0xff]  ;;  %v1717_v24 = vld [vmem:[#allocation2 + $0x2b9] sm:$0xff]  ;;  %v1770_v42 = vmul.f32 %v9753_v4, %v1701_v31  ;;  %v1771_v39 = vmul.f32 %v9753_v4, %v1702_v38  ;;  %v1772_v59 = vmul.f32 %v9753_v4, %v1703_v55 }
 0x173   :  { %12869 = vst [vmem:[#allocation41_spill] sm:$0xff] %v9739_v14  ;;  %12872 = vst [vmem:[#allocation48_spill] sm:$0xff] %v9756_v12  ;;  %v1718_v0 = vld [vmem:[#allocation2 + $0x2c1] sm:$0xff]  ;;  %v1719_v14 = vld [vmem:[#allocation2 + $0x2d1] sm:$0xff]  ;;  %v1773_v18 = vmul.f32 %v9753_v4, %v1704_v44  ;;  %v1774_v63 = vmul.f32 %v9753_v4, %v1705_v61  ;;  %v1775_v21 = vmul.f32 %v9753_v4, %v1706_v22 }
 0x174   :  { %12873 = vst [vmem:[#allocation16_spill] sm:$0xff] %v9759_v29  ;;  %v1720_v28 = vld [vmem:[#allocation2 + $0x2d9] sm:$0xff]  ;;  %v1721_v34 = vld [vmem:[#allocation2 + $0x2e9] sm:$0xff]  ;;  %v1722_v50 = vld [vmem:[#allocation2 + $0x2f1] sm:$0xff]  ;;  %v1776_v35 = vmul.f32 %v9753_v4, %v1707_v9  ;;  %v1777_v31 = vmul.f32 %v9753_v4, %v1708_v43  ;;  %v1778_v32 = vmul.f32 %v9753_v4, %v1709_v15  ;;  %v1779_v55 = vmul.f32 %v9753_v4, %v1710_v60 }
 0x175   :  { %v1723_v16 = vld [vmem:[#allocation2 + $0x301] sm:$0xff]  ;;  %v1724_v62 = vld [vmem:[#allocation2 + $0x309] sm:$0xff]  ;;  %v1725_v5 = vld [vmem:[#allocation2 + $0x319] sm:$0xff]  ;;  %v1780_v44 = vmul.f32 %v9753_v4, %v1711_v33  ;;  %v1781_v61 = vmul.f32 %v9753_v4, %v1712_v40  ;;  %v1782_v46 = vmul.f32 %v9753_v4, %v1713_v47  ;;  %v1783_v9 = vmul.f32 %v9753_v4, %v1714_v11 }
 0x176   :  { %v1726_v38 = vld [vmem:[#allocation2 + $0x321] sm:$0xff]  ;;  %v1728_v29 = vld [vmem:[#allocation2 + $0x339] sm:$0xff]  ;;  %v1729_v22 = vld [vmem:[#allocation2 + $0x349] sm:$0xff]  ;;  %v1784_v43 = vmul.f32 %v9753_v4, %v1715_v30  ;;  %v1785_v15 = vmul.f32 %v9753_v4, %v1716_v25  ;;  %v1786_v36 = vmul.f32 %v9753_v4, %v1717_v24  ;;  %v1787_v60 = vmul.f32 %v9753_v4, %v1718_v0 }
 0x177   :  { %v1730_v12 = vld [vmem:[#allocation2 + $0x351] sm:$0xff]  ;;  %v1788_v33 = vmul.f32 %v9753_v4, %v1719_v14  ;;  %v1789_v40 = vmul.f32 %v9753_v4, %v1720_v28  ;;  %v1790_v47 = vmul.f32 %v9753_v4, %v1721_v34  ;;  %v1791_v37 = vmul.f32 %v9753_v4, %v1722_v50 }
 0x178   :  { %v1792_v1 = vmul.f32 %v9753_v4, %v1723_v16  ;;  %v1793_v11 = vmul.f32 %v9753_v4, %v1724_v62  ;;  %v1794_v30 = vmul.f32 %v9753_v4, %v1725_v5  ;;  %v1795_v25 = vmul.f32 %v9753_v4, %v1726_v38 }
 0x179   :  { %v1796_v24 = vmul.f32 %v9753_v4, %v1727_v2  ;;  %v1797_v0 = vmul.f32 %v9753_v4, %v1728_v29  ;;  %v1798_v14 = vmul.f32 %v9753_v4, %v1729_v22  ;;  %v1799_v28 = vmul.f32 %v9753_v4, %v1730_v12  ;;  %v12890_v22 = vld [vmem:[#allocation30_spill] sm:$0xff] }
 0x17a   :  { %v9793_v34 = vadd.f32 %v1769_v20, %v9517_v23  ;;  %v9796_v50 = vadd.f32 %v1770_v42, %v9520_v19  ;;  %v9799_v62 = vadd.f32 %v1771_v39, %v9523_v58  ;;  %v9802_v5 = vadd.f32 %v1772_v59, %v9526_v17  ;;  %v1476_v59 = vld [vmem:[#allocation2 + $0x78] sm:$0xff]  ;;  %v1477_v39 = vld [vmem:[#allocation2 + $0x80] sm:$0xff]  ;;  %v1483_v20 = vld [vmem:[#allocation2 + $0xc8] sm:$0xff] }
 0x17b   :  { %v9805_v2 = vadd.f32 %v1773_v18, %v9529_v10  ;;  %v9808_v16 = vadd.f32 %v1774_v63, %v9532_v27  ;;  %v9811_v12 = vadd.f32 %v1775_v21, %v9535_v48  ;;  %v9814_v23 = vadd.f32 %v1776_v35, %v9538_v13  ;;  %v1475_v10 = vld [vmem:[#allocation2 + $0x68] sm:$0xff]  ;;  %v12882_v18 = vld [vmem:[#allocation23_spill] sm:$0xff] }
 0x17c   :  { %v9817_v19 = vadd.f32 %v1777_v31, %v9541_v56  ;;  %v9820_v58 = vadd.f32 %v1778_v32, %v9544_v49  ;;  %v9823_v17 = vadd.f32 %v1779_v55, %v9547_v53  ;;  %v9826_v27 = vadd.f32 %v1780_v44, %v9550_v7  ;;  %v1478_v49 = vld [vmem:[#allocation2 + $0x90] sm:$0xff]  ;;  %v1479_v32 = vld [vmem:[#allocation2 + $0x98] sm:$0xff]  ;;  %v1480_v21 = vld [vmem:[#allocation2 + $0xa8] sm:$0xff] }
 0x17d   :  { %v9829_v48 = vadd.f32 %v1781_v61, %v9553_v45  ;;  %v9832_v13 = vadd.f32 %v1782_v46, %v9556_v41  ;;  %v9835_v56 = vadd.f32 %v1783_v9, %v9559_v57  ;;  %v9838_v53 = vadd.f32 %v1784_v43, %v9562_v8  ;;  %v12878_v45 = vld [vmem:[#allocation21_spill] sm:$0xff]  ;;  %v1482_v46 = vld [vmem:[#allocation2 + $0xc0] sm:$0xff]  ;;  %v12880_v57 = vld [vmem:[#allocation22_spill] sm:$0xff] }
 0x17e   :  { %v9841_v63 = vadd.f32 %v1785_v15, %v9565_v26  ;;  %v9844_v7 = vadd.f32 %v1786_v36, %v9568_v3  ;;  %v9847_v29 = vadd.f32 %v1787_v60, %v12878_v45  ;;  %v1481_v41 = vld [vmem:[#allocation2 + $0xb0] sm:$0xff]  ;;  %v9850_v42 = vadd.f32 %v1788_v33, %v12880_v57  ;;  %v12884_v8 = vld [vmem:[#allocation24_spill] sm:$0xff]  ;;  %v1484_v3 = vld [vmem:[#allocation2 + $0xd8] sm:$0xff] }
 0x17f   :  { %12874 = vst [vmem:[#allocation49_spill] sm:$0xff] %v9835_v56  ;;  %12875 = vst [vmem:[#allocation17_spill] sm:$0xff] %v9838_v53  ;;  %v9853_v35 = vadd.f32 %v1789_v40, %v12882_v18  ;;  %v9856_v31 = vadd.f32 %v1790_v47, %v12884_v8  ;;  %v12886_v26 = vld [vmem:[#allocation28_spill] sm:$0xff]  ;;  %v1485_v36 = vld [vmem:[#allocation2 + $0xe0] sm:$0xff]  ;;  %v9865_v9 = vadd.f32 %v1793_v11, %v12890_v22 }
 0x180   :  { %12876 = vst [vmem:[#allocation50_spill] sm:$0xff] %v9841_v63  ;;  %12877 = vst [vmem:[#allocation55_spill] sm:$0xff] %v9844_v7  ;;  %v9859_v38 = vadd.f32 %v1791_v37, %v12886_v26  ;;  %v1486_v55 = vld [vmem:[#allocation2 + $0xf0] sm:$0xff]  ;;  %v12892_v43 = vld [vmem:[#allocation31_spill] sm:$0xff] }
 0x181   :  { %12879 = vst [vmem:[#allocation21_spill] sm:$0xff] %v9847_v29  ;;  %12881 = vst [vmem:[#allocation22_spill] sm:$0xff] %v9850_v42  ;;  %v12888_v44 = vld [vmem:[#allocation29_spill] sm:$0xff]  ;;  %v9868_v15 = vadd.f32 %v1794_v30, %v12892_v43  ;;  %v12894_v60 = vld [vmem:[#allocation35_spill] sm:$0xff] }
 0x182   :  { %12883 = vst [vmem:[#allocation23_spill] sm:$0xff] %v9853_v35  ;;  %12885 = vst [vmem:[#allocation24_spill] sm:$0xff] %v9856_v31  ;;  %v9862_v61 = vadd.f32 %v1792_v1, %v12888_v44  ;;  %v9871_v33 = vadd.f32 %v1795_v25, %v12894_v60  ;;  %v1487_v40 = vld [vmem:[#allocation2 + $0xf8] sm:$0xff]  ;;  %v1488_v47 = vld [vmem:[#allocation2 + $0x108] sm:$0xff]  ;;  %v1544_v25 = vmul.f32 %v9477_v6, %v1475_v10 }
 0x183   :  { %12887 = vst [vmem:[#allocation28_spill] sm:$0xff] %v9859_v38  ;;  %12891 = vst [vmem:[#allocation30_spill] sm:$0xff] %v9865_v9  ;;  %v1489_v45 = vld [vmem:[#allocation2 + $0x110] sm:$0xff]  ;;  %v12896_v37 = vld [vmem:[#allocation36_spill] sm:$0xff]  ;;  %v1545_v60 = vmul.f32 %v9477_v6, %v1476_v59  ;;  %v9903_v10 = vmul.f32 %v9477_v6, %v1482_v46  ;;  %v9918_v46 = vmul.f32 %v9477_v6, %v1487_v40 }
 0x184   :  { %12889 = vst [vmem:[#allocation29_spill] sm:$0xff] %v9862_v61  ;;  %12893 = vst [vmem:[#allocation31_spill] sm:$0xff] %v9868_v15  ;;  %v9874_v57 = vadd.f32 %v1796_v24, %v12896_v37  ;;  %v12898_v18 = vld [vmem:[#allocation37_spill] sm:$0xff]  ;;  %v12900_v1 = vld [vmem:[#allocation38_spill] sm:$0xff]  ;;  %v9891_v24 = vmul.f32 %v9477_v6, %v1478_v49  ;;  %v9906_v49 = vmul.f32 %v9477_v6, %v1483_v20 }
 0x185   :  { %12895 = vst [vmem:[#allocation35_spill] sm:$0xff] %v9871_v33  ;;  %v9877_v8 = vadd.f32 %v1797_v0, %v12898_v18  ;;  %v9880_v26 = vadd.f32 %v1798_v14, %v12900_v1  ;;  %v12902_v11 = vld [vmem:[#allocation42_spill] sm:$0xff]  ;;  %v1490_v30 = vld [vmem:[#allocation2 + $0x120] sm:$0xff]  ;;  %v1491_v22 = vld [vmem:[#allocation2 + $0x128] sm:$0xff]  ;;  %v9888_v33 = vmul.f32 %v9477_v6, %v1477_v39  ;;  %v9894_v18 = vmul.f32 %v9477_v6, %v1479_v32 }
 0x186   :  { %12897 = vst [vmem:[#allocation36_spill] sm:$0xff] %v9874_v57  ;;  %v9883_v44 = vadd.f32 %v1799_v28, %v12902_v11  ;;  %v1492_v43 = vld [vmem:[#allocation2 + $0x138] sm:$0xff]  ;;  %v1493_v0 = vld [vmem:[#allocation2 + $0x140] sm:$0xff]  ;;  %v1494_v37 = vld [vmem:[#allocation2 + $0x150] sm:$0xff]  ;;  %v9897_v28 = vmul.f32 %v9477_v6, %v1480_v21  ;;  %v9900_v1 = vmul.f32 %v9477_v6, %v1481_v41  ;;  %v9912_v32 = vmul.f32 %v9477_v6, %v1485_v36 }
 0x187   :  { %12899 = vst [vmem:[#allocation37_spill] sm:$0xff] %v9877_v8  ;;  %12901 = vst [vmem:[#allocation38_spill] sm:$0xff] %v9880_v26  ;;  %v1495_v14 = vld [vmem:[#allocation2 + $0x158] sm:$0xff]  ;;  %v1496_v59 = vld [vmem:[#allocation2 + $0x168] sm:$0xff]  ;;  %v9915_v21 = vmul.f32 %v9477_v6, %v1486_v55  ;;  %v9924_v20 = vmul.f32 %v9477_v6, %v1489_v45  ;;  %v9930_v36 = vmul.f32 %v9477_v6, %v1491_v22 }
 0x188   :  { %12903 = vst [vmem:[#allocation42_spill] sm:$0xff] %v9883_v44  ;;  %12904 = vst [vmem:[#allocation56_spill] sm:$0xff] %v9900_v1  ;;  %v1497_v39 = vld [vmem:[#allocation2 + $0x170] sm:$0xff]  ;;  %v1498_v11 = vld [vmem:[#allocation2 + $0x180] sm:$0xff]  ;;  %v9909_v44 = vmul.f32 %v9477_v6, %v1484_v3  ;;  %v9927_v3 = vmul.f32 %v9477_v6, %v1490_v30  ;;  %v9933_v55 = vmul.f32 %v9477_v6, %v1492_v43 }
 0x189   :  { %12905 = vst [vmem:[#allocation57_spill] sm:$0xff] %v9903_v10  ;;  %12906 = vst [vmem:[#allocation58_spill] sm:$0xff] %v9906_v49  ;;  %v1499_v41 = vld [vmem:[#allocation2 + $0x188] sm:$0xff]  ;;  %v1500_v1 = vld [vmem:[#allocation2 + $0x198] sm:$0xff]  ;;  %v9921_v10 = vmul.f32 %v9477_v6, %v1488_v47  ;;  %v9939_v40 = vmul.f32 %v9477_v6, %v1494_v37  ;;  %v9945_v45 = vmul.f32 %v9477_v6, %v1496_v59 }
 0x18a   :  { %12907 = vst [vmem:[#allocation59_spill] sm:$0xff] %v9909_v44  ;;  %12908 = vst [vmem:[#allocation60_spill] sm:$0xff] %v9912_v32  ;;  %v1667_v47 = vld [vmem:[#allocation2 + $0x31] sm:$0xff]  ;;  %v9948_v30 = vmul.f32 %v9477_v6, %v1497_v39  ;;  %v9951_v22 = vmul.f32 %v9477_v6, %v1498_v11  ;;  %v1668_v43 = vld [vmem:[#allocation2 + $0x39] sm:$0xff]  ;;  %v9957_v37 = vmul.f32 %v9477_v6, %v1500_v1 }
 0x18b   :  { %12909 = vst [vmem:[#allocation61_spill] sm:$0xff] %v9915_v21  ;;  %12910 = vst [vmem:[#allocation62_spill] sm:$0xff] %v9918_v46  ;;  %v9936_v21 = vmul.f32 %v9477_v6, %v1493_v0  ;;  %v1670_v0 = vld [vmem:[#allocation2 + $0x51] sm:$0xff]  ;;  %v12924_v59 = vld [vmem:[#allocation43_spill] sm:$0xff] }
 0x18c   :  { %12911 = vst [vmem:[#allocation63_spill] sm:$0xff] %v9921_v10  ;;  %12912 = vst [vmem:[#allocation64_spill] sm:$0xff] %v9924_v20  ;;  %v9942_v10 = vmul.f32 %v9477_v6, %v1495_v14  ;;  %v1603_v14 = vadd.f32 %v9742_v54, %v9639_v52  ;;  %v1671_v39 = vld [vmem:[#allocation2 + $0x61] sm:$0xff]  ;;  %v12927_v20 = vld [vmem:[#allocation45_spill] sm:$0xff]  ;;  %v1739_v26 = vmul.f32 %v9753_v4, %v1670_v0 }
 0x18d   :  { %12913 = vst [vmem:[#allocation65_spill] sm:$0xff] %v9927_v3  ;;  %12914 = vst [vmem:[#allocation66_spill] sm:$0xff] %v9930_v36  ;;  %v1501_v11 = vld [vmem:[#allocation2 + $0x1a0] sm:$0xff]  ;;  %v12930_v1 = vld [vmem:[#allocation16_spill] sm:$0xff] }
 0x18e   :  { %12915 = vst [vmem:[#allocation67_spill] sm:$0xff] %v9933_v55  ;;  %12916 = vst [vmem:[#allocation68_spill] sm:$0xff] %v9936_v21  ;;  %v1669_v55 = vld [vmem:[#allocation2 + $0x49] sm:$0xff]  ;;  %v9954_v21 = vmul.f32 %v9477_v6, %v1499_v41  ;;  %v12926_v36 = vld [vmem:[#allocation47_spill] sm:$0xff] }
 0x18f   :  { %12917 = vst [vmem:[#allocation69_spill] sm:$0xff] %v9939_v40  ;;  %12918 = vst [vmem:[#allocation70_spill] sm:$0xff] %v9942_v10  ;;  %v1673_v10 = vld [vmem:[#allocation2 + $0x79] sm:$0xff]  ;;  %v12925_v40 = vld [vmem:[#allocation44_spill] sm:$0xff]  ;;  %v1738_v49 = vmul.f32 %v9753_v4, %v1669_v55 }
 0x190   :  { %12919 = vst [vmem:[#allocation71_spill] sm:$0xff] %v9945_v45  ;;  %12920 = vst [vmem:[#allocation72_spill] sm:$0xff] %v9948_v30  ;;  %v1604_v45 = vadd.f32 %v9745_v51, %v12924_v59  ;;  %v1672_v30 = vld [vmem:[#allocation2 + $0x69] sm:$0xff]  ;;  %v1605_v3 = vadd.f32 %v12926_v36, %v12925_v40  ;;  %v12929_v46 = vld [vmem:[#allocation51_spill] sm:$0xff]  ;;  %v1736_v51 = vmul.f32 %v9753_v4, %v1667_v47 }
 0x191   :  { %12921 = vst [vmem:[#allocation73_spill] sm:$0xff] %v9951_v22  ;;  %12922 = vst [vmem:[#allocation74_spill] sm:$0xff] %v9954_v21  ;;  %v1502_v22 = vld [vmem:[#allocation2 + $0x1e0] sm:$0xff]  ;;  %v12928_v41 = vld [vmem:[#allocation48_spill] sm:$0xff]  ;;  %v1737_v59 = vmul.f32 %v9753_v4, %v1668_v43  ;;  %v9979_v47 = vmul.f32 %v9477_v6, %v1501_v11 }
 0x192   :  { %12923 = vst [vmem:[#allocation75_spill] sm:$0xff] %v9957_v37  ;;  %v1606_v21 = vadd.f32 %v12928_v41, %v12927_v20  ;;  %v1607_v37 = vadd.f32 %v12930_v1, %v12929_v46  ;;  %v12931_v32 = vld [vmem:[#allocation52_spill] sm:$0xff]  ;;  %v1675_v54 = vld [vmem:[#allocation2 + $0x91] sm:$0xff]  ;;  %v1740_v20 = vmul.f32 %v9753_v4, %v1671_v39  ;;  %v1741_v41 = vmul.f32 %v9753_v4, %v1672_v30  ;;  %v1898_v15 = vld [vmem:[#allocation2 + $0x1fa] sm:$0xff] }
 0x193   :  { %v1608_v44 = vadd.f32 %v1544_v25, %v12931_v32  ;;  %v1674_v52 = vld [vmem:[#allocation2 + $0x81] sm:$0xff]  ;;  %v1864_v8 = vld [vmem:[#allocation2 + $0x32] sm:$0xff]  ;;  %v1742_v46 = vmul.f32 %v9753_v4, %v1673_v10  ;;  %v1866_v32 = vld [vmem:[#allocation2 + $0x4a] sm:$0xff]  ;;  %12933 = vst [vmem:[#allocation43_spill] sm:$0xff] %v9979_v47  ;;  %v9982_v55 = vmul.f32 %v9477_v6, %v1502_v22  ;;  %v10011_v9 = vadd.f32 %v1736_v51, %v1603_v14 }
 0x194   :  { %v12932_v36 = vld [vmem:[#allocation53_spill] sm:$0xff]  ;;  %v1865_v25 = vld [vmem:[#allocation2 + $0x3a] sm:$0xff]  ;;  %v1868_v57 = vld [vmem:[#allocation2 + $0x62] sm:$0xff]  ;;  %v10013_v61 = vadd.f32 %v1737_v59, %v1604_v45 }
 0x195   :  { %v1609_v40 = vadd.f32 %v1545_v60, %v12932_v36  ;;  %v1867_v1 = vld [vmem:[#allocation2 + $0x52] sm:$0xff]  ;;  %12934 = vst [vmem:[#allocation44_spill] sm:$0xff] %v9982_v55  ;;  %v1869_v30 = vld [vmem:[#allocation2 + $0x6a] sm:$0xff]  ;;  %v1870_v10 = vld [vmem:[#allocation2 + $0x7a] sm:$0xff] }
 0x196   :  { %v12935_v43 = vld [vmem:[#allocation18_spill] sm:$0xff]  ;;  %v1897_v36 = vld [vmem:[#allocation2 + $0x1ea] sm:$0xff]  ;;  %v9995_v11 = vld [vmem:[%s12243_s1 + $0x8] ss:$0 sm:$0xff] }
 0x197   :  { %v9986_v0 = vadd.f32 %v9888_v33, %v12935_v43  ;;  %v12937_v60 = vld [vmem:[#allocation54_spill] sm:$0xff]  ;;  %v12939_v47 = vld [vmem:[#allocation19_spill] sm:$0xff]  ;;  %v12941_v22 = vld [vmem:[#allocation4_spill] sm:$0xff]  ;;  %v10009_v43 = vmul.f32 %v9753_v4, %v1675_v54  ;;  %v10023_v54 = vadd.f32 %v1742_v46, %v1609_v40  ;;  %v1933_v14 = vmul.f32 %v9995_v11, %v1864_v8 }
 0x198   :  { %v9990_v39 = vadd.f32 %v9891_v24, %v12937_v60  ;;  %v9999_v6 = vadd.f32 %v9894_v18, %v12939_v47  ;;  %v10003_v33 = vadd.f32 %v9897_v28, %v12941_v22  ;;  %v10006_v24 = vmul.f32 %v9753_v4, %v1674_v52  ;;  %v1899_v60 = vld [vmem:[#allocation2 + $0x202] sm:$0xff]  ;;  %v1900_v55 = vld [vmem:[#allocation2 + $0x212] sm:$0xff]  ;;  %v1909_v45 = vld [vmem:[#allocation2 + $0x27a] sm:$0xff] }
 0x199   :  { %12936 = vst [vmem:[#allocation47_spill] sm:$0xff] %v9986_v0  ;;  %12944 = vst [vmem:[#allocation52_spill] sm:$0xff] %v10009_v43  ;;  %v1902_v0 = vld [vmem:[#allocation2 + $0x22a] sm:$0xff]  ;;  %v10015_v18 = vadd.f32 %v1738_v49, %v1605_v3  ;;  %v10017_v47 = vadd.f32 %v1739_v26, %v1606_v21  ;;  %v1903_v28 = vld [vmem:[#allocation2 + $0x232] sm:$0xff]  ;;  %v10019_v52 = vadd.f32 %v1740_v20, %v1607_v37 }
 0x19a   :  { %12938 = vst [vmem:[#allocation45_spill] sm:$0xff] %v9990_v39  ;;  %12940 = vst [vmem:[#allocation48_spill] sm:$0xff] %v9999_v6  ;;  %v1901_v39 = vld [vmem:[#allocation2 + $0x21a] sm:$0xff]  ;;  %v1904_v22 = vld [vmem:[#allocation2 + $0x242] sm:$0xff]  ;;  %v10021_v6 = vadd.f32 %v1741_v41, %v1608_v44  ;;  %v1934_v26 = vmul.f32 %v9995_v11, %v1865_v25  ;;  %v1935_v21 = vmul.f32 %v9995_v11, %v1866_v32 }
 0x19b   :  { %12942 = vst [vmem:[#allocation51_spill] sm:$0xff] %v10003_v33  ;;  %12943 = vst [vmem:[#allocation16_spill] sm:$0xff] %v10006_v24  ;;  %v1905_v33 = vld [vmem:[#allocation2 + $0x24a] sm:$0xff]  ;;  %v1906_v43 = vld [vmem:[#allocation2 + $0x25a] sm:$0xff]  ;;  %v1936_v3 = vmul.f32 %v9995_v11, %v1867_v1  ;;  %v10030_v37 = vmul.f32 %v9995_v11, %v1868_v57  ;;  %v10033_v20 = vmul.f32 %v9995_v11, %v1869_v30 }
 0x19c   :  { %12945 = vst [vmem:[#allocation53_spill] sm:$0xff] %v10019_v52  ;;  %12946 = vst [vmem:[#allocation18_spill] sm:$0xff] %v10021_v6  ;;  %v1907_v24 = vld [vmem:[#allocation2 + $0x262] sm:$0xff]  ;;  %v1908_v4 = vld [vmem:[#allocation2 + $0x272] sm:$0xff]  ;;  %v10036_v8 = vmul.f32 %v9995_v11, %v1870_v10  ;;  %v1966_v41 = vmul.f32 %v9995_v11, %v1897_v36  ;;  %v1967_v46 = vmul.f32 %v9995_v11, %v1898_v15 }
 0x19d   :  { %12947 = vst [vmem:[#allocation54_spill] sm:$0xff] %v10023_v54  ;;  %v1910_v51 = vld [vmem:[#allocation2 + $0x28a] sm:$0xff]  ;;  %v1911_v49 = vld [vmem:[#allocation2 + $0x292] sm:$0xff]  ;;  %12948 = vst [vmem:[#allocation19_spill] sm:$0xff] %v10030_v37  ;;  %v1968_v1 = vmul.f32 %v9995_v11, %v1899_v60  ;;  %v1969_v57 = vmul.f32 %v9995_v11, %v1900_v55  ;;  %v1970_v6 = vmul.f32 %v9995_v11, %v1901_v39 }
 0x19e   :  { %v1912_v44 = vld [vmem:[#allocation2 + $0x2a2] sm:$0xff]  ;;  %v1913_v59 = vld [vmem:[#allocation2 + $0x2aa] sm:$0xff]  ;;  %v1914_v40 = vld [vmem:[#allocation2 + $0x2ba] sm:$0xff]  ;;  %12949 = vst [vmem:[#allocation4_spill] sm:$0xff] %v10033_v20  ;;  %v1971_v37 = vmul.f32 %v9995_v11, %v1902_v0  ;;  %v1972_v10 = vmul.f32 %v9995_v11, %v1903_v28  ;;  %v1973_v36 = vmul.f32 %v9995_v11, %v1904_v22  ;;  %v1974_v15 = vmul.f32 %v9995_v11, %v1905_v33 }
 0x19f   :  { %12950 = vst [vmem:[#allocation76_spill] sm:$0xff] %v10036_v8  ;;  %v1915_v25 = vld [vmem:[#allocation2 + $0x2c2] sm:$0xff]  ;;  %v1916_v32 = vld [vmem:[#allocation2 + $0x2d2] sm:$0xff]  ;;  %v1917_v54 = vld [vmem:[#allocation2 + $0x2da] sm:$0xff]  ;;  %v1975_v8 = vmul.f32 %v9995_v11, %v1906_v43  ;;  %v1976_v55 = vmul.f32 %v9995_v11, %v1907_v24  ;;  %v1977_v39 = vmul.f32 %v9995_v11, %v1908_v4  ;;  %v1978_v0 = vmul.f32 %v9995_v11, %v1909_v45 }
 0x1a0   :  { %v1918_v30 = vld [vmem:[#allocation2 + $0x2ea] sm:$0xff]  ;;  %v1919_v20 = vld [vmem:[#allocation2 + $0x2f2] sm:$0xff]  ;;  %v1920_v52 = vld [vmem:[#allocation2 + $0x302] sm:$0xff]  ;;  %v1979_v35 = vmul.f32 %v9995_v11, %v1910_v51  ;;  %v1980_v22 = vmul.f32 %v9995_v11, %v1911_v49  ;;  %v1981_v33 = vmul.f32 %v9995_v11, %v1912_v44  ;;  %v1982_v43 = vmul.f32 %v9995_v11, %v1913_v59 }
 0x1a1   :  { %v1921_v38 = vld [vmem:[#allocation2 + $0x30a] sm:$0xff]  ;;  %v1922_v31 = vld [vmem:[#allocation2 + $0x31a] sm:$0xff]  ;;  %v1923_v60 = vld [vmem:[#allocation2 + $0x322] sm:$0xff]  ;;  %v1983_v7 = vmul.f32 %v9995_v11, %v1914_v40  ;;  %v1984_v24 = vmul.f32 %v9995_v11, %v1915_v25  ;;  %v1985_v4 = vmul.f32 %v9995_v11, %v1916_v32  ;;  %v1986_v45 = vmul.f32 %v9995_v11, %v1917_v54 }
 0x1a2   :  { %v1924_v42 = vld [vmem:[#allocation2 + $0x332] sm:$0xff]  ;;  %v1925_v29 = vld [vmem:[#allocation2 + $0x33a] sm:$0xff]  ;;  %v1926_v28 = vld [vmem:[#allocation2 + $0x34a] sm:$0xff]  ;;  %v1987_v51 = vmul.f32 %v9995_v11, %v1918_v30  ;;  %v1988_v53 = vmul.f32 %v9995_v11, %v1919_v20  ;;  %v1989_v56 = vmul.f32 %v9995_v11, %v1920_v52  ;;  %v1990_v49 = vmul.f32 %v9995_v11, %v1921_v38 }
 0x1a3   :  { %v1927_v63 = vld [vmem:[#allocation2 + $0x352] sm:$0xff]  ;;  %v1991_v44 = vmul.f32 %v9995_v11, %v1922_v31  ;;  %v1992_v59 = vmul.f32 %v9995_v11, %v1923_v60  ;;  %v1993_v40 = vmul.f32 %v9995_v11, %v1924_v42  ;;  %v1994_v25 = vmul.f32 %v9995_v11, %v1925_v29 }
 0x1a4   :  { %v1995_v32 = vmul.f32 %v9995_v11, %v1926_v28  ;;  %v1996_v54 = vmul.f32 %v9995_v11, %v1927_v63  ;;  %v10070_v30 = vadd.f32 %v1933_v14, %v10011_v9  ;;  %v10073_v20 = vadd.f32 %v1934_v26, %v10013_v61  ;;  %v12993_v28 = vld [vmem:[#allocation36_spill] sm:$0xff] }
 0x1a5   :  { %v10076_v38 = vadd.f32 %v1935_v21, %v10015_v18  ;;  %v10079_v31 = vadd.f32 %v1936_v3, %v10017_v47  ;;  %v10082_v42 = vadd.f32 %v1966_v41, %v9793_v34  ;;  %v10085_v29 = vadd.f32 %v1967_v46, %v9796_v50  ;;  %v12983_v41 = vld [vmem:[#allocation28_spill] sm:$0xff] }
 0x1a6   :  { %12951 = vst [vmem:[#allocation77_spill] sm:$0xff] %v10070_v30  ;;  %12952 = vst [vmem:[#allocation78_spill] sm:$0xff] %v10073_v20  ;;  %v10088_v63 = vadd.f32 %v1968_v1, %v9799_v62  ;;  %v10091_v9 = vadd.f32 %v1969_v57, %v9802_v5  ;;  %v10094_v61 = vadd.f32 %v1970_v6, %v9805_v2  ;;  %v1676_v1 = vld [vmem:[#allocation2 + $0x99] sm:$0xff]  ;;  %v12985_v57 = vld [vmem:[#allocation29_spill] sm:$0xff] }
 0x1a7   :  { %12953 = vst [vmem:[#allocation79_spill] sm:$0xff] %v10082_v42  ;;  %12954 = vst [vmem:[#allocation80_spill] sm:$0xff] %v10085_v29  ;;  %v10097_v18 = vadd.f32 %v1971_v37, %v9808_v16  ;;  %v10100_v47 = vadd.f32 %v1972_v10, %v9811_v12  ;;  %v10103_v34 = vadd.f32 %v1973_v36, %v9814_v23  ;;  %v12967_v23 = vld [vmem:[#allocation49_spill] sm:$0xff]  ;;  %v12981_v37 = vld [vmem:[#allocation24_spill] sm:$0xff] }
 0x1a8   :  { %12955 = vst [vmem:[#allocation81_spill] sm:$0xff] %v10088_v63  ;;  %12956 = vst [vmem:[#allocation82_spill] sm:$0xff] %v10091_v9  ;;  %v10106_v50 = vadd.f32 %v1974_v15, %v9817_v19  ;;  %v10109_v62 = vadd.f32 %v1975_v8, %v9820_v58  ;;  %v10112_v5 = vadd.f32 %v1976_v55, %v9823_v17  ;;  %v12969_v19 = vld [vmem:[#allocation17_spill] sm:$0xff]  ;;  %v12971_v58 = vld [vmem:[#allocation50_spill] sm:$0xff] }
 0x1a9   :  { %12957 = vst [vmem:[#allocation83_spill] sm:$0xff] %v10094_v61  ;;  %12958 = vst [vmem:[#allocation84_spill] sm:$0xff] %v10097_v18  ;;  %v10115_v2 = vadd.f32 %v1977_v39, %v9826_v27  ;;  %v10118_v16 = vadd.f32 %v1978_v0, %v9829_v48  ;;  %v10121_v12 = vadd.f32 %v1979_v35, %v9832_v13  ;;  %v12973_v17 = vld [vmem:[#allocation55_spill] sm:$0xff]  ;;  %v12975_v27 = vld [vmem:[#allocation21_spill] sm:$0xff] }
 0x1aa   :  { %12959 = vst [vmem:[#allocation85_spill] sm:$0xff] %v10100_v47  ;;  %12960 = vst [vmem:[#allocation86_spill] sm:$0xff] %v10103_v34  ;;  %v10124_v6 = vadd.f32 %v1980_v22, %v12967_v23  ;;  %v10127_v52 = vadd.f32 %v1981_v33, %v12969_v19  ;;  %v10130_v14 = vadd.f32 %v1982_v43, %v12971_v58  ;;  %v12977_v48 = vld [vmem:[#allocation22_spill] sm:$0xff]  ;;  %v12979_v13 = vld [vmem:[#allocation23_spill] sm:$0xff] }
 0x1ab   :  { %12961 = vst [vmem:[#allocation87_spill] sm:$0xff] %v10106_v50  ;;  %12962 = vst [vmem:[#allocation88_spill] sm:$0xff] %v10109_v62  ;;  %v10133_v26 = vadd.f32 %v1983_v7, %v12973_v17  ;;  %v10136_v21 = vadd.f32 %v1984_v24, %v12975_v27  ;;  %v10139_v3 = vadd.f32 %v1985_v4, %v12977_v48  ;;  %v12987_v7 = vld [vmem:[#allocation30_spill] sm:$0xff]  ;;  %v12989_v15 = vld [vmem:[#allocation31_spill] sm:$0xff] }
 0x1ac   :  { %12963 = vst [vmem:[#allocation89_spill] sm:$0xff] %v10112_v5  ;;  %12964 = vst [vmem:[#allocation90_spill] sm:$0xff] %v10115_v2  ;;  %v10142_v35 = vadd.f32 %v1986_v45, %v12979_v13  ;;  %v10145_v8 = vadd.f32 %v1987_v51, %v12981_v37  ;;  %v10148_v46 = vadd.f32 %v1988_v53, %v12983_v41  ;;  %v12991_v55 = vld [vmem:[#allocation35_spill] sm:$0xff]  ;;  %v12995_v33 = vld [vmem:[#allocation37_spill] sm:$0xff] }
 0x1ad   :  { %12965 = vst [vmem:[#allocation91_spill] sm:$0xff] %v10118_v16  ;;  %12966 = vst [vmem:[#allocation92_spill] sm:$0xff] %v10121_v12  ;;  %v10151_v10 = vadd.f32 %v1989_v56, %v12985_v57  ;;  %v10154_v36 = vadd.f32 %v1990_v49, %v12987_v7  ;;  %v10157_v60 = vadd.f32 %v1991_v44, %v12989_v15  ;;  %v1871_v0 = vld [vmem:[#allocation2 + $0x82] sm:$0xff]  ;;  %v12997_v43 = vld [vmem:[#allocation38_spill] sm:$0xff] }
 0x1ae   :  { %12968 = vst [vmem:[#allocation49_spill] sm:$0xff] %v10124_v6  ;;  %12970 = vst [vmem:[#allocation17_spill] sm:$0xff] %v10127_v52  ;;  %v10160_v39 = vadd.f32 %v1992_v59, %v12991_v55  ;;  %v10163_v22 = vadd.f32 %v1993_v40, %v12993_v28  ;;  %v10166_v53 = vadd.f32 %v1994_v25, %v12995_v33  ;;  %v12999_v56 = vld [vmem:[#allocation42_spill] sm:$0xff]  ;;  %v1677_v45 = vld [vmem:[#allocation2 + $0xa9] sm:$0xff]  ;;  %v2061_v59 = vsel %vm48_vm0, %v10070_v30, 0.0 }
 0x1af   :  { %12972 = vst [vmem:[#allocation50_spill] sm:$0xff] %v10130_v14  ;;  %12974 = vst [vmem:[#allocation55_spill] sm:$0xff] %v10133_v26  ;;  %v10169_v24 = vadd.f32 %v1995_v32, %v12997_v43  ;;  %v10172_v4 = vadd.f32 %v1996_v54, %v12999_v56  ;;  %v13001_v51 = vld [vmem:[#allocation53_spill] sm:$0xff]  ;;  %v13002_v49 = vld [vmem:[#allocation19_spill] sm:$0xff]  ;;  %v2062_v40 = vsel %vm48_vm0, %v10073_v20, 0.0  ;;  %v2064_v25 = vsel %vm48_vm0, %v10076_v38, 0.0 }
 0x1b0   :  { %12976 = vst [vmem:[#allocation21_spill] sm:$0xff] %v10136_v21  ;;  %12978 = vst [vmem:[#allocation22_spill] sm:$0xff] %v10139_v3  ;;  %v10176_v44 = vadd.f32 %v13002_v49, %v13001_v51  ;;  %v13003_v23 = vld [vmem:[#allocation20_spill] sm:$0xff]  ;;  %v13005_v58 = vld [vmem:[#allocation5_spill] sm:$0xff]  ;;  %v2063_v37 = vadd.f32 %v2062_v40, %v2061_v59  ;;  %v1940_v55 = vmul.f32 %v9995_v11, %v1871_v0  ;;  %v2066_v56 = vsel %vm48_vm0, %v10079_v31, 0.0 }
 0x1b1   :  { %12980 = vst [vmem:[#allocation23_spill] sm:$0xff] %v10142_v35  ;;  %12982 = vst [vmem:[#allocation24_spill] sm:$0xff] %v10145_v8  ;;  %v13004_v32 = vld [vmem:[#allocation56_spill] sm:$0xff]  ;;  %v13006_v54 = vld [vmem:[#allocation57_spill] sm:$0xff] }
 0x1b2   :  { %12984 = vst [vmem:[#allocation28_spill] sm:$0xff] %v10148_v46  ;;  %12986 = vst [vmem:[#allocation29_spill] sm:$0xff] %v10151_v10  ;;  %v1614_v19 = vadd.f32 %v13004_v32, %v13003_v23  ;;  %v1615_v17 = vadd.f32 %v13006_v54, %v13005_v58  ;;  %v13007_v27 = vld [vmem:[#allocation15_spill] sm:$0xff]  ;;  %v1872_v13 = vld [vmem:[#allocation2 + $0x92] sm:$0xff]  ;;  %v2065_v54 = vadd.f32 %v2064_v25, %v2063_v37 }
 0x1b3   :  { %12988 = vst [vmem:[#allocation30_spill] sm:$0xff] %v10154_v36  ;;  %12990 = vst [vmem:[#allocation31_spill] sm:$0xff] %v10157_v60  ;;  %v1745_v48 = vmul.f32 %v13007_v27, %v1676_v1  ;;  %v1678_v41 = vld [vmem:[#allocation2 + $0xb1] sm:$0xff]  ;;  %v13008_v57 = vld [vmem:[#allocation47_spill] sm:$0xff]  ;;  %v1746_v59 = vmul.f32 %v13007_v27, %v1677_v45 }
 0x1b4   :  { %12992 = vst [vmem:[#allocation35_spill] sm:$0xff] %v10160_v39  ;;  %12994 = vst [vmem:[#allocation36_spill] sm:$0xff] %v10163_v22  ;;  %v13009_v7 = vld [vmem:[#allocation16_spill] sm:$0xff]  ;;  %v13010_v28 = vld [vmem:[#allocation18_spill] sm:$0xff]  ;;  %v1747_v37 = vmul.f32 %v13007_v27, %v1678_v41 }
 0x1b5   :  { %12996 = vst [vmem:[#allocation37_spill] sm:$0xff] %v10166_v53  ;;  %12998 = vst [vmem:[#allocation38_spill] sm:$0xff] %v10169_v24  ;;  %v1807_v15 = vadd.f32 %v13009_v7, %v13008_v57  ;;  %v13011_v33 = vld [vmem:[#allocation4_spill] sm:$0xff]  ;;  %v13012_v51 = vld [vmem:[#allocation6_spill] sm:$0xff] }
 0x1b6   :  { %13000 = vst [vmem:[#allocation42_spill] sm:$0xff] %v10172_v4  ;;  %v10194_v43 = vadd.f32 %v13011_v33, %v13010_v28  ;;  %v13013_v49 = vld [vmem:[#allocation58_spill] sm:$0xff]  ;;  %v13014_v32 = vld [vmem:[#allocation25_spill] sm:$0xff]  ;;  %v13015_v1 = vld [vmem:[#allocation59_spill] sm:$0xff]  ;;  %v1941_v28 = vmul.f32 %v9995_v11, %v1872_v13 }
 0x1b7   :  { %v1616_v23 = vadd.f32 %v13013_v49, %v13012_v51  ;;  %v10202_v58 = vadd.f32 %v13015_v1, %v13014_v32  ;;  %v1873_v40 = vld [vmem:[#allocation2 + $0x9a] sm:$0xff]  ;;  %v13016_v0 = vld [vmem:[#allocation45_spill] sm:$0xff]  ;;  %v13017_v7 = vld [vmem:[#allocation52_spill] sm:$0xff]  ;;  %v2068_v51 = vsel %vm48_vm0, %v10176_v44, 0.0 }
 0x1b8   :  { %v1679_v57 = vld [vmem:[#allocation2 + $0xc1] sm:$0xff]  ;;  %v1808_v4 = vadd.f32 %v13017_v7, %v13016_v0  ;;  %v13018_v33 = vld [vmem:[#allocation54_spill] sm:$0xff]  ;;  %v13023_v22 = vld [vmem:[#allocation61_spill] sm:$0xff]  ;;  %v2067_v7 = vadd.f32 %v2066_v56, %v2065_v54  ;;  %v2070_v36 = vsel %vm48_vm0, %v10194_v43, 0.0 }
 0x1b9   :  { %v13019_v24 = vld [vmem:[#allocation76_spill] sm:$0xff]  ;;  %v13020_v49 = vld [vmem:[#allocation7_spill] sm:$0xff]  ;;  %v13022_v45 = vld [vmem:[#allocation26_spill] sm:$0xff]  ;;  %v1748_v41 = vmul.f32 %v13007_v27, %v1679_v57 }
 0x1ba   :  { %v10210_v53 = vadd.f32 %v13019_v24, %v13018_v33  ;;  %v13021_v32 = vld [vmem:[#allocation60_spill] sm:$0xff]  ;;  %v10220_v25 = vadd.f32 %v13023_v22, %v13022_v45  ;;  %v1942_v24 = vmul.f32 %v9995_v11, %v1873_v40  ;;  %v10225_v33 = vadd.f32 %v1940_v55, %v1807_v15  ;;  %v13027_v22 = vld [vmem:[#allocation27_spill] sm:$0xff]  ;;  %v1875_v56 = vld [vmem:[#allocation2 + $0xb2] sm:$0xff] }
 0x1bb   :  { %v10216_v1 = vadd.f32 %v13021_v32, %v13020_v49  ;;  %v1874_v0 = vld [vmem:[#allocation2 + $0xaa] sm:$0xff]  ;;  %v13026_v32 = vld [vmem:[#allocation62_spill] sm:$0xff]  ;;  %v13028_v45 = vld [vmem:[#allocation63_spill] sm:$0xff]  ;;  %v2069_v54 = vadd.f32 %v2068_v51, %v2067_v7  ;;  %v10240_v55 = vadd.f32 %v1941_v28, %v1808_v4  ;;  %v1944_v4 = vmul.f32 %v9995_v11, %v1875_v56 }
 0x1bc   :  { %v1680_v13 = vld [vmem:[#allocation2 + $0xc9] sm:$0xff]  ;;  %v10235_v46 = vadd.f32 %v13028_v45, %v13027_v22  ;;  %v1943_v15 = vmul.f32 %v9995_v11, %v1874_v0  ;;  %v2072_v8 = vsel %vm48_vm0, %v10210_v53, 0.0  ;;  %v13032_v22 = vld [vmem:[#allocation10_spill] sm:$0xff]  ;;  %v2074_v0 = vsel %vm48_vm0, %v10225_v33, 0.0  ;;  %v13044_v12 = vld [vmem:[#allocation11_spill] sm:$0xff] }
 0x1bd   :  { %v13024_v39 = vld [vmem:[#allocation48_spill] sm:$0xff]  ;;  %v13033_v45 = vld [vmem:[#allocation65_spill] sm:$0xff]  ;;  %v1749_v57 = vmul.f32 %v13007_v27, %v1680_v13  ;;  %v2071_v7 = vadd.f32 %v2070_v36, %v2069_v54  ;;  %v2076_v56 = vsel %vm48_vm0, %v10240_v55, 0.0  ;;  %v13042_v6 = vld [vmem:[#allocation34_spill] sm:$0xff] }
 0x1be   :  { %v1809_v60 = vadd.f32 %v1745_v48, %v13024_v39  ;;  %v13025_v49 = vld [vmem:[#allocation8_spill] sm:$0xff]  ;;  %v1681_v39 = vld [vmem:[#allocation2 + $0xd9] sm:$0xff]  ;;  %v10250_v3 = vadd.f32 %v13033_v45, %v13032_v22  ;;  %v13038_v14 = vld [vmem:[#allocation33_spill] sm:$0xff] }
 0x1bf   :  { %v10231_v10 = vadd.f32 %v13026_v32, %v13025_v49  ;;  %v13029_v48 = vld [vmem:[#allocation51_spill] sm:$0xff]  ;;  %v13030_v49 = vld [vmem:[#allocation9_spill] sm:$0xff]  ;;  %v13031_v32 = vld [vmem:[#allocation64_spill] sm:$0xff]  ;;  %v1750_v13 = vmul.f32 %v13007_v27, %v1681_v39  ;;  %v2073_v54 = vadd.f32 %v2072_v8, %v2071_v7 }
 0x1c0   :  { %v1810_v40 = vadd.f32 %v1746_v59, %v13029_v48  ;;  %v10246_v35 = vadd.f32 %v13031_v32, %v13030_v49  ;;  %v1876_v51 = vld [vmem:[#allocation2 + $0xc2] sm:$0xff]  ;;  %v1811_v48 = vadd.f32 %v1747_v37, %v1614_v19  ;;  %v10254_v28 = vadd.f32 %v1942_v24, %v1809_v60  ;;  %v13035_v49 = vld [vmem:[#allocation66_spill] sm:$0xff]  ;;  %v1877_v36 = vld [vmem:[#allocation2 + $0xca] sm:$0xff] }
 0x1c1   :  { %v1682_v59 = vld [vmem:[#allocation2 + $0xe1] sm:$0xff]  ;;  %v1683_v19 = vld [vmem:[#allocation2 + $0xf1] sm:$0xff]  ;;  %v1812_v37 = vadd.f32 %v1748_v41, %v1615_v17  ;;  %v1945_v60 = vmul.f32 %v9995_v11, %v1876_v51  ;;  %v2075_v7 = vadd.f32 %v2074_v0, %v2073_v54  ;;  %v1684_v17 = vld [vmem:[#allocation2 + $0xf9] sm:$0xff]  ;;  %v1813_v41 = vadd.f32 %v1749_v57, %v1616_v23 }
 0x1c2   :  { %v13034_v21 = vld [vmem:[#allocation32_spill] sm:$0xff]  ;;  %v13037_v22 = vld [vmem:[#allocation67_spill] sm:$0xff]  ;;  %v10268_v24 = vadd.f32 %v1943_v15, %v1810_v40  ;;  %v13040_v52 = vld [vmem:[#allocation13_spill] sm:$0xff]  ;;  %v1751_v39 = vmul.f32 %v13007_v27, %v1682_v59  ;;  %v1946_v40 = vmul.f32 %v9995_v11, %v1877_v36  ;;  %v10282_v15 = vadd.f32 %v1944_v4, %v1811_v48 }
 0x1c3   :  { %v10260_v32 = vadd.f32 %v13035_v49, %v13034_v21  ;;  %v13036_v26 = vld [vmem:[#allocation12_spill] sm:$0xff]  ;;  %v1878_v8 = vld [vmem:[#allocation2 + $0xda] sm:$0xff]  ;;  %v2078_v51 = vsel %vm48_vm0, %v10254_v28, 0.0  ;;  %v1752_v59 = vmul.f32 %v13007_v27, %v1683_v19  ;;  %v2077_v54 = vadd.f32 %v2076_v56, %v2075_v7  ;;  %v1880_v56 = vld [vmem:[#allocation2 + $0xf2] sm:$0xff] }
 0x1c4   :  { %v10264_v45 = vadd.f32 %v13037_v22, %v13036_v26  ;;  %v13039_v21 = vld [vmem:[#allocation68_spill] sm:$0xff]  ;;  %v13041_v26 = vld [vmem:[#allocation69_spill] sm:$0xff]  ;;  %v1814_v57 = vadd.f32 %v1750_v13, %v10202_v58  ;;  %v1947_v48 = vmul.f32 %v9995_v11, %v1878_v8  ;;  %v10297_v4 = vadd.f32 %v1945_v60, %v1812_v37  ;;  %v13055_v34 = vld [vmem:[#allocation43_spill] sm:$0xff] }
 0x1c5   :  { %v10274_v49 = vadd.f32 %v13039_v21, %v13038_v14  ;;  %v10278_v22 = vadd.f32 %v13041_v26, %v13040_v52  ;;  %v13043_v14 = vld [vmem:[#allocation70_spill] sm:$0xff]  ;;  %v13045_v52 = vld [vmem:[#allocation71_spill] sm:$0xff]  ;;  %v1685_v23 = vld [vmem:[#allocation2 + $0x109] sm:$0xff]  ;;  %v2080_v36 = vsel %vm48_vm0, %v10268_v24, 0.0  ;;  %v1753_v19 = vmul.f32 %v13007_v27, %v1684_v17 }
 0x1c6   :  { %v10288_v21 = vadd.f32 %v13043_v14, %v13042_v6  ;;  %v10292_v26 = vadd.f32 %v13045_v52, %v13044_v12  ;;  %v1879_v0 = vld [vmem:[#allocation2 + $0xe2] sm:$0xff]  ;;  %v13049_v52 = vld [vmem:[#allocation73_spill] sm:$0xff]  ;;  %v2079_v7 = vadd.f32 %v2078_v51, %v2077_v54  ;;  %v1815_v13 = vadd.f32 %v1751_v39, %v10216_v1  ;;  %v1881_v51 = vld [vmem:[#allocation2 + $0xfa] sm:$0xff] }
 0x1c7   :  { %v13046_v6 = vld [vmem:[#allocation3_spill] sm:$0xff]  ;;  %v13047_v14 = vld [vmem:[#allocation72_spill] sm:$0xff]  ;;  %v1686_v58 = vld [vmem:[#allocation2 + $0x111] sm:$0xff]  ;;  %v1948_v37 = vmul.f32 %v9995_v11, %v1879_v0  ;;  %v10312_v60 = vadd.f32 %v1946_v40, %v1813_v41  ;;  %v2082_v8 = vsel %vm48_vm0, %v10282_v15, 0.0  ;;  %v1754_v17 = vmul.f32 %v13007_v27, %v1685_v23 }
 0x1c8   :  { %v10303_v16 = vadd.f32 %v13047_v14, %v13046_v6  ;;  %v13048_v12 = vld [vmem:[#allocation39_spill] sm:$0xff]  ;;  %v13050_v6 = vld [vmem:[#allocation46_spill] sm:$0xff]  ;;  %v2081_v54 = vadd.f32 %v2080_v36, %v2079_v7  ;;  %v1688_v39 = vld [vmem:[#allocation2 + $0x129] sm:$0xff]  ;;  %v1816_v41 = vadd.f32 %v1752_v59, %v10220_v25  ;;  %v1949_v40 = vmul.f32 %v9995_v11, %v1880_v56 }
 0x1c9   :  { %v10307_v2 = vadd.f32 %v13049_v52, %v13048_v12  ;;  %v13051_v14 = vld [vmem:[#allocation74_spill] sm:$0xff]  ;;  %v13052_v12 = vld [vmem:[#allocation40_spill] sm:$0xff]  ;;  %v13053_v52 = vld [vmem:[#allocation75_spill] sm:$0xff]  ;;  %v10327_v50 = vadd.f32 %v1947_v48, %v1814_v57  ;;  %v1755_v36 = vmul.f32 %v13007_v27, %v1686_v58  ;;  %v1817_v57 = vadd.f32 %v1753_v19, %v10231_v10 }
 0x1ca   :  { %v10318_v5 = vadd.f32 %v13051_v14, %v13050_v6  ;;  %v10322_v62 = vadd.f32 %v13053_v52, %v13052_v12  ;;  %v1687_v1 = vld [vmem:[#allocation2 + $0x121] sm:$0xff]  ;;  %v1689_v0 = vld [vmem:[#allocation2 + $0x139] sm:$0xff]  ;;  %v2084_v6 = vsel %vm48_vm0, %v10297_v4, 0.0  ;;  %v13056_v52 = vld [vmem:[#allocation41_spill] sm:$0xff]  ;;  %v2083_v18 = vadd.f32 %v2082_v8, %v2081_v54 }
 0x1cb   :  { %v13054_v14 = vld [vmem:[#allocation14_spill] sm:$0xff]  ;;  %v13057_v23 = vld [vmem:[#allocation44_spill] sm:$0xff]  ;;  %v1950_v48 = vmul.f32 %v9995_v11, %v1881_v51  ;;  %v10342_v61 = vadd.f32 %v1948_v37, %v1815_v13  ;;  %v1758_v58 = vmul.f32 %v13007_v27, %v1689_v0  ;;  %v1818_v10 = vadd.f32 %v1754_v17, %v10235_v46 }
 0x1cc   :  { %v10333_v12 = vadd.f32 %v13055_v34, %v13054_v14  ;;  %v10337_v47 = vadd.f32 %v13057_v23, %v13056_v52  ;;  %v1882_v7 = vld [vmem:[#allocation2 + $0x10a] sm:$0xff]  ;;  %v1690_v25 = vld [vmem:[#allocation2 + $0x141] sm:$0xff]  ;;  %v1692_v56 = vld [vmem:[#allocation2 + $0x159] sm:$0xff]  ;;  %v2086_v34 = vsel %vm48_vm0, %v10312_v60, 0.0  ;;  %v1756_v14 = vmul.f32 %v13007_v27, %v1687_v1 }
 0x1cd   :  { %v1691_v59 = vld [vmem:[#allocation2 + $0x151] sm:$0xff]  ;;  %v1757_v52 = vmul.f32 %v13007_v27, %v1688_v39  ;;  %v2085_v8 = vadd.f32 %v2084_v6, %v2083_v18  ;;  %v1693_v54 = vld [vmem:[#allocation2 + $0x169] sm:$0xff]  ;;  %v1695_v63 = vld [vmem:[#allocation2 + $0x181] sm:$0xff]  ;;  %v1951_v19 = vmul.f32 %v9995_v11, %v1882_v7  ;;  %v10351_v13 = vadd.f32 %v1949_v40, %v1816_v41 }
 0x1ce   :  { %v1883_v23 = vld [vmem:[#allocation2 + $0x112] sm:$0xff]  ;;  %v2088_v37 = vsel %vm48_vm0, %v10327_v50, 0.0  ;;  %v1759_v51 = vmul.f32 %v13007_v27, %v1690_v25  ;;  %v1760_v1 = vmul.f32 %v13007_v27, %v1691_v59  ;;  %v1761_v39 = vmul.f32 %v13007_v27, %v1692_v56  ;;  %v1884_v0 = vld [vmem:[#allocation2 + $0x122] sm:$0xff]  ;;  %v1885_v56 = vld [vmem:[#allocation2 + $0x12a] sm:$0xff] }
 0x1cf   :  { %v1694_v9 = vld [vmem:[#allocation2 + $0x171] sm:$0xff]  ;;  %13058 = vst [vmem:[#allocation53_spill] sm:$0xff] %v10351_v13  ;;  %v2087_v18 = vadd.f32 %v2086_v34, %v2085_v8  ;;  %v1696_v6 = vld [vmem:[#allocation2 + $0x189] sm:$0xff]  ;;  %v1697_v29 = vld [vmem:[#allocation2 + $0x199] sm:$0xff]  ;;  %v1819_v46 = vadd.f32 %v1755_v36, %v10246_v35  ;;  %v1952_v17 = vmul.f32 %v9995_v11, %v1883_v23  ;;  %v10360_v41 = vadd.f32 %v1950_v48, %v1817_v57 }
 0x1d0   :  { %v1698_v42 = vld [vmem:[#allocation2 + $0x1a1] sm:$0xff]  ;;  %v2090_v40 = vsel %vm48_vm0, %v10342_v61, 0.0  ;;  %v1762_v7 = vmul.f32 %v13007_v27, %v1693_v54  ;;  %v10366_v25 = vmul.f32 %v13007_v27, %v1694_v9  ;;  %v10369_v59 = vmul.f32 %v13007_v27, %v1695_v63 }
 0x1d1   :  { %v2089_v34 = vadd.f32 %v2088_v37, %v2087_v18  ;;  %v1699_v8 = vld [vmem:[#allocation2 + $0x1e1] sm:$0xff]  ;;  %v1820_v35 = vadd.f32 %v1756_v14, %v10250_v3  ;;  %v1953_v57 = vmul.f32 %v9995_v11, %v1884_v0  ;;  %v10373_v48 = vadd.f32 %v1951_v19, %v1818_v10 }
 0x1d2   :  { %v1886_v36 = vld [vmem:[#allocation2 + $0x13a] sm:$0xff]  ;;  %v2092_v23 = vsel %vm48_vm0, %v10351_v13, 0.0  ;;  %v10378_v54 = vmul.f32 %v13007_v27, %v1696_v6  ;;  %v10381_v9 = vmul.f32 %v13007_v27, %v1697_v29  ;;  %v10384_v63 = vmul.f32 %v13007_v27, %v1698_v42  ;;  %v1887_v29 = vld [vmem:[#allocation2 + $0x142] sm:$0xff]  ;;  %v1888_v13 = vld [vmem:[#allocation2 + $0x152] sm:$0xff] }
 0x1d3   :  { %v2091_v37 = vadd.f32 %v2090_v40, %v2089_v34  ;;  %v1821_v3 = vadd.f32 %v1757_v52, %v10260_v32  ;;  %v1954_v14 = vmul.f32 %v9995_v11, %v1885_v56  ;;  %v10388_v0 = vadd.f32 %v1952_v17, %v1819_v46  ;;  %v1889_v56 = vld [vmem:[#allocation2 + $0x15a] sm:$0xff] }
 0x1d4   :  { %v2094_v10 = vsel %vm48_vm0, %v10360_v41, 0.0  ;;  %v10393_v19 = vmul.f32 %v13007_v27, %v1699_v8  ;;  %v1822_v18 = vadd.f32 %v1758_v58, %v10264_v45  ;;  %v1955_v6 = vmul.f32 %v9995_v11, %v1886_v36 }
 0x1d5   :  { %v2093_v42 = vadd.f32 %v2092_v23, %v2091_v37  ;;  %v10397_v40 = vadd.f32 %v1953_v57, %v1820_v35  ;;  %v2096_v32 = vsel %vm48_vm0, %v10373_v48, 0.0  ;;  %v2194_v52 = vmul.f32 %v10070_v30, %v10070_v30 }
 0x1d6   :  { %v2195_v46 = vmul.f32 %v10073_v20, %v10073_v20  ;;  %v1823_v27 = vadd.f32 %v1759_v51, %v10274_v49  ;;  %v1824_v45 = vadd.f32 %v1760_v1, %v10278_v22  ;;  %v2196_v17 = vmul.f32 %v10076_v38, %v10076_v38  ;;  %v1890_v1 = vld [vmem:[#allocation2 + $0x16a] sm:$0xff] }
 0x1d7   :  { %v2095_v58 = vadd.f32 %v2094_v10, %v2093_v42  ;;  %v1956_v34 = vmul.f32 %v9995_v11, %v1887_v29  ;;  %v10410_v8 = vadd.f32 %v1954_v14, %v1821_v3  ;;  %v2098_v35 = vsel %vm48_vm0, %v10388_v0, 0.0 }
 0x1d8   :  { %v2197_v36 = vmul.f32 %v10079_v31, %v10079_v31  ;;  %v1825_v57 = vadd.f32 %v1761_v39, %v10288_v21  ;;  %v1957_v49 = vmul.f32 %v9995_v11, %v1888_v13  ;;  %v10418_v22 = vadd.f32 %v1955_v6, %v1822_v18  ;;  %v1891_v39 = vld [vmem:[#allocation2 + $0x172] sm:$0xff] }
 0x1d9   :  { %v2097_v51 = vadd.f32 %v2096_v32, %v2095_v58  ;;  %v2100_v23 = vsel %vm48_vm0, %v10397_v40, 0.0  ;;  %v2198_v37 = vmul.f32 %v10176_v44, %v10176_v44  ;;  %v2258_v3 = vsel %vm48_vm0, %v2194_v52, 0.0 }
 0x1da   :  { %v2259_v14 = vsel %vm48_vm0, %v2195_v46, 0.0  ;;  %v1958_v10 = vmul.f32 %v9995_v11, %v1889_v56  ;;  %v2261_v13 = vsel %vm48_vm0, %v2196_v17, 0.0  ;;  %v10428_v18 = vadd.f32 %v1956_v34, %v1823_v27 }
 0x1db   :  { %v2099_v29 = vadd.f32 %v2098_v35, %v2097_v51  ;;  %v2260_v21 = vadd.f32 %v2259_v14, %v2258_v3  ;;  %v2102_v6 = vsel %vm48_vm0, %v10410_v8, 0.0  ;;  %v2199_v42 = vmul.f32 %v10194_v43, %v10194_v43  ;;  %v1892_v35 = vld [vmem:[#allocation2 + $0x182] sm:$0xff] }
 0x1dc   :  { %v2263_v32 = vsel %vm48_vm0, %v2197_v36, 0.0  ;;  %v1826_v52 = vadd.f32 %v1762_v7, %v10292_v26  ;;  %v1959_v46 = vmul.f32 %v9995_v11, %v1890_v1  ;;  %v10437_v51 = vadd.f32 %v1957_v49, %v1824_v45 }
 0x1dd   :  { %v2101_v58 = vadd.f32 %v2100_v23, %v2099_v29  ;;  %v2262_v56 = vadd.f32 %v2261_v13, %v2260_v21  ;;  %v2104_v27 = vsel %vm48_vm0, %v10418_v22, 0.0  ;;  %v2200_v17 = vmul.f32 %v10210_v53, %v10210_v53  ;;  %v1893_v23 = vld [vmem:[#allocation2 + $0x18a] sm:$0xff]  ;;  %v1894_v21 = vld [vmem:[#allocation2 + $0x19a] sm:$0xff] }
 0x1de   :  { %v2265_v34 = vsel %vm48_vm0, %v2198_v37, 0.0  ;;  %v1827_v36 = vadd.f32 %v10366_v25, %v10303_v16  ;;  %v1960_v26 = vmul.f32 %v9995_v11, %v1891_v39  ;;  %v10447_v3 = vadd.f32 %v1958_v10, %v1825_v57 }
 0x1df   :  { %v2103_v7 = vadd.f32 %v2102_v6, %v2101_v58  ;;  %v2264_v1 = vadd.f32 %v2263_v32, %v2262_v56  ;;  %v2106_v45 = vsel %vm48_vm0, %v10428_v18, 0.0  ;;  %v2201_v49 = vmul.f32 %v10225_v33, %v10225_v33  ;;  %v1895_v32 = vld [vmem:[#allocation2 + $0x1a2] sm:$0xff] }
 0x1e0   :  { %v2267_v14 = vsel %vm48_vm0, %v2199_v42, 0.0  ;;  %v1828_v37 = vadd.f32 %v10369_v59, %v10307_v2  ;;  %v1961_v16 = vmul.f32 %v9995_v11, %v1892_v35  ;;  %v10457_v13 = vadd.f32 %v1959_v46, %v1826_v52 }
 0x1e1   :  { %v2105_v25 = vadd.f32 %v2104_v27, %v2103_v7  ;;  %v2266_v29 = vadd.f32 %v2265_v34, %v2264_v1  ;;  %v2108_v57 = vsel %vm48_vm0, %v10437_v51, 0.0  ;;  %v2202_v10 = vmul.f32 %v10240_v55, %v10240_v55 }
 0x1e2   :  { %v2269_v39 = vsel %vm48_vm0, %v2200_v17, 0.0  ;;  %v1829_v6 = vadd.f32 %v10378_v54, %v10318_v5  ;;  %v1962_v2 = vmul.f32 %v9995_v11, %v1893_v23  ;;  %v10467_v58 = vadd.f32 %v1960_v26, %v1827_v36  ;;  %v1896_v17 = vld [vmem:[#allocation2 + $0x1e2] sm:$0xff] }
 0x1e3   :  { %v2107_v59 = vadd.f32 %v2106_v45, %v2105_v25  ;;  %v2268_v42 = vadd.f32 %v2267_v14, %v2266_v29  ;;  %v2110_v52 = vsel %vm48_vm0, %v10447_v3, 0.0  ;;  %v2203_v46 = vmul.f32 %v10254_v28, %v10254_v28 }
 0x1e4   :  { %v2271_v56 = vsel %vm48_vm0, %v2201_v49, 0.0  ;;  %v1830_v35 = vadd.f32 %v10381_v9, %v10322_v62  ;;  %v1963_v5 = vmul.f32 %v9995_v11, %v1894_v21  ;;  %v10477_v34 = vadd.f32 %v1961_v16, %v1828_v37 }
 0x1e5   :  { %v2109_v54 = vadd.f32 %v2108_v57, %v2107_v59  ;;  %v2270_v27 = vadd.f32 %v2269_v39, %v2268_v42  ;;  %v2112_v36 = vsel %vm48_vm0, %v10457_v13, 0.0  ;;  %v2204_v26 = vmul.f32 %v10268_v24, %v10268_v24 }
 0x1e6   :  { %v2273_v7 = vsel %vm48_vm0, %v2202_v10, 0.0  ;;  %v1831_v1 = vadd.f32 %v10384_v63, %v10333_v12  ;;  %v1964_v62 = vmul.f32 %v9995_v11, %v1895_v32  ;;  %v10487_v45 = vadd.f32 %v1962_v2, %v1829_v6 }
 0x1e7   :  { %v2111_v9 = vadd.f32 %v2110_v52, %v2109_v54  ;;  %v2272_v23 = vadd.f32 %v2271_v56, %v2270_v27  ;;  %v2114_v49 = vsel %vm48_vm0, %v10467_v58, 0.0  ;;  %v2205_v14 = vmul.f32 %v10282_v15, %v10282_v15 }
 0x1e8   :  { %13059 = vst [vmem:[#allocation19_spill] sm:$0xff] %v10487_v45  ;;  %v2275_v37 = vsel %vm48_vm0, %v2203_v46, 0.0  ;;  %v1832_v16 = vadd.f32 %v10393_v19, %v10337_v47  ;;  %v1965_v25 = vmul.f32 %v9995_v11, %v1896_v17  ;;  %v10497_v29 = vadd.f32 %v1963_v5, %v1830_v35 }
 0x1e9   :  { %v2113_v12 = vadd.f32 %v2112_v36, %v2111_v9  ;;  %v2274_v63 = vadd.f32 %v2273_v7, %v2272_v23  ;;  %v2116_v21 = vsel %vm48_vm0, %v10477_v34, 0.0  ;;  %v2206_v57 = vmul.f32 %v10297_v4, %v10297_v4 }
 0x1ea   :  { %13060 = vst [vmem:[#allocation20_spill] sm:$0xff] %v10497_v29  ;;  %v2277_v10 = vsel %vm48_vm0, %v2204_v26, 0.0  ;;  %v10504_v2 = vadd.f32 %v1964_v62, %v1831_v1  ;;  %v2118_v47 = vsel %vm48_vm0, %v10487_v45, 0.0  ;;  %v2207_v11 = vmul.f32 %v10312_v60, %v10312_v60  ;;  %v13063_v1 = vld [vmem:[#allocation53_spill] sm:$0xff] }
 0x1eb   :  { %v2115_v39 = vadd.f32 %v2114_v49, %v2113_v12  ;;  %v2276_v6 = vadd.f32 %v2275_v37, %v2274_v63  ;;  %v2279_v19 = vsel %vm48_vm0, %v2205_v14, 0.0  ;;  %v10511_v32 = vadd.f32 %v1965_v25, %v1832_v16  ;;  %v13064_v14 = vld [vmem:[#allocation79_spill] sm:$0xff] }
 0x1ec   :  { %13061 = vst [vmem:[#allocation56_spill] sm:$0xff] %v10504_v2  ;;  %v2120_v52 = vsel %vm48_vm0, %v10497_v29, 0.0  ;;  %v2208_v46 = vmul.f32 %v10327_v50, %v10327_v50  ;;  %v2281_v56 = vsel %vm48_vm0, %v2206_v57, 0.0  ;;  %v2122_v54 = vsel %vm48_vm0, %v10504_v2, 0.0 }
 0x1ed   :  { %v2117_v59 = vadd.f32 %v2116_v21, %v2115_v39  ;;  %v2278_v42 = vadd.f32 %v2277_v10, %v2276_v6  ;;  %13062 = vst [vmem:[#allocation5_spill] sm:$0xff] %v10511_v32  ;;  %v2209_v27 = vmul.f32 %v10342_v61, %v10342_v61  ;;  %v2283_v17 = vsel %vm48_vm0, %v2207_v11, 0.0  ;;  %v13065_v21 = vld [vmem:[#allocation80_spill] sm:$0xff]  ;;  %v13066_v11 = vld [vmem:[#allocation81_spill] sm:$0xff] }
 0x1ee   :  { %v2124_v7 = vsel %vm48_vm0, %v10511_v32, 0.0  ;;  %v2210_v62 = vmul.f32 %v13063_v1, %v13063_v1  ;;  %v2285_v9 = vsel %vm48_vm0, %v2208_v46, 0.0  ;;  %v2126_v37 = vsel %vm48_vm0, %v13064_v14, 0.0 }
 0x1ef   :  { %v2119_v35 = vadd.f32 %v2118_v47, %v2117_v59  ;;  %v2280_v5 = vadd.f32 %v2279_v19, %v2278_v42  ;;  %v2211_v16 = vmul.f32 %v10360_v41, %v10360_v41  ;;  %v2287_v25 = vsel %vm48_vm0, %v2209_v27, 0.0 }
 0x1f0   :  { %v2128_v57 = vsel %vm48_vm0, %v13065_v21, 0.0  ;;  %v2212_v10 = vmul.f32 %v10373_v48, %v10373_v48  ;;  %v2289_v39 = vsel %vm48_vm0, %v2210_v62, 0.0  ;;  %v2130_v19 = vsel %vm48_vm0, %v13066_v11, 0.0 }
 0x1f1   :  { %v2121_v36 = vadd.f32 %v2120_v52, %v2119_v35  ;;  %v2282_v26 = vadd.f32 %v2281_v56, %v2280_v5  ;;  %v2213_v59 = vmul.f32 %v10388_v0, %v10388_v0  ;;  %v2291_v42 = vsel %vm48_vm0, %v2211_v16, 0.0  ;;  %v13067_v56 = vld [vmem:[#allocation82_spill] sm:$0xff] }
 0x1f2   :  { %v2132_v35 = vsel %vm48_vm0, %v13067_v56, 0.0  ;;  %v2214_v5 = vmul.f32 %v10397_v40, %v10397_v40  ;;  %v2216_v16 = vmul.f32 %v10418_v22, %v10418_v22  ;;  %v2224_v20 = vmul.f32 %v10497_v29, %v10497_v29 }
 0x1f3   :  { %v2123_v23 = vadd.f32 %v2122_v54, %v2121_v36  ;;  %v2284_v49 = vadd.f32 %v2283_v17, %v2282_v26  ;;  %v2293_v54 = vsel %vm48_vm0, %v2212_v10, 0.0  ;;  %v13068_v36 = vld [vmem:[#allocation83_spill] sm:$0xff]  ;;  %v2295_v62 = vsel %vm48_vm0, %v2213_v59, 0.0  ;;  %v13071_v59 = vld [vmem:[#allocation86_spill] sm:$0xff] }
 0x1f4   :  { %v2134_v26 = vsel %vm48_vm0, %v13068_v36, 0.0  ;;  %v2225_v30 = vmul.f32 %v10504_v2, %v10504_v2  ;;  %v2226_v29 = vmul.f32 %v10511_v32, %v10511_v32  ;;  %v2227_v2 = vmul.f32 %v13064_v14, %v13064_v14 }
 0x1f5   :  { %v2125_v12 = vadd.f32 %v2124_v7, %v2123_v23  ;;  %v2286_v63 = vadd.f32 %v2285_v9, %v2284_v49  ;;  %v2215_v7 = vmul.f32 %v10410_v8, %v10410_v8  ;;  %v13069_v49 = vld [vmem:[#allocation84_spill] sm:$0xff]  ;;  %v2228_v32 = vmul.f32 %v13065_v21, %v13065_v21 }
 0x1f6   :  { %v2229_v14 = vmul.f32 %v13066_v11, %v13066_v11  ;;  %v2230_v21 = vmul.f32 %v13067_v56, %v13067_v56  ;;  %v2231_v11 = vmul.f32 %v13068_v36, %v13068_v36  ;;  %v2232_v56 = vmul.f32 %v13069_v49, %v13069_v49 }
 0x1f7   :  { %v2127_v6 = vadd.f32 %v2126_v37, %v2125_v12  ;;  %v2288_v47 = vadd.f32 %v2287_v25, %v2286_v63  ;;  %v2136_v37 = vsel %vm48_vm0, %v13069_v49, 0.0  ;;  %v2297_v25 = vsel %vm48_vm0, %v2214_v5, 0.0 }
 0x1f9   :  { %v2129_v52 = vadd.f32 %v2128_v57, %v2127_v6  ;;  %v2290_v46 = vadd.f32 %v2289_v39, %v2288_v47  ;;  %v13070_v57 = vld [vmem:[#allocation85_spill] sm:$0xff]  ;;  %v2217_v39 = vmul.f32 %v10428_v18, %v10428_v18  ;;  %v2299_v6 = vsel %vm48_vm0, %v2215_v7, 0.0 }
 0x1fa   :  { %v2138_v10 = vsel %vm48_vm0, %v13070_v57, 0.0  ;;  %v2233_v36 = vmul.f32 %v13070_v57, %v13070_v57 }
 0x1fb   :  { %v2131_v27 = vadd.f32 %v2130_v19, %v2129_v52  ;;  %v2292_v17 = vadd.f32 %v2291_v42, %v2290_v46  ;;  %v2140_v42 = vsel %vm48_vm0, %v13071_v59, 0.0  ;;  %v2218_v52 = vmul.f32 %v10437_v51, %v10437_v51 }
 0x1fc   :  { %v2301_v46 = vsel %vm48_vm0, %v2216_v16, 0.0 }
 0x1fd   :  { %v2133_v9 = vadd.f32 %v2132_v35, %v2131_v27  ;;  %v2294_v23 = vadd.f32 %v2293_v54, %v2292_v17  ;;  %v13072_v54 = vld [vmem:[#allocation87_spill] sm:$0xff]  ;;  %v2219_v17 = vmul.f32 %v10447_v3, %v10447_v3  ;;  %v2305_v16 = vsel %vm48_vm0, %v2218_v52, 0.0 }
 0x1fe   :  { %v2142_v27 = vsel %vm48_vm0, %v13072_v54, 0.0 }
 0x1ff   :  { %v2135_v12 = vadd.f32 %v2134_v26, %v2133_v9  ;;  %v2296_v63 = vadd.f32 %v2295_v62, %v2294_v23  ;;  %v2303_v26 = vsel %vm48_vm0, %v2217_v39, 0.0  ;;  %v13073_v9 = vld [vmem:[#allocation88_spill] sm:$0xff]  ;;  %v2307_v39 = vsel %vm48_vm0, %v2219_v17, 0.0 }
 0x200   :  { %v2144_v23 = vsel %vm48_vm0, %v13073_v9, 0.0 }
 0x201   :  { %v2137_v47 = vadd.f32 %v2136_v37, %v2135_v12  ;;  %v2298_v19 = vadd.f32 %v2297_v25, %v2296_v63  ;;  %v2220_v37 = vmul.f32 %v10457_v13, %v10457_v13  ;;  %v13074_v63 = vld [vmem:[#allocation89_spill] sm:$0xff] }
 0x203   :  { %v2139_v35 = vadd.f32 %v2138_v10, %v2137_v47  ;;  %v2300_v5 = vadd.f32 %v2299_v6, %v2298_v19  ;;  %v2146_v10 = vsel %vm48_vm0, %v13074_v63, 0.0  ;;  %v2221_v6 = vmul.f32 %v10467_v58, %v10467_v58 }
 0x204   :  { %v2309_v52 = vsel %vm48_vm0, %v2220_v37, 0.0 }
 0x205   :  { %v2141_v7 = vadd.f32 %v2140_v42, %v2139_v35  ;;  %v2302_v62 = vadd.f32 %v2301_v46, %v2300_v5  ;;  %v13075_v42 = vld [vmem:[#allocation90_spill] sm:$0xff]  ;;  %v2222_v35 = vmul.f32 %v10477_v34, %v10477_v34  ;;  %v2311_v17 = vsel %vm48_vm0, %v2221_v6, 0.0 }
 0x206   :  { %v2148_v46 = vsel %vm48_vm0, %v13075_v42, 0.0 }
 0x207   :  { %v2143_v25 = vadd.f32 %v2142_v27, %v2141_v7  ;;  %v2304_v12 = vadd.f32 %v2303_v26, %v2302_v62  ;;  %v13076_v26 = vld [vmem:[#allocation91_spill] sm:$0xff]  ;;  %v2223_v62 = vmul.f32 %v10487_v45, %v10487_v45  ;;  %v2313_v37 = vsel %vm48_vm0, %v2222_v35, 0.0 }
 0x208   :  { %v2150_v7 = vsel %vm48_vm0, %v13076_v26, 0.0  ;;  %v2317_v35 = vsel %vm48_vm0, %v2224_v20, 0.0  ;;  %v2321_v20 = vsel %vm48_vm0, %v2226_v29, 0.0  ;;  %v2325_v29 = vsel %vm48_vm0, %v2228_v32, 0.0 }
 0x209   :  { %v2145_v47 = vadd.f32 %v2144_v23, %v2143_v25  ;;  %v2306_v19 = vadd.f32 %v2305_v16, %v2304_v12  ;;  %v13077_v25 = vld [vmem:[#allocation92_spill] sm:$0xff]  ;;  %v2315_v6 = vsel %vm48_vm0, %v2223_v62, 0.0  ;;  %v2319_v62 = vsel %vm48_vm0, %v2225_v30, 0.0 }
 0x20a   :  { %v2152_v12 = vsel %vm48_vm0, %v13077_v25, 0.0  ;;  %v2323_v30 = vsel %vm48_vm0, %v2227_v2, 0.0  ;;  %v2327_v2 = vsel %vm48_vm0, %v2229_v14, 0.0  ;;  %v2329_v32 = vsel %vm48_vm0, %v2230_v21, 0.0  ;;  %v13087_v21 = vld [vmem:[#allocation29_spill] sm:$0xff] }
 0x20b   :  { %v2147_v5 = vadd.f32 %v2146_v10, %v2145_v47  ;;  %v2308_v27 = vadd.f32 %v2307_v39, %v2306_v19  ;;  %v13078_v47 = vld [vmem:[#allocation49_spill] sm:$0xff]  ;;  %v2331_v14 = vsel %vm48_vm0, %v2231_v11, 0.0  ;;  %v2236_v11 = vmul.f32 %v13073_v9, %v13073_v9  ;;  %v13089_v9 = vld [vmem:[#allocation31_spill] sm:$0xff] }
 0x20c   :  { %v2154_v19 = vsel %vm48_vm0, %v13078_v47, 0.0 }
 0x20d   :  { %v2149_v23 = vadd.f32 %v2148_v46, %v2147_v5  ;;  %v2310_v16 = vadd.f32 %v2309_v52, %v2308_v27  ;;  %v13079_v5 = vld [vmem:[#allocation17_spill] sm:$0xff] }
 0x20e   :  { %v2156_v27 = vsel %vm48_vm0, %v13079_v5, 0.0 }
 0x20f   :  { %v2151_v10 = vadd.f32 %v2150_v7, %v2149_v23  ;;  %v2312_v39 = vadd.f32 %v2311_v17, %v2310_v16  ;;  %v13080_v23 = vld [vmem:[#allocation50_spill] sm:$0xff] }
 0x210   :  { %v2158_v16 = vsel %vm48_vm0, %v13080_v23, 0.0 }
 0x211   :  { %v2153_v46 = vadd.f32 %v2152_v12, %v2151_v10  ;;  %v2314_v52 = vadd.f32 %v2313_v37, %v2312_v39  ;;  %v13081_v10 = vld [vmem:[#allocation55_spill] sm:$0xff] }
 0x212   :  { %v2160_v39 = vsel %vm48_vm0, %v13081_v10, 0.0 }
 0x213   :  { %v2155_v7 = vadd.f32 %v2154_v19, %v2153_v46  ;;  %v2316_v17 = vadd.f32 %v2315_v6, %v2314_v52  ;;  %v13082_v46 = vld [vmem:[#allocation21_spill] sm:$0xff] }
 0x214   :  { %v2162_v52 = vsel %vm48_vm0, %v13082_v46, 0.0 }
 0x215   :  { %v2157_v12 = vadd.f32 %v2156_v27, %v2155_v7  ;;  %v2318_v37 = vadd.f32 %v2317_v35, %v2316_v17  ;;  %v13083_v7 = vld [vmem:[#allocation22_spill] sm:$0xff] }
 0x216   :  { %v2164_v17 = vsel %vm48_vm0, %v13083_v7, 0.0 }
 0x217   :  { %v2159_v19 = vadd.f32 %v2158_v16, %v2157_v12  ;;  %v2320_v6 = vadd.f32 %v2319_v62, %v2318_v37  ;;  %v13084_v12 = vld [vmem:[#allocation23_spill] sm:$0xff] }
 0x218   :  { %v2166_v37 = vsel %vm48_vm0, %v13084_v12, 0.0 }
 0x219   :  { %v2161_v27 = vadd.f32 %v2160_v39, %v2159_v19  ;;  %v2322_v35 = vadd.f32 %v2321_v20, %v2320_v6  ;;  %v13085_v19 = vld [vmem:[#allocation24_spill] sm:$0xff] }
 0x21a   :  { %v2168_v6 = vsel %vm48_vm0, %v13085_v19, 0.0 }
 0x21b   :  { %v2163_v16 = vadd.f32 %v2162_v52, %v2161_v27  ;;  %v2324_v62 = vadd.f32 %v2323_v30, %v2322_v35  ;;  %v13086_v27 = vld [vmem:[#allocation28_spill] sm:$0xff] }
 0x21c   :  { %v2170_v35 = vsel %vm48_vm0, %v13086_v27, 0.0 }
 0x21d   :  { %v2165_v39 = vadd.f32 %v2164_v17, %v2163_v16  ;;  %v2326_v20 = vadd.f32 %v2325_v29, %v2324_v62  ;;  %v2234_v16 = vmul.f32 %v13071_v59, %v13071_v59  ;;  %v2333_v62 = vsel %vm48_vm0, %v2232_v56, 0.0  ;;  %v13094_v59 = vld [vmem:[#allocation42_spill] sm:$0xff] }
 0x21f   :  { %v2167_v52 = vadd.f32 %v2166_v37, %v2165_v39  ;;  %v2328_v30 = vadd.f32 %v2327_v2, %v2326_v20  ;;  %v2172_v37 = vsel %vm48_vm0, %v13087_v21, 0.0  ;;  %v2235_v2 = vmul.f32 %v13072_v54, %v13072_v54  ;;  %v13093_v54 = vld [vmem:[#allocation38_spill] sm:$0xff] }
 0x220   :  { %v2335_v39 = vsel %vm48_vm0, %v2233_v36, 0.0  ;;  %v2238_v36 = vmul.f32 %v13075_v42, %v13075_v42  ;;  %v13090_v42 = vld [vmem:[#allocation35_spill] sm:$0xff] }
 0x221   :  { %v2169_v17 = vadd.f32 %v2168_v6, %v2167_v52  ;;  %v2330_v29 = vadd.f32 %v2329_v32, %v2328_v30  ;;  %v2337_v6 = vsel %vm48_vm0, %v2234_v16, 0.0  ;;  %v13088_v30 = vld [vmem:[#allocation30_spill] sm:$0xff]  ;;  %v2239_v16 = vmul.f32 %v13076_v26, %v13076_v26  ;;  %v13091_v26 = vld [vmem:[#allocation36_spill] sm:$0xff] }
 0x222   :  { %v2174_v56 = vsel %vm48_vm0, %v13088_v30, 0.0 }
 0x223   :  { %v2171_v49 = vadd.f32 %v2170_v35, %v2169_v17  ;;  %v2332_v45 = vadd.f32 %v2331_v14, %v2330_v29  ;;  %v2237_v35 = vmul.f32 %v13074_v63, %v13074_v63  ;;  %v2339_v14 = vsel %vm48_vm0, %v2235_v2, 0.0  ;;  %v13092_v63 = vld [vmem:[#allocation37_spill] sm:$0xff] }
 0x224   :  { %v2240_v2 = vmul.f32 %v13077_v25, %v13077_v25 }
 0x225   :  { %v2334_v20 = vadd.f32 %v2333_v62, %v2332_v45  ;;  %v2173_v32 = vadd.f32 %v2172_v37, %v2171_v49  ;;  %v2341_v45 = vsel %vm48_vm0, %v2236_v11, 0.0  ;;  %v2176_v49 = vsel %vm48_vm0, %v13089_v9, 0.0 }
 0x226   :  { %v2343_v37 = vsel %vm48_vm0, %v2237_v35, 0.0  ;;  %v2178_v11 = vsel %vm48_vm0, %v13090_v42, 0.0  ;;  %v2242_v35 = vmul.f32 %v13079_v5, %v13079_v5 }
 0x227   :  { %v2336_v52 = vadd.f32 %v2335_v39, %v2334_v20  ;;  %v2175_v29 = vadd.f32 %v2174_v56, %v2173_v32  ;;  %v2345_v20 = vsel %vm48_vm0, %v2238_v36, 0.0  ;;  %v2241_v32 = vmul.f32 %v13078_v47, %v13078_v47 }
 0x228   :  { %v2347_v56 = vsel %vm48_vm0, %v2239_v16, 0.0  ;;  %v2180_v36 = vsel %vm48_vm0, %v13091_v26, 0.0  ;;  %v2244_v16 = vmul.f32 %v13081_v10, %v13081_v10 }
 0x229   :  { %v2338_v17 = vadd.f32 %v2337_v6, %v2336_v52  ;;  %v2177_v6 = vadd.f32 %v2176_v49, %v2175_v29  ;;  %v2243_v29 = vmul.f32 %v13080_v23, %v13080_v23  ;;  %v2351_v49 = vsel %vm48_vm0, %v2241_v32, 0.0 }
 0x22a   :  { %v2246_v32 = vmul.f32 %v13083_v7, %v13083_v7 }
 0x22b   :  { %v2340_v62 = vadd.f32 %v2339_v14, %v2338_v17  ;;  %v2349_v17 = vsel %vm48_vm0, %v2240_v2, 0.0  ;;  %v2182_v2 = vsel %vm48_vm0, %v13092_v63, 0.0 }
 0x22d   :  { %v2342_v39 = vadd.f32 %v2341_v45, %v2340_v62  ;;  %v2179_v45 = vadd.f32 %v2178_v11, %v2177_v6  ;;  %v2245_v6 = vmul.f32 %v13082_v46, %v13082_v46  ;;  %v2355_v11 = vsel %vm48_vm0, %v2243_v29, 0.0 }
 0x22e   :  { %v2248_v29 = vmul.f32 %v13085_v19, %v13085_v19 }
 0x22f   :  { %v2344_v52 = vadd.f32 %v2343_v37, %v2342_v39  ;;  %v2353_v39 = vsel %vm48_vm0, %v2242_v35, 0.0  ;;  %v2184_v35 = vsel %vm48_vm0, %v13093_v54, 0.0 }
 0x231   :  { %v2346_v14 = vadd.f32 %v2345_v20, %v2344_v52  ;;  %v2181_v20 = vadd.f32 %v2180_v36, %v2179_v45  ;;  %v2247_v45 = vmul.f32 %v13084_v12, %v13084_v12  ;;  %v2359_v36 = vsel %vm48_vm0, %v2245_v6, 0.0 }
 0x232   :  { %v2250_v6 = vmul.f32 %v13087_v21, %v13087_v21 }
 0x233   :  { %v2348_v62 = vadd.f32 %v2347_v56, %v2346_v14  ;;  %v2357_v14 = vsel %vm48_vm0, %v2244_v16, 0.0  ;;  %v2186_v16 = vsel %vm48_vm0, %v13094_v59, 0.0 }
 0x235   :  { %v2350_v37 = vadd.f32 %v2349_v17, %v2348_v62  ;;  %v2183_v17 = vadd.f32 %v2182_v2, %v2181_v20  ;;  %v2249_v20 = vmul.f32 %v13086_v27, %v13086_v27  ;;  %v2363_v2 = vsel %vm48_vm0, %v2247_v45, 0.0 }
 0x237   :  { %v2352_v52 = vadd.f32 %v2351_v49, %v2350_v37  ;;  %v2361_v37 = vsel %vm48_vm0, %v2246_v32, 0.0  ;;  %v2251_v32 = vmul.f32 %v13088_v30, %v13088_v30 }
 0x239   :  { %v2354_v56 = vadd.f32 %v2353_v39, %v2352_v52  ;;  %v2185_v39 = vadd.f32 %v2184_v35, %v2183_v17  ;;  %v2367_v17 = vsel %vm48_vm0, %v2249_v20, 0.0 }
 0x23b   :  { %v2356_v62 = vadd.f32 %v2355_v11, %v2354_v56  ;;  %v2365_v56 = vsel %vm48_vm0, %v2248_v29, 0.0  ;;  %v2371_v29 = vsel %vm48_vm0, %v2251_v32, 0.0 }
 0x23d   :  { %v2358_v49 = vadd.f32 %v2357_v14, %v2356_v62  ;;  %v2187_v14 = vadd.f32 %v2186_v16, %v2185_v39  ;;  %v2254_v16 = vmul.f32 %v13091_v26, %v13091_v26 }
 0x23f   :  { %v2360_v52 = vadd.f32 %v2359_v36, %v2358_v49  ;;  %v2252_v36 = vmul.f32 %v13089_v9, %v13089_v9  ;;  %v2369_v49 = vsel %vm48_vm0, %v2250_v6, 0.0  ;;  %v2188_v45 = vrot.slane %v2187_v14, 4 }
 0x241   :  { %v2362_v11 = vadd.f32 %v2361_v37, %v2360_v52  ;;  %v2253_v52 = vmul.f32 %v13090_v42, %v13090_v42  ;;  %v2189_v20 = vadd.f32 %v2188_v45, %v2187_v14 }
 0x243   :  { %v2364_v62 = vadd.f32 %v2363_v2, %v2362_v11  ;;  %v2373_v2 = vsel %vm48_vm0, %v2252_v36, 0.0  ;;  %v2375_v6 = vsel %vm48_vm0, %v2253_v52, 0.0  ;;  %v2190_v32 = vrot.slane %v2189_v20, 2 }
 0x245   :  { %v2366_v35 = vadd.f32 %v2365_v56, %v2364_v62  ;;  %v2255_v56 = vmul.f32 %v13092_v63, %v13092_v63 }
 0x247   :  { %v2368_v37 = vadd.f32 %v2367_v17, %v2366_v35  ;;  %v2256_v17 = vmul.f32 %v13093_v54, %v13093_v54  ;;  %v2377_v35 = vsel %vm48_vm0, %v2254_v16, 0.0  ;;  %v2379_v36 = vsel %vm48_vm0, %v2255_v56, 0.0  ;;  %v10736_v16 = vld [vmem:[%s12244_s4 + $0x10] sm:$0xff]  }
 0x248   :  { %13095 = vst [vmem:[#allocation57_spill] sm:$0xff] %v10736_v16  ;;  %6803 = vmatprep.mubr.msk.bf16.mxu0 %vm48_vm0, %v10736_v16  ;;  %6823 = vmatprep.mubr.msk.bf16.mxu1 %vm48_vm0, %v10736_v16 }
 0x249   :  { %v2370_v39 = vadd.f32 %v2369_v49, %v2368_v37  ;;  %v2257_v37 = vmul.f32 %v13094_v59, %v13094_v59  ;;  %v2381_v45 = vsel %vm48_vm0, %v2256_v17, 0.0 }
 0x24b   :  { %v2372_v11 = vadd.f32 %v2371_v29, %v2370_v39  ;;  %v2191_v29 = vadd.f32 %v2190_v32, %v2189_v20  ;;  %v2383_v52 = vsel %vm48_vm0, %v2257_v37, 0.0 }
 0x24d   :  { %v2374_v62 = vadd.f32 %v2373_v2, %v2372_v11  ;;  %v2192_v11 = vrot.slane %v2191_v29, 1 }
 0x24f   :  { %v2376_v49 = vadd.f32 %v2375_v6, %v2374_v62  ;;  %v2193_v6 = vadd.f32 %v2192_v11, %v2191_v29  ;;  %v10747_v11 = vld [vmem:[#allocation2 + $0x9] sm:$0xff] }
 0x251   :  { %v2378_v14 = vadd.f32 %v2377_v35, %v2376_v49  ;;  %v2391_v17 = vmul.f32 0.001953125, %v2193_v6  ;;  %v2399_v6 = vld [vmem:[%s12246_s3] sm:$0x1] }
 0x253   :  { %v2380_v39 = vadd.f32 %v2379_v36, %v2378_v14  ;;  %v2393_v49 = vmul.f32 %v2391_v17, %v2391_v17 }
 0x255   :  { %v2382_v2 = vadd.f32 %v2381_v45, %v2380_v39  ;;  %v2403_v45 = vlaneseq }
 0x257   :  { %v2384_v63 = vadd.f32 %v2383_v52, %v2382_v2  ;;  %v2404_v39 = vshrl.u32 %v2403_v45, 7  ;;  %v10745_v2 = vld [vmem:[#allocation2 + $0x1] sm:$0xff] }
 0x259   :  { %v2385_v54 = vrot.slane %v2384_v63, 4 }
 0x25b   :  { %v2386_v62 = vadd.f32 %v2385_v54, %v2384_v63  ;;  %v2395_v54 = vld [vmem:[%s12245_s2] sm:$0x1]  ;;  %v2405_v63 = vsub.s32 0, %v2404_v39 }
 0x25c   :  { %v13096_v39 = vld [vmem:[#allocation19_spill] sm:$0xff] }
 0x25d   :  { %v2387_v20 = vrot.slane %v2386_v62, 2 }
 0x25f   :  { %v2388_v56 = vadd.f32 %v2387_v20, %v2386_v62 }
 0x261   :  { %v2389_v35 = vrot.slane %v2388_v56, 1 }
 0x263   :  { %v2390_v32 = vadd.f32 %v2389_v35, %v2388_v56 }
 0x265   :  { %v2392_v37 = vmul.f32 0.001953125, %v2390_v32 }
 0x267   :  { %v2394_v36 = vsub.f32 %v2392_v37, %v2393_v49 }
 0x269   :  { %v2396_v14 = vadd.f32 1e-05, %v2394_v36 }
 0x26b   :  { %7447 = vrsqrt.f32 %v2396_v14 }
 0x275   :  { %v7448_v29 = vpop.eup %7447 }
 0x276   :  { %v2398_v52 = vmul.f32 %v7448_v29, %v2395_v54  ;;  %v13097_v54 = vld [vmem:[#allocation80_spill] sm:$0xff]  ;;  %v13098_v29 = vld [vmem:[#allocation77_spill] sm:$0xff] }
 0x278   :  { %v2400_v62 = vmul.f32 %v2398_v52, %v2391_v17  ;;  %v10752_v20 = vrot.slane %v2398_v52, %v2405_v63 }
 0x27a   :  { %v2401_v35 = vsub.f32 %v2399_v6, %v2400_v62  ;;  %v2410_v32 = vmul.f32 %v10752_v20, %v10076_v38  ;;  %v2411_v49 = vmul.f32 %v10752_v20, %v10079_v31  ;;  %v2412_v37 = vmul.f32 %v10752_v20, %v10176_v44 }
 0x27b   :  { %v2413_v36 = vmul.f32 %v10752_v20, %v10194_v43  ;;  %v2414_v17 = vmul.f32 %v10752_v20, %v10210_v53  ;;  %v2415_v14 = vmul.f32 %v10752_v20, %v10225_v33  ;;  %v2416_v45 = vmul.f32 %v10752_v20, %v10240_v55 }
 0x27c   :  { %v2417_v38 = vmul.f32 %v10752_v20, %v10254_v28  ;;  %v2418_v31 = vmul.f32 %v10752_v20, %v10268_v24  ;;  %v2419_v44 = vmul.f32 %v10752_v20, %v10282_v15  ;;  %v2420_v43 = vmul.f32 %v10752_v20, %v10297_v4 }
 0x27d   :  { %v2421_v53 = vmul.f32 %v10752_v20, %v10312_v60  ;;  %v2422_v33 = vmul.f32 %v10752_v20, %v10327_v50  ;;  %v2423_v55 = vmul.f32 %v10752_v20, %v10342_v61  ;;  %v2424_v28 = vmul.f32 %v10752_v20, %v13063_v1 }
 0x27e   :  { %v2425_v24 = vmul.f32 %v10752_v20, %v10360_v41  ;;  %v2426_v15 = vmul.f32 %v10752_v20, %v10373_v48  ;;  %v2427_v4 = vmul.f32 %v10752_v20, %v10388_v0  ;;  %v2428_v60 = vmul.f32 %v10752_v20, %v10397_v40 }
 0x27f   :  { %v2429_v50 = vmul.f32 %v10752_v20, %v10410_v8  ;;  %v2430_v61 = vmul.f32 %v10752_v20, %v10418_v22  ;;  %v2431_v1 = vmul.f32 %v10752_v20, %v10428_v18  ;;  %v2432_v41 = vmul.f32 %v10752_v20, %v10437_v51 }
 0x280   :  { %v2433_v48 = vmul.f32 %v10752_v20, %v10447_v3  ;;  %v2434_v0 = vmul.f32 %v10752_v20, %v10457_v13  ;;  %v2435_v40 = vmul.f32 %v10752_v20, %v10467_v58  ;;  %v2436_v8 = vmul.f32 %v10752_v20, %v10477_v34 }
 0x281   :  { %v2437_v22 = vmul.f32 %v10752_v20, %v13096_v39  ;;  %v10814_v18 = vmul.f32 %v10752_v20, %v13097_v54  ;;  %v10816_v51 = vrot.slane %v2401_v35, %v2405_v63  ;;  %v10820_v3 = vmul.f32 %v10752_v20, %v13077_v25 }
 0x282   :  { %v10824_v13 = vmul.f32 %v10752_v20, %v13078_v47  ;;  %v10828_v58 = vmul.f32 %v10752_v20, %v13079_v5  ;;  %v10832_v34 = vmul.f32 %v10752_v20, %v13080_v23  ;;  %v10836_v63 = vmul.f32 %v10752_v20, %v13098_v29 }
 0x283   :  { %v2480_v52 = vadd.f32 %v10816_v51, %v2410_v32  ;;  %v2481_v25 = vadd.f32 %v10816_v51, %v2411_v49  ;;  %v2482_v6 = vadd.f32 %v10816_v51, %v2412_v37  ;;  %v2483_v47 = vadd.f32 %v10816_v51, %v2413_v36 }
 0x284   :  { %v2484_v62 = vadd.f32 %v10816_v51, %v2414_v17  ;;  %v2485_v5 = vadd.f32 %v10816_v51, %v2415_v14  ;;  %v2486_v35 = vadd.f32 %v10816_v51, %v2416_v45  ;;  %v2487_v23 = vadd.f32 %v10816_v51, %v2417_v38 }
 0x285   :  { %v2488_v39 = vadd.f32 %v10816_v51, %v2418_v31  ;;  %v2489_v54 = vadd.f32 %v10816_v51, %v2419_v44  ;;  %v2490_v32 = vadd.f32 %v10816_v51, %v2420_v43  ;;  %v2491_v49 = vadd.f32 %v10816_v51, %v2421_v53 }
 0x286   :  { %v2492_v37 = vadd.f32 %v10816_v51, %v2422_v33  ;;  %v2493_v36 = vadd.f32 %v10816_v51, %v2423_v55  ;;  %v2494_v17 = vadd.f32 %v10816_v51, %v2424_v28  ;;  %v2495_v14 = vadd.f32 %v10816_v51, %v2425_v24 }
 0x287   :  { %v2496_v45 = vadd.f32 %v10816_v51, %v2426_v15  ;;  %v2497_v38 = vadd.f32 %v10816_v51, %v2427_v4  ;;  %v2498_v31 = vadd.f32 %v10816_v51, %v2428_v60  ;;  %v2499_v44 = vadd.f32 %v10816_v51, %v2429_v50 }
 0x288   :  { %v2500_v43 = vadd.f32 %v10816_v51, %v2430_v61  ;;  %v2501_v53 = vadd.f32 %v10816_v51, %v2431_v1  ;;  %v2502_v33 = vadd.f32 %v10816_v51, %v2432_v41  ;;  %v2503_v55 = vadd.f32 %v10816_v51, %v2433_v48 }
 0x289   :  { %v2504_v28 = vadd.f32 %v10816_v51, %v2434_v0  ;;  %v2505_v24 = vadd.f32 %v10816_v51, %v2435_v40  ;;  %v2506_v15 = vadd.f32 %v10816_v51, %v2436_v8  ;;  %v2507_v4 = vadd.f32 %v10816_v51, %v2437_v22 }
 0x28a   :  { %v2544_v29 = vmax.f32 %v2480_v52, 0.0  ;;  %v2545_v60 = vmax.f32 %v2481_v25, 0.0  ;;  %v2546_v56 = vmax.f32 %v2482_v6, 0.0  ;;  %v2547_v50 = vmax.f32 %v2483_v47, 0.0 }
 0x28b   :  { %v2548_v59 = vmax.f32 %v2484_v62, 0.0  ;;  %v2549_v61 = vmax.f32 %v2485_v5, 0.0  ;;  %v2550_v16 = vmax.f32 %v2486_v35, 0.0  ;;  %v2551_v1 = vmax.f32 %v2487_v23, 0.0 }
 0x28c   :  { %v2552_v26 = vmax.f32 %v2488_v39, 0.0  ;;  %v2553_v41 = vmax.f32 %v2489_v54, 0.0  ;;  %v2554_v42 = vmax.f32 %v2490_v32, 0.0  ;;  %v2555_v48 = vmax.f32 %v2491_v49, 0.0  ;;  %2608 = vst.msk [vmem:[#allocation2 + $0x31] sm:$0xff] %vm48_vm0, %v2544_v29  ;;  %2609 = vst.msk [vmem:[#allocation2 + $0x39] sm:$0xff] %vm48_vm0, %v2545_v60 }
 0x28d   :  { %2610 = vst.msk [vmem:[#allocation2 + $0x49] sm:$0xff] %vm48_vm0, %v2546_v56  ;;  %2611 = vst.msk [vmem:[#allocation2 + $0x51] sm:$0xff] %vm48_vm0, %v2547_v50  ;;  %v2556_v0 = vmax.f32 %v2492_v37, 0.0  ;;  %v2557_v40 = vmax.f32 %v2493_v36, 0.0  ;;  %v2558_v8 = vmax.f32 %v2494_v17, 0.0  ;;  %v2559_v22 = vmax.f32 %v2495_v14, 0.0 }
 0x28e   :  { %2612 = vst.msk [vmem:[#allocation2 + $0x61] sm:$0xff] %vm48_vm0, %v2548_v59  ;;  %2613 = vst.msk [vmem:[#allocation2 + $0x69] sm:$0xff] %vm48_vm0, %v2549_v61  ;;  %v2560_v52 = vmax.f32 %v2496_v45, 0.0  ;;  %v2561_v25 = vmax.f32 %v2497_v38, 0.0  ;;  %v2562_v6 = vmax.f32 %v2498_v31, 0.0  ;;  %v2563_v47 = vmax.f32 %v2499_v44, 0.0 }
 0x28f   :  { %2614 = vst.msk [vmem:[#allocation2 + $0x79] sm:$0xff] %vm48_vm0, %v2550_v16  ;;  %2615 = vst.msk [vmem:[#allocation2 + $0x81] sm:$0xff] %vm48_vm0, %v2551_v1  ;;  %v2564_v56 = vmax.f32 %v2500_v43, 0.0  ;;  %v2565_v59 = vmax.f32 %v2501_v53, 0.0  ;;  %v2566_v62 = vmax.f32 %v2502_v33, 0.0  ;;  %v2567_v5 = vmax.f32 %v2503_v55, 0.0 }
 0x290   :  { %2616 = vst.msk [vmem:[#allocation2 + $0x91] sm:$0xff] %vm48_vm0, %v2552_v26  ;;  %2617 = vst.msk [vmem:[#allocation2 + $0x99] sm:$0xff] %vm48_vm0, %v2553_v41  ;;  %v2568_v16 = vmax.f32 %v2504_v28, 0.0  ;;  %v2569_v26 = vmax.f32 %v2505_v24, 0.0  ;;  %v2570_v35 = vmax.f32 %v2506_v15, 0.0  ;;  %v2571_v23 = vmax.f32 %v2507_v4, 0.0 }
 0x291   :  { %2618 = vst.msk [vmem:[#allocation2 + $0xa9] sm:$0xff] %vm48_vm0, %v2554_v42  ;;  %2619 = vst.msk [vmem:[#allocation2 + $0xb1] sm:$0xff] %vm48_vm0, %v2555_v48  ;;  %v2524_v42 = vadd.f32 %v10816_v51, %v10820_v3  ;;  %v2525_v39 = vadd.f32 %v10816_v51, %v10824_v13  ;;  %v2526_v54 = vadd.f32 %v10816_v51, %v10828_v58  ;;  %v13099_v49 = vld [vmem:[#allocation78_spill] sm:$0xff]  ;;  %v13100_v37 = vld [vmem:[#allocation5_spill] sm:$0xff] }
 0x292   :  { %2620 = vst.msk [vmem:[#allocation2 + $0xc1] sm:$0xff] %vm48_vm0, %v2556_v0  ;;  %2621 = vst.msk [vmem:[#allocation2 + $0xc9] sm:$0xff] %vm48_vm0, %v2557_v40  ;;  %v2527_v32 = vadd.f32 %v10816_v51, %v10832_v34  ;;  %v2409_v3 = vmul.f32 %v10752_v20, %v13099_v49  ;;  %v2478_v13 = vadd.f32 %v10816_v51, %v10836_v63  ;;  %v13101_v36 = vld [vmem:[#allocation79_spill] sm:$0xff]  ;;  %v2802_v63 = vld [vmem:[#allocation2 + $0x1b1] sm:$0xff] }
 0x293   :  { %2622 = vst.msk [vmem:[#allocation2 + $0xd9] sm:$0xff] %vm48_vm0, %v2558_v8  ;;  %2623 = vst.msk [vmem:[#allocation2 + $0xe1] sm:$0xff] %vm48_vm0, %v2559_v22  ;;  %v2440_v58 = vmul.f32 %v10752_v20, %v13100_v37  ;;  %v2441_v34 = vmul.f32 %v10752_v20, %v13101_v36  ;;  %v2588_v17 = vmax.f32 %v2524_v42, 0.0  ;;  %v2589_v14 = vmax.f32 %v2525_v39, 0.0  ;;  %v2803_v33 = vld [vmem:[#allocation2 + $0x1b9] sm:$0xff]  ;;  %v13102_v24 = vld [vmem:[#allocation81_spill] sm:$0xff] }
 0x294   :  { %2624 = vst.msk [vmem:[#allocation2 + $0xf1] sm:$0xff] %vm48_vm0, %v2560_v52  ;;  %2625 = vst.msk [vmem:[#allocation2 + $0xf9] sm:$0xff] %vm48_vm0, %v2561_v25  ;;  %v2590_v45 = vmax.f32 %v2526_v54, 0.0  ;;  %v2591_v38 = vmax.f32 %v2527_v32, 0.0  ;;  %v2479_v31 = vadd.f32 %v10816_v51, %v2409_v3  ;;  %v2542_v44 = vmax.f32 %v2478_v13, 0.0 }
 0x295   :  { %2626 = vst.msk [vmem:[#allocation2 + $0x109] sm:$0xff] %vm48_vm0, %v2562_v6  ;;  %2627 = vst.msk [vmem:[#allocation2 + $0x111] sm:$0xff] %vm48_vm0, %v2563_v47  ;;  %v2510_v43 = vadd.f32 %v10816_v51, %v2440_v58  ;;  %v2511_v53 = vadd.f32 %v10816_v51, %v2441_v34  ;;  %v2458_v55 = vmul.f32 %v10752_v20, %v13081_v10 }
 0x296   :  { %2628 = vst.msk [vmem:[#allocation2 + $0x121] sm:$0xff] %vm48_vm0, %v2564_v56  ;;  %2629 = vst.msk [vmem:[#allocation2 + $0x129] sm:$0xff] %vm48_vm0, %v2565_v59  ;;  %v2459_v28 = vmul.f32 %v10752_v20, %v13082_v46  ;;  %v2443_v15 = vmul.f32 %v10752_v20, %v13102_v24  ;;  %v2543_v50 = vmax.f32 %v2479_v31, 0.0  ;;  %v2512_v41 = vadd.f32 %v10816_v51, %v10814_v18  ;;  %v13104_v59 = vld [vmem:[#allocation82_spill] sm:$0xff] }
 0x297   :  { %2630 = vst.msk [vmem:[#allocation2 + $0x139] sm:$0xff] %vm48_vm0, %v2566_v62  ;;  %2631 = vst.msk [vmem:[#allocation2 + $0x141] sm:$0xff] %vm48_vm0, %v2567_v5  ;;  %v2574_v61 = vmax.f32 %v2510_v43, 0.0  ;;  %v2575_v1 = vmax.f32 %v2511_v53, 0.0  ;;  %v13103_v10 = vpack.c.bf16 %v10747_v11, %v10745_v2  ;;  %v2528_v40 = vadd.f32 %v10816_v51, %v2458_v55  ;;  %v13106_v55 = vld [vmem:[#allocation84_spill] sm:$0xff] }
 0x298   :  { %2632 = vst.msk [vmem:[#allocation2 + $0x151] sm:$0xff] %vm48_vm0, %v2568_v16  ;;  %2633 = vst.msk [vmem:[#allocation2 + $0x159] sm:$0xff] %vm48_vm0, %v2569_v26  ;;  %v2529_v8 = vadd.f32 %v10816_v51, %v2459_v28  ;;  %v2855_v22 = vpack.c.bf16 %v2803_v33, %v2802_v63  ;;  %v2513_v18 = vadd.f32 %v10816_v51, %v2443_v15  ;;  %v2576_v25 = vmax.f32 %v2512_v41, 0.0 }
 0x299   :  { %2634 = vst.msk [vmem:[#allocation2 + $0x169] sm:$0xff] %vm48_vm0, %v2570_v35  ;;  %2635 = vst.msk [vmem:[#allocation2 + $0x171] sm:$0xff] %vm48_vm0, %v2571_v23  ;;  %v2786_v4 = vld [vmem:[#allocation2 + $0xc1] sm:$0xff]  ;;  %v2787_v29 = vld [vmem:[#allocation2 + $0xc9] sm:$0xff]  ;;  %v2888_v46 = vsel %vm48_vm0, %v13103_v10, 0  ;;  %v2592_v2 = vmax.f32 %v2528_v40, 0.0  ;;  %v2460_v6 = vmul.f32 %v10752_v20, %v13083_v7  ;;  %v2461_v56 = vmul.f32 %v10752_v20, %v13084_v12 }
 0x29a   :  { %2652 = vst.msk [vmem:[#allocation2 + $0x271] sm:$0xff] %vm48_vm0, %v2588_v17  ;;  %2653 = vst.msk [vmem:[#allocation2 + $0x279] sm:$0xff] %vm48_vm0, %v2589_v14  ;;  %v2788_v60 = vld [vmem:[#allocation2 + $0xd9] sm:$0xff]  ;;  %v2847_v48 = vpack.c.bf16 %v2787_v29, %v2786_v4  ;;  %v2789_v0 = vld [vmem:[#allocation2 + $0xe1] sm:$0xff]  ;;  %v2593_v11 = vmax.f32 %v2529_v8, 0.0  ;;  %v2577_v47 = vmax.f32 %v2513_v18, 0.0  ;;  %v2444_v62 = vmul.f32 %v10752_v20, %v13104_v59 }
 0x29b   :  { %2654 = vst.msk [vmem:[#allocation2 + $0x289] sm:$0xff] %vm48_vm0, %v2590_v45  ;;  %2655 = vst.msk [vmem:[#allocation2 + $0x291] sm:$0xff] %vm48_vm0, %v2591_v38  ;;  %v2848_v52 = vpack.c.bf16 %v2789_v0, %v2788_v60  ;;  %v2790_v5 = vld [vmem:[#allocation2 + $0xf1] sm:$0xff]  ;;  %v2530_v16 = vadd.f32 %v10816_v51, %v2460_v6  ;;  %v13105_v7 = vld [vmem:[#allocation83_spill] sm:$0xff]  ;;  %v2462_v35 = vmul.f32 %v10752_v20, %v13085_v19  ;;  %v2936_v42 = vsel %vm48_vm0, %v2855_v22, 0 }
 0x29c   :  { %2606 = vst.msk [vmem:[#allocation2 + $0x19] sm:$0xff] %vm48_vm0, %v2542_v44  ;;  %2607 = vst.msk [vmem:[#allocation2 + $0x21] sm:$0xff] %vm48_vm0, %v2543_v50  ;;  %7275 = vmatprep.subr.msk.bf16.mxu0 %vm48_vm0, %v2847_v48  ;;  %v2445_v26 = vmul.f32 %v10752_v20, %v13105_v7  ;;  %v2531_v54 = vadd.f32 %v10816_v51, %v2461_v56  ;;  %v2514_v32 = vadd.f32 %v10816_v51, %v2444_v62  ;;  %v2791_v58 = vld [vmem:[#allocation2 + $0xf9] sm:$0xff]  ;;  %v2774_v14 = vld [vmem:[#allocation2 + $0x31] sm:$0xff] }
 0x29d   :  { %2638 = vst.msk [vmem:[#allocation2 + $0x1c9] sm:$0xff] %vm48_vm0, %v2574_v61  ;;  %2639 = vst.msk [vmem:[#allocation2 + $0x1d1] sm:$0xff] %vm48_vm0, %v2575_v1  ;;  %6788 = vmatpush3.bf16.xpose.msra.mxu0 %v2888_v46  ;;  %v2463_v49 = vmul.f32 %v10752_v20, %v13086_v27  ;;  %v2594_v36 = vmax.f32 %v2530_v16, 0.0  ;;  %v2532_v34 = vadd.f32 %v10816_v51, %v2462_v35  ;;  %v2775_v45 = vld [vmem:[#allocation2 + $0x39] sm:$0xff]  ;;  %v2792_v8 = vld [vmem:[#allocation2 + $0x109] sm:$0xff] }
 0x29e   :  { %2640 = vst.msk [vmem:[#allocation2 + $0x1e1] sm:$0xff] %vm48_vm0, %v2576_v25  ;;  %7276 = vmatprep.subr.msk.bf16.mxu0 %vm48_vm0, %v2848_v52  ;;  %2656 = vst.msk [vmem:[#allocation2 + $0x2a1] sm:$0xff] %vm48_vm0, %v2592_v2  ;;  %v2515_v19 = vadd.f32 %v10816_v51, %v2445_v26  ;;  %v2595_v38 = vmax.f32 %v2531_v54, 0.0  ;;  %v2578_v31 = vmax.f32 %v2514_v32, 0.0  ;;  %v2446_v28 = vmul.f32 %v10752_v20, %v13106_v55  ;;  %v13107_v18 = vld [vmem:[#allocation86_spill] sm:$0xff]  ;;  %v13108_v56 = vld [vmem:[#allocation87_spill] sm:$0xff] }
 0x29f   :  { %2657 = vst.msk [vmem:[#allocation2 + $0x2a9] sm:$0xff] %vm48_vm0, %v2593_v11  ;;  %2641 = vst.msk [vmem:[#allocation2 + $0x1e9] sm:$0xff] %vm48_vm0, %v2577_v47  ;;  %v2533_v44 = vadd.f32 %v10816_v51, %v2463_v49  ;;  %v2596_v33 = vmax.f32 %v2532_v34, 0.0  ;;  %v2849_v15 = vpack.c.bf16 %v2791_v58, %v2790_v5  ;;  %v2447_v29 = vmul.f32 %v10752_v20, %v13070_v57  ;;  %v2776_v32 = vld [vmem:[#allocation2 + $0x49] sm:$0xff]  ;;  %v2777_v49 = vld [vmem:[#allocation2 + $0x51] sm:$0xff] }
 0x2a0   :  { %2658 = vst.msk [vmem:[#allocation2 + $0x2b9] sm:$0xff] %vm48_vm0, %v2594_v36  ;;  %v2579_v63 = vmax.f32 %v2515_v19, 0.0  ;;  %2659 = vst.msk [vmem:[#allocation2 + $0x2c1] sm:$0xff] %vm48_vm0, %v2595_v38  ;;  %v2516_v50 = vadd.f32 %v10816_v51, %v2446_v28  ;;  %v2464_v61 = vmul.f32 %v10752_v20, %v13087_v21  ;;  %v2841_v10 = vpack.c.bf16 %v2775_v45, %v2774_v14  ;;  %v2793_v21 = vld [vmem:[#allocation2 + $0x111] sm:$0xff] }
 0x2a1   :  { %v2818_v23 = vld [vmem:[#allocation2 + $0x271] sm:$0xff]  ;;  %v2819_v12 = vld [vmem:[#allocation2 + $0x279] sm:$0xff]  ;;  %2642 = vst.msk [vmem:[#allocation2 + $0x1f9] sm:$0xff] %vm48_vm0, %v2578_v31  ;;  %v2597_v4 = vmax.f32 %v2533_v44, 0.0  ;;  %2660 = vst.msk [vmem:[#allocation2 + $0x2d1] sm:$0xff] %vm48_vm0, %v2596_v33  ;;  %v2517_v57 = vadd.f32 %v10816_v51, %v2447_v29  ;;  %v2465_v46 = vmul.f32 %v10752_v20, %v13088_v30  ;;  %v2448_v25 = vmul.f32 %v10752_v20, %v13107_v18 }
 0x2a2   :  { %v2820_v39 = vld [vmem:[#allocation2 + $0x289] sm:$0xff]  ;;  %v2863_v3 = vpack.c.bf16 %v2819_v12, %v2818_v23  ;;  %v2821_v13 = vld [vmem:[#allocation2 + $0x291] sm:$0xff]  ;;  %2643 = vst.msk [vmem:[#allocation2 + $0x201] sm:$0xff] %vm48_vm0, %v2579_v63  ;;  %v2580_v0 = vmax.f32 %v2516_v50, 0.0  ;;  %v2534_v40 = vadd.f32 %v10816_v51, %v2464_v61  ;;  %v2449_v59 = vmul.f32 %v10752_v20, %v13108_v56  ;;  %v13109_v23 = vld [vmem:[#allocation35_spill] sm:$0xff] }
 0x2a3   :  { %v2772_v37 = vld [vmem:[#allocation2 + $0x19] sm:$0xff]  ;;  %v2864_v17 = vpack.c.bf16 %v2821_v13, %v2820_v39  ;;  %v2773_v43 = vld [vmem:[#allocation2 + $0x21] sm:$0xff]  ;;  %2661 = vst.msk [vmem:[#allocation2 + $0x2d9] sm:$0xff] %vm48_vm0, %v2597_v4  ;;  %v2581_v22 = vmax.f32 %v2517_v57, 0.0  ;;  %v2535_v52 = vadd.f32 %v10816_v51, %v2465_v46  ;;  %v2894_v62 = vsel %vm48_vm0, %v2841_v10, 0  ;;  %v13111_v13 = vld [vmem:[#allocation89_spill] sm:$0xff] }
 0x2a4   :  { %7283 = vmatprep.subr.msk.bf16.mxu1 %vm48_vm0, %v2863_v3  ;;  %v2804_v27 = vld [vmem:[#allocation2 + $0x1c9] sm:$0xff]  ;;  %v2805_v53 = vld [vmem:[#allocation2 + $0x1d1] sm:$0xff]  ;;  %v2840_v24 = vpack.c.bf16 %v2773_v43, %v2772_v37  ;;  %2644 = vst.msk [vmem:[#allocation2 + $0x211] sm:$0xff] %vm48_vm0, %v2580_v0  ;;  %v2598_v30 = vmax.f32 %v2534_v40, 0.0  ;;  %v2518_v16 = vadd.f32 %v10816_v51, %v2448_v25  ;;  %v2466_v7 = vmul.f32 %v10752_v20, %v13089_v9  ;;  %v13115_v50 = vld [vmem:[#allocation91_spill] sm:$0xff] }
 0x2a5   :  { %6808 = vmatpush3.bf16.xpose.msra.mxu1 %v2936_v42  ;;  %v2856_v60 = vpack.c.bf16 %v2805_v53, %v2804_v27  ;;  %v2822_v41 = vld [vmem:[#allocation2 + $0x2a1] sm:$0xff]  ;;  %2645 = vst.msk [vmem:[#allocation2 + $0x219] sm:$0xff] %vm48_vm0, %v2581_v22  ;;  %v2599_v5 = vmax.f32 %v2535_v52, 0.0  ;;  %v2850_v26 = vpack.c.bf16 %v2793_v21, %v2792_v8  ;;  %v2519_v35 = vadd.f32 %v10816_v51, %v2449_v59  ;;  %v13113_v33 = vld [vmem:[#allocation37_spill] sm:$0xff]  ;;  %v13114_v29 = vld [vmem:[#allocation90_spill] sm:$0xff] }
 0x2a6   :  { %7284 = vmatprep.subr.msk.bf16.mxu1 %vm48_vm0, %v2864_v17  ;;  %v2891_v1 = vsel %vm48_vm0, %v2840_v24, 0  ;;  %v2823_v48 = vld [vmem:[#allocation2 + $0x2a9] sm:$0xff]  ;;  %v2806_v6 = vld [vmem:[#allocation2 + $0x1e1] sm:$0xff]  ;;  %2662 = vst.msk [vmem:[#allocation2 + $0x2e9] sm:$0xff] %vm48_vm0, %v2598_v30  ;;  %v2467_v12 = vmul.f32 %v10752_v20, %v13109_v23  ;;  %v2582_v3 = vmax.f32 %v2518_v16, 0.0  ;;  %v2536_v9 = vadd.f32 %v10816_v51, %v2466_v7  ;;  %v2796_v56 = vld [vmem:[#allocation2 + $0x139] sm:$0xff] }
 0x2a7   :  { %6790 = vmatpush3.bf16.xpose.msra.mxu0 %v2891_v1  ;;  %v2939_v2 = vsel %vm48_vm0, %v2856_v60, 0  ;;  %v2865_v11 = vpack.c.bf16 %v2823_v48, %v2822_v41  ;;  %v2807_v47 = vld [vmem:[#allocation2 + $0x1e9] sm:$0xff]  ;;  %2663 = vst.msk [vmem:[#allocation2 + $0x2f1] sm:$0xff] %vm48_vm0, %v2599_v5  ;;  %v2451_v37 = vmul.f32 %v10752_v20, %v13111_v13  ;;  %v2583_v58 = vmax.f32 %v2519_v35, 0.0  ;;  %v2824_v19 = vld [vmem:[#allocation2 + $0x2b9] sm:$0xff]  ;;  %v2825_v34 = vld [vmem:[#allocation2 + $0x2c1] sm:$0xff] }
 0x2a8   :  { %7277 = vmatprep.subr.msk.bf16.mxu0 %vm48_vm0, %v2849_v15  ;;  %v13110_v42 = vld [vmem:[#allocation88_spill] sm:$0xff]  ;;  %v2857_v54 = vpack.c.bf16 %v2807_v47, %v2806_v6  ;;  %v2537_v36 = vadd.f32 %v10816_v51, %v2467_v12  ;;  %2646 = vst.msk [vmem:[#allocation2 + $0x229] sm:$0xff] %vm48_vm0, %v2582_v3  ;;  %v2600_v17 = vmax.f32 %v2536_v9, 0.0  ;;  %v2842_v38 = vpack.c.bf16 %v2777_v49, %v2776_v32  ;;  %v2808_v1 = vld [vmem:[#allocation2 + $0x1f9] sm:$0xff]  ;;  %v2798_v49 = vld [vmem:[#allocation2 + $0x151] sm:$0xff] }
 0x2a9   :  { %v2450_v39 = vmul.f32 %v10752_v20, %v13110_v42  ;;  %v2521_v45 = vadd.f32 %v10816_v51, %v2451_v37  ;;  %2647 = vst.msk [vmem:[#allocation2 + $0x231] sm:$0xff] %vm48_vm0, %v2583_v58  ;;  %v13112_v44 = vld [vmem:[#allocation36_spill] sm:$0xff]  ;;  %v2469_v55 = vmul.f32 %v10752_v20, %v13113_v33  ;;  %v2866_v28 = vpack.c.bf16 %v2825_v34, %v2824_v19  ;;  %v2780_v35 = vld [vmem:[#allocation2 + $0x79] sm:$0xff]  ;;  %v2782_v19 = vld [vmem:[#allocation2 + $0x91] sm:$0xff] }
 0x2aa   :  { %v2601_v31 = vmax.f32 %v2537_v36, 0.0  ;;  %v2468_v43 = vmul.f32 %v10752_v20, %v13112_v44  ;;  %v2942_v27 = vsel %vm48_vm0, %v2857_v54, 0  ;;  %2664 = vst.msk [vmem:[#allocation2 + $0x301] sm:$0xff] %vm48_vm0, %v2600_v17  ;;  %v2794_v24 = vld [vmem:[#allocation2 + $0x121] sm:$0xff]  ;;  %v2795_v15 = vld [vmem:[#allocation2 + $0x129] sm:$0xff]  ;;  %v2452_v60 = vmul.f32 %v10752_v20, %v13114_v29  ;;  %v2799_v3 = vld [vmem:[#allocation2 + $0x159] sm:$0xff] }
 0x2ab   :  { %v2520_v14 = vadd.f32 %v10816_v51, %v2450_v39  ;;  %v2585_v63 = vmax.f32 %v2521_v45, 0.0  ;;  %v2453_v61 = vmul.f32 %v10752_v20, %v13115_v50  ;;  %v2809_v41 = vld [vmem:[#allocation2 + $0x201] sm:$0xff]  ;;  %v2539_v48 = vadd.f32 %v10816_v51, %v2469_v55  ;;  %v2779_v52 = vld [vmem:[#allocation2 + $0x69] sm:$0xff]  ;;  %v2783_v34 = vld [vmem:[#allocation2 + $0x99] sm:$0xff] }
 0x2ac   :  { %2665 = vst.msk [vmem:[#allocation2 + $0x309] sm:$0xff] %vm48_vm0, %v2601_v31  ;;  %v2538_v4 = vadd.f32 %v10816_v51, %v2468_v43  ;;  %v2522_v57 = vadd.f32 %v10816_v51, %v2452_v60  ;;  %v2897_v0 = vsel %vm48_vm0, %v2842_v38, 0  ;;  %v2851_v40 = vpack.c.bf16 %v2795_v15, %v2794_v24  ;;  %v2778_v22 = vld [vmem:[#allocation2 + $0x61] sm:$0xff]  ;;  %v2811_v5 = vld [vmem:[#allocation2 + $0x219] sm:$0xff]  ;;  %v2800_v44 = vld [vmem:[#allocation2 + $0x169] sm:$0xff] }
 0x2ad   :  { %6810 = vmatpush3.bf16.xpose.msra.mxu1 %v2939_v2  ;;  %v2584_v53 = vmax.f32 %v2520_v14, 0.0  ;;  %2649 = vst.msk [vmem:[#allocation2 + $0x249] sm:$0xff] %vm48_vm0, %v2585_v63  ;;  %v2523_v46 = vadd.f32 %v10816_v51, %v2453_v61  ;;  %v2603_v8 = vmax.f32 %v2539_v48, 0.0  ;;  %v2858_v21 = vpack.c.bf16 %v2809_v41, %v2808_v1  ;;  %v2826_v2 = vld [vmem:[#allocation2 + $0x2d1] sm:$0xff]  ;;  %v2797_v59 = vld [vmem:[#allocation2 + $0x141] sm:$0xff]  ;;  %v2828_v12 = vld [vmem:[#allocation2 + $0x2e9] sm:$0xff] }
 0x2ae   :  { %7285 = vmatprep.subr.msk.bf16.mxu1 %vm48_vm0, %v2865_v11  ;;  %v2602_v10 = vmax.f32 %v2538_v4, 0.0  ;;  %v2586_v18 = vmax.f32 %v2522_v57, 0.0  ;;  %v2827_v11 = vld [vmem:[#allocation2 + $0x2d9] sm:$0xff]  ;;  %v2843_v6 = vpack.c.bf16 %v2779_v52, %v2778_v22  ;;  %v2852_v7 = vpack.c.bf16 %v2797_v59, %v2796_v56  ;;  %v2781_v23 = vld [vmem:[#allocation2 + $0x81] sm:$0xff]  ;;  %v2829_v42 = vld [vmem:[#allocation2 + $0x2f1] sm:$0xff] }
 0x2af   :  { %6792 = vmatpush3.bf16.xpose.msra.mxu0 %v2894_v62  ;;  %2648 = vst.msk [vmem:[#allocation2 + $0x241] sm:$0xff] %vm48_vm0, %v2584_v53  ;;  %v2587_v25 = vmax.f32 %v2523_v46, 0.0  ;;  %2667 = vst.msk [vmem:[#allocation2 + $0x321] sm:$0xff] %vm48_vm0, %v2603_v8  ;;  %v2945_v47 = vsel %vm48_vm0, %v2858_v21, 0  ;;  %v2867_v30 = vpack.c.bf16 %v2827_v11, %v2826_v2  ;;  %v2810_v62 = vld [vmem:[#allocation2 + $0x211] sm:$0xff]  ;;  %v2844_v39 = vpack.c.bf16 %v2781_v23, %v2780_v35  ;;  %v2812_v9 = vld [vmem:[#allocation2 + $0x229] sm:$0xff] }
 0x2b0   :  { %7278 = vmatprep.subr.msk.bf16.mxu0 %vm48_vm0, %v2850_v26  ;;  %2666 = vst.msk [vmem:[#allocation2 + $0x319] sm:$0xff] %vm48_vm0, %v2602_v10  ;;  %2650 = vst.msk [vmem:[#allocation2 + $0x259] sm:$0xff] %vm48_vm0, %v2586_v18  ;;  %v2900_v16 = vsel %vm48_vm0, %v2843_v6, 0  ;;  %v2859_v26 = vpack.c.bf16 %v2811_v5, %v2810_v62  ;;  %v2868_v32 = vpack.c.bf16 %v2829_v42, %v2828_v12  ;;  %v2813_v13 = vld [vmem:[#allocation2 + $0x231] sm:$0xff]  ;;  %v2686_v61 = vld [vmem:[#allocation2 + $0xc0] sm:$0xff] }
 0x2b1   :  { %2651 = vst.msk [vmem:[#allocation2 + $0x261] sm:$0xff] %vm48_vm0, %v2587_v25  ;;  %v2903_v37 = vsel %vm48_vm0, %v2844_v39, 0  ;;  %v2853_v58 = vpack.c.bf16 %v2799_v3, %v2798_v49  ;;  %v2860_v36 = vpack.c.bf16 %v2813_v13, %v2812_v9  ;;  %v2830_v17 = vld [vmem:[#allocation2 + $0x301] sm:$0xff]  ;;  %v2845_v45 = vpack.c.bf16 %v2783_v34, %v2782_v19  ;;  %v2801_v43 = vld [vmem:[#allocation2 + $0x171] sm:$0xff] }
 0x2b2   :  { %v2948_v54 = vsel %vm48_vm0, %v2859_v26, 0  ;;  %v2854_v33 = vpack.c.bf16 %v2801_v43, %v2800_v44  ;;  %v2785_v24 = vld [vmem:[#allocation2 + $0xb1] sm:$0xff]  ;;  %v2687_v1 = vld [vmem:[#allocation2 + $0xc8] sm:$0xff]  ;;  %v2689_v2 = vld [vmem:[#allocation2 + $0xe0] sm:$0xff] }
 0x2b3   :  { %v2831_v14 = vld [vmem:[#allocation2 + $0x309] sm:$0xff]  ;;  %v2951_v38 = vsel %vm48_vm0, %v2860_v36, 0  ;;  %v2906_v63 = vsel %vm48_vm0, %v2845_v45, 0  ;;  %v11049_v57 = vpack.c.bf16 %v2687_v1, %v2686_v61  ;;  %v2719_v21 = vld [vmem:[#allocation2 + $0x278] sm:$0xff]  ;;  %v2673_v5 = vld [vmem:[#allocation2 + $0x20] sm:$0xff] }
 0x2b4   :  { %v2869_v31 = vpack.c.bf16 %v2831_v14, %v2830_v17  ;;  %v2815_v53 = vld [vmem:[#allocation2 + $0x249] sm:$0xff]  ;;  %v2688_v25 = vld [vmem:[#allocation2 + $0xd8] sm:$0xff]  ;;  %v11078_v49 = vld [vmem:[%s12244_s4] sm:$0xff]  }
 0x2b5   :  { %6812 = vmatpush3.bf16.xpose.msra.mxu1 %v2942_v27  ;;  %v2718_v8 = vld [vmem:[#allocation2 + $0x270] sm:$0xff]  ;;  %v2703_v6 = vld [vmem:[#allocation2 + $0x1b8] sm:$0xff]  ;;  %v11061_v56 = vpack.c.bf16 %v2689_v2, %v2688_v25  ;;  %v2722_v36 = vld [vmem:[#allocation2 + $0x2a0] sm:$0xff] }
 0x2b6   :  { %7286 = vmatprep.subr.msk.bf16.mxu1 %vm48_vm0, %v2866_v28  ;;  %v2814_v27 = vld [vmem:[#allocation2 + $0x241] sm:$0xff]  ;;  %v2784_v28 = vld [vmem:[#allocation2 + $0xa9] sm:$0xff]  ;;  %v11055_v18 = vpack.c.bf16 %v2719_v21, %v2718_v8  ;;  %v2672_v62 = vld [vmem:[#allocation2 + $0x18] sm:$0xff] }
 0x2b7   :  { %6794 = vmatpush3.bf16.xpose.msra.mxu0 %v2897_v0  ;;  %v2861_v55 = vpack.c.bf16 %v2815_v53, %v2814_v27  ;;  %v2832_v15 = vld [vmem:[#allocation2 + $0x319] sm:$0xff]  ;;  %v2833_v4 = vld [vmem:[#allocation2 + $0x321] sm:$0xff]  ;;  %v2846_v29 = vpack.c.bf16 %v2785_v24, %v2784_v28  ;;  %v2702_v11 = vld [vmem:[#allocation2 + $0x1b0] sm:$0xff]  ;;  %v2739_v35 = vpack.c.bf16 %v2673_v5, %v2672_v62 }
 0x2b8   :  { %7279 = vmatprep.subr.msk.bf16.mxu0 %vm48_vm0, %v2851_v40  ;;  %v2870_v50 = vpack.c.bf16 %v2833_v4, %v2832_v15  ;;  %v2816_v41 = vld [vmem:[#allocation2 + $0x259] sm:$0xff]  ;;  %v2817_v48 = vld [vmem:[#allocation2 + $0x261] sm:$0xff]  ;;  %v2754_v59 = vpack.c.bf16 %v2703_v6, %v2702_v11  ;;  %v2721_v26 = vld [vmem:[#allocation2 + $0x290] sm:$0xff] }
 0x2b9   :  { %v2954_v60 = vsel %vm48_vm0, %v2861_v55, 0  ;;  %v2909_v10 = vsel %vm48_vm0, %v2846_v29, 0  ;;  %v2862_v46 = vpack.c.bf16 %v2817_v48, %v2816_v41  ;;  %v2670_v0 = vld [vmem:[#allocation2] sm:$0xff]  ;;  %v2671_v40 = vld [vmem:[#allocation2 + $0x8] sm:$0xff]  ;;  %v2690_v42 = vld [vmem:[#allocation2 + $0xf0] sm:$0xff]  ;;  %v11081_v3 = vsel %vm48_vm0, %v2739_v35, 0 }
 0x2ba   :  { %v2738_v22 = vpack.c.bf16 %v2671_v40, %v2670_v0  ;;  %v3154_v23 = vsel %vm48_vm0, %v2754_v59, 0  ;;  %v2691_v39 = vld [vmem:[#allocation2 + $0xf8] sm:$0xff]  ;;  %v2723_v19 = vld [vmem:[#allocation2 + $0x2a8] sm:$0xff]  ;;  %v2725_v28 = vld [vmem:[#allocation2 + $0x2c0] sm:$0xff] }
 0x2bb   :  { %v2957_v52 = vsel %vm48_vm0, %v2862_v46, 0  ;;  %v11083_v9 = vpack.c.bf16 %v2691_v39, %v2690_v42  ;;  %v11097_v14 = vpack.c.bf16 %v2723_v19, %v2722_v36  ;;  %v2692_v45 = vld [vmem:[#allocation2 + $0x108] sm:$0xff]  ;;  %v2724_v55 = vld [vmem:[#allocation2 + $0x2b8] sm:$0xff]  ;;  %v2694_v29 = vld [vmem:[#allocation2 + $0x120] sm:$0xff] }
 0x2bc   :  { %v2707_v44 = vld [vmem:[#allocation2 + $0x1e8] sm:$0xff]  ;;  %v11116_v4 = vpack.c.bf16 %v2725_v28, %v2724_v55  ;;  %v2709_v61 = vld [vmem:[#allocation2 + $0x200] sm:$0xff]  ;;  %v2726_v0 = vld [vmem:[#allocation2 + $0x2d0] sm:$0xff] }
 0x2bd   :  { %6814 = vmatpush3.bf16.xpose.msra.mxu1 %v2945_v47  ;;  %v7424_v47 = vld [vmem:[%s12244_s4 + $0x18] sm:$0xff]   ;;  %v2679_v46 = vld [vmem:[#allocation2 + $0x68] sm:$0xff]  ;;  %v2697_v25 = vld [vmem:[#allocation2 + $0x140] sm:$0xff] }
 0x2be   :  { %7287 = vmatprep.subr.msk.bf16.mxu1 %vm48_vm0, %v2867_v30  ;;  %v3106_v30 = vsel %vm48_vm0, %v2738_v22, 0  ;;  %v2727_v40 = vld [vmem:[#allocation2 + $0x2d8] sm:$0xff]  ;;  %v2710_v2 = vld [vmem:[#allocation2 + $0x210] sm:$0xff]  ;;  %v2681_v62 = vld [vmem:[#allocation2 + $0x80] sm:$0xff] }
 0x2bf   :  { %6796 = vmatpush3.bf16.xpose.msra.mxu0 %v2900_v16  ;;  %v13116_v16 = vld [vmem:[#allocation57_spill] sm:$0xff]  ;;  %v11132_v22 = vpack.c.bf16 %v2727_v40, %v2726_v0  ;;  %v2711_v11 = vld [vmem:[#allocation2 + $0x218] sm:$0xff]  ;;  %v2728_v5 = vld [vmem:[#allocation2 + $0x2e8] sm:$0xff] }
 0x2c0   :  { %7280 = vmatprep.subr.msk.bf16.mxu0 %vm48_vm0, %v2852_v7  ;;  %v2720_v7 = vld [vmem:[#allocation2 + $0x288] sm:$0xff]  ;;  %v2680_v59 = vld [vmem:[#allocation2 + $0x78] sm:$0xff]  ;;  %v2730_v19 = vld [vmem:[#allocation2 + $0x300] sm:$0xff] }
 0x2c1   :  { %v11071_v12 = vpack.c.bf16 %v2721_v26, %v2720_v7  ;;  %v2743_v7 = vpack.c.bf16 %v2681_v62, %v2680_v59  ;;  %v2699_v42 = vld [vmem:[#allocation2 + $0x158] sm:$0xff]  ;;  %v2712_v39 = vld [vmem:[#allocation2 + $0x228] sm:$0xff] }
 0x2c2   :  { %v2683_v36 = vld [vmem:[#allocation2 + $0x98] sm:$0xff]  ;;  %v13117_v55 = vld [vmem:[#allocation20_spill] sm:$0xff] }
 0x2c3   :  { %v2438_v28 = vmul.f32 %v10752_v20, %v13117_v55  ;;  %v2684_v40 = vld [vmem:[#allocation2 + $0xa8] sm:$0xff] }
 0x2c5   :  { %6816 = vmatpush3.bf16.xpose.msra.mxu1 %v2948_v54  ;;  %v2704_v54 = vld [vmem:[#allocation2 + $0x1c8] sm:$0xff] }
 0x2c6   :  { %7288 = vmatprep.subr.msk.bf16.mxu1 %vm48_vm0, %v2868_v32  ;;  %v2705_v32 = vld [vmem:[#allocation2 + $0x1d0] sm:$0xff] }
 0x2c7   :  { %6798 = vmatpush3.bf16.xpose.msra.mxu0 %v2903_v37  ;;  %v2755_v13 = vpack.c.bf16 %v2705_v32, %v2704_v54  ;;  %v2674_v37 = vld [vmem:[#allocation2 + $0x30] sm:$0xff]  ;;  %v11152_v32 = vsel %vm48_vm0, %v2743_v7, 0 }
 0x2c8   :  { %7281 = vmatprep.subr.msk.bf16.mxu0 %vm48_vm0, %v2853_v58  ;;  %v2675_v58 = vld [vmem:[#allocation2 + $0x38] sm:$0xff]  ;;  %v2713_v54 = vld [vmem:[#allocation2 + $0x230] sm:$0xff] }
 0x2c9   :  { %v2740_v34 = vpack.c.bf16 %v2675_v58, %v2674_v37  ;;  %v11095_v17 = vsel %vm48_vm0, %v2755_v13, 0  ;;  %v2759_v37 = vpack.c.bf16 %v2713_v54, %v2712_v39  ;;  %v2682_v58 = vld [vmem:[#allocation2 + $0x90] sm:$0xff]  ;;  %v3323_v39 = vld [vmem:[#allocation2 + $0xc2] sm:$0xff] }
 0x2ca   :  { %v3324_v54 = vld [vmem:[#allocation2 + $0xca] sm:$0xff] }
 0x2cb   :  { %v11102_v43 = vsel %vm48_vm0, %v2740_v34, 0  ;;  %v2731_v34 = vld [vmem:[#allocation2 + $0x308] sm:$0xff] }
 0x2cd   :  { %6818 = vmatpush3.bf16.xpose.msra.mxu1 %v2951_v38  ;;  %v2693_v38 = vld [vmem:[#allocation2 + $0x110] sm:$0xff] }
 0x2ce   :  { %7289 = vmatprep.subr.msk.bf16.mxu1 %vm48_vm0, %v2869_v31  ;;  %v2706_v31 = vld [vmem:[#allocation2 + $0x1e0] sm:$0xff]  ;;  %v11104_v27 = vpack.c.bf16 %v2693_v38, %v2692_v45  ;;  %v2744_v45 = vpack.c.bf16 %v2683_v36, %v2682_v58  ;;  %v3384_v36 = vpack.c.bf16 %v3324_v54, %v3323_v39 }
 0x2cf   :  { %6800 = vmatpush3.bf16.xpose.msra.mxu0 %v2906_v63  ;;  %v2756_v53 = vpack.c.bf16 %v2707_v44, %v2706_v31  ;;  %v2676_v63 = vld [vmem:[#allocation2 + $0x48] sm:$0xff]  ;;  %v2714_v38 = vld [vmem:[#allocation2 + $0x240] sm:$0xff]  ;;  %v11162_v31 = vsel %vm48_vm0, %v2759_v37, 0  ;;  %v11164_v44 = vpack.c.bf16 %v2731_v34, %v2730_v19 }
 0x2d0   :  { %7282 = vmatprep.subr.msk.bf16.mxu0 %vm48_vm0, %v2854_v33  ;;  %v2677_v33 = vld [vmem:[#allocation2 + $0x50] sm:$0xff]  ;;  %v2717_v37 = vld [vmem:[#allocation2 + $0x260] sm:$0xff] }
 0x2d1   :  { %v2741_v24 = vpack.c.bf16 %v2677_v33, %v2676_v63  ;;  %v11114_v15 = vsel %vm48_vm0, %v2756_v53, 0  ;;  %v2715_v53 = vld [vmem:[#allocation2 + $0x248] sm:$0xff]  ;;  %v2701_v33 = vld [vmem:[#allocation2 + $0x170] sm:$0xff] }
 0x2d2   :  { %v2700_v63 = vld [vmem:[#allocation2 + $0x168] sm:$0xff] }
 0x2d3   :  { %v11120_v1 = vsel %vm48_vm0, %v2741_v24, 0  ;;  %v13118_v24 = vld [vmem:[#allocation56_spill] sm:$0xff]  ;;  %v11178_v0 = vpack.c.bf16 %v2701_v33, %v2700_v63 }
 0x2d4   :  { %v3307_v34 = vld [vmem:[#allocation2 + $0x2] sm:$0xff] }
 0x2d5   :  { %6820 = vmatpush3.bf16.xpose.msra.mxu1 %v2954_v60  ;;  %v2695_v60 = vld [vmem:[#allocation2 + $0x128] sm:$0xff] }
 0x2d6   :  { %7290 = vmatprep.subr.msk.bf16.mxu1 %vm48_vm0, %v2870_v50  ;;  %v2708_v50 = vld [vmem:[#allocation2 + $0x1f8] sm:$0xff]  ;;  %v11122_v41 = vpack.c.bf16 %v2695_v60, %v2694_v29  ;;  %v2439_v29 = vmul.f32 %v10752_v20, %v13118_v24  ;;  %v3326_v24 = vld [vmem:[#allocation2 + $0xe2] sm:$0xff] }
 0x2d7   :  { %6802 = vmatpush3.bf16.xpose.msra.mxu0 %v2909_v10  ;;  %v2757_v48 = vpack.c.bf16 %v2709_v61, %v2708_v50  ;;  %v2678_v10 = vld [vmem:[#allocation2 + $0x60] sm:$0xff]  ;;  %v13119_v60 = vld [vmem:[#allocation38_spill] sm:$0xff] }
 0x2d8   :  { %7291 = vmatprep.subr.msk.bf16.mxu0 %vm48_vm0, %v11049_v57  ;;  %v2742_v8 = vpack.c.bf16 %v2679_v46, %v2678_v10  ;;  %v2470_v50 = vmul.f32 %v10752_v20, %v13119_v60  ;;  %v13120_v61 = vld [vmem:[#allocation42_spill] sm:$0xff]  ;;  %v11176_v10 = vsel %vm48_vm0, %v2744_v45, 0  ;;  %v2760_v46 = vpack.c.bf16 %v2715_v53, %v2714_v38  ;;  %v3308_v45 = vld [vmem:[#allocation2 + $0xa] sm:$0xff] }
 0x2d9   :  { %v11130_v21 = vsel %vm48_vm0, %v2757_v48, 0  ;;  %v2471_v48 = vmul.f32 %v10752_v20, %v13120_v61  ;;  %v3355_v38 = vld [vmem:[#allocation2 + $0x272] sm:$0xff]  ;;  %v3356_v53 = vld [vmem:[#allocation2 + $0x27a] sm:$0xff]  ;;  %v3376_v63 = vpack.c.bf16 %v3308_v45, %v3307_v34 }
 0x2da   :  { %v11136_v6 = vsel %vm48_vm0, %v2742_v8, 0  ;;  %v2685_v8 = vld [vmem:[#allocation2 + $0xb0] sm:$0xff]  ;;  %v3400_v55 = vpack.c.bf16 %v3356_v53, %v3355_v38  ;;  %v3340_v60 = vld [vmem:[#allocation2 + $0x1ba] sm:$0xff] }
 0x2db   :  { %v2541_v20 = vadd.f32 %v10816_v51, %v2471_v48  ;;  %v2745_v7 = vpack.c.bf16 %v2685_v8, %v2684_v40  ;;  %v3425_v61 = vsel %vm48_vm0, %v3376_v63, 0  ;;  %v3309_v40 = vld [vmem:[#allocation2 + $0x1a] sm:$0xff]  ;;  %v3310_v8 = vld [vmem:[#allocation2 + $0x22] sm:$0xff]  ;;  %v3329_v38 = vld [vmem:[#allocation2 + $0x10a] sm:$0xff] }
 0x2dc   :  { %v3330_v53 = vld [vmem:[#allocation2 + $0x112] sm:$0xff]  ;;  %v3343_v63 = vld [vmem:[#allocation2 + $0x1e2] sm:$0xff] }
 0x2dd   :  { %6822 = vmatpush3.bf16.xpose.msra.mxu1 %v2957_v52  ;;  %v2696_v52 = vld [vmem:[#allocation2 + $0x138] sm:$0xff]  ;;  %v11200_v58 = vsel %vm48_vm0, %v2745_v7, 0 }
 0x2de   :  { %7299 = vmatprep.subr.msk.bf16.mxu1 %vm48_vm0, %v11055_v18  ;;  %6804 = vmatmul.mubr.msk.bf16.vlgmr.msra.gmra.mrb[0].mxu0 %vm48_vm0, %v13116_v16 }
 0x2df   :  { %6828 = vmatpush3.bf16.xpose.msra.mxu0 %v3106_v30  ;;  %6805 = vmatprep.mubr.msk.bf16.mxu0 %vm48_vm0, %v7424_v47  ;;  %v2758_v30 = vpack.c.bf16 %v2711_v11, %v2710_v2  ;;  %v2540_v2 = vadd.f32 %v10816_v51, %v2470_v50  ;;  %v2732_v11 = vld [vmem:[#allocation2 + $0x318] sm:$0xff]  ;;  %v7426_v50 = vld [vmem:[%s12244_s4 + $0x8] sm:$0xff]  }
 0x2e0   :  { %7292 = vmatprep.subr.msk.bf16.mxu0 %vm48_vm0, %v11061_v56 }
 0x2e1   :  { %v11146_v26 = vsel %vm48_vm0, %v2758_v30, 0  ;;  %v2733_v30 = vld [vmem:[#allocation2 + $0x320] sm:$0xff] }
 0x2e4   :  { %6824 = vmatmul.mubr.msk.bf16.vlgmr.msra.gmra.mrb[0].mxu1 %vm48_vm0, %v13116_v16  ;;  %v2729_v16 = vld [vmem:[#allocation2 + $0x2f0] sm:$0xff] }
 0x2e5   :  { %6848 = vmatpush3.bf16.xpose.msra.mxu1 %v3154_v23  ;;  %6825 = vmatprep.mubr.msk.bf16.mxu1 %vm48_vm0, %v7424_v47  ;;  %v11148_v35 = vpack.c.bf16 %v2729_v16, %v2728_v5  ;;  %v2698_v23 = vld [vmem:[#allocation2 + $0x150] sm:$0xff]  ;;  %v2604_v5 = vmax.f32 %v2540_v2, 0.0  ;;  %v2605_v16 = vmax.f32 %v2541_v20, 0.0  ;;  %v3377_v2 = vpack.c.bf16 %v3310_v8, %v3309_v40  ;;  %v3362_v40 = vld [vmem:[#allocation2 + $0x2c2] sm:$0xff] }
 0x2e6   :  { %7300 = vmatprep.subr.msk.bf16.mxu1 %vm48_vm0, %v11071_v12  ;;  %6806 = vmatmul.mubr.msk.bf16.gmra.mrb[4].mxu0 %vm48_vm0, %v7424_v47  ;;  %v11154_v13 = vpack.c.bf16 %v2699_v42, %v2698_v23  ;;  %v11190_v23 = vsel %vm48_vm0, %v2760_v46, 0  ;;  %v11192_v42 = vpack.c.bf16 %v2733_v30, %v2732_v11  ;;  %v3327_v30 = vld [vmem:[#allocation2 + $0xf2] sm:$0xff] }
 0x2e7   :  { %6830 = vmatpush3.bf16.xpose.msra.mxu0 %v11081_v3  ;;  %6843 = vmatprep.mubr.msk.bf16.mxu0 %vm48_vm0, %v11078_v49  ;;  %2668 = vst.msk [vmem:[#allocation2 + $0x331] sm:$0xff] %vm48_vm0, %v2604_v5  ;;  %2669 = vst.msk [vmem:[#allocation2 + $0x339] sm:$0xff] %vm48_vm0, %v2605_v16  ;;  %v3342_v5 = vld [vmem:[#allocation2 + $0x1d2] sm:$0xff]  ;;  %v11230_v16 = vld [vmem:[%s12244_s4 + $0x20] sm:$0xff]   ;;  %v11233_v7 = vsel %vm48_vm0, %v3377_v2, 0 }
 0x2e8   :  { %7293 = vmatprep.subr.msk.bf16.mxu0 %vm48_vm0, %v11083_v9  ;;  %v3332_v2 = vld [vmem:[#allocation2 + $0x12a] sm:$0xff] }
 0x2ec   :  { %6826 = vmatmul.mubr.msk.bf16.gmra.mrb[4].mxu1 %vm48_vm0, %v7424_v47  ;;  %v11138_v47 = vpack.c.bf16 %v2697_v25, %v2696_v52  ;;  %v2508_v52 = vadd.f32 %v10816_v51, %v2438_v28  ;;  %v2509_v25 = vadd.f32 %v10816_v51, %v2439_v29  ;;  %v2716_v51 = vld [vmem:[#allocation2 + $0x258] sm:$0xff] }
 0x2ed   :  { %6850 = vmatpush3.bf16.xpose.msra.mxu1 %v11095_v17  ;;  %6863 = vmatprep.mubr.msk.bf16.mxu1 %vm48_vm0, %v11078_v49  ;;  %v2761_v19 = vpack.c.bf16 %v2717_v37, %v2716_v51  ;;  %v3325_v28 = vld [vmem:[#allocation2 + $0xda] sm:$0xff]  ;;  %v3339_v29 = vld [vmem:[#allocation2 + $0x1b2] sm:$0xff] }
 0x2ee   :  { %7301 = vmatprep.subr.msk.bf16.mxu1 %vm48_vm0, %v11097_v14  ;;  %v2572_v59 = vmax.f32 %v2508_v52, 0.0  ;;  %v2573_v62 = vmax.f32 %v2509_v25, 0.0  ;;  %v11214_v48 = vpack.c.bf16 %v3326_v24, %v3325_v28  ;;  %v3392_v46 = vpack.c.bf16 %v3340_v60, %v3339_v29  ;;  %v3357_v52 = vld [vmem:[#allocation2 + $0x28a] sm:$0xff]  ;;  %v3358_v25 = vld [vmem:[#allocation2 + $0x292] sm:$0xff]  ;;  %v3312_v37 = vld [vmem:[#allocation2 + $0x3a] sm:$0xff] }
 0x2ef   :  { %6832 = vmatpush3.bf16.xpose.msra.mxu0 %v11102_v43  ;;  %v11207_v33 = vsel %vm48_vm0, %v2761_v19, 0  ;;  %v11223_v11 = vpack.c.bf16 %v3358_v25, %v3357_v52  ;;  %v3311_v51 = vld [vmem:[#allocation2 + $0x32] sm:$0xff]  ;;  %v11256_v24 = vpack.c.bf16 %v3330_v53, %v3329_v38  ;;  %v3313_v60 = vld [vmem:[#allocation2 + $0x4a] sm:$0xff]  ;;  %v3331_v25 = vld [vmem:[#allocation2 + $0x122] sm:$0xff] }
 0x2f0   :  { %7294 = vmatprep.subr.msk.bf16.mxu0 %vm48_vm0, %v11104_v27  ;;  %2636 = vst.msk [vmem:[#allocation2 + $0x181] sm:$0xff] %vm48_vm0, %v2572_v59  ;;  %2637 = vst.msk [vmem:[#allocation2 + $0x189] sm:$0xff] %vm48_vm0, %v2573_v62  ;;  %v3473_v20 = vsel %vm48_vm0, %v3392_v46, 0  ;;  %v3328_v59 = vld [vmem:[#allocation2 + $0xfa] sm:$0xff]  ;;  %v3341_v62 = vld [vmem:[#allocation2 + $0x1ca] sm:$0xff]  ;;  %v3378_v19 = vpack.c.bf16 %v3312_v37, %v3311_v51 }
 0x2f1   :  { %v11235_v39 = vpack.c.bf16 %v3328_v59, %v3327_v30  ;;  %v3393_v54 = vpack.c.bf16 %v3342_v5, %v3341_v62  ;;  %v3361_v46 = vld [vmem:[#allocation2 + $0x2ba] sm:$0xff]  ;;  %v3346_v30 = vld [vmem:[#allocation2 + $0x202] sm:$0xff]  ;;  %v11274_v62 = vpack.c.bf16 %v3332_v2, %v3331_v25  ;;  %v3316_v51 = vld [vmem:[#allocation2 + $0x6a] sm:$0xff] }
 0x2f2   :  { %v11254_v28 = vsel %vm48_vm0, %v3378_v19, 0  ;;  %v11268_v52 = vpack.c.bf16 %v3362_v40, %v3361_v46  ;;  %v3363_v37 = vld [vmem:[#allocation2 + $0x2d2] sm:$0xff]  ;;  %v3333_v53 = vld [vmem:[#allocation2 + $0x13a] sm:$0xff]  ;;  %v3365_v25 = vld [vmem:[#allocation2 + $0x2ea] sm:$0xff] }
 0x2f3   :  { %v11247_v34 = vsel %vm48_vm0, %v3393_v54, 0  ;;  %v3315_v54 = vld [vmem:[#allocation2 + $0x62] sm:$0xff]  ;;  %v3317_v40 = vld [vmem:[#allocation2 + $0x7a] sm:$0xff]  ;;  %v3366_v2 = vld [vmem:[#allocation2 + $0x2f2] sm:$0xff] }
 0x2f5   :  { %6852 = vmatpush3.bf16.xpose.msra.mxu1 %v11114_v15 }
 0x2f6   :  { %7302 = vmatprep.subr.msk.bf16.mxu1 %vm48_vm0, %v11116_v4 }
 0x2f7   :  { %6834 = vmatpush3.bf16.xpose.msra.mxu0 %v11120_v1 }
 0x2f8   :  { %7295 = vmatprep.subr.msk.bf16.mxu0 %vm48_vm0, %v11122_v41 }
 0x2fd   :  { %6854 = vmatpush3.bf16.xpose.msra.mxu1 %v11130_v21 }
 0x2fe   :  { %7303 = vmatprep.subr.msk.bf16.mxu1 %vm48_vm0, %v11132_v22 }
 0x2ff   :  { %6836 = vmatpush3.bf16.xpose.msra.mxu0 %v11136_v6 }
 0x300   :  { %7296 = vmatprep.subr.msk.bf16.mxu0 %vm48_vm0, %v11138_v47 }
 0x305   :  { %6856 = vmatpush3.bf16.xpose.msra.mxu1 %v11146_v26 }
 0x306   :  { %7304 = vmatprep.subr.msk.bf16.mxu1 %vm48_vm0, %v11148_v35 }
 0x307   :  { %6838 = vmatpush3.bf16.xpose.msra.mxu0 %v11152_v32 }
 0x308   :  { %7297 = vmatprep.subr.msk.bf16.mxu0 %vm48_vm0, %v11154_v13 }
 0x30d   :  { %6858 = vmatpush3.bf16.xpose.msra.mxu1 %v11162_v31 }
 0x30e   :  { %7305 = vmatprep.subr.msk.bf16.mxu1 %vm48_vm0, %v11164_v44 }
 0x30f   :  { %6840 = vmatpush3.bf16.xpose.msra.mxu0 %v11176_v10 }
 0x310   :  { %7298 = vmatprep.subr.msk.bf16.mxu0 %vm48_vm0, %v11178_v0 }
 0x315   :  { %6860 = vmatpush3.bf16.xpose.msra.mxu1 %v11190_v23 }
 0x316   :  { %7306 = vmatprep.subr.msk.bf16.mxu1 %vm48_vm0, %v11192_v42 }
 0x317   :  { %6842 = vmatpush3.bf16.xpose.msra.mxu0 %v11200_v58 }
 0x318   :  { %7307 = vmatprep.subr.msk.bf16.mxu0 %vm48_vm0, %v3384_v36  ;;  %v3360_v36 = vld [vmem:[#allocation2 + $0x2aa] sm:$0xff] }
 0x31d   :  { %6862 = vmatpush3.bf16.xpose.msra.mxu1 %v11207_v33 }
 0x31e   :  { %7315 = vmatprep.subr.msk.bf16.mxu1 %vm48_vm0, %v3400_v55  ;;  %6844 = vmatmul.mubr.msk.bf16.vlgmr.msra.gmra.mrb[0].mxu0 %vm48_vm0, %v11078_v49  ;;  %v3344_v55 = vld [vmem:[#allocation2 + $0x1ea] sm:$0xff] }
 0x31f   :  { %6868 = vmatpush3.bf16.xpose.msra.mxu0 %v3425_v61  ;;  %6845 = vmatprep.mubr.msk.bf16.mxu0 %vm48_vm0, %v7426_v50  ;;  %v3394_v29 = vpack.c.bf16 %v3344_v55, %v3343_v63  ;;  %v3314_v61 = vld [vmem:[#allocation2 + $0x52] sm:$0xff]  ;;  %v3334_v63 = vld [vmem:[#allocation2 + $0x142] sm:$0xff] }
 0x320   :  { %7308 = vmatprep.subr.msk.bf16.mxu0 %vm48_vm0, %v11214_v48  ;;  %v3347_v55 = vld [vmem:[#allocation2 + $0x212] sm:$0xff] }
 0x321   :  { %v11266_v8 = vsel %vm48_vm0, %v3394_v29, 0  ;;  %v3348_v29 = vld [vmem:[#allocation2 + $0x21a] sm:$0xff] }
 0x322   :  { %v3396_v46 = vpack.c.bf16 %v3348_v29, %v3347_v55  ;;  %v3319_v55 = vld [vmem:[#allocation2 + $0x92] sm:$0xff]  ;;  %v3320_v29 = vld [vmem:[#allocation2 + $0x9a] sm:$0xff] }
 0x324   :  { %6864 = vmatmul.mubr.msk.bf16.vlgmr.msra.gmra.mrb[0].mxu1 %vm48_vm0, %v11078_v49  ;;  %v3359_v49 = vld [vmem:[#allocation2 + $0x2a2] sm:$0xff] }
 0x325   :  { %6888 = vmatpush3.bf16.xpose.msra.mxu1 %v3473_v20  ;;  %6865 = vmatprep.mubr.msk.bf16.mxu1 %vm48_vm0, %v7426_v50  ;;  %v11249_v45 = vpack.c.bf16 %v3360_v36, %v3359_v49  ;;  %v3345_v20 = vld [vmem:[#allocation2 + $0x1fa] sm:$0xff]  ;;  %v3380_v36 = vpack.c.bf16 %v3316_v51, %v3315_v54  ;;  %v3335_v54 = vld [vmem:[#allocation2 + $0x152] sm:$0xff] }
 0x326   :  { %7316 = vmatprep.subr.msk.bf16.mxu1 %vm48_vm0, %v11223_v11  ;;  %6846 = vmatmul.mubr.msk.bf16.gmra.mrb[4].mxu0 %vm48_vm0, %v7426_v50  ;;  %v3395_v5 = vpack.c.bf16 %v3346_v30, %v3345_v20  ;;  %v3364_v49 = vld [vmem:[#allocation2 + $0x2da] sm:$0xff]  ;;  %v11298_v30 = vsel %vm48_vm0, %v3396_v46, 0  ;;  %v3367_v46 = vld [vmem:[#allocation2 + $0x302] sm:$0xff] }
 0x327   :  { %6870 = vmatpush3.bf16.xpose.msra.mxu0 %v11233_v7  ;;  %6883 = vmatprep.mubr.msk.bf16.mxu0 %vm48_vm0, %v11230_v16  ;;  %v11284_v38 = vpack.c.bf16 %v3364_v49, %v3363_v37  ;;  %v3336_v51 = vld [vmem:[#allocation2 + $0x15a] sm:$0xff]  ;;  %v3349_v37 = vld [vmem:[#allocation2 + $0x22a] sm:$0xff]  ;;  %v3350_v49 = vld [vmem:[#allocation2 + $0x232] sm:$0xff] }
 0x328   :  { %7309 = vmatprep.subr.msk.bf16.mxu0 %vm48_vm0, %v11235_v39  ;;  %v11282_v19 = vsel %vm48_vm0, %v3395_v5, 0  ;;  %v11300_v5 = vpack.c.bf16 %v3366_v2, %v3365_v25 }
 0x32a   :  { %13121 = vst [vmem:[#allocation15_spill] sm:$0xff] %v11300_v5 }
 0x32c   :  { %6866 = vmatmul.mubr.msk.bf16.gmra.mrb[4].mxu1 %vm48_vm0, %v7426_v50  ;;  %v3379_v50 = vpack.c.bf16 %v3314_v61, %v3313_v60  ;;  %v11288_v60 = vsel %vm48_vm0, %v3380_v36, 0  ;;  %v11290_v61 = vpack.c.bf16 %v3334_v63, %v3333_v53  ;;  %v11306_v53 = vpack.c.bf16 %v3336_v51, %v3335_v54  ;;  %v3338_v54 = vld [vmem:[#allocation2 + $0x172] sm:$0xff]  ;;  %v3351_v51 = vld [vmem:[#allocation2 + $0x242] sm:$0xff] }
 0x32d   :  { %6890 = vmatpush3.bf16.xpose.msra.mxu1 %v11247_v34  ;;  %6903 = vmatprep.mubr.msk.bf16.mxu1 %vm48_vm0, %v11230_v16  ;;  %v3397_v63 = vpack.c.bf16 %v3350_v49, %v3349_v37 }
 0x32e   :  { %7317 = vmatprep.subr.msk.bf16.mxu1 %vm48_vm0, %v11249_v45  ;;  %v11272_v59 = vsel %vm48_vm0, %v3379_v50, 0  ;;  %v3318_v50 = vld [vmem:[#allocation2 + $0x82] sm:$0xff]  ;;  %13122 = vst [vmem:[#allocation47_spill] sm:$0xff] %v11306_v53 }
 0x32f   :  { %6872 = vmatpush3.bf16.xpose.msra.mxu0 %v11254_v28  ;;  %v3381_v20 = vpack.c.bf16 %v3318_v50, %v3317_v40  ;;  %v3368_v40 = vld [vmem:[#allocation2 + $0x30a] sm:$0xff]  ;;  %v3382_v50 = vpack.c.bf16 %v3320_v29, %v3319_v55  ;;  %v11314_v25 = vsel %vm48_vm0, %v3397_v63, 0  ;;  %v3322_v63 = vld [vmem:[#allocation2 + $0xb2] sm:$0xff] }
 0x330   :  { %7310 = vmatprep.subr.msk.bf16.mxu0 %vm48_vm0, %v11256_v24  ;;  %13123 = vst [vmem:[#allocation16_spill] sm:$0xff] %v11314_v25  ;;  %v11316_v2 = vpack.c.bf16 %v3368_v40, %v3367_v46  ;;  %v3321_v29 = vld [vmem:[#allocation2 + $0xaa] sm:$0xff]  ;;  %v3370_v46 = vld [vmem:[#allocation2 + $0x322] sm:$0xff] }
 0x331   :  { %v11304_v36 = vsel %vm48_vm0, %v3381_v20, 0  ;;  %v3337_v20 = vld [vmem:[#allocation2 + $0x16a] sm:$0xff]  ;;  %v11320_v37 = vsel %vm48_vm0, %v3382_v50, 0  ;;  %v3383_v40 = vpack.c.bf16 %v3322_v63, %v3321_v29 }
 0x332   :  { %v11322_v49 = vpack.c.bf16 %v3338_v54, %v3337_v20  ;;  %v3353_v20 = vld [vmem:[#allocation2 + $0x25a] sm:$0xff]  ;;  %v3354_v54 = vld [vmem:[#allocation2 + $0x262] sm:$0xff] }
 0x335   :  { %6892 = vmatpush3.bf16.xpose.msra.mxu1 %v11266_v8 }
 0x336   :  { %7318 = vmatprep.subr.msk.bf16.mxu1 %vm48_vm0, %v11268_v52 }
 0x337   :  { %6874 = vmatpush3.bf16.xpose.msra.mxu0 %v11272_v59 }
 0x338   :  { %7311 = vmatprep.subr.msk.bf16.mxu0 %vm48_vm0, %v11274_v62 }
 0x33d   :  { %6894 = vmatpush3.bf16.xpose.msra.mxu1 %v11282_v19 }
 0x33e   :  { %7319 = vmatprep.subr.msk.bf16.mxu1 %vm48_vm0, %v11284_v38 }
 0x33f   :  { %6876 = vmatpush3.bf16.xpose.msra.mxu0 %v11288_v60 }
 0x340   :  { %7312 = vmatprep.subr.msk.bf16.mxu0 %vm48_vm0, %v11290_v61 }
 0x345   :  { %6896 = vmatpush3.bf16.xpose.msra.mxu1 %v11298_v30 }
 0x346   :  { %7320 = vmatprep.subr.msk.bf16.mxu1 %vm48_vm0, %v11300_v5  ;;  %v3352_v5 = vld [vmem:[#allocation2 + $0x24a] sm:$0xff] }
 0x347   :  { %6878 = vmatpush3.bf16.xpose.msra.mxu0 %v11304_v36  ;;  %v3398_v55 = vpack.c.bf16 %v3352_v5, %v3351_v51  ;;  %v11336_v5 = vsel %vm48_vm0, %v3383_v40, 0  ;;  %v3399_v51 = vpack.c.bf16 %v3354_v54, %v3353_v20  ;;  %v3998_v40 = vld [vmem:[#allocation2 + $0x111] sm:$0xff]  ;;  %v4011_v20 = vld [vmem:[#allocation2 + $0x1e1] sm:$0xff]  ;;  %v4012_v54 = vld [vmem:[#allocation2 + $0x1e9] sm:$0xff] }
 0x348   :  { %7313 = vmatprep.subr.msk.bf16.mxu0 %vm48_vm0, %v11306_v53  ;;  %v3369_v53 = vld [vmem:[#allocation2 + $0x31a] sm:$0xff] }
 0x349   :  { %v11332_v50 = vpack.c.bf16 %v3370_v46, %v3369_v53  ;;  %v7428_v53 = vld [vmem:[%s12244_s4 + $0x28] sm:$0xff]  }
 0x34a   :  { %v3997_v46 = vld [vmem:[#allocation2 + $0x109] sm:$0xff] }
 0x34d   :  { %6898 = vmatpush3.bf16.xpose.msra.mxu1 %v11314_v25  ;;  %v11330_v25 = vsel %vm48_vm0, %v3398_v55, 0  ;;  %v11344_v55 = vsel %vm48_vm0, %v3399_v51, 0  ;;  %v11440_v51 = vld [vmem:[%s12244_s4 + $0x40] sm:$0xff]  }
 0x34e   :  { %7321 = vmatprep.subr.msk.bf16.mxu1 %vm48_vm0, %v11316_v2 }
 0x34f   :  { %6880 = vmatpush3.bf16.xpose.msra.mxu0 %v11320_v37 }
 0x350   :  { %7314 = vmatprep.subr.msk.bf16.mxu0 %vm48_vm0, %v11322_v49 }
 0x355   :  { %6900 = vmatpush3.bf16.xpose.msra.mxu1 %v11330_v25 }
 0x356   :  { %7322 = vmatprep.subr.msk.bf16.mxu1 %vm48_vm0, %v11332_v50 }
 0x357   :  { %6882 = vmatpush3.bf16.xpose.msra.mxu0 %v11336_v5 }
 0x358   :  { %7323 = vmatprep.subr.msk.bf16.mxu0 %vm48_vm0, %v11061_v56  ;;  %v11363_v56 = vld [vmem:[%s12244_s4 + $0x30] sm:$0xff]  }
 0x35d   :  { %6902 = vmatpush3.bf16.xpose.msra.mxu1 %v11344_v55 }
 0x35e   :  { %7331 = vmatprep.subr.msk.bf16.mxu1 %vm48_vm0, %v11071_v12  ;;  %6884 = vmatmul.mubr.msk.bf16.vlgmr.msra.gmra.mrb[0].mxu0 %vm48_vm0, %v11230_v16  ;;  %v3672_v12 = vld [vmem:[#allocation2 + $0x180] sm:$0xff] }
 0x35f   :  { %6908 = vmatpush3.bf16.xpose.msra.mxu0 %v11081_v3  ;;  %6885 = vmatprep.mubr.msk.bf16.mxu0 %vm48_vm0, %v7428_v53  ;;  %v3673_v3 = vld [vmem:[#allocation2 + $0x188] sm:$0xff] }
 0x360   :  { %7324 = vmatprep.subr.msk.bf16.mxu0 %vm48_vm0, %v11083_v9  ;;  %v11403_v9 = vpack.c.bf16 %v3673_v3, %v3672_v12  ;;  %v11445_v12 = vpack.c.bf16 %v3998_v40, %v3997_v46  ;;  %v4063_v3 = vpack.c.bf16 %v4012_v54, %v4011_v20  ;;  %v3985_v40 = vld [vmem:[#allocation2 + $0x79] sm:$0xff]  ;;  %v3986_v20 = vld [vmem:[#allocation2 + $0x81] sm:$0xff]  ;;  %v4033_v54 = vld [vmem:[#allocation2 + $0x2e9] sm:$0xff] }
 0x364   :  { %6904 = vmatmul.mubr.msk.bf16.vlgmr.msra.gmra.mrb[0].mxu1 %vm48_vm0, %v11230_v16 }
 0x365   :  { %6928 = vmatpush3.bf16.xpose.msra.mxu1 %v11095_v17  ;;  %6905 = vmatprep.mubr.msk.bf16.mxu1 %vm48_vm0, %v7428_v53  ;;  %v3704_v17 = vld [vmem:[#allocation2 + $0x330] sm:$0xff] }
 0x366   :  { %7332 = vmatprep.subr.msk.bf16.mxu1 %vm48_vm0, %v11097_v14  ;;  %6886 = vmatmul.mubr.msk.bf16.gmra.mrb[4].mxu0 %vm48_vm0, %v7428_v53  ;;  %v3705_v14 = vld [vmem:[#allocation2 + $0x338] sm:$0xff] }
 0x367   :  { %6910 = vmatpush3.bf16.xpose.msra.mxu0 %v11102_v43  ;;  %6923 = vmatprep.mubr.msk.bf16.mxu0 %vm48_vm0, %v11363_v56  ;;  %v11410_v43 = vpack.c.bf16 %v3705_v14, %v3704_v17  ;;  %v3981_v17 = vld [vmem:[#allocation2 + $0x49] sm:$0xff]  ;;  %v3982_v14 = vld [vmem:[#allocation2 + $0x51] sm:$0xff] }
 0x368   :  { %7325 = vmatprep.subr.msk.bf16.mxu0 %vm48_vm0, %v11104_v27  ;;  %v3993_v27 = vld [vmem:[#allocation2 + $0xd9] sm:$0xff] }
 0x36c   :  { %6906 = vmatmul.mubr.msk.bf16.gmra.mrb[4].mxu1 %vm48_vm0, %v7428_v53 }
 0x36d   :  { %6930 = vmatpush3.bf16.xpose.msra.mxu1 %v11114_v15  ;;  %6943 = vmatprep.mubr.msk.bf16.mxu1 %vm48_vm0, %v11363_v56  ;;  %v3994_v15 = vld [vmem:[#allocation2 + $0xe1] sm:$0xff] }
 0x36e   :  { %7333 = vmatprep.subr.msk.bf16.mxu1 %vm48_vm0, %v11116_v4  ;;  %v3781_v4 = vsel %vm48_vm0, %v11049_v57, 0  ;;  %v4010_v57 = vld [vmem:[#allocation2 + $0x1d1] sm:$0xff] }
 0x36f   :  { %6912 = vmatpush3.bf16.xpose.msra.mxu0 %v11120_v1  ;;  %v4054_v1 = vpack.c.bf16 %v3994_v15, %v3993_v27  ;;  %v4030_v27 = vld [vmem:[#allocation2 + $0x2c1] sm:$0xff]  ;;  %v4048_v15 = vpack.c.bf16 %v3982_v14, %v3981_v17  ;;  %v4050_v17 = vpack.c.bf16 %v3986_v20, %v3985_v40  ;;  %v4020_v40 = vld [vmem:[#allocation2 + $0x249] sm:$0xff] }
 0x370   :  { %7326 = vmatprep.subr.msk.bf16.mxu0 %vm48_vm0, %v11122_v41  ;;  %v3977_v41 = vld [vmem:[#allocation2 + $0x19] sm:$0xff] }
 0x375   :  { %6932 = vmatpush3.bf16.xpose.msra.mxu1 %v11130_v21  ;;  %v3978_v21 = vld [vmem:[#allocation2 + $0x21] sm:$0xff] }
 0x376   :  { %7334 = vmatprep.subr.msk.bf16.mxu1 %vm48_vm0, %v11132_v22  ;;  %v4025_v22 = vld [vmem:[#allocation2 + $0x289] sm:$0xff] }
 0x377   :  { %6914 = vmatpush3.bf16.xpose.msra.mxu0 %v11136_v6  ;;  %v4026_v6 = vld [vmem:[#allocation2 + $0x291] sm:$0xff] }
 0x378   :  { %7327 = vmatprep.subr.msk.bf16.mxu0 %vm48_vm0, %v11138_v47  ;;  %v4046_v47 = vpack.c.bf16 %v3978_v21, %v3977_v41  ;;  %v3999_v41 = vld [vmem:[#allocation2 + $0x121] sm:$0xff]  ;;  %v4000_v21 = vld [vmem:[#allocation2 + $0x129] sm:$0xff] }
 0x37d   :  { %6934 = vmatpush3.bf16.xpose.msra.mxu1 %v11146_v26  ;;  %v3829_v26 = vsel %vm48_vm0, %v11055_v18, 0  ;;  %v4027_v18 = vld [vmem:[#allocation2 + $0x2a1] sm:$0xff] }
 0x37e   :  { %7335 = vmatprep.subr.msk.bf16.mxu1 %vm48_vm0, %v11148_v35  ;;  %v4070_v35 = vpack.c.bf16 %v4026_v6, %v4025_v22  ;;  %v4013_v22 = vld [vmem:[#allocation2 + $0x1f9] sm:$0xff]  ;;  %v4014_v6 = vld [vmem:[#allocation2 + $0x201] sm:$0xff] }
 0x37f   :  { %6916 = vmatpush3.bf16.xpose.msra.mxu0 %v11152_v32  ;;  %v3995_v32 = vld [vmem:[#allocation2 + $0xf1] sm:$0xff] }
 0x380   :  { %7328 = vmatprep.subr.msk.bf16.mxu0 %vm48_vm0, %v11154_v13  ;;  %v3996_v13 = vld [vmem:[#allocation2 + $0xf9] sm:$0xff] }
 0x385   :  { %6936 = vmatpush3.bf16.xpose.msra.mxu1 %v11162_v31  ;;  %v4009_v31 = vld [vmem:[#allocation2 + $0x1c9] sm:$0xff] }
 0x386   :  { %7336 = vmatprep.subr.msk.bf16.mxu1 %vm48_vm0, %v11164_v44  ;;  %v7430_v44 = vld [vmem:[%s12244_s4 + $0x38] sm:$0xff]  }
 0x387   :  { %6918 = vmatpush3.bf16.xpose.msra.mxu0 %v11176_v10  ;;  %v4095_v10 = vsel %vm48_vm0, %v4046_v47, 0  ;;  %v11464_v47 = vsel %vm48_vm0, %v4048_v15, 0  ;;  %v4004_v15 = vld [vmem:[#allocation2 + $0x159] sm:$0xff] }
 0x388   :  { %7329 = vmatprep.subr.msk.bf16.mxu0 %vm48_vm0, %v11178_v0  ;;  %v11424_v0 = vpack.c.bf16 %v3996_v13, %v3995_v32  ;;  %v3983_v32 = vld [vmem:[#allocation2 + $0x61] sm:$0xff]  ;;  %v3984_v13 = vld [vmem:[#allocation2 + $0x69] sm:$0xff] }
 0x38d   :  { %6938 = vmatpush3.bf16.xpose.msra.mxu1 %v11190_v23  ;;  %v4062_v23 = vpack.c.bf16 %v4010_v57, %v4009_v31  ;;  %v4031_v31 = vld [vmem:[#allocation2 + $0x2d1] sm:$0xff]  ;;  %v4032_v57 = vld [vmem:[#allocation2 + $0x2d9] sm:$0xff] }
 0x38e   :  { %7337 = vmatprep.subr.msk.bf16.mxu1 %vm48_vm0, %v11192_v42  ;;  %v3979_v42 = vld [vmem:[#allocation2 + $0x31] sm:$0xff] }
 0x38f   :  { %6920 = vmatpush3.bf16.xpose.msra.mxu0 %v11200_v58  ;;  %v3980_v58 = vld [vmem:[#allocation2 + $0x39] sm:$0xff]  ;;  %v4143_v29 = vsel %vm48_vm0, %v4062_v23, 0  ;;  %v11478_v23 = vpack.c.bf16 %v4032_v57, %v4031_v31  ;;  %v4035_v31 = vld [vmem:[#allocation2 + $0x301] sm:$0xff]  ;;  %v4036_v57 = vld [vmem:[#allocation2 + $0x309] sm:$0xff] }
 0x390   :  { %7330 = vmatprep.subr.msk.bf16.mxu0 %vm48_vm0, %v11403_v9  ;;  %v4047_v16 = vpack.c.bf16 %v3980_v58, %v3979_v42  ;;  %v4001_v42 = vld [vmem:[#allocation2 + $0x139] sm:$0xff]  ;;  %v4002_v58 = vld [vmem:[#allocation2 + $0x141] sm:$0xff] }
 0x392   :  { %v11443_v53 = vsel %vm48_vm0, %v4047_v16, 0 }
 0x395   :  { %6940 = vmatpush3.bf16.xpose.msra.mxu1 %v11207_v33  ;;  %v4028_v33 = vld [vmem:[#allocation2 + $0x2a9] sm:$0xff] }
 0x396   :  { %7338 = vmatprep.subr.msk.bf16.mxu1 %vm48_vm0, %v11410_v43  ;;  %v11433_v63 = vpack.c.bf16 %v4028_v33, %v4027_v18  ;;  %v4015_v18 = vld [vmem:[#allocation2 + $0x211] sm:$0xff]  ;;  %v4016_v33 = vld [vmem:[#allocation2 + $0x219] sm:$0xff] }
 0x397   :  { %6922 = vmatpush3.bf16.xpose.msra.mxu0 %v3781_v4  ;;  %v11457_v4 = vsel %vm48_vm0, %v4063_v3, 0  ;;  %v4065_v46 = vpack.c.bf16 %v4016_v33, %v4015_v18  ;;  %v4034_v3 = vld [vmem:[#allocation2 + $0x2f1] sm:$0xff]  ;;  %v4005_v18 = vld [vmem:[#allocation2 + $0x169] sm:$0xff] }
 0x398   :  { %7339 = vmatprep.subr.msk.bf16.mxu0 %vm48_vm0, %v4054_v1  ;;  %v4006_v33 = vld [vmem:[#allocation2 + $0x171] sm:$0xff] }
 0x399   :  { %v11492_v14 = vsel %vm48_vm0, %v4065_v46, 0  ;;  %v4019_v46 = vld [vmem:[#allocation2 + $0x241] sm:$0xff] }
 0x39d   :  { %6942 = vmatpush3.bf16.xpose.msra.mxu1 %v3829_v26  ;;  %v11466_v26 = vpack.c.bf16 %v4000_v21, %v3999_v41  ;;  %v4017_v41 = vld [vmem:[#allocation2 + $0x229] sm:$0xff]  ;;  %v4018_v21 = vld [vmem:[#allocation2 + $0x231] sm:$0xff] }
 0x39e   :  { %7347 = vmatprep.subr.msk.bf16.mxu1 %vm48_vm0, %v4070_v35  ;;  %6924 = vmatmul.mubr.msk.bf16.vlgmr.msra.gmra.mrb[0].mxu0 %vm48_vm0, %v11363_v56  ;;  %v4064_v35 = vpack.c.bf16 %v4014_v6, %v4013_v22  ;;  %v11498_v22 = vsel %vm48_vm0, %v4050_v17, 0  ;;  %v3989_v17 = vld [vmem:[#allocation2 + $0xa9] sm:$0xff] }
 0x39f   :  { %6948 = vmatpush3.bf16.xpose.msra.mxu0 %v4095_v10  ;;  %6925 = vmatprep.mubr.msk.bf16.mxu0 %vm48_vm0, %v7430_v44 }
 0x3a0   :  { %7340 = vmatprep.subr.msk.bf16.mxu0 %vm48_vm0, %v11424_v0  ;;  %v11476_v10 = vsel %vm48_vm0, %v4064_v35, 0  ;;  %v4066_v35 = vpack.c.bf16 %v4018_v21, %v4017_v41  ;;  %v4038_v41 = vld [vmem:[#allocation2 + $0x321] sm:$0xff] }
 0x3a4   :  { %6944 = vmatmul.mubr.msk.bf16.vlgmr.msra.gmra.mrb[0].mxu1 %vm48_vm0, %v11363_v56  ;;  %v4029_v56 = vld [vmem:[#allocation2 + $0x2b9] sm:$0xff] }
 0x3a5   :  { %6968 = vmatpush3.bf16.xpose.msra.mxu1 %v4143_v29  ;;  %6945 = vmatprep.mubr.msk.bf16.mxu1 %vm48_vm0, %v7430_v44  ;;  %v11459_v1 = vpack.c.bf16 %v4030_v27, %v4029_v56  ;;  %v11484_v29 = vpack.c.bf16 %v4002_v58, %v4001_v42  ;;  %v11494_v56 = vpack.c.bf16 %v4034_v3, %v4033_v54  ;;  %v4003_v27 = vld [vmem:[#allocation2 + $0x151] sm:$0xff]  ;;  %v11508_v42 = vsel %vm48_vm0, %v4066_v35, 0 }
 0x3a6   :  { %7348 = vmatprep.subr.msk.bf16.mxu1 %vm48_vm0, %v11433_v63  ;;  %6926 = vmatmul.mubr.msk.bf16.gmra.mrb[4].mxu0 %vm48_vm0, %v7430_v44  ;;  %v11500_v6 = vpack.c.bf16 %v4004_v15, %v4003_v27  ;;  %v11510_v58 = vpack.c.bf16 %v4036_v57, %v4035_v31  ;;  %v11516_v54 = vpack.c.bf16 %v4006_v33, %v4005_v18  ;;  %v3990_v27 = vld [vmem:[#allocation2 + $0xb1] sm:$0xff]  ;;  %v4037_v15 = vld [vmem:[#allocation2 + $0x319] sm:$0xff]  ;;  %v4008_v31 = vld [vmem:[#allocation2 + $0x189] sm:$0xff] }
 0x3a7   :  { %6950 = vmatpush3.bf16.xpose.msra.mxu0 %v11443_v53  ;;  %6963 = vmatprep.mubr.msk.bf16.mxu0 %vm48_vm0, %v11440_v51  ;;  %v4067_v3 = vpack.c.bf16 %v4020_v40, %v4019_v46  ;;  %v4052_v21 = vpack.c.bf16 %v3990_v27, %v3989_v17  ;;  %v4021_v57 = vld [vmem:[#allocation2 + $0x259] sm:$0xff]  ;;  %v3991_v40 = vld [vmem:[#allocation2 + $0xc1] sm:$0xff]  ;;  %v4039_v17 = vld [vmem:[#allocation2 + $0x331] sm:$0xff] }
 0x3a8   :  { %7341 = vmatprep.subr.msk.bf16.mxu0 %vm48_vm0, %v11445_v12  ;;  %v4040_v27 = vld [vmem:[#allocation2 + $0x339] sm:$0xff] }
 0x3a9   :  { %v11524_v35 = vsel %vm48_vm0, %v4067_v3, 0  ;;  %v11530_v18 = vsel %vm48_vm0, %v4052_v21, 0  ;;  %v3992_v3 = vld [vmem:[#allocation2 + $0xc9] sm:$0xff]  ;;  %v11542_v21 = vpack.c.bf16 %v4040_v27, %v4039_v17 }
 0x3aa   :  { %v4665_v17 = vld [vmem:[#allocation2 + $0x108] sm:$0xff]  ;;  %v4666_v27 = vld [vmem:[#allocation2 + $0x110] sm:$0xff] }
 0x3ac   :  { %6946 = vmatmul.mubr.msk.bf16.gmra.mrb[4].mxu1 %vm48_vm0, %v7430_v44  ;;  %v4049_v44 = vpack.c.bf16 %v3984_v13, %v3983_v32  ;;  %v3987_v32 = vld [vmem:[#allocation2 + $0x91] sm:$0xff]  ;;  %v3988_v13 = vld [vmem:[#allocation2 + $0x99] sm:$0xff] }
 0x3ad   :  { %6970 = vmatpush3.bf16.xpose.msra.mxu1 %v11457_v4  ;;  %6983 = vmatprep.mubr.msk.bf16.mxu1 %vm48_vm0, %v11440_v51 }
 0x3ae   :  { %7349 = vmatprep.subr.msk.bf16.mxu1 %vm48_vm0, %v11459_v1  ;;  %v11482_v16 = vsel %vm48_vm0, %v4049_v44, 0  ;;  %v4051_v44 = vpack.c.bf16 %v3988_v13, %v3987_v32  ;;  %v11526_v32 = vpack.c.bf16 %v4038_v41, %v4037_v15  ;;  %v4007_v13 = vld [vmem:[#allocation2 + $0x181] sm:$0xff]  ;;  %v4053_v15 = vpack.c.bf16 %v3992_v3, %v3991_v40 }
 0x3af   :  { %6952 = vmatpush3.bf16.xpose.msra.mxu0 %v11464_v47  ;;  %v11532_v33 = vpack.c.bf16 %v4008_v31, %v4007_v13  ;;  %v4023_v13 = vld [vmem:[#allocation2 + $0x271] sm:$0xff]  ;;  %v4024_v31 = vld [vmem:[#allocation2 + $0x279] sm:$0xff]  ;;  %v7432_v40 = vld [vmem:[%s12244_s4 + $0x48] sm:$0xff]  }
 0x3b0   :  { %7342 = vmatprep.subr.msk.bf16.mxu0 %vm48_vm0, %v11466_v26  ;;  %v11514_v20 = vsel %vm48_vm0, %v4051_v44, 0  ;;  %v4022_v44 = vld [vmem:[#allocation2 + $0x261] sm:$0xff] }
 0x3b1   :  { %v4068_v46 = vpack.c.bf16 %v4022_v44, %v4021_v57  ;;  %v11546_v57 = vsel %vm48_vm0, %v4053_v15, 0  ;;  %v4069_v44 = vpack.c.bf16 %v4024_v31, %v4023_v13  ;;  %v4679_v15 = vld [vmem:[#allocation2 + $0x1e0] sm:$0xff]  ;;  %v4680_v13 = vld [vmem:[#allocation2 + $0x1e8] sm:$0xff]  ;;  %v7434_v31 = vld [vmem:[%s12244_s4 + $0x58] sm:$0xff]  }
 0x3b3   :  { %v11540_v41 = vsel %vm48_vm0, %v4068_v46, 0  ;;  %v11554_v46 = vsel %vm48_vm0, %v4069_v44, 0 }
 0x3b5   :  { %6972 = vmatpush3.bf16.xpose.msra.mxu1 %v11476_v10 }
 0x3b6   :  { %7350 = vmatprep.subr.msk.bf16.mxu1 %vm48_vm0, %v11478_v23 }
 0x3b7   :  { %6954 = vmatpush3.bf16.xpose.msra.mxu0 %v11482_v16 }
 0x3b8   :  { %7343 = vmatprep.subr.msk.bf16.mxu0 %vm48_vm0, %v11484_v29 }
 0x3bd   :  { %6974 = vmatpush3.bf16.xpose.msra.mxu1 %v11492_v14 }
 0x3be   :  { %7351 = vmatprep.subr.msk.bf16.mxu1 %vm48_vm0, %v11494_v56 }
 0x3bf   :  { %6956 = vmatpush3.bf16.xpose.msra.mxu0 %v11498_v22 }
 0x3c0   :  { %7344 = vmatprep.subr.msk.bf16.mxu0 %vm48_vm0, %v11500_v6 }
 0x3c5   :  { %6976 = vmatpush3.bf16.xpose.msra.mxu1 %v11508_v42 }
 0x3c6   :  { %7352 = vmatprep.subr.msk.bf16.mxu1 %vm48_vm0, %v11510_v58 }
 0x3c7   :  { %6958 = vmatpush3.bf16.xpose.msra.mxu0 %v11514_v20 }
 0x3c8   :  { %7345 = vmatprep.subr.msk.bf16.mxu0 %vm48_vm0, %v11516_v54 }
 0x3cd   :  { %6978 = vmatpush3.bf16.xpose.msra.mxu1 %v11524_v35 }
 0x3ce   :  { %7353 = vmatprep.subr.msk.bf16.mxu1 %vm48_vm0, %v11526_v32 }
 0x3cf   :  { %6960 = vmatpush3.bf16.xpose.msra.mxu0 %v11530_v18 }
 0x3d0   :  { %7346 = vmatprep.subr.msk.bf16.mxu0 %vm48_vm0, %v11532_v33 }
 0x3d5   :  { %6980 = vmatpush3.bf16.xpose.msra.mxu1 %v11540_v41 }
 0x3d6   :  { %7354 = vmatprep.subr.msk.bf16.mxu1 %vm48_vm0, %v11542_v21 }
 0x3d7   :  { %6962 = vmatpush3.bf16.xpose.msra.mxu0 %v11546_v57 }
 0x3d8   :  { %7355 = vmatprep.subr.msk.bf16.mxu0 %vm48_vm0, %v11214_v48  ;;  %v11573_v48 = vld [vmem:[%s12244_s4 + $0x50] sm:$0xff]  }
 0x3dd   :  { %6982 = vmatpush3.bf16.xpose.msra.mxu1 %v11554_v46 }
 0x3de   :  { %7363 = vmatprep.subr.msk.bf16.mxu1 %vm48_vm0, %v11223_v11  ;;  %6964 = vmatmul.mubr.msk.bf16.vlgmr.msra.gmra.mrb[0].mxu0 %vm48_vm0, %v11440_v51  ;;  %v13124_v11 = vld [vmem:[#allocation15_spill] sm:$0xff] }
 0x3df   :  { %6988 = vmatpush3.bf16.xpose.msra.mxu0 %v11233_v7  ;;  %6965 = vmatprep.mubr.msk.bf16.mxu0 %vm48_vm0, %v7432_v40  ;;  %v13125_v7 = vld [vmem:[#allocation47_spill] sm:$0xff] }
 0x3e0   :  { %7356 = vmatprep.subr.msk.bf16.mxu0 %vm48_vm0, %v11235_v39  ;;  %v13126_v39 = vld [vmem:[#allocation16_spill] sm:$0xff] }
 0x3e4   :  { %6984 = vmatmul.mubr.msk.bf16.vlgmr.msra.gmra.mrb[0].mxu1 %vm48_vm0, %v11440_v51 }
 0x3e5   :  { %7008 = vmatpush3.bf16.xpose.msra.mxu1 %v11247_v34  ;;  %6985 = vmatprep.mubr.msk.bf16.mxu1 %vm48_vm0, %v7432_v40  ;;  %v4342_v34 = vld [vmem:[#allocation2 + $0x182] sm:$0xff] }
 0x3e6   :  { %7364 = vmatprep.subr.msk.bf16.mxu1 %vm48_vm0, %v11249_v45  ;;  %6966 = vmatmul.mubr.msk.bf16.gmra.mrb[4].mxu0 %vm48_vm0, %v7432_v40  ;;  %v4343_v45 = vld [vmem:[#allocation2 + $0x18a] sm:$0xff] }
 0x3e7   :  { %6990 = vmatpush3.bf16.xpose.msra.mxu0 %v11254_v28  ;;  %7003 = vmatprep.mubr.msk.bf16.mxu0 %vm48_vm0, %v11573_v48  ;;  %v11613_v28 = vpack.c.bf16 %v4343_v45, %v4342_v34  ;;  %v4697_v34 = vld [vmem:[#allocation2 + $0x2b8] sm:$0xff]  ;;  %v4698_v45 = vld [vmem:[#allocation2 + $0x2c0] sm:$0xff] }
 0x3e8   :  { %7357 = vmatprep.subr.msk.bf16.mxu0 %vm48_vm0, %v11256_v24  ;;  %v4326_v24 = vld [vmem:[#allocation2 + $0xc2] sm:$0xff] }
 0x3ec   :  { %6986 = vmatmul.mubr.msk.bf16.gmra.mrb[4].mxu1 %vm48_vm0, %v7432_v40  ;;  %v4725_v40 = vpack.c.bf16 %v4666_v27, %v4665_v17  ;;  %v4669_v17 = vld [vmem:[#allocation2 + $0x138] sm:$0xff]  ;;  %v4670_v27 = vld [vmem:[#allocation2 + $0x140] sm:$0xff] }
 0x3ed   :  { %7010 = vmatpush3.bf16.xpose.msra.mxu1 %v11266_v8  ;;  %7023 = vmatprep.mubr.msk.bf16.mxu1 %vm48_vm0, %v11573_v48  ;;  %v4327_v8 = vld [vmem:[#allocation2 + $0xca] sm:$0xff] }
 0x3ee   :  { %7365 = vmatprep.subr.msk.bf16.mxu1 %vm48_vm0, %v11268_v52  ;;  %v4374_v52 = vld [vmem:[#allocation2 + $0x332] sm:$0xff] }
 0x3ef   :  { %6992 = vmatpush3.bf16.xpose.msra.mxu0 %v11272_v59  ;;  %v4375_v59 = vld [vmem:[#allocation2 + $0x33a] sm:$0xff] }
 0x3f0   :  { %7358 = vmatprep.subr.msk.bf16.mxu0 %vm48_vm0, %v11274_v62  ;;  %v4388_v62 = vpack.c.bf16 %v4327_v8, %v4326_v24 }
 0x3f5   :  { %7012 = vmatpush3.bf16.xpose.msra.mxu1 %v11282_v19  ;;  %v11620_v19 = vpack.c.bf16 %v4375_v59, %v4374_v52  ;;  %v4741_v52 = vpack.c.bf16 %v4698_v45, %v4697_v34  ;;  %v4667_v59 = vld [vmem:[#allocation2 + $0x120] sm:$0xff]  ;;  %v4701_v34 = vld [vmem:[#allocation2 + $0x2e8] sm:$0xff]  ;;  %v4702_v45 = vld [vmem:[#allocation2 + $0x2f0] sm:$0xff] }
 0x3f6   :  { %7366 = vmatprep.subr.msk.bf16.mxu1 %vm48_vm0, %v11284_v38  ;;  %v4663_v38 = vld [vmem:[#allocation2 + $0xf0] sm:$0xff] }
 0x3f7   :  { %6994 = vmatpush3.bf16.xpose.msra.mxu0 %v11288_v60  ;;  %v4664_v60 = vld [vmem:[#allocation2 + $0xf8] sm:$0xff] }
 0x3f8   :  { %7359 = vmatprep.subr.msk.bf16.mxu0 %vm48_vm0, %v11290_v61  ;;  %v4358_v61 = vld [vmem:[#allocation2 + $0x272] sm:$0xff] }
 0x3fd   :  { %7014 = vmatpush3.bf16.xpose.msra.mxu1 %v11298_v30  ;;  %v4359_v30 = vld [vmem:[#allocation2 + $0x27a] sm:$0xff] }
 0x3fe   :  { %7367 = vmatprep.subr.msk.bf16.mxu1 %vm48_vm0, %v13124_v11  ;;  %v4732_v11 = vpack.c.bf16 %v4680_v13, %v4679_v15  ;;  %v4683_v15 = vld [vmem:[#allocation2 + $0x210] sm:$0xff]  ;;  %v4684_v13 = vld [vmem:[#allocation2 + $0x218] sm:$0xff] }
 0x3ff   :  { %6996 = vmatpush3.bf16.xpose.msra.mxu0 %v11304_v36  ;;  %v11624_v36 = vsel %vm48_vm0, %v4388_v62, 0  ;;  %v4668_v62 = vld [vmem:[#allocation2 + $0x128] sm:$0xff] }
 0x400   :  { %7360 = vmatprep.subr.msk.bf16.mxu0 %vm48_vm0, %v13125_v7  ;;  %v4649_v7 = vld [vmem:[#allocation2 + $0x48] sm:$0xff]  ;;  %v4813_v8 = vsel %vm48_vm0, %v4732_v11, 0  ;;  %v4734_v11 = vpack.c.bf16 %v4684_v13, %v4683_v15 }
 0x401   :  { %v4688_v15 = vld [vmem:[#allocation2 + $0x248] sm:$0xff] }
 0x405   :  { %7016 = vmatpush3.bf16.xpose.msra.mxu1 %v13126_v39  ;;  %v4650_v39 = vld [vmem:[#allocation2 + $0x50] sm:$0xff] }
 0x406   :  { %7368 = vmatprep.subr.msk.bf16.mxu1 %vm48_vm0, %v11316_v2  ;;  %v4404_v2 = vpack.c.bf16 %v4359_v30, %v4358_v61  ;;  %v4717_v24 = vpack.c.bf16 %v4650_v39, %v4649_v7  ;;  %v11649_v61 = vld [vmem:[%s12244_s4 + $0x60] sm:$0xff]   ;;  %v4653_v7 = vld [vmem:[#allocation2 + $0x78] sm:$0xff] }
 0x407   :  { %6998 = vmatpush3.bf16.xpose.msra.mxu0 %v11320_v37  ;;  %v4647_v37 = vld [vmem:[#allocation2 + $0x30] sm:$0xff]  ;;  %v4654_v39 = vld [vmem:[#allocation2 + $0x80] sm:$0xff] }
 0x408   :  { %7361 = vmatprep.subr.msk.bf16.mxu0 %vm48_vm0, %v11322_v49  ;;  %v4648_v49 = vld [vmem:[#allocation2 + $0x38] sm:$0xff]  ;;  %v11631_v3 = vsel %vm48_vm0, %v4404_v2, 0  ;;  %v4768_v30 = vsel %vm48_vm0, %v4717_v24, 0  ;;  %v4719_v24 = vpack.c.bf16 %v4654_v39, %v4653_v7  ;;  %v4658_v7 = vld [vmem:[#allocation2 + $0xb0] sm:$0xff] }
 0x409   :  { %v4716_v51 = vpack.c.bf16 %v4648_v49, %v4647_v37  ;;  %v4651_v37 = vld [vmem:[#allocation2 + $0x60] sm:$0xff]  ;;  %v4652_v49 = vld [vmem:[#allocation2 + $0x68] sm:$0xff]  ;;  %v4705_v39 = vld [vmem:[#allocation2 + $0x318] sm:$0xff] }
 0x40b   :  { %v4765_v44 = vsel %vm48_vm0, %v4716_v51, 0 }
 0x40d   :  { %7018 = vmatpush3.bf16.xpose.msra.mxu1 %v11330_v25  ;;  %v4724_v25 = vpack.c.bf16 %v4664_v60, %v4663_v38  ;;  %v4681_v38 = vld [vmem:[#allocation2 + $0x1f8] sm:$0xff]  ;;  %v4682_v60 = vld [vmem:[#allocation2 + $0x200] sm:$0xff] }
 0x40e   :  { %7369 = vmatprep.subr.msk.bf16.mxu1 %vm48_vm0, %v11332_v50  ;;  %v4695_v50 = vld [vmem:[#allocation2 + $0x2a0] sm:$0xff]  ;;  %v4733_v2 = vpack.c.bf16 %v4682_v60, %v4681_v38  ;;  %v4686_v38 = vld [vmem:[#allocation2 + $0x230] sm:$0xff]  ;;  %v4774_v60 = vsel %vm48_vm0, %v4719_v24, 0 }
 0x40f   :  { %7000 = vmatpush3.bf16.xpose.msra.mxu0 %v11336_v5  ;;  %v4696_v5 = vld [vmem:[#allocation2 + $0x2a8] sm:$0xff] }
 0x410   :  { %7362 = vmatprep.subr.msk.bf16.mxu0 %vm48_vm0, %v11613_v28  ;;  %v4816_v51 = vsel %vm48_vm0, %v4733_v2, 0  ;;  %v4655_v2 = vld [vmem:[#allocation2 + $0x90] sm:$0xff] }
 0x415   :  { %7020 = vmatpush3.bf16.xpose.msra.mxu1 %v11344_v55  ;;  %v4740_v55 = vpack.c.bf16 %v4696_v5, %v4695_v50  ;;  %v4699_v50 = vld [vmem:[#allocation2 + $0x2d0] sm:$0xff]  ;;  %v4700_v5 = vld [vmem:[#allocation2 + $0x2d8] sm:$0xff] }
 0x416   :  { %7370 = vmatprep.subr.msk.bf16.mxu1 %vm48_vm0, %v11620_v19 }
 0x417   :  { %7002 = vmatpush3.bf16.xpose.msra.mxu0 %v11624_v36 }
 0x418   :  { %7371 = vmatprep.subr.msk.bf16.mxu0 %vm48_vm0, %v4724_v25  ;;  %v4726_v25 = vpack.c.bf16 %v4668_v62, %v4667_v59  ;;  %v4672_v59 = vld [vmem:[#allocation2 + $0x158] sm:$0xff]  ;;  %v4685_v62 = vld [vmem:[#allocation2 + $0x228] sm:$0xff] }
 0x41d   :  { %7022 = vmatpush3.bf16.xpose.msra.mxu1 %v11631_v3 }
 0x41e   :  { %7379 = vmatprep.subr.msk.bf16.mxu1 %vm48_vm0, %v4740_v55  ;;  %7004 = vmatmul.mubr.msk.bf16.vlgmr.msra.gmra.mrb[0].mxu0 %vm48_vm0, %v11573_v48  ;;  %v4742_v55 = vpack.c.bf16 %v4700_v5, %v4699_v50  ;;  %v4704_v50 = vld [vmem:[#allocation2 + $0x308] sm:$0xff] }
 0x41f   :  { %7028 = vmatpush3.bf16.xpose.msra.mxu0 %v4765_v44  ;;  %7005 = vmatprep.mubr.msk.bf16.mxu0 %vm48_vm0, %v7434_v31 }
 0x420   :  { %7372 = vmatprep.subr.msk.bf16.mxu0 %vm48_vm0, %v4725_v40  ;;  %v4727_v40 = vpack.c.bf16 %v4670_v27, %v4669_v17  ;;  %v4674_v17 = vld [vmem:[#allocation2 + $0x170] sm:$0xff]  ;;  %v4687_v27 = vld [vmem:[#allocation2 + $0x240] sm:$0xff] }
 0x424   :  { %7024 = vmatmul.mubr.msk.bf16.vlgmr.msra.gmra.mrb[0].mxu1 %vm48_vm0, %v11573_v48  ;;  %v4718_v48 = vpack.c.bf16 %v4652_v49, %v4651_v37  ;;  %v4656_v37 = vld [vmem:[#allocation2 + $0x98] sm:$0xff]  ;;  %v4703_v49 = vld [vmem:[#allocation2 + $0x300] sm:$0xff] }
 0x425   :  { %7048 = vmatpush3.bf16.xpose.msra.mxu1 %v4813_v8  ;;  %7025 = vmatprep.mubr.msk.bf16.mxu1 %vm48_vm0, %v7434_v31  ;;  %v4743_v8 = vpack.c.bf16 %v4702_v45, %v4701_v34  ;;  %v4720_v5 = vpack.c.bf16 %v4656_v37, %v4655_v2  ;;  %v4706_v34 = vld [vmem:[#allocation2 + $0x320] sm:$0xff]  ;;  %v4677_v2 = vld [vmem:[#allocation2 + $0x198] sm:$0xff] }
 0x426   :  { %7380 = vmatprep.subr.msk.bf16.mxu1 %vm48_vm0, %v4741_v52  ;;  %7006 = vmatmul.mubr.msk.bf16.gmra.mrb[4].mxu0 %vm48_vm0, %v7434_v31  ;;  %v4771_v44 = vsel %vm48_vm0, %v4718_v48, 0  ;;  %v4671_v52 = vld [vmem:[#allocation2 + $0x150] sm:$0xff]  ;;  %v4678_v37 = vld [vmem:[#allocation2 + $0x1a0] sm:$0xff] }
 0x427   :  { %7030 = vmatpush3.bf16.xpose.msra.mxu0 %v4768_v30  ;;  %7043 = vmatprep.mubr.msk.bf16.mxu0 %vm48_vm0, %v11649_v61  ;;  %v4728_v30 = vpack.c.bf16 %v4672_v59, %v4671_v52  ;;  %v4777_v13 = vsel %vm48_vm0, %v4720_v5, 0  ;;  %v4690_v52 = vld [vmem:[#allocation2 + $0x260] sm:$0xff] }
 0x428   :  { %7373 = vmatprep.subr.msk.bf16.mxu0 %vm48_vm0, %v4726_v25  ;;  %v4735_v25 = vpack.c.bf16 %v4686_v38, %v4685_v62  ;;  %v4659_v38 = vld [vmem:[#allocation2 + $0xc0] sm:$0xff] }
 0x42a   :  { %v4822_v48 = vsel %vm48_vm0, %v4735_v25, 0 }
 0x42c   :  { %7026 = vmatmul.mubr.msk.bf16.gmra.mrb[4].mxu1 %vm48_vm0, %v7434_v31  ;;  %v4819_v31 = vsel %vm48_vm0, %v4734_v11, 0  ;;  %v4657_v11 = vld [vmem:[#allocation2 + $0xa8] sm:$0xff] }
 0x42d   :  { %7050 = vmatpush3.bf16.xpose.msra.mxu1 %v4816_v51  ;;  %7063 = vmatprep.mubr.msk.bf16.mxu1 %vm48_vm0, %v11649_v61  ;;  %v4744_v51 = vpack.c.bf16 %v4704_v50, %v4703_v49  ;;  %v4721_v45 = vpack.c.bf16 %v4658_v7, %v4657_v11  ;;  %v4691_v49 = vld [vmem:[#allocation2 + $0x270] sm:$0xff]  ;;  %v4692_v50 = vld [vmem:[#allocation2 + $0x278] sm:$0xff] }
 0x42e   :  { %7381 = vmatprep.subr.msk.bf16.mxu1 %vm48_vm0, %v4742_v55  ;;  %v4673_v55 = vld [vmem:[#allocation2 + $0x168] sm:$0xff]  ;;  %v4694_v11 = vld [vmem:[#allocation2 + $0x290] sm:$0xff] }
 0x42f   :  { %7032 = vmatpush3.bf16.xpose.msra.mxu0 %v4771_v44  ;;  %v4729_v44 = vpack.c.bf16 %v4674_v17, %v4673_v55  ;;  %v4780_v59 = vsel %vm48_vm0, %v4721_v45, 0  ;;  %v4661_v55 = vld [vmem:[#allocation2 + $0xd8] sm:$0xff]  ;;  %v4662_v17 = vld [vmem:[#allocation2 + $0xe0] sm:$0xff] }
 0x430   :  { %7374 = vmatprep.subr.msk.bf16.mxu0 %vm48_vm0, %v4727_v40  ;;  %v4736_v40 = vpack.c.bf16 %v4688_v15, %v4687_v27  ;;  %v4709_v27 = vld [vmem:[#allocation2 + $0x348] sm:$0xff]  ;;  %v4710_v15 = vld [vmem:[#allocation2 + $0x350] sm:$0xff] }
 0x432   :  { %v4825_v24 = vsel %vm48_vm0, %v4736_v40, 0  ;;  %v4693_v40 = vld [vmem:[#allocation2 + $0x288] sm:$0xff] }
 0x435   :  { %7052 = vmatpush3.bf16.xpose.msra.mxu1 %v4819_v31  ;;  %v4745_v31 = vpack.c.bf16 %v4706_v34, %v4705_v39  ;;  %v7436_v34 = vld [vmem:[%s12244_s4 + $0x68] sm:$0xff]  }
 0x436   :  { %7382 = vmatprep.subr.msk.bf16.mxu1 %vm48_vm0, %v4743_v8  ;;  %v4689_v8 = vld [vmem:[#allocation2 + $0x258] sm:$0xff] }
 0x437   :  { %7034 = vmatpush3.bf16.xpose.msra.mxu0 %v4774_v60  ;;  %v4737_v62 = vpack.c.bf16 %v4690_v52, %v4689_v8  ;;  %v4660_v60 = vld [vmem:[#allocation2 + $0xc8] sm:$0xff]  ;;  %v5320_v52 = vld [vmem:[#allocation2 + $0x52] sm:$0xff] }
 0x438   :  { %7375 = vmatprep.subr.msk.bf16.mxu0 %vm48_vm0, %v4728_v30  ;;  %v4722_v30 = vpack.c.bf16 %v4660_v60, %v4659_v38  ;;  %v5319_v8 = vld [vmem:[#allocation2 + $0x4a] sm:$0xff] }
 0x439   :  { %v4828_v25 = vsel %vm48_vm0, %v4737_v62, 0  ;;  %v5368_v62 = vld [vmem:[#allocation2 + $0x2c2] sm:$0xff]  ;;  %v5387_v38 = vpack.c.bf16 %v5320_v52, %v5319_v8 }
 0x43a   :  { %v4783_v5 = vsel %vm48_vm0, %v4722_v30, 0  ;;  %v5376_v8 = vld [vmem:[#allocation2 + $0x322] sm:$0xff] }
 0x43d   :  { %7054 = vmatpush3.bf16.xpose.msra.mxu1 %v4822_v48  ;;  %v4731_v48 = vpack.c.bf16 %v4678_v37, %v4677_v2  ;;  %v5338_v2 = vld [vmem:[#allocation2 + $0x12a] sm:$0xff]  ;;  %v5351_v37 = vld [vmem:[#allocation2 + $0x1fa] sm:$0xff] }
 0x43e   :  { %7383 = vmatprep.subr.msk.bf16.mxu1 %vm48_vm0, %v4744_v51  ;;  %v4738_v51 = vpack.c.bf16 %v4692_v50, %v4691_v49  ;;  %v5352_v49 = vld [vmem:[#allocation2 + $0x202] sm:$0xff] }
 0x43f   :  { %7036 = vmatpush3.bf16.xpose.msra.mxu0 %v4777_v13  ;;  %v11769_v50 = vld [vmem:[%s12244_s4 + $0x80] sm:$0xff]  }
 0x440   :  { %7376 = vmatprep.subr.msk.bf16.mxu0 %vm48_vm0, %v4729_v44  ;;  %v4831_v13 = vsel %vm48_vm0, %v4738_v51, 0  ;;  %v4747_v44 = vpack.c.bf16 %v4710_v15, %v4709_v27  ;;  %v5403_v51 = vpack.c.bf16 %v5352_v49, %v5351_v37  ;;  %v5369_v27 = vld [vmem:[#allocation2 + $0x2d2] sm:$0xff]  ;;  %v5370_v15 = vld [vmem:[#allocation2 + $0x2da] sm:$0xff]  ;;  %v5348_v49 = vld [vmem:[#allocation2 + $0x1a2] sm:$0xff] }
 0x441   :  { %v5347_v37 = vld [vmem:[#allocation2 + $0x19a] sm:$0xff] }
 0x445   :  { %7056 = vmatpush3.bf16.xpose.msra.mxu1 %v4825_v24 }
 0x446   :  { %7384 = vmatprep.subr.msk.bf16.mxu1 %vm48_vm0, %v4745_v31 }
 0x447   :  { %7038 = vmatpush3.bf16.xpose.msra.mxu0 %v4780_v59  ;;  %v5367_v59 = vld [vmem:[#allocation2 + $0x2ba] sm:$0xff] }
 0x448   :  { %7377 = vmatprep.subr.msk.bf16.mxu0 %vm48_vm0, %v11403_v9  ;;  %v4723_v9 = vpack.c.bf16 %v4662_v17, %v4661_v55  ;;  %v5411_v30 = vpack.c.bf16 %v5368_v62, %v5367_v59  ;;  %v5321_v55 = vld [vmem:[#allocation2 + $0x62] sm:$0xff]  ;;  %v5322_v17 = vld [vmem:[#allocation2 + $0x6a] sm:$0xff] }
 0x44a   :  { %v4786_v7 = vsel %vm48_vm0, %v4723_v9, 0  ;;  %v5388_v9 = vpack.c.bf16 %v5322_v17, %v5321_v55  ;;  %v5379_v55 = vld [vmem:[#allocation2 + $0x34a] sm:$0xff]  ;;  %v5380_v17 = vld [vmem:[#allocation2 + $0x352] sm:$0xff] }
 0x44d   :  { %7058 = vmatpush3.bf16.xpose.msra.mxu1 %v4828_v25  ;;  %v5337_v25 = vld [vmem:[#allocation2 + $0x122] sm:$0xff] }
 0x44e   :  { %7385 = vmatprep.subr.msk.bf16.mxu1 %vm48_vm0, %v11410_v43  ;;  %v4739_v43 = vpack.c.bf16 %v4694_v11, %v4693_v40  ;;  %v5339_v40 = vld [vmem:[#allocation2 + $0x13a] sm:$0xff]  ;;  %v5340_v11 = vld [vmem:[#allocation2 + $0x142] sm:$0xff] }
 0x44f   :  { %7040 = vmatpush3.bf16.xpose.msra.mxu0 %v4783_v5  ;;  %v5438_v5 = vsel %vm48_vm0, %v5387_v38, 0  ;;  %v5359_v38 = vld [vmem:[#allocation2 + $0x25a] sm:$0xff] }
 0x450   :  { %7378 = vmatprep.subr.msk.bf16.mxu0 %vm48_vm0, %v4731_v48  ;;  %v4834_v39 = vsel %vm48_vm0, %v4739_v43, 0  ;;  %v5396_v48 = vpack.c.bf16 %v5338_v2, %v5337_v25  ;;  %v5354_v43 = vld [vmem:[#allocation2 + $0x21a] sm:$0xff] }
 0x455   :  { %7060 = vmatpush3.bf16.xpose.msra.mxu1 %v4831_v13  ;;  %v5486_v13 = vsel %vm48_vm0, %v5403_v51, 0  ;;  %v5332_v51 = vld [vmem:[#allocation2 + $0xe2] sm:$0xff] }
 0x456   :  { %7386 = vmatprep.subr.msk.bf16.mxu1 %vm48_vm0, %v4747_v44  ;;  %v5412_v44 = vpack.c.bf16 %v5370_v15, %v5369_v27  ;;  %v5417_v15 = vpack.c.bf16 %v5380_v17, %v5379_v55 }
 0x457   :  { %7042 = vmatpush3.bf16.xpose.msra.mxu0 %v4786_v7  ;;  %v5353_v7 = vld [vmem:[#allocation2 + $0x212] sm:$0xff] }
 0x458   :  { %7387 = vmatprep.subr.msk.bf16.mxu0 %vm48_vm0, %v11424_v0  ;;  %v11705_v0 = vld [vmem:[%s12244_s4 + $0x70] sm:$0xff]  }
 0x45d   :  { %7062 = vmatpush3.bf16.xpose.msra.mxu1 %v4834_v39  ;;  %v5441_v39 = vsel %vm48_vm0, %v5388_v9, 0  ;;  %v5364_v9 = vld [vmem:[#allocation2 + $0x292] sm:$0xff] }
 0x45e   :  { %7395 = vmatprep.subr.msk.bf16.mxu1 %vm48_vm0, %v11433_v63  ;;  %7044 = vmatmul.mubr.msk.bf16.vlgmr.msra.gmra.mrb[0].mxu0 %vm48_vm0, %v11649_v61  ;;  %v5012_v63 = vld [vmem:[#allocation2 + $0x199] sm:$0xff] }
 0x45f   :  { %7068 = vmatpush3.bf16.xpose.msra.mxu0 %v11443_v53  ;;  %7045 = vmatprep.mubr.msk.bf16.mxu0 %vm48_vm0, %v7436_v34  ;;  %v5013_v53 = vld [vmem:[#allocation2 + $0x1a1] sm:$0xff] }
 0x460   :  { %7388 = vmatprep.subr.msk.bf16.mxu0 %vm48_vm0, %v11445_v12  ;;  %v5066_v12 = vpack.c.bf16 %v5013_v53, %v5012_v63  ;;  %v5323_v63 = vld [vmem:[#allocation2 + $0x7a] sm:$0xff]  ;;  %v5324_v53 = vld [vmem:[#allocation2 + $0x82] sm:$0xff] }
 0x464   :  { %7064 = vmatmul.mubr.msk.bf16.vlgmr.msra.gmra.mrb[0].mxu1 %vm48_vm0, %v11649_v61  ;;  %v7438_v61 = vld [vmem:[%s12244_s4 + $0x78] sm:$0xff]  }
 0x465   :  { %7088 = vmatpush3.bf16.xpose.msra.mxu1 %v11457_v4  ;;  %7065 = vmatprep.mubr.msk.bf16.mxu1 %vm48_vm0, %v7436_v34  ;;  %v4996_v4 = vld [vmem:[#allocation2 + $0xd9] sm:$0xff] }
 0x466   :  { %7396 = vmatprep.subr.msk.bf16.mxu1 %vm48_vm0, %v11459_v1  ;;  %7046 = vmatmul.mubr.msk.bf16.gmra.mrb[4].mxu0 %vm48_vm0, %v7436_v34  ;;  %v4997_v1 = vld [vmem:[#allocation2 + $0xe1] sm:$0xff] }
 0x467   :  { %7070 = vmatpush3.bf16.xpose.msra.mxu0 %v11464_v47  ;;  %7083 = vmatprep.mubr.msk.bf16.mxu0 %vm48_vm0, %v11705_v0  ;;  %v5044_v47 = vld [vmem:[#allocation2 + $0x349] sm:$0xff] }
 0x468   :  { %7389 = vmatprep.subr.msk.bf16.mxu0 %vm48_vm0, %v11466_v26  ;;  %v5045_v26 = vld [vmem:[#allocation2 + $0x351] sm:$0xff] }
 0x46c   :  { %7066 = vmatmul.mubr.msk.bf16.gmra.mrb[4].mxu1 %vm48_vm0, %v7436_v34  ;;  %v5397_v34 = vpack.c.bf16 %v5340_v11, %v5339_v40 }
 0x46d   :  { %7090 = vmatpush3.bf16.xpose.msra.mxu1 %v11476_v10  ;;  %7103 = vmatprep.mubr.msk.bf16.mxu1 %vm48_vm0, %v11705_v0  ;;  %v5058_v10 = vpack.c.bf16 %v4997_v1, %v4996_v4  ;;  %v5372_v4 = vld [vmem:[#allocation2 + $0x2f2] sm:$0xff]  ;;  %v5389_v1 = vpack.c.bf16 %v5324_v53, %v5323_v63 }
 0x46e   :  { %7397 = vmatprep.subr.msk.bf16.mxu1 %vm48_vm0, %v11478_v23  ;;  %v5082_v23 = vpack.c.bf16 %v5045_v26, %v5044_v47 }
 0x46f   :  { %7072 = vmatpush3.bf16.xpose.msra.mxu0 %v11482_v16  ;;  %v5333_v16 = vld [vmem:[#allocation2 + $0xf2] sm:$0xff] }
 0x470   :  { %7390 = vmatprep.subr.msk.bf16.mxu0 %vm48_vm0, %v11484_v29  ;;  %v5334_v29 = vld [vmem:[#allocation2 + $0xfa] sm:$0xff] }
 0x475   :  { %7092 = vmatpush3.bf16.xpose.msra.mxu1 %v11492_v14  ;;  %v5028_v14 = vld [vmem:[#allocation2 + $0x289] sm:$0xff] }
 0x476   :  { %7398 = vmatprep.subr.msk.bf16.mxu1 %vm48_vm0, %v11494_v56  ;;  %v5029_v56 = vld [vmem:[#allocation2 + $0x291] sm:$0xff] }
 0x477   :  { %7074 = vmatpush3.bf16.xpose.msra.mxu0 %v11498_v22  ;;  %v5121_v22 = vsel %vm48_vm0, %v5058_v10, 0  ;;  %v5341_v10 = vld [vmem:[#allocation2 + $0x152] sm:$0xff] }
 0x478   :  { %7391 = vmatprep.subr.msk.bf16.mxu0 %vm48_vm0, %v11500_v6  ;;  %v5394_v6 = vpack.c.bf16 %v5334_v29, %v5333_v16  ;;  %v5355_v16 = vld [vmem:[#allocation2 + $0x22a] sm:$0xff]  ;;  %v5356_v29 = vld [vmem:[#allocation2 + $0x232] sm:$0xff] }
 0x47d   :  { %7094 = vmatpush3.bf16.xpose.msra.mxu1 %v11508_v42  ;;  %v5074_v42 = vpack.c.bf16 %v5029_v56, %v5028_v14  ;;  %v5444_v14 = vsel %vm48_vm0, %v5389_v1, 0 }
 0x47e   :  { %7399 = vmatprep.subr.msk.bf16.mxu1 %vm48_vm0, %v11510_v58  ;;  %v5317_v58 = vld [vmem:[#allocation2 + $0x32] sm:$0xff] }
 0x47f   :  { %7076 = vmatpush3.bf16.xpose.msra.mxu0 %v11514_v20  ;;  %v5318_v20 = vld [vmem:[#allocation2 + $0x3a] sm:$0xff] }
 0x480   :  { %7392 = vmatprep.subr.msk.bf16.mxu0 %vm48_vm0, %v11516_v54  ;;  %v5365_v54 = vld [vmem:[#allocation2 + $0x2a2] sm:$0xff] }
 0x485   :  { %7096 = vmatpush3.bf16.xpose.msra.mxu1 %v11524_v35  ;;  %v5366_v35 = vld [vmem:[#allocation2 + $0x2aa] sm:$0xff] }
 0x486   :  { %7400 = vmatprep.subr.msk.bf16.mxu1 %vm48_vm0, %v11526_v32  ;;  %v5386_v32 = vpack.c.bf16 %v5318_v20, %v5317_v58  ;;  %v5373_v58 = vld [vmem:[#allocation2 + $0x302] sm:$0xff]  ;;  %v5374_v20 = vld [vmem:[#allocation2 + $0x30a] sm:$0xff] }
 0x487   :  { %7078 = vmatpush3.bf16.xpose.msra.mxu0 %v11530_v18  ;;  %v5169_v18 = vsel %vm48_vm0, %v5074_v42, 0  ;;  %v5326_v42 = vld [vmem:[#allocation2 + $0x9a] sm:$0xff] }
 0x488   :  { %7393 = vmatprep.subr.msk.bf16.mxu0 %vm48_vm0, %v11532_v33  ;;  %v5410_v33 = vpack.c.bf16 %v5366_v35, %v5365_v54  ;;  %v5435_v45 = vsel %vm48_vm0, %v5386_v32, 0  ;;  %v5414_v32 = vpack.c.bf16 %v5374_v20, %v5373_v58 }
 0x48d   :  { %7098 = vmatpush3.bf16.xpose.msra.mxu1 %v11540_v41  ;;  %v5335_v41 = vld [vmem:[#allocation2 + $0x10a] sm:$0xff] }
 0x48e   :  { %7401 = vmatprep.subr.msk.bf16.mxu1 %vm48_vm0, %v11542_v21  ;;  %v5336_v21 = vld [vmem:[#allocation2 + $0x112] sm:$0xff] }
 0x48f   :  { %7080 = vmatpush3.bf16.xpose.msra.mxu0 %v11546_v57  ;;  %v5349_v57 = vld [vmem:[#allocation2 + $0x1e2] sm:$0xff]  ;;  %v5395_v24 = vpack.c.bf16 %v5336_v21, %v5335_v41  ;;  %v5358_v21 = vld [vmem:[#allocation2 + $0x24a] sm:$0xff] }
 0x490   :  { %7394 = vmatprep.subr.msk.bf16.mxu0 %vm48_vm0, %v5066_v12  ;;  %v5371_v12 = vld [vmem:[#allocation2 + $0x2ea] sm:$0xff]  ;;  %v5357_v41 = vld [vmem:[#allocation2 + $0x242] sm:$0xff] }
 0x491   :  { %v5413_v26 = vpack.c.bf16 %v5372_v4, %v5371_v12 }
 0x495   :  { %7100 = vmatpush3.bf16.xpose.msra.mxu1 %v11554_v46  ;;  %v5350_v46 = vld [vmem:[#allocation2 + $0x1ea] sm:$0xff] }
 0x496   :  { %7402 = vmatprep.subr.msk.bf16.mxu1 %vm48_vm0, %v5082_v23  ;;  %v5402_v31 = vpack.c.bf16 %v5350_v46, %v5349_v57  ;;  %v5342_v23 = vld [vmem:[#allocation2 + $0x15a] sm:$0xff] }
 0x497   :  { %7082 = vmatpush3.bf16.xpose.msra.mxu0 %v5121_v22  ;;  %v5398_v56 = vpack.c.bf16 %v5342_v23, %v5341_v10  ;;  %v5405_v22 = vpack.c.bf16 %v5356_v29, %v5355_v16 }
 0x498   :  { %7403 = vmatprep.subr.msk.bf16.mxu0 %vm48_vm0, %v5394_v6  ;;  %v5483_v60 = vsel %vm48_vm0, %v5402_v31, 0  ;;  %v5325_v6 = vld [vmem:[#allocation2 + $0x92] sm:$0xff]  ;;  %v5375_v31 = vld [vmem:[#allocation2 + $0x31a] sm:$0xff] }
 0x499   :  { %v5390_v54 = vpack.c.bf16 %v5326_v42, %v5325_v6  ;;  %v5492_v35 = vsel %vm48_vm0, %v5405_v22, 0  ;;  %v5415_v62 = vpack.c.bf16 %v5376_v8, %v5375_v31 }
 0x49b   :  { %v5447_v57 = vsel %vm48_vm0, %v5390_v54, 0 }
 0x49d   :  { %7102 = vmatpush3.bf16.xpose.msra.mxu1 %v5169_v18  ;;  %v5343_v18 = vld [vmem:[#allocation2 + $0x16a] sm:$0xff] }
 0x49e   :  { %7411 = vmatprep.subr.msk.bf16.mxu1 %vm48_vm0, %v5410_v33  ;;  %7084 = vmatmul.mubr.msk.bf16.vlgmr.msra.gmra.mrb[0].mxu0 %vm48_vm0, %v11705_v0  ;;  %v5344_v33 = vld [vmem:[#allocation2 + $0x172] sm:$0xff] }
 0x49f   :  { %7108 = vmatpush3.bf16.xpose.msra.mxu0 %v5435_v45  ;;  %7085 = vmatprep.mubr.msk.bf16.mxu0 %vm48_vm0, %v7438_v61  ;;  %v5399_v46 = vpack.c.bf16 %v5344_v33, %v5343_v18  ;;  %v5327_v45 = vld [vmem:[#allocation2 + $0xaa] sm:$0xff] }
 0x4a0   :  { %7404 = vmatprep.subr.msk.bf16.mxu0 %vm48_vm0, %v5395_v24  ;;  %v5328_v24 = vld [vmem:[#allocation2 + $0xb2] sm:$0xff] }
 0x4a1   :  { %v5391_v52 = vpack.c.bf16 %v5328_v24, %v5327_v45 }
 0x4a4   :  { %7104 = vmatmul.mubr.msk.bf16.vlgmr.msra.gmra.mrb[0].mxu1 %vm48_vm0, %v11705_v0  ;;  %v5404_v0 = vpack.c.bf16 %v5354_v43, %v5353_v7 }
 0x4a5   :  { %7128 = vmatpush3.bf16.xpose.msra.mxu1 %v5483_v60  ;;  %7105 = vmatprep.mubr.msk.bf16.mxu1 %vm48_vm0, %v7438_v61  ;;  %v5360_v60 = vld [vmem:[#allocation2 + $0x262] sm:$0xff] }
 0x4a6   :  { %7412 = vmatprep.subr.msk.bf16.mxu1 %vm48_vm0, %v5411_v30  ;;  %7086 = vmatmul.mubr.msk.bf16.gmra.mrb[4].mxu0 %vm48_vm0, %v7438_v61  ;;  %v5489_v47 = vsel %vm48_vm0, %v5404_v0, 0  ;;  %v5450_v30 = vsel %vm48_vm0, %v5391_v52, 0  ;;  %v5407_v25 = vpack.c.bf16 %v5360_v60, %v5359_v38 }
 0x4a7   :  { %7110 = vmatpush3.bf16.xpose.msra.mxu0 %v5438_v5  ;;  %7123 = vmatprep.mubr.msk.bf16.mxu0 %vm48_vm0, %v11769_v50  ;;  %v5401_v5 = vpack.c.bf16 %v5348_v49, %v5347_v37 }
 0x4a8   :  { %7405 = vmatprep.subr.msk.bf16.mxu0 %vm48_vm0, %v5396_v48  ;;  %v5498_v2 = vsel %vm48_vm0, %v5407_v25, 0  ;;  %v5331_v48 = vld [vmem:[#allocation2 + $0xda] sm:$0xff] }
 0x4a9   :  { %v5393_v27 = vpack.c.bf16 %v5332_v51, %v5331_v48 }
 0x4ac   :  { %7106 = vmatmul.mubr.msk.bf16.gmra.mrb[4].mxu1 %vm48_vm0, %v7438_v61  ;;  %v5406_v61 = vpack.c.bf16 %v5358_v21, %v5357_v41 }
 0x4ad   :  { %7130 = vmatpush3.bf16.xpose.msra.mxu1 %v5486_v13  ;;  %7143 = vmatprep.mubr.msk.bf16.mxu1 %vm48_vm0, %v11769_v50  ;;  %v5456_v13 = vsel %vm48_vm0, %v5393_v27, 0  ;;  %v7482_v27 = vmov 0  }
 0x4ae   :  { %7413 = vmatprep.subr.msk.bf16.mxu1 %vm48_vm0, %v5412_v44  ;;  %v5495_v59 = vsel %vm48_vm0, %v5406_v61, 0  ;;  %7421 = vset.pattern.permute.xlu0 %v7482_v27 }
 0x4af   :  { %7112 = vmatpush3.bf16.xpose.msra.mxu0 %v5441_v39  ;;  %7422 = vset.pattern.permute.xlu1 %v7482_v27 }
 0x4b0   :  { %7406 = vmatprep.subr.msk.bf16.mxu0 %vm48_vm0, %v5397_v34 }
 0x4b5   :  { %7132 = vmatpush3.bf16.xpose.msra.mxu1 %v5489_v47 }
 0x4b6   :  { %7414 = vmatprep.subr.msk.bf16.mxu1 %vm48_vm0, %v5413_v26 }
 0x4b7   :  { %7114 = vmatpush3.bf16.xpose.msra.mxu0 %v5444_v14 }
 0x4b8   :  { %7407 = vmatprep.subr.msk.bf16.mxu0 %vm48_vm0, %v5398_v56 }
 0x4bd   :  { %7134 = vmatpush3.bf16.xpose.msra.mxu1 %v5492_v35 }
 0x4be   :  { %7415 = vmatprep.subr.msk.bf16.mxu1 %vm48_vm0, %v5414_v32 }
 0x4bf   :  { %7116 = vmatpush3.bf16.xpose.msra.mxu0 %v5447_v57 }
 0x4c0   :  { %7408 = vmatprep.subr.msk.bf16.mxu0 %vm48_vm0, %v5399_v46 }
 0x4c5   :  { %7136 = vmatpush3.bf16.xpose.msra.mxu1 %v5495_v59 }
 0x4c6   :  { %7416 = vmatprep.subr.msk.bf16.mxu1 %vm48_vm0, %v5415_v62 }
 0x4c7   :  { %7118 = vmatpush3.bf16.xpose.msra.mxu0 %v5450_v30 }
 0x4c8   :  { %7409 = vmatprep.subr.msk.bf16.mxu0 %vm48_vm0, %v11613_v28  ;;  %v5363_v28 = vld [vmem:[#allocation2 + $0x28a] sm:$0xff] }
 0x4c9   :  { %v5409_v44 = vpack.c.bf16 %v5364_v9, %v5363_v28 }
 0x4cd   :  { %7138 = vmatpush3.bf16.xpose.msra.mxu1 %v5498_v2 }
 0x4ce   :  { %7417 = vmatprep.subr.msk.bf16.mxu1 %vm48_vm0, %v11620_v19  ;;  %v5504_v19 = vsel %vm48_vm0, %v5409_v44, 0 }
 0x4cf   :  { %7120 = vmatpush3.bf16.xpose.msra.mxu0 %v11624_v36  ;;  %v7440_v36 = vld [vmem:[%s12244_s4 + $0x88] sm:$0xff]  }
 0x4d0   :  { %7410 = vmatprep.subr.msk.bf16.mxu0 %vm48_vm0, %v5401_v5 }
 0x4d5   :  { %7140 = vmatpush3.bf16.xpose.msra.mxu1 %v11631_v3 }
 0x4d6   :  { %7418 = vmatprep.subr.msk.bf16.mxu1 %vm48_vm0, %v5417_v15 }
 0x4d7   :  { %7122 = vmatpush3.bf16.xpose.msra.mxu0 %v5456_v13 }
 0x4dd   :  { %7142 = vmatpush3.bf16.xpose.msra.mxu1 %v5504_v19 }
 0x4de   :  { %7124 = vmatmul.mubr.msk.bf16.vlgmr.msra.gmra.mrb[0].mxu0 %vm48_vm0, %v11769_v50 }
 0x4df   :  { %7125 = vmatprep.mubr.msk.bf16.mxu0 %vm48_vm0, %v7440_v36 }
 0x4e4   :  { %7144 = vmatmul.mubr.msk.bf16.vlgmr.msra.gmra.mrb[0].mxu1 %vm48_vm0, %v11769_v50 }
 0x4e5   :  { %7145 = vmatprep.mubr.msk.bf16.mxu1 %vm48_vm0, %v7440_v36 }
 0x4e6   :  { %7126 = vmatmul.mubr.msk.bf16.gmra.mrb[4].mxu0 %vm48_vm0, %v7440_v36 }
 0x4e7   :  { %5901 = vmatprep.mubr.bf16.mxu0 %v7482_v27 }
 0x4ec   :  { %7146 = vmatmul.mubr.msk.bf16.gmra.mrb[4].mxu1 %vm48_vm0, %v7440_v36 }
 0x4ed   :  { %5954 = vmatprep.mubr.bf16.mxu1 %v7482_v27 }
 0x5b1   :  { %v11818_v3 = vpop.f32.mrb[0].mxu0 }
 0x5b2   :  { %v5680_v40 = vmul.f32 %v11818_v3, %v11818_v3  ;;  %v11822_v11 = vpop.f32.mrb[1].mxu0 }
 0x5b3   :  { %v5660_v7 = vadd.f32 %v11822_v11, %v11818_v3  ;;  %v5681_v43 = vmul.f32 %v11822_v11, %v11822_v11  ;;  %v11828_v50 = vpop.f32.mrb[2].mxu0 }
 0x5b4   :  { %v5684_v39 = vmul.f32 %v11828_v50, %v11828_v50  ;;  %v11832_v34 = vpop.f32.mrb[3].mxu0 }
 0x5b5   :  { %v5665_v0 = vadd.f32 %v11832_v34, %v11828_v50  ;;  %v5685_v63 = vmul.f32 %v11832_v34, %v11832_v34  ;;  %v5696_v53 = vadd.f32 %v5681_v43, %v5680_v40 }
 0x5b7   :  { %v11838_v12 = vpop.f32.mrb[0].mxu1  ;;  %v5701_v26 = vadd.f32 %v5685_v63, %v5684_v39 }
 0x5b8   :  { %v5682_v4 = vmul.f32 %v11838_v12, %v11838_v12  ;;  %v11842_v1 = vpop.f32.mrb[1].mxu1  ;;  %v5661_v47 = vadd.f32 %v5660_v7, %v11838_v12 }
 0x5b9   :  { %v11845_v10 = vpop.f32.mrb[2].mxu1  ;;  %v11850_v29 = vpop.f32.mrb[4].mxu0  ;;  %v5683_v14 = vmul.f32 %v11842_v1, %v11842_v1 }
 0x5ba   :  { %v11847_v23 = vpop.f32.mrb[3].mxu1  ;;  %v5662_v16 = vadd.f32 %v5661_v47, %v11842_v1  ;;  %v5697_v56 = vadd.f32 %v5696_v53, %v5682_v4  ;;  %v5666_v22 = vadd.f32 %v5665_v0, %v11845_v10  ;;  %v5686_v6 = vmul.f32 %v11845_v10, %v11845_v10  ;;  %v11859_v58 = vpop.f32.mrb[5].mxu0 }
 0x5bb   :  { %v5688_v42 = vmul.f32 %v11850_v29, %v11850_v29  ;;  %v5670_v20 = vadd.f32 %v11859_v58, %v11850_v29  ;;  %v5689_v54 = vmul.f32 %v11859_v58, %v11859_v58  ;;  %v11865_v32 = vpop.f32.mrb[6].mxu0  ;;  %v5687_v21 = vmul.f32 %v11847_v23, %v11847_v23 }
 0x5bc   :  { %5663 = vadd.xlane.f32.xlu0 %v5662_v16  ;;  %v5698_v35 = vadd.f32 %v5697_v56, %v5683_v14  ;;  %v5667_v18 = vadd.f32 %v5666_v22, %v11847_v23  ;;  %v5692_v33 = vmul.f32 %v11865_v32, %v11865_v32  ;;  %v11870_v41 = vpop.f32.mrb[7].mxu0  ;;  %v5702_v57 = vadd.f32 %v5701_v26, %v5686_v6 }
 0x5bd   :  { %v5675_v46 = vadd.f32 %v11870_v41, %v11865_v32  ;;  %v5693_v61 = vmul.f32 %v11870_v41, %v11870_v41  ;;  %v5706_v45 = vadd.f32 %v5689_v54, %v5688_v42 }
 0x5be   :  { %5699 = vadd.xlane.f32.xlu1 %v5698_v35  ;;  %v5703_v31 = vadd.f32 %v5702_v57, %v5687_v21  ;;  %v5652_v35 = vld [vmem:[%s12247_s5] sm:$0xff] }
 0x5bf   :  { %v11878_v24 = vpop.f32.mrb[4].mxu1  ;;  %v5711_v62 = vadd.f32 %v5693_v61, %v5692_v33 }
 0x5c0   :  { %v5690_v8 = vmul.f32 %v11878_v24, %v11878_v24  ;;  %v11882_v52 = vpop.f32.mrb[5].mxu1  ;;  %5668 = vadd.xlane.f32.xlu0 %v5667_v18  ;;  %v5671_v59 = vadd.f32 %v5670_v20, %v11878_v24 }
 0x5c1   :  { %v11885_v38 = vpop.f32.mrb[6].mxu1  ;;  %v5691_v60 = vmul.f32 %v11882_v52, %v11882_v52 }
 0x5c2   :  { %v5694_v30 = vmul.f32 %v11885_v38, %v11885_v38  ;;  %v11891_v25 = vpop.f32.mrb[7].mxu1  ;;  %5704 = vadd.xlane.f32.xlu1 %v5703_v31  ;;  %v5672_v2 = vadd.f32 %v5671_v59, %v11882_v52  ;;  %v5676_v37 = vadd.f32 %v5675_v46, %v11885_v38  ;;  %v5707_v49 = vadd.f32 %v5706_v45, %v5690_v8  ;;  %v5653_v46 = vld [vmem:[%s12247_s5 + $0x8] sm:$0xff]  ;;  %v5656_v59 = vld [vmem:[%s12248_s6] sm:$0xff] }
 0x5c3   :  { %v5695_v51 = vmul.f32 %v11891_v25, %v11891_v25 }
 0x5c4   :  { %5673 = vadd.xlane.f32.xlu0 %v5672_v2  ;;  %v5677_v5 = vadd.f32 %v5676_v37, %v11891_v25  ;;  %v5708_v48 = vadd.f32 %v5707_v49, %v5691_v60  ;;  %v5712_v55 = vadd.f32 %v5711_v62, %v5694_v30  ;;  %v5657_v30 = vld [vmem:[%s12248_s6 + $0x8] sm:$0xff]  ;;  %v5654_v49 = vld [vmem:[%s12247_s5 + $0x10] sm:$0xff] }
 0x5c6   :  { %5678 = vadd.xlane.f32.xlu1 %v5677_v5  ;;  %v5713_v17 = vadd.f32 %v5712_v55, %v5695_v51  ;;  %v5655_v51 = vld [vmem:[%s12247_s5 + $0x18] sm:$0xff] }
 0x5c8   :  { %5709 = vadd.xlane.f32.xlu0 %v5708_v48 }
 0x5ca   :  { %5714 = vadd.xlane.f32.xlu1 %v5713_v17 }
 0x649   :  { %v5664_v15 = vpop.xlane.xlu0 %5663 }
 0x64a   :  { %v5716_v28 = vmul.f32 0.001953125, %v5664_v15  ;;  %v5658_v15 = vld [vmem:[%s12248_s6 + $0x10] sm:$0xff] }
 0x64b   :  { %v5700_v9 = vpop.xlane.xlu1 %5699 }
 0x64c   :  { %v5724_v13 = vmul.f32 %v5716_v28, %v5716_v28  ;;  %v5720_v44 = vmul.f32 0.001953125, %v5700_v9 }
 0x64d   :  { %v5669_v19 = vpop.xlane.xlu0 %5668 }
 0x64e   :  { %v5728_v36 = vsub.f32 %v5720_v44, %v5724_v13  ;;  %v5717_v40 = vmul.f32 0.001953125, %v5669_v19  ;;  %v5659_v13 = vld [vmem:[%s12248_s6 + $0x18] sm:$0xff] }
 0x64f   :  { %v5705_v7 = vpop.xlane.xlu1 %5704 }
 0x650   :  { %v5732_v43 = vadd.f32 1e-05, %v5728_v36  ;;  %v5725_v39 = vmul.f32 %v5717_v40, %v5717_v40  ;;  %v5721_v0 = vmul.f32 0.001953125, %v5705_v7 }
 0x651   :  { %v5674_v63 = vpop.xlane.xlu0 %5673 }
 0x652   :  { %7449 = vrsqrt.f32 %v5732_v43  ;;  %v5729_v53 = vsub.f32 %v5721_v0, %v5725_v39  ;;  %v5718_v4 = vmul.f32 0.001953125, %v5674_v63 }
 0x653   :  { %v5679_v47 = vpop.xlane.xlu1 %5678 }
 0x654   :  { %v5733_v26 = vadd.f32 1e-05, %v5729_v53  ;;  %v5726_v14 = vmul.f32 %v5718_v4, %v5718_v4  ;;  %v5719_v56 = vmul.f32 0.001953125, %v5679_v47 }
 0x655   :  { %v5710_v16 = vpop.xlane.xlu0 %5709 }
 0x656   :  { %7451 = vrsqrt.f32 %v5733_v26  ;;  %v5722_v22 = vmul.f32 0.001953125, %v5710_v16  ;;  %v5727_v54 = vmul.f32 %v5719_v56, %v5719_v56 }
 0x657   :  { %v5715_v6 = vpop.xlane.xlu1 %5714 }
 0x658   :  { %v5730_v42 = vsub.f32 %v5722_v22, %v5726_v14  ;;  %v5723_v20 = vmul.f32 0.001953125, %v5715_v6 }
 0x65a   :  { %v5734_v33 = vadd.f32 1e-05, %v5730_v42  ;;  %v5731_v21 = vsub.f32 %v5723_v20, %v5727_v54 }
 0x65c   :  { %v7450_v18 = vpop.eup %7449  ;;  %7453 = vrsqrt.f32 %v5734_v33  ;;  %v5735_v45 = vadd.f32 1e-05, %v5731_v21 }
 0x65d   :  { %v5740_v57 = vmul.f32 %v7450_v18, %v5652_v35 }
 0x65e   :  { %7455 = vrsqrt.f32 %v5735_v45 }
 0x65f   :  { %5754 = vperm.xlu0 %7421, %v5740_v57   ;;  %v5744_v8 = vmul.f32 %v5740_v57, %v5716_v28 }
 0x660   :  { %v7452_v61 = vpop.eup %7451 }
 0x661   :  { %v5741_v31 = vmul.f32 %v7452_v61, %v5653_v46  ;;  %v5748_v62 = vsub.f32 %v5656_v59, %v5744_v8 }
 0x663   :  { %5759 = vperm.xlu1 %7422, %v5741_v31   ;;  %v5745_v60 = vmul.f32 %v5741_v31, %v5717_v40 }
 0x665   :  { %v5749_v2 = vsub.f32 %v5657_v30, %v5745_v60 }
 0x666   :  { %v7454_v37 = vpop.eup %7453 }
 0x667   :  { %5790 = vperm.xlu1 %7422, %v5748_v62   ;;  %v5742_v5 = vmul.f32 %v7454_v37, %v5654_v49 }
 0x668   :  { %v7456_v48 = vpop.eup %7455 }
 0x669   :  { %v5743_v55 = vmul.f32 %v7456_v48, %v5655_v51  ;;  %v5746_v17 = vmul.f32 %v5742_v5, %v5718_v4 }
 0x66b   :  { %5795 = vperm.xlu1 %7422, %v5749_v2   ;;  %v5750_v28 = vsub.f32 %v5658_v15, %v5746_v17  ;;  %v5747_v9 = vmul.f32 %v5743_v55, %v5719_v56 }
 0x66d   :  { %v5751_v44 = vsub.f32 %v5659_v13, %v5747_v9 }
 0x66f   :  { %5764 = vperm.xlu1 %7422, %v5742_v5  }
 0x673   :  { %5769 = vperm.xlu1 %7422, %v5743_v55  }
 0x677   :  { %5800 = vperm.xlu1 %7422, %v5750_v28  }
 0x67b   :  { %5805 = vperm.xlu1 %7422, %v5751_v44  }
 0x6de   :  { %v5755_v36 = vpop.permute.xlu0 %5754 }
 0x6df   :  { %v5772_v7 = vmul.f32 %v5755_v36, %v11818_v3  ;;  %v5773_v43 = vmul.f32 %v5755_v36, %v11822_v11  ;;  %v5774_v39 = vmul.f32 %v5755_v36, %v11838_v12  ;;  %v5775_v0 = vmul.f32 %v5755_v36, %v11842_v1 }
 0x6e2   :  { %v5760_v19 = vpop.permute.xlu1 %5759 }
 0x6e3   :  { %v5776_v63 = vmul.f32 %v5760_v19, %v11828_v50  ;;  %v5777_v53 = vmul.f32 %v5760_v19, %v11832_v34  ;;  %v5778_v4 = vmul.f32 %v5760_v19, %v11845_v10  ;;  %v5779_v47 = vmul.f32 %v5760_v19, %v11847_v23 }
 0x6e6   :  { %v5791_v40 = vpop.permute.xlu1 %5790 }
 0x6e7   :  { %v5808_v26 = vadd.f32 %v5791_v40, %v5772_v7  ;;  %v5809_v16 = vadd.f32 %v5791_v40, %v5773_v43  ;;  %v5810_v14 = vadd.f32 %v5791_v40, %v5774_v39  ;;  %v5811_v56 = vadd.f32 %v5791_v40, %v5775_v0 }
 0x6e9   :  { %v5824_v50 = vmax.f32 %v5808_v26, 0.0  ;;  %v5826_v35 = vmax.f32 %v5810_v14, 0.0  ;;  %v5825_v18 = vmax.f32 %v5809_v16, 0.0  ;;  %v5827_v10 = vmax.f32 %v5811_v56, 0.0 }
 0x6ea   :  { %v5796_v22 = vpop.permute.xlu1 %5795 }
 0x6eb   :  { %v5812_v3 = vadd.f32 %v5796_v22, %v5776_v63  ;;  %v5813_v6 = vadd.f32 %v5796_v22, %v5777_v53  ;;  %v5814_v11 = vadd.f32 %v5796_v22, %v5778_v4  ;;  %v5815_v42 = vadd.f32 %v5796_v22, %v5779_v47 }
 0x6ed   :  { %v5828_v12 = vmax.f32 %v5812_v3, 0.0  ;;  %v5830_v20 = vmax.f32 %v5814_v11, 0.0  ;;  %v5829_v1 = vmax.f32 %v5813_v6, 0.0  ;;  %v5831_v54 = vmax.f32 %v5815_v42, 0.0 }
 0x6ee   :  { %v5765_v34 = vpop.permute.xlu1 %5764 }
 0x6ef   :  { %v5845_v33 = vpack.c.bf16 %v5829_v1, %v5825_v18  ;;  %v5847_v23 = vpack.c.bf16 %v5831_v54, %v5827_v10  ;;  %v5844_v21 = vpack.c.bf16 %v5828_v12, %v5824_v50  ;;  %v5846_v57 = vpack.c.bf16 %v5830_v20, %v5826_v35 }
 0x6f0   :  { %v5780_v61 = vmul.f32 %v5765_v34, %v11850_v29  ;;  %v5781_v45 = vmul.f32 %v5765_v34, %v11859_v58  ;;  %v5782_v31 = vmul.f32 %v5765_v34, %v11878_v24  ;;  %v5783_v8 = vmul.f32 %v5765_v34, %v11882_v52 }
 0x6f1   :  { %5869 = vmatprep.subr.bf16.mxu0 %v5845_v33  ;;  %5922 = vmatprep.subr.bf16.mxu1 %v5847_v23 }
 0x6f2   :  { %v5770_v46 = vpop.permute.xlu1 %5769  ;;  %5870 = vmatpush1.bf16.msra.mxu0 %v5844_v21  ;;  %5923 = vmatpush1.bf16.msra.mxu1 %v5846_v57 }
 0x6f3   :  { %v5784_v37 = vmul.f32 %v5770_v46, %v11865_v32  ;;  %v5785_v49 = vmul.f32 %v5770_v46, %v11870_v41  ;;  %v5786_v5 = vmul.f32 %v5770_v46, %v11885_v38  ;;  %v5787_v48 = vmul.f32 %v5770_v46, %v11891_v25  ;;  %v7441_v38 = vld [vmem:[%s12249_s7] sm:$0xff]   ;;  %v7442_v25 = vld [vmem:[%s12249_s7 + $0x8] sm:$0xff]  }
 0x6f6   :  { %v5801_v59 = vpop.permute.xlu1 %5800 }
 0x6f7   :  { %v5816_v62 = vadd.f32 %v5801_v59, %v5780_v61  ;;  %v5817_v60 = vadd.f32 %v5801_v59, %v5781_v45  ;;  %v5818_v30 = vadd.f32 %v5801_v59, %v5782_v31  ;;  %v5819_v2 = vadd.f32 %v5801_v59, %v5783_v8 }
 0x6f9   :  { %v5832_v17 = vmax.f32 %v5816_v62, 0.0  ;;  %v5834_v52 = vmax.f32 %v5818_v30, 0.0  ;;  %v5833_v15 = vmax.f32 %v5817_v60, 0.0  ;;  %v5835_v28 = vmax.f32 %v5819_v2, 0.0 }
 0x6fa   :  { %v5806_v29 = vpop.permute.xlu1 %5805 }
 0x6fb   :  { %v5820_v51 = vadd.f32 %v5806_v29, %v5784_v37  ;;  %v5821_v58 = vadd.f32 %v5806_v29, %v5785_v49  ;;  %v5822_v55 = vadd.f32 %v5806_v29, %v5786_v5  ;;  %v5823_v24 = vadd.f32 %v5806_v29, %v5787_v48 }
 0x6fd   :  { %v5836_v9 = vmax.f32 %v5820_v51, 0.0  ;;  %v5838_v13 = vmax.f32 %v5822_v55, 0.0  ;;  %v5837_v44 = vmax.f32 %v5821_v58, 0.0  ;;  %v5839_v19 = vmax.f32 %v5823_v24, 0.0 }
 0x6ff   :  { %v5849_v32 = vpack.c.bf16 %v5837_v44, %v5833_v15  ;;  %v5851_v36 = vpack.c.bf16 %v5839_v19, %v5835_v28  ;;  %v5848_v41 = vpack.c.bf16 %v5836_v9, %v5832_v17  ;;  %v5850_v40 = vpack.c.bf16 %v5838_v13, %v5834_v52 }
 0x701   :  { %5871 = vmatprep.subr.bf16.mxu0 %v5849_v32  ;;  %5924 = vmatprep.subr.bf16.mxu1 %v5851_v36 }
 0x702   :  { %5872 = vmatpush1.bf16.msra.mxu0 %v5848_v41  ;;  %5925 = vmatpush1.bf16.msra.mxu1 %v5850_v40 }
 0x705   :  { %6763 = vmatmul.mubr.msk.bf16.vlgmr.msra.gmra.mrb[8].mxu0 %vm5862_vm2, %v7441_v38  ;;  %6765 = vmatmul.mubr.msk.bf16.vlgmr.msra.gmra.mrb[8].mxu1 %vm5862_vm2, %v7441_v38 }
 0x706   :  { %5911 = vmatprep.mubr.bf16.mxu0 %v7482_v27  ;;  %5964 = vmatprep.mubr.bf16.mxu1 %v7482_v27 }
 0x70d   :  { %6764 = vmatmul.mubr.msk.bf16.gmra.mrb[12].mxu0 %vm5862_vm2, %v7442_v25  ;;  %6766 = vmatmul.mubr.msk.bf16.gmra.mrb[12].mxu1 %vm5862_vm2, %v7442_v25 }
 0x70e   :  { %6224 = vmatprep.mubr.bf16.mxu0 %v7482_v27  ;;  %6277 = vmatprep.mubr.bf16.mxu1 %v7482_v27 }
 0x7d8   :  { %v11956_v7 = vpop.f32.mrb[8].mxu0  ;;  %v11958_v43 = vpop.f32.mrb[8].mxu1 }
 0x7d9   :  { %v6003_v39 = vmul.f32 %v11956_v7, %v11956_v7  ;;  %v11962_v0 = vpop.f32.mrb[9].mxu0  ;;  %v11964_v63 = vpop.f32.mrb[9].mxu1  ;;  %v6005_v16 = vmul.f32 %v11958_v43, %v11958_v43 }
 0x7da   :  { %v5983_v53 = vadd.f32 %v11962_v0, %v11956_v7  ;;  %v6004_v4 = vmul.f32 %v11962_v0, %v11962_v0  ;;  %v11970_v47 = vpop.f32.mrb[10].mxu0  ;;  %v11972_v26 = vpop.f32.mrb[10].mxu1  ;;  %v6006_v50 = vmul.f32 %v11964_v63, %v11964_v63 }
 0x7db   :  { %v6007_v14 = vmul.f32 %v11970_v47, %v11970_v47  ;;  %v11978_v56 = vpop.f32.mrb[11].mxu0  ;;  %v11980_v22 = vpop.f32.mrb[11].mxu1  ;;  %v6009_v12 = vmul.f32 %v11972_v26, %v11972_v26 }
 0x7dc   :  { %v5988_v3 = vadd.f32 %v11978_v56, %v11970_v47  ;;  %v6008_v6 = vmul.f32 %v11978_v56, %v11978_v56  ;;  %v5984_v11 = vadd.f32 %v5983_v53, %v11958_v43  ;;  %v6019_v42 = vadd.f32 %v6004_v4, %v6003_v39 }
 0x7dd   :  { %v6010_v33 = vmul.f32 %v11980_v22, %v11980_v22 }
 0x7de   :  { %v5985_v20 = vadd.f32 %v5984_v11, %v11964_v63  ;;  %v5989_v1 = vadd.f32 %v5988_v3, %v11972_v26  ;;  %v6024_v54 = vadd.f32 %v6008_v6, %v6007_v14  ;;  %v6020_v35 = vadd.f32 %v6019_v42, %v6005_v16 }
 0x7e0   :  { %v11993_v34 = vpop.f32.mrb[12].mxu1  ;;  %5986 = vadd.xlane.f32.xlu1 %v5985_v20  ;;  %v11995_v18 = vpop.f32.mrb[12].mxu0  ;;  %v5990_v10 = vadd.f32 %v5989_v1, %v11980_v22  ;;  %v6025_v23 = vadd.f32 %v6024_v54, %v6009_v12  ;;  %v6021_v61 = vadd.f32 %v6020_v35, %v6006_v50 }
 0x7e1   :  { %v6011_v21 = vmul.f32 %v11995_v18, %v11995_v18  ;;  %v12002_v57 = vpop.f32.mrb[13].mxu0  ;;  %v12004_v46 = vpop.f32.mrb[13].mxu1  ;;  %v6013_v45 = vmul.f32 %v11993_v34, %v11993_v34 }
 0x7e2   :  { %v5993_v31 = vadd.f32 %v12002_v57, %v11995_v18  ;;  %v6012_v8 = vmul.f32 %v12002_v57, %v12002_v57  ;;  %v12012_v59 = vpop.f32.mrb[14].mxu1  ;;  %5991 = vadd.xlane.f32.xlu0 %v5990_v10  ;;  %v12014_v62 = vpop.f32.mrb[14].mxu0  ;;  %v6026_v60 = vadd.f32 %v6025_v23, %v6010_v33  ;;  %v6014_v58 = vmul.f32 %v12004_v46, %v12004_v46 }
 0x7e3   :  { %v6015_v30 = vmul.f32 %v12014_v62, %v12014_v62  ;;  %v12018_v2 = vpop.f32.mrb[15].mxu0  ;;  %v12020_v37 = vpop.f32.mrb[15].mxu1  ;;  %v6017_v51 = vmul.f32 %v12012_v59, %v12012_v59 }
 0x7e4   :  { %v5998_v49 = vadd.f32 %v12018_v2, %v12014_v62  ;;  %v6016_v5 = vmul.f32 %v12018_v2, %v12018_v2  ;;  %6027 = vadd.xlane.f32.xlu1 %v6026_v60  ;;  %v5994_v48 = vadd.f32 %v5993_v31, %v11993_v34  ;;  %v6029_v29 = vadd.f32 %v6012_v8, %v6011_v21  ;;  %v5976_v31 = vld [vmem:[%s12250_s8 + $0x8] sm:$0xff]  ;;  %v5975_v60 = vld [vmem:[%s12250_s8] sm:$0xff] }
 0x7e5   :  { %v6018_v9 = vmul.f32 %v12020_v37, %v12020_v37 }
 0x7e6   :  { %6022 = vadd.xlane.f32.xlu0 %v6021_v61  ;;  %v5995_v55 = vadd.f32 %v5994_v48, %v12004_v46  ;;  %v5999_v24 = vadd.f32 %v5998_v49, %v12012_v59  ;;  %v6030_v17 = vadd.f32 %v6029_v29, %v6013_v45  ;;  %v6034_v52 = vadd.f32 %v6016_v5, %v6015_v30  ;;  %v5980_v29 = vld [vmem:[%s12251_s9 + $0x8] sm:$0xff] }
 0x7e8   :  { %v6000_v15 = vadd.f32 %v5999_v24, %v12020_v37  ;;  %v6031_v28 = vadd.f32 %v6030_v17, %v6014_v58  ;;  %v6035_v13 = vadd.f32 %v6034_v52, %v6017_v51  ;;  %v5979_v51 = vld [vmem:[%s12251_s9] sm:$0xff]  ;;  %v5977_v17 = vld [vmem:[%s12250_s8 + $0x10] sm:$0xff]  ;;  %v5978_v52 = vld [vmem:[%s12250_s8 + $0x18] sm:$0xff] }
 0x7ea   :  { %5996 = vadd.xlane.f32.xlu0 %v5995_v55  ;;  %6001 = vadd.xlane.f32.xlu1 %v6000_v15  ;;  %v6036_v44 = vadd.f32 %v6035_v13, %v6018_v9 }
 0x7ee   :  { %6032 = vadd.xlane.f32.xlu0 %v6031_v28  ;;  %6037 = vadd.xlane.f32.xlu1 %v6036_v44  ;;  %v5981_v44 = vld [vmem:[%s12251_s9 + $0x10] sm:$0xff] }
 0x86d   :  { %v5987_v19 = vpop.xlane.xlu1 %5986 }
 0x86e   :  { %v6039_v36 = vmul.f32 0.001953125, %v5987_v19 }
 0x86f   :  { %v5992_v32 = vpop.xlane.xlu0 %5991 }
 0x870   :  { %v6040_v41 = vmul.f32 0.001953125, %v5992_v32  ;;  %v6047_v53 = vmul.f32 %v6039_v36, %v6039_v36  ;;  %v5982_v32 = vld [vmem:[%s12251_s9 + $0x18] sm:$0xff] }
 0x871   :  { %v6028_v40 = vpop.xlane.xlu1 %6027 }
 0x872   :  { %v6048_v38 = vmul.f32 %v6040_v41, %v6040_v41  ;;  %v6044_v25 = vmul.f32 0.001953125, %v6028_v40 }
 0x873   :  { %v6023_v39 = vpop.xlane.xlu0 %6022 }
 0x874   :  { %v6052_v4 = vsub.f32 %v6044_v25, %v6048_v38  ;;  %v6043_v16 = vmul.f32 0.001953125, %v6023_v39 }
 0x876   :  { %v6056_v14 = vadd.f32 1e-05, %v6052_v4  ;;  %v6051_v3 = vsub.f32 %v6043_v16, %v6047_v53 }
 0x877   :  { %v5997_v6 = vpop.xlane.xlu0 %5996  ;;  %v6002_v11 = vpop.xlane.xlu1 %6001 }
 0x878   :  { %7457 = vrsqrt.f32 %v6056_v14  ;;  %v6055_v42 = vadd.f32 1e-05, %v6051_v3  ;;  %v6041_v12 = vmul.f32 0.001953125, %v5997_v6  ;;  %v6042_v20 = vmul.f32 0.001953125, %v6002_v11 }
 0x87a   :  { %7459 = vrsqrt.f32 %v6055_v42  ;;  %v6049_v50 = vmul.f32 %v6041_v12, %v6041_v12  ;;  %v6050_v35 = vmul.f32 %v6042_v20, %v6042_v20 }
 0x87b   :  { %v6033_v1 = vpop.xlane.xlu0 %6032  ;;  %v6038_v54 = vpop.xlane.xlu1 %6037 }
 0x87c   :  { %v6045_v10 = vmul.f32 0.001953125, %v6033_v1  ;;  %v6046_v33 = vmul.f32 0.001953125, %v6038_v54 }
 0x87e   :  { %v6053_v23 = vsub.f32 %v6045_v10, %v6049_v50  ;;  %v6054_v21 = vsub.f32 %v6046_v33, %v6050_v35 }
 0x880   :  { %v6057_v61 = vadd.f32 1e-05, %v6053_v23  ;;  %v6058_v45 = vadd.f32 1e-05, %v6054_v21 }
 0x882   :  { %v7458_v8 = vpop.eup %7457  ;;  %7461 = vrsqrt.f32 %v6057_v61 }
 0x883   :  { %7463 = vrsqrt.f32 %v6058_v45  ;;  %v6064_v30 = vmul.f32 %v7458_v8, %v5976_v31 }
 0x884   :  { %v7460_v49 = vpop.eup %7459 }
 0x885   :  { %6082 = vperm.xlu1 %7422, %v6064_v30   ;;  %v6063_v5 = vmul.f32 %v7460_v49, %v5975_v60  ;;  %v6068_v48 = vmul.f32 %v6064_v30, %v6040_v41 }
 0x887   :  { %6077 = vperm.xlu0 %7421, %v6063_v5   ;;  %v6067_v58 = vmul.f32 %v6063_v5, %v6039_v36  ;;  %v6072_v55 = vsub.f32 %v5980_v29, %v6068_v48 }
 0x889   :  { %v6071_v24 = vsub.f32 %v5979_v51, %v6067_v58 }
 0x88b   :  { %6118 = vperm.xlu0 %7421, %v6072_v55   ;;  %6113 = vperm.xlu1 %7422, %v6071_v24  }
 0x88c   :  { %v7462_v15 = vpop.eup %7461 }
 0x88d   :  { %v7464_v28 = vpop.eup %7463  ;;  %v6065_v9 = vmul.f32 %v7462_v15, %v5977_v17 }
 0x88e   :  { %v6066_v13 = vmul.f32 %v7464_v28, %v5978_v52 }
 0x88f   :  { %6087 = vperm.xlu1 %7422, %v6065_v9   ;;  %v6069_v19 = vmul.f32 %v6065_v9, %v6041_v12 }
 0x890   :  { %6092 = vperm.xlu0 %7421, %v6066_v13   ;;  %v6070_v36 = vmul.f32 %v6066_v13, %v6042_v20 }
 0x891   :  { %v6073_v41 = vsub.f32 %v5981_v44, %v6069_v19 }
 0x892   :  { %v6074_v40 = vsub.f32 %v5982_v32, %v6070_v36 }
 0x893   :  { %6123 = vperm.xlu1 %7422, %v6073_v41  }
 0x894   :  { %6128 = vperm.xlu0 %7421, %v6074_v40  }
 0x904   :  { %v6083_v38 = vpop.permute.xlu1 %6082 }
 0x905   :  { %v6099_v39 = vmul.f32 %v6083_v38, %v11970_v47  ;;  %v6100_v53 = vmul.f32 %v6083_v38, %v11978_v56  ;;  %v6101_v4 = vmul.f32 %v6083_v38, %v11972_v26  ;;  %v6102_v16 = vmul.f32 %v6083_v38, %v11980_v22 }
 0x906   :  { %v6078_v25 = vpop.permute.xlu0 %6077 }
 0x907   :  { %v6095_v14 = vmul.f32 %v6078_v25, %v11956_v7  ;;  %v6096_v3 = vmul.f32 %v6078_v25, %v11962_v0  ;;  %v6097_v6 = vmul.f32 %v6078_v25, %v11958_v43  ;;  %v6098_v11 = vmul.f32 %v6078_v25, %v11964_v63  ;;  %v7443_v25 = vld [vmem:[%s12249_s7 + $0x10] sm:$0xff]  }
 0x90a   :  { %v6119_v42 = vpop.permute.xlu0 %6118  ;;  %v6114_v12 = vpop.permute.xlu1 %6113 }
 0x90b   :  { %v6135_v20 = vadd.f32 %v6119_v42, %v6099_v39  ;;  %v6136_v1 = vadd.f32 %v6119_v42, %v6100_v53  ;;  %v6137_v54 = vadd.f32 %v6119_v42, %v6101_v4  ;;  %v6138_v47 = vadd.f32 %v6119_v42, %v6102_v16  ;;  %v7444_v39 = vld [vmem:[%s12249_s7 + $0x18] sm:$0xff]  }
 0x90c   :  { %v6131_v50 = vadd.f32 %v6114_v12, %v6095_v14  ;;  %v6132_v56 = vadd.f32 %v6114_v12, %v6096_v3  ;;  %v6133_v35 = vadd.f32 %v6114_v12, %v6097_v6  ;;  %v6134_v26 = vadd.f32 %v6114_v12, %v6098_v11 }
 0x90d   :  { %v6151_v10 = vmax.f32 %v6135_v20, 0.0  ;;  %v6153_v22 = vmax.f32 %v6137_v54, 0.0  ;;  %v6152_v33 = vmax.f32 %v6136_v1, 0.0  ;;  %v6154_v7 = vmax.f32 %v6138_v47, 0.0 }
 0x90e   :  { %v6147_v23 = vmax.f32 %v6131_v50, 0.0  ;;  %v6149_v0 = vmax.f32 %v6133_v35, 0.0  ;;  %v6088_v21 = vpop.permute.xlu1 %6087  ;;  %v6148_v43 = vmax.f32 %v6132_v56, 0.0  ;;  %v6150_v61 = vmax.f32 %v6134_v26, 0.0 }
 0x90f   :  { %v6093_v63 = vpop.permute.xlu0 %6092  ;;  %v6103_v45 = vmul.f32 %v6088_v21, %v11995_v18  ;;  %v6104_v31 = vmul.f32 %v6088_v21, %v12002_v57  ;;  %v6105_v8 = vmul.f32 %v6088_v21, %v11993_v34  ;;  %v6106_v60 = vmul.f32 %v6088_v21, %v12004_v46 }
 0x910   :  { %v6169_v30 = vpack.c.bf16 %v6152_v33, %v6148_v43  ;;  %v6171_v49 = vpack.c.bf16 %v6154_v7, %v6150_v61  ;;  %v6168_v5 = vpack.c.bf16 %v6151_v10, %v6147_v23  ;;  %v6170_v48 = vpack.c.bf16 %v6153_v22, %v6149_v0 }
 0x911   :  { %v6107_v29 = vmul.f32 %v6093_v63, %v12014_v62  ;;  %v6108_v51 = vmul.f32 %v6093_v63, %v12018_v2  ;;  %v6109_v58 = vmul.f32 %v6093_v63, %v12012_v59  ;;  %v6110_v55 = vmul.f32 %v6093_v63, %v12020_v37 }
 0x912   :  { %v6124_v24 = vpop.permute.xlu1 %6123  ;;  %6192 = vmatprep.subr.bf16.mxu0 %v6169_v30  ;;  %6245 = vmatprep.subr.bf16.mxu1 %v6171_v49 }
 0x913   :  { %v6129_v18 = vpop.permute.xlu0 %6128  ;;  %v6139_v57 = vadd.f32 %v6124_v24, %v6103_v45  ;;  %v6140_v34 = vadd.f32 %v6124_v24, %v6104_v31  ;;  %v6141_v17 = vadd.f32 %v6124_v24, %v6105_v8  ;;  %6193 = vmatpush1.bf16.msra.mxu0 %v6168_v5  ;;  %6246 = vmatpush1.bf16.msra.mxu1 %v6170_v48 }
 0x914   :  { %v6143_v46 = vadd.f32 %v6129_v18, %v6107_v29  ;;  %v6144_v52 = vadd.f32 %v6129_v18, %v6108_v51  ;;  %v6145_v15 = vadd.f32 %v6129_v18, %v6109_v58  ;;  %v6146_v28 = vadd.f32 %v6129_v18, %v6110_v55 }
 0x915   :  { %v6142_v62 = vadd.f32 %v6124_v24, %v6106_v60  ;;  %v6155_v9 = vmax.f32 %v6139_v57, 0.0  ;;  %v6157_v2 = vmax.f32 %v6141_v17, 0.0  ;;  %v6156_v13 = vmax.f32 %v6140_v34, 0.0 }
 0x916   :  { %v6159_v59 = vmax.f32 %v6143_v46, 0.0  ;;  %v6161_v44 = vmax.f32 %v6145_v15, 0.0  ;;  %v6160_v37 = vmax.f32 %v6144_v52, 0.0  ;;  %v6162_v19 = vmax.f32 %v6146_v28, 0.0 }
 0x917   :  { %v6158_v32 = vmax.f32 %v6142_v62, 0.0 }
 0x918   :  { %v6173_v36 = vpack.c.bf16 %v6160_v37, %v6156_v13  ;;  %v6172_v41 = vpack.c.bf16 %v6159_v59, %v6155_v9  ;;  %v6174_v40 = vpack.c.bf16 %v6161_v44, %v6157_v2 }
 0x919   :  { %v6175_v38 = vpack.c.bf16 %v6162_v19, %v6158_v32 }
 0x91a   :  { %6194 = vmatprep.subr.bf16.mxu0 %v6173_v36 }
 0x91b   :  { %6247 = vmatprep.subr.bf16.mxu1 %v6175_v38  ;;  %6195 = vmatpush1.bf16.msra.mxu0 %v6172_v41 }
 0x91c   :  { %6248 = vmatpush1.bf16.msra.mxu1 %v6174_v40 }
 0x91e   :  { %6773 = vmatmul.mubr.msk.bf16.vlgmr.msra.gmra.mrb[16].mxu0 %vm5862_vm2, %v7443_v25 }
 0x91f   :  { %6775 = vmatmul.mubr.msk.bf16.vlgmr.msra.gmra.mrb[16].mxu1 %vm5862_vm2, %v7443_v25  ;;  %6234 = vmatprep.mubr.bf16.mxu0 %v7482_v27 }
 0x920   :  { %6287 = vmatprep.mubr.bf16.mxu1 %v7482_v27 }
 0x926   :  { %6774 = vmatmul.mubr.msk.bf16.gmra.mrb[20].mxu0 %vm5862_vm2, %v7444_v39 }
 0x927   :  { %6776 = vmatmul.mubr.msk.bf16.gmra.mrb[20].mxu1 %vm5862_vm2, %v7444_v39  ;;  %6538 = vmatprep.mubr.bf16.mxu0 %v7482_v27 }
 0x928   :  { %6579 = vmatprep.mubr.bf16.mxu1 %v7482_v27 }
 0x9f1   :  { %v12090_v53 = vpop.f32.mrb[16].mxu0 }
 0x9f2   :  { %v6328_v4 = vmul.f32 %v12090_v53, %v12090_v53  ;;  %v12094_v16 = vpop.f32.mrb[16].mxu1  ;;  %v12096_v14 = vpop.f32.mrb[17].mxu0 }
 0x9f3   :  { %v6308_v3 = vadd.f32 %v12096_v14, %v12090_v53  ;;  %v6329_v6 = vmul.f32 %v12096_v14, %v12096_v14  ;;  %v12102_v11 = vpop.f32.mrb[17].mxu1  ;;  %v12104_v42 = vpop.f32.mrb[18].mxu0  ;;  %v6330_v27 = vmul.f32 %v12094_v16, %v12094_v16 }
 0x9f4   :  { %v6332_v12 = vmul.f32 %v12104_v42, %v12104_v42  ;;  %v12110_v20 = vpop.f32.mrb[18].mxu1  ;;  %v12112_v1 = vpop.f32.mrb[19].mxu0  ;;  %v6331_v7 = vmul.f32 %v12102_v11, %v12102_v11 }
 0x9f5   :  { %v6313_v54 = vadd.f32 %v12112_v1, %v12104_v42  ;;  %v6333_v47 = vmul.f32 %v12112_v1, %v12112_v1  ;;  %v12118_v50 = vpop.f32.mrb[19].mxu1  ;;  %v6309_v56 = vadd.f32 %v6308_v3, %v12094_v16  ;;  %v6344_v35 = vadd.f32 %v6329_v6, %v6328_v4 }
 0x9f6   :  { %v6334_v26 = vmul.f32 %v12110_v20, %v12110_v20  ;;  %v6335_v43 = vmul.f32 %v12118_v50, %v12118_v50 }
 0x9f7   :  { %v6310_v10 = vadd.f32 %v6309_v56, %v12102_v11  ;;  %v6314_v22 = vadd.f32 %v6313_v54, %v12110_v20  ;;  %v6349_v33 = vadd.f32 %v6333_v47, %v6332_v12  ;;  %v6345_v23 = vadd.f32 %v6344_v35, %v6330_v27 }
 0x9f9   :  { %6311 = vadd.xlane.f32.xlu1 %v6310_v10  ;;  %v12127_v0 = vpop.f32.mrb[20].mxu0  ;;  %v6315_v21 = vadd.f32 %v6314_v22, %v12118_v50  ;;  %v6350_v61 = vadd.f32 %v6349_v33, %v6334_v26  ;;  %v6346_v8 = vadd.f32 %v6345_v23, %v6331_v7 }
 0x9fa   :  { %v12132_v63 = vpop.f32.mrb[20].mxu1  ;;  %v6336_v45 = vmul.f32 %v12127_v0, %v12127_v0  ;;  %v12136_v31 = vpop.f32.mrb[21].mxu0 }
 0x9fb   :  { %v6318_v60 = vadd.f32 %v12136_v31, %v12127_v0  ;;  %v6337_v30 = vmul.f32 %v12136_v31, %v12136_v31  ;;  %v12142_v49 = vpop.f32.mrb[21].mxu1  ;;  %6316 = vadd.xlane.f32.xlu0 %v6315_v21  ;;  %v12144_v5 = vpop.f32.mrb[22].mxu0  ;;  %v6351_v48 = vadd.f32 %v6350_v61, %v6335_v43  ;;  %v6338_v29 = vmul.f32 %v12132_v63, %v12132_v63 }
 0x9fc   :  { %v12148_v51 = vpop.f32.mrb[22].mxu1  ;;  %v6340_v58 = vmul.f32 %v12144_v5, %v12144_v5  ;;  %v12152_v55 = vpop.f32.mrb[23].mxu0  ;;  %v6339_v62 = vmul.f32 %v12142_v49, %v12142_v49 }
 0x9fd   :  { %v6323_v24 = vadd.f32 %v12152_v55, %v12144_v5  ;;  %v6341_v18 = vmul.f32 %v12152_v55, %v12152_v55  ;;  %v12158_v57 = vpop.f32.mrb[23].mxu1  ;;  %6352 = vadd.xlane.f32.xlu1 %v6351_v48  ;;  %v6319_v34 = vadd.f32 %v6318_v60, %v12132_v63  ;;  %v6354_v17 = vadd.f32 %v6337_v30, %v6336_v45  ;;  %v6778_v60 = vld [vmem:[%s12250_s8 + $0x28] sm:$0xff]  ;;  %v6777_v48 = vld [vmem:[%s12250_s8 + $0x20] sm:$0xff] }
 0x9fe   :  { %v6342_v46 = vmul.f32 %v12148_v51, %v12148_v51  ;;  %v6343_v13 = vmul.f32 %v12158_v57, %v12158_v57 }
 0x9ff   :  { %6347 = vadd.xlane.f32.xlu0 %v6346_v8  ;;  %v6320_v52 = vadd.f32 %v6319_v34, %v12142_v49  ;;  %v6324_v15 = vadd.f32 %v6323_v24, %v12148_v51  ;;  %v6359_v28 = vadd.f32 %v6341_v18, %v6340_v58  ;;  %v6355_v9 = vadd.f32 %v6354_v17, %v6338_v29  ;;  %v6782_v34 = vld [vmem:[%s12251_s9 + $0x28] sm:$0xff]  ;;  %v6781_v17 = vld [vmem:[%s12251_s9 + $0x20] sm:$0xff] }
 0xa01   :  { %v6325_v2 = vadd.f32 %v6324_v15, %v12158_v57  ;;  %v6360_v59 = vadd.f32 %v6359_v28, %v6342_v46  ;;  %v6356_v44 = vadd.f32 %v6355_v9, %v6339_v62  ;;  %v6779_v28 = vld [vmem:[%s12250_s8 + $0x30] sm:$0xff]  ;;  %v6780_v62 = vld [vmem:[%s12250_s8 + $0x38] sm:$0xff] }
 0xa03   :  { %6321 = vadd.xlane.f32.xlu0 %v6320_v52  ;;  %6326 = vadd.xlane.f32.xlu1 %v6325_v2  ;;  %v6361_v37 = vadd.f32 %v6360_v59, %v6343_v13 }
 0xa07   :  { %6357 = vadd.xlane.f32.xlu0 %v6356_v44  ;;  %6362 = vadd.xlane.f32.xlu1 %v6361_v37  ;;  %v6783_v44 = vld [vmem:[%s12251_s9 + $0x30] sm:$0xff] }
 0xa86   :  { %v6312_v19 = vpop.xlane.xlu1 %6311 }
 0xa87   :  { %v6364_v36 = vmul.f32 0.001953125, %v6312_v19  ;;  %v6784_v19 = vld [vmem:[%s12251_s9 + $0x38] sm:$0xff] }
 0xa88   :  { %v6317_v32 = vpop.xlane.xlu0 %6316 }
 0xa89   :  { %v6365_v41 = vmul.f32 0.001953125, %v6317_v32  ;;  %v6372_v4 = vmul.f32 %v6364_v36, %v6364_v36 }
 0xa8a   :  { %v6353_v40 = vpop.xlane.xlu1 %6352 }
 0xa8b   :  { %v6373_v38 = vmul.f32 %v6365_v41, %v6365_v41  ;;  %v6369_v25 = vmul.f32 0.001953125, %v6353_v40  ;;  %v6497_v40 = vld [vmem:[%s12252_s11] sm:$0xff] }
 0xa8c   :  { %v6348_v39 = vpop.xlane.xlu0 %6347 }
 0xa8d   :  { %v6377_v3 = vsub.f32 %v6369_v25, %v6373_v38  ;;  %v6368_v6 = vmul.f32 0.001953125, %v6348_v39 }
 0xa8f   :  { %v6381_v27 = vadd.f32 1e-05, %v6377_v3  ;;  %v6376_v12 = vsub.f32 %v6368_v6, %v6372_v4 }
 0xa90   :  { %v6322_v54 = vpop.xlane.xlu0 %6321  ;;  %v6327_v47 = vpop.xlane.xlu1 %6326 }
 0xa91   :  { %7465 = vrsqrt.f32 %v6381_v27  ;;  %v6380_v56 = vadd.f32 1e-05, %v6376_v12  ;;  %v6366_v35 = vmul.f32 0.001953125, %v6322_v54  ;;  %v6367_v26 = vmul.f32 0.001953125, %v6327_v47 }
 0xa93   :  { %7467 = vrsqrt.f32 %v6380_v56  ;;  %v6374_v33 = vmul.f32 %v6366_v35, %v6366_v35  ;;  %v6375_v7 = vmul.f32 %v6367_v26, %v6367_v26 }
 0xa94   :  { %v6358_v10 = vpop.xlane.xlu0 %6357  ;;  %v6363_v22 = vpop.xlane.xlu1 %6362 }
 0xa95   :  { %v6370_v23 = vmul.f32 0.001953125, %v6358_v10  ;;  %v6371_v21 = vmul.f32 0.001953125, %v6363_v22 }
 0xa97   :  { %v6378_v43 = vsub.f32 %v6370_v23, %v6374_v33  ;;  %v6379_v61 = vsub.f32 %v6371_v21, %v6375_v7 }
 0xa99   :  { %v6382_v45 = vadd.f32 1e-05, %v6378_v43  ;;  %v6383_v8 = vadd.f32 1e-05, %v6379_v61 }
 0xa9b   :  { %v7466_v30 = vpop.eup %7465  ;;  %7469 = vrsqrt.f32 %v6382_v45 }
 0xa9c   :  { %7471 = vrsqrt.f32 %v6383_v8  ;;  %v6389_v29 = vmul.f32 %v7466_v30, %v6778_v60 }
 0xa9d   :  { %v7468_v58 = vpop.eup %7467 }
 0xa9e   :  { %6407 = vperm.xlu1 %7422, %v6389_v29   ;;  %v6388_v24 = vmul.f32 %v7468_v58, %v6777_v48  ;;  %v6393_v18 = vmul.f32 %v6389_v29, %v6365_v41 }
 0xaa0   :  { %6402 = vperm.xlu0 %7421, %v6388_v24   ;;  %v6392_v46 = vmul.f32 %v6388_v24, %v6364_v36  ;;  %v6397_v52 = vsub.f32 %v6782_v34, %v6393_v18 }
 0xaa2   :  { %v6396_v15 = vsub.f32 %v6781_v17, %v6392_v46 }
 0xaa4   :  { %6443 = vperm.xlu0 %7421, %v6397_v52   ;;  %6438 = vperm.xlu1 %7422, %v6396_v15  }
 0xaa5   :  { %v7470_v9 = vpop.eup %7469 }
 0xaa6   :  { %v7472_v2 = vpop.eup %7471  ;;  %v6390_v13 = vmul.f32 %v7470_v9, %v6779_v28 }
 0xaa7   :  { %v6391_v59 = vmul.f32 %v7472_v2, %v6780_v62 }
 0xaa8   :  { %6412 = vperm.xlu1 %7422, %v6390_v13   ;;  %v6394_v37 = vmul.f32 %v6390_v13, %v6366_v35 }
 0xaa9   :  { %6417 = vperm.xlu0 %7421, %v6391_v59   ;;  %v6395_v32 = vmul.f32 %v6391_v59, %v6367_v26 }
 0xaaa   :  { %v6398_v36 = vsub.f32 %v6783_v44, %v6394_v37 }
 0xaab   :  { %v6399_v41 = vsub.f32 %v6784_v19, %v6395_v32 }
 0xaac   :  { %6448 = vperm.xlu1 %7422, %v6398_v36  }
 0xaad   :  { %6453 = vperm.xlu0 %7421, %v6399_v41  }
 0xab0   :  { %6500 = vperm.xlu1 %7422, %v6497_v40  }
 0xb1d   :  { %v6408_v38 = vpop.permute.xlu1 %6407 }
 0xb1e   :  { %v6424_v39 = vmul.f32 %v6408_v38, %v12104_v42  ;;  %v6425_v4 = vmul.f32 %v6408_v38, %v12112_v1  ;;  %v6426_v3 = vmul.f32 %v6408_v38, %v12110_v20  ;;  %v6427_v6 = vmul.f32 %v6408_v38, %v12118_v50  ;;  %v6488_v38 = vld [vmem:[%s12253_s10] sm:$0xf] }
 0xb1f   :  { %v6403_v25 = vpop.permute.xlu0 %6402 }
 0xb20   :  { %v6420_v27 = vmul.f32 %v6403_v25, %v12090_v53  ;;  %v6421_v12 = vmul.f32 %v6403_v25, %v12096_v14  ;;  %v6422_v54 = vmul.f32 %v6403_v25, %v12094_v16  ;;  %v6423_v47 = vmul.f32 %v6403_v25, %v12102_v11 }
 0xb23   :  { %v6444_v56 = vpop.permute.xlu0 %6443  ;;  %v6439_v35 = vpop.permute.xlu1 %6438 }
 0xb24   :  { %v6460_v26 = vadd.f32 %v6444_v56, %v6424_v39  ;;  %v6461_v10 = vadd.f32 %v6444_v56, %v6425_v4  ;;  %v6462_v22 = vadd.f32 %v6444_v56, %v6426_v3  ;;  %v6463_v42 = vadd.f32 %v6444_v56, %v6427_v6 }
 0xb25   :  { %v6456_v33 = vadd.f32 %v6439_v35, %v6420_v27  ;;  %v6457_v1 = vadd.f32 %v6439_v35, %v6421_v12  ;;  %v6458_v7 = vadd.f32 %v6439_v35, %v6422_v54  ;;  %v6459_v20 = vadd.f32 %v6439_v35, %v6423_v47 }
 0xb26   :  { %v6476_v23 = vmax.f32 %v6460_v26, 0.0  ;;  %v6478_v50 = vmax.f32 %v6462_v22, 0.0  ;;  %v6477_v21 = vmax.f32 %v6461_v10, 0.0  ;;  %v6479_v53 = vmax.f32 %v6463_v42, 0.0 }
 0xb27   :  { %v6472_v43 = vmax.f32 %v6456_v33, 0.0  ;;  %v6474_v14 = vmax.f32 %v6458_v7, 0.0  ;;  %v6413_v61 = vpop.permute.xlu1 %6412  ;;  %v6473_v16 = vmax.f32 %v6457_v1, 0.0  ;;  %v6475_v45 = vmax.f32 %v6459_v20, 0.0 }
 0xb28   :  { %v6418_v11 = vpop.permute.xlu0 %6417  ;;  %v6428_v8 = vmul.f32 %v6413_v61, %v12127_v0  ;;  %v6429_v60 = vmul.f32 %v6413_v61, %v12136_v31  ;;  %v6430_v30 = vmul.f32 %v6413_v61, %v12132_v63  ;;  %v6431_v58 = vmul.f32 %v6413_v61, %v12142_v49  ;;  %v6600_v61 = vld [vmem:[%s12256_s12] sm:$0xff] }
 0xb29   :  { %v6490_v48 = vpack.c.bf16 %v6477_v21, %v6473_v16  ;;  %v6492_v29 = vpack.c.bf16 %v6479_v53, %v6475_v45  ;;  %v6432_v24 = vmul.f32 %v6418_v11, %v12144_v5  ;;  %v6489_v18 = vpack.c.bf16 %v6476_v23, %v6472_v43  ;;  %v6601_v16 = vld [vmem:[%s12256_s12 + $0x8] sm:$0xff] }
 0xb2a   :  { %v6491_v34 = vpack.c.bf16 %v6478_v50, %v6474_v14  ;;  %v6433_v17 = vmul.f32 %v6418_v11, %v12152_v55  ;;  %v6434_v46 = vmul.f32 %v6418_v11, %v12148_v51  ;;  %v6435_v0 = vmul.f32 %v6418_v11, %v12158_v57 }
 0xb2b   :  { %6506 = vmatprep.subr.bf16.mxu0 %v6490_v48  ;;  %6547 = vmatprep.subr.bf16.mxu1 %v6492_v29  ;;  %v6449_v52 = vpop.permute.xlu1 %6448  ;;  %v6604_v45 = vcombine.low %v6600_v61, %v6600_v61  ;;  %v6605_v11 = vcombine.low %v6601_v16, %v6601_v16 }
 0xb2c   :  { %v6454_v31 = vpop.permute.xlu0 %6453  ;;  %6507 = vmatpush1.bf16.msra.mxu0 %v6489_v18  ;;  %6548 = vmatpush1.bf16.msra.mxu1 %v6491_v34  ;;  %v6464_v63 = vadd.f32 %v6449_v52, %v6428_v8  ;;  %v6465_v15 = vadd.f32 %v6449_v52, %v6429_v60  ;;  %v6466_v28 = vadd.f32 %v6449_v52, %v6430_v30 }
 0xb2d   :  { %v6468_v49 = vadd.f32 %v6454_v31, %v6432_v24  ;;  %v6469_v62 = vadd.f32 %v6454_v31, %v6433_v17  ;;  %v6470_v5 = vadd.f32 %v6454_v31, %v6434_v46  ;;  %v6471_v9 = vadd.f32 %v6454_v31, %v6435_v0 }
 0xb2e   :  { %v6467_v2 = vadd.f32 %v6449_v52, %v6431_v58  ;;  %v6480_v13 = vmax.f32 %v6464_v63, 0.0  ;;  %v6482_v59 = vmax.f32 %v6466_v28, 0.0  ;;  %v6481_v44 = vmax.f32 %v6465_v15, 0.0 }
 0xb2f   :  { %v6484_v55 = vmax.f32 %v6468_v49, 0.0  ;;  %v6485_v37 = vmax.f32 %v6469_v62, 0.0  ;;  %v6486_v51 = vmax.f32 %v6470_v5, 0.0  ;;  %v6487_v19 = vmax.f32 %v6471_v9, 0.0  ;;  %v6501_v25 = vpop.permute.xlu1 %6500 }
 0xb30   :  { %v6483_v57 = vmax.f32 %v6467_v2, 0.0 }
 0xb31   :  { %v6494_v32 = vpack.c.bf16 %v6485_v37, %v6481_v44  ;;  %v6493_v36 = vpack.c.bf16 %v6484_v55, %v6480_v13  ;;  %v6495_v41 = vpack.c.bf16 %v6486_v51, %v6482_v59 }
 0xb32   :  { %v6496_v40 = vpack.c.bf16 %v6487_v19, %v6483_v57 }
 0xb33   :  { %6508 = vmatprep.subr.bf16.mxu0 %v6494_v32 }
 0xb34   :  { %6549 = vmatprep.subr.bf16.mxu1 %v6496_v40  ;;  %6509 = vmatpush1.bf16.msra.mxu0 %v6493_v36 }
 0xb35   :  { %6550 = vmatpush1.bf16.msra.mxu1 %v6495_v41 }
 0xb37   :  { %6785 = vmatmul.mubr.msk.bf16.vlgmr.msra.gmra.mrb[24].mxu0 %vm5862_vm2, %v6488_v38 }
 0xb38   :  { %6786 = vmatmul.mubr.msk.bf16.vlgmr.msra.gmra.mrb[24].mxu1 %vm5862_vm2, %v6488_v38 }
 0xc0a   :  { %v6540_v39 = vpop.f32.mrb[24].mxu0 }
 0xc0b   :  { %v6541_v4 = vadd.f32 %v6540_v39, %v6501_v25  ;;  %v6581_v3 = vpop.f32.mrb[24].mxu1  ;;  %v6542_v6 = vpop.f32.mrb[25].mxu0 }
 0xc0c   :  { %v6582_v27 = vadd.f32 %v6581_v3, %v6501_v25  ;;  %v6543_v12 = vadd.f32 %v6542_v6, %v6501_v25  ;;  %v6583_v54 = vpop.f32.mrb[25].mxu1  ;;  %v6544_v47 = vpop.f32.mrb[26].mxu0 }
 0xc0d   :  { %v6588_v56 = vmul.f32 0.5, %v6541_v4  ;;  %v6584_v35 = vadd.f32 %v6583_v54, %v6501_v25  ;;  %v6585_v26 = vpop.f32.mrb[26].mxu1  ;;  %v6545_v10 = vpop.f32.mrb[27].mxu0 }
 0xc0e   :  { %v6590_v22 = vmul.f32 0.5, %v6582_v27  ;;  %v6589_v42 = vmul.f32 0.5, %v6543_v12  ;;  %v6642_v33 = vcombine.low %v6541_v4, %v6543_v12  ;;  %v6648_v1 = vcombine.high %v6541_v4, %v6543_v12  ;;  %v6586_v7 = vpop.f32.mrb[27].mxu1 }
 0xc0f   :  { %v6592_v20 = vmul.f32 1.442695, %v6588_v56  ;;  %v6591_v23 = vmul.f32 0.5, %v6584_v35  ;;  %v6643_v50 = vcombine.low %v6582_v27, %v6584_v35  ;;  %v6649_v21 = vcombine.high %v6582_v27, %v6584_v35 }
 0xc10   :  { %v6596_v53 = vmul.f32 1.442695, %v6590_v22  ;;  %v6594_v43 = vmul.f32 1.442695, %v6589_v42  ;;  %6646 = vst [vmem:[%s12254_s14] sm:$0xff] %v6642_v33  ;;  %6652 = vst [vmem:[%s12255_s15] sm:$0xff] %v6648_v1 }
 0xc11   :  { %7473 = vpow2.f32 %v6592_v20  ;;  %v6598_v14 = vmul.f32 1.442695, %v6591_v23  ;;  %6647 = vst [vmem:[%s12254_s14 + $0x8] sm:$0xff] %v6643_v50  ;;  %6653 = vst [vmem:[%s12255_s15 + $0x8] sm:$0xff] %v6649_v21 }
 0xc12   :  { %7475 = vpow2.f32 %v6596_v53 }
 0xc13   :  { %7477 = vpow2.f32 %v6594_v43 }
 0xc14   :  { %7479 = vpow2.f32 %v6598_v14 }
 0xc1b   :  { %v7474_v8 = vpop.eup %7473 }
 0xc1c   :  { %v7476_v60 = vpop.eup %7475  ;;  %v6608_v30 = vmul.f32 %v7474_v8, %v6604_v45 }
 0xc1d   :  { %v7478_v48 = vpop.eup %7477  ;;  %v6610_v29 = vmul.f32 %v7476_v60, %v6605_v11 }
 0xc1e   :  { %v7480_v58 = vpop.eup %7479  ;;  %v6616_v24 = vrot.slane %v6608_v30, 4  ;;  %v6609_v18 = vmul.f32 %v7478_v48, %v6600_v61 }
 0xc1f   :  { %v6618_v34 = vrot.slane %v6610_v29, 4  ;;  %v6611_v17 = vmul.f32 %v7480_v58, %v6601_v16 }
 0xc20   :  { %v6624_v46 = vadd.f32 %v6616_v24, %v6541_v4  ;;  %v6617_v0 = vrot.slane %v6609_v18, 4 }
 0xc21   :  { %v6626_v52 = vadd.f32 %v6618_v34, %v6582_v27  ;;  %v6619_v31 = vrot.slane %v6611_v17, 4 }
 0xc22   :  { %v6625_v63 = vadd.f32 %v6617_v0, %v6543_v12 }
 0xc23   :  { %v6627_v15 = vadd.f32 %v6619_v31, %v6584_v35 }
 0xc24   :  { %v6632_v28 = vcombine.low %v6624_v46, %v6625_v63 }
 0xc25   :  { %v6633_v49 = vcombine.low %v6626_v52, %v6627_v15 }
 0xc26   :  { %6636 = vst [vmem:[%s12257_s13] sm:$0xff] %v6632_v28 }
 0xc27   :  { %6637 = vst [vmem:[%s12257_s13 + $0x8] sm:$0xff] %v6633_v49 }

</bundles_post_ra>
